<compile_context>
chip_gen: v6e
topology: v6e:2x2x1
jax: 0.10.0
libtpu: 0.0.40
codegen_flags: <defaults>
</compile_context>

<pallas_src>
import functools

import jax
import jax.numpy as jnp
from jax.experimental import pallas as pl
from jax.experimental.pallas import tpu as pltpu


# ----------------------------------------------------------------------------
# Kernel 1: fused input_to_rnn_net MLP (Linear -> ReLU -> Linear)
# ----------------------------------------------------------------------------

def _mlp_kernel(x_ref, w1_ref, b1_ref, w2_ref, b2_ref, o_ref):
    h = (
        jnp.dot(x_ref[...], w1_ref[...], preferred_element_type=jnp.float32)
        + b1_ref[...]
    )
    h = jnp.maximum(h, 0.0)
    o_ref[...] = (
        jnp.dot(h, w2_ref[...], preferred_element_type=jnp.float32) + b2_ref[...]
    ).astype(o_ref.dtype)


# ----------------------------------------------------------------------------
# Kernel 2: z0 branch — stacked ReLU-RNN over the time-REVERSED sequence,
#           fused with the two latent heads.
#
# Sequence layout inside the kernel: (T*B, D) rows, row index = t*B + b.
# ----------------------------------------------------------------------------

def _make_rnn_branch_kernel(n_layers, T, B, H):
    def kernel(*refs):
        x_ref = refs[0]
        lw = refs[1:1 + 3 * n_layers]
        wloc_ref, bloc_ref, wlv_ref, blv_ref = refs[1 + 3 * n_layers:5 + 3 * n_layers]
        o_loc_ref, o_lv_ref, seq_scr = refs[5 + 3 * n_layers:8 + 3 * n_layers]

        seq = x_ref[...]                                    # (T*B, Din)
        h = jnp.zeros((B, H), jnp.float32)
        for l in range(n_layers):
            wih = lw[3 * l][...]
            whh = lw[3 * l + 1][...]
            b = lw[3 * l + 2][...]
            last = (l == n_layers - 1)

            # Hoisted input->hidden projection for the whole sequence.
            pre = jnp.dot(seq, wih, preferred_element_type=jnp.float32) + b

            h = jnp.zeros((B, H), jnp.float32)
            for s in range(T):
                # Layer 0 consumes the time-reversed sequence (PyTorch feeds
                # the flipped sequence; deeper layers follow processing order).
                t = (T - 1 - s) if l == 0 else s
                h = jnp.maximum(
                    pre[t * B:(t + 1) * B, :]
                    + jnp.dot(h, whh, preferred_element_type=jnp.float32),
                    0.0,
                )
                if not last:
                    seq_scr[s * B:(s + 1) * B, :] = h       # processing order
            if not last:
                seq = seq_scr[...]

        # h == last layer's hidden state at the final processing step.
        o_loc_ref[...] = (
            jnp.dot(h, wloc_ref[...], preferred_element_type=jnp.float32)
            + bloc_ref[...]
        ).astype(o_loc_ref.dtype)
        o_lv_ref[...] = (
            jnp.dot(h, wlv_ref[...], preferred_element_type=jnp.float32)
            + blv_ref[...]
        ).astype(o_lv_ref.dtype)

    return kernel


# ----------------------------------------------------------------------------
# Kernel 3: params branch — stacked bidirectional LSTM fused with heads.
# ----------------------------------------------------------------------------

def _make_lstm_branch_kernel(n_layers, T, B, H):
    def kernel(*refs):
        x_ref = refs[0]
        n_lw = 6 * n_layers
        lw = refs[1:1 + n_lw]
        wloc_ref, bloc_ref, wlv_ref, blv_ref = refs[1 + n_lw:5 + n_lw]
        o_loc_ref, o_lv_ref, cat_scr = refs[5 + n_lw:9 + n_lw]

        def run_dir(seq, wih_ref, whh4_ref, b_ref, *, reverse, out_scr,
                    col_off, n_steps):
            # Hoisted input->gates projection for the whole sequence.
            pre = (
                jnp.dot(seq, wih_ref[...], preferred_element_type=jnp.float32)
                + b_ref[...]
            )                                               # (T*B, 4H)
            # Split gates ONCE (outside the serial time loop). Gate order i,f,g,o.
            pre_i = pre[:, 0 * H:1 * H]
            pre_f = pre[:, 1 * H:2 * H]
            pre_g = pre[:, 2 * H:3 * H]
            pre_o = pre[:, 3 * H:4 * H]
            whh_i = whh4_ref[0]
            whh_f = whh4_ref[1]
            whh_g = whh4_ref[2]
            whh_o = whh4_ref[3]

            h = jnp.zeros((B, H), jnp.float32)
            c = jnp.zeros((B, H), jnp.float32)
            for s in range(n_steps):
                t = (T - 1 - s) if reverse else s
                r0, r1 = t * B, (t + 1) * B
                i_g = jax.nn.sigmoid(
                    pre_i[r0:r1, :]
                    + jnp.dot(h, whh_i, preferred_element_type=jnp.float32))
                f_g = jax.nn.sigmoid(
                    pre_f[r0:r1, :]
                    + jnp.dot(h, whh_f, preferred_element_type=jnp.float32))
                g_g = jnp.tanh(
                    pre_g[r0:r1, :]
                    + jnp.dot(h, whh_g, preferred_element_type=jnp.float32))
                o_g = jax.nn.sigmoid(
                    pre_o[r0:r1, :]
                    + jnp.dot(h, whh_o, preferred_element_type=jnp.float32))
                c = f_g * c + i_g * g_g
                h = o_g * jnp.tanh(c)
                if out_scr is not None:
                    out_scr[r0:r1, col_off:col_off + H] = h
            return h

        seq = x_ref[...]                                    # (T*B, Din)
        h_f = jnp.zeros((B, H), jnp.float32)
        h_b = jnp.zeros((B, H), jnp.float32)
        for l in range(n_layers):
            last = (l == n_layers - 1)
            wih_f, whh_f4, b_f = lw[6 * l + 0], lw[6 * l + 1], lw[6 * l + 2]
            wih_b, whh_b4, b_b = lw[6 * l + 3], lw[6 * l + 4], lw[6 * l + 5]

            h_f = run_dir(seq, wih_f, whh_f4, b_f, reverse=False,
                          out_scr=None if last else cat_scr, col_off=0,
                          n_steps=T)
            # Last layer: only output[T-1] is consumed, and for the backward
            # direction that is the hidden state after a SINGLE step.
            h_b = run_dir(seq, wih_b, whh_b4, b_b, reverse=True,
                          out_scr=None if last else cat_scr, col_off=H,
                          n_steps=1 if last else T)
            if not last:
                seq = cat_scr[...]                          # (T*B, 2H)

        # Heads on the concatenated last output [h_f(T-1), h_b(T-1)]:
        # [hf, hb] @ W == hf @ W[:H] + hb @ W[H:]  (avoids in-kernel concat).
        o_loc_ref[...] = (
            jnp.dot(h_f, wloc_ref[0:H, :], preferred_element_type=jnp.float32)
            + jnp.dot(h_b, wloc_ref[H:2 * H, :], preferred_element_type=jnp.float32)
            + bloc_ref[...]
        ).astype(o_loc_ref.dtype)
        o_lv_ref[...] = (
            jnp.dot(h_f, wlv_ref[0:H, :], preferred_element_type=jnp.float32)
            + jnp.dot(h_b, wlv_ref[H:2 * H, :], preferred_element_type=jnp.float32)
            + blv_ref[...]
        ).astype(o_lv_ref.dtype)

    return kernel


# ----------------------------------------------------------------------------
# Parameter construction (deterministic, PyTorch-style uniform init)
# ----------------------------------------------------------------------------

def _uniform(key, shape, scale):
    return jax.random.uniform(key, shape, jnp.float32, -scale, scale)


def _init_linear(key, din, dout):
    k1, k2 = jax.random.split(key)
    s = 1.0 / float(din) ** 0.5
    return _uniform(k1, (din, dout), s), _uniform(k2, (1, dout), s)


def init_encoder_params(key, input_dim, latent_dim, rnn_input_dim,
                        rnn_output_dim, rnn_layers):
    keys = iter(jax.random.split(key, 128))
    H = rnn_output_dim
    sH = 1.0 / float(H) ** 0.5
    p = {}
    # input_to_rnn_net
    p["mlp_w1"], p["mlp_b1"] = _init_linear(next(keys), input_dim, 200)
    p["mlp_w2"], p["mlp_b2"] = _init_linear(next(keys), 200, rnn_input_dim)
    # ReLU RNN stack (unidirectional), PyTorch scale 1/sqrt(H), b = b_ih + b_hh
    p["rnn"] = []
    din = rnn_input_dim
    for _ in range(rnn_layers):
        p["rnn"].append({
            "wih": _uniform(next(keys), (din, H), sH),
            "whh": _uniform(next(keys), (H, H), sH),
            "b": _uniform(next(keys), (1, H), sH) + _uniform(next(keys), (1, H), sH),
        })
        din = H
    # Bidirectional LSTM stack; whh stored gate-major (4, H, H), gate order i,f,g,o
    p["lstm"] = []
    din = rnn_input_dim
    for _ in range(rnn_layers):
        layer = {}
        for d in ("fwd", "bwd"):
            layer[d] = {
                "wih": _uniform(next(keys), (din, 4 * H), sH),
                "whh4": _uniform(next(keys), (4, H, H), sH),
                "b": (_uniform(next(keys), (1, 4 * H), sH)
                      + _uniform(next(keys), (1, 4 * H), sH)),
            }
        p["lstm"].append(layer)
        din = 2 * H
    # latent heads
    p["rnn_loc_w"], p["rnn_loc_b"] = _init_linear(next(keys), H, latent_dim)
    p["rnn_lv_w"], p["rnn_lv_b"] = _init_linear(next(keys), H, latent_dim)
    p["lstm_loc_w"], p["lstm_loc_b"] = _init_linear(next(keys), 2 * H, latent_dim)
    p["lstm_lv_w"], p["lstm_lv_b"] = _init_linear(next(keys), 2 * H, latent_dim)
    return p


# ----------------------------------------------------------------------------
# Encoder forward (3 pallas_calls total)
# ----------------------------------------------------------------------------

@functools.partial(jax.jit, static_argnums=(2,))
def encoder_forward(params, mini_batch, rnn_layers):
    B, T, Din = mini_batch.shape
    H = params["rnn"][0]["whh"].shape[0]
    latent = params["rnn_loc_w"].shape[1]
    rnn_in = params["mlp_w2"].shape[1]
    f32 = jnp.float32

    # Single tiny transpose to time-major rows (row index = t*B + b); both
    # downstream kernels consume this layout directly.
    x2d = jnp.transpose(mini_batch, (1, 0, 2)).reshape(T * B, Din)

    # 1) fused MLP over all T*B rows.
    x = pl.pallas_call(
        _mlp_kernel,
        out_shape=jax.ShapeDtypeStruct((T * B, rnn_in), f32),
    )(x2d, params["mlp_w1"], params["mlp_b1"], params["mlp_w2"], params["mlp_b2"])

    # 2) z0 branch: stacked ReLU-RNN over reversed time + heads, one kernel.
    rnn_args = [x]
    for l in range(rnn_layers):
        pr = params["rnn"][l]
        rnn_args += [pr["wih"], pr["whh"], pr["b"]]
    rnn_args += [params["rnn_loc_w"], params["rnn_loc_b"],
                 params["rnn_lv_w"], params["rnn_lv_b"]]
    z0_loc, z0_lv = pl.pallas_call(
        _make_rnn_branch_kernel(rnn_layers, T, B, H),
        out_shape=(jax.ShapeDtypeStruct((B, latent), f32),
                   jax.ShapeDtypeStruct((B, latent), f32)),
        scratch_shapes=[pltpu.VMEM((T * B, H), f32)],
    )(*rnn_args)

    # 3) params branch: stacked bidirectional LSTM + heads, one kernel.
    lstm_args = [x]
    for l in range(rnn_layers):
        for d in ("fwd", "bwd"):
            pd = params["lstm"][l][d]
            lstm_args += [pd["wih"], pd["whh4"], pd["b"]]
    lstm_args += [params["lstm_loc_w"], params["lstm_loc_b"],
                  params["lstm_lv_w"], params["lstm_lv_b"]]
    p_loc, p_lv = pl.pallas_call(
        _make_lstm_branch_kernel(rnn_layers, T, B, H),
        out_shape=(jax.ShapeDtypeStruct((B, latent), f32),
                   jax.ShapeDtypeStruct((B, latent), f32)),
        scratch_shapes=[pltpu.VMEM((T * B, 2 * H), f32)],
    )(*lstm_args)

    return z0_loc, z0_lv, p_loc, p_lv


# ----------------------------------------------------------------------------
# Demo
# ----------------------------------------------------------------------------

if __name__ == "__main__":
    input_dim = 16
    latent_dim = 8
    rnn_input_dim = 32
    rnn_output_dim = 32
    rnn_layers = 2
    B, T = 2, 8

    key = jax.random.PRNGKey(0)
    pkey, xkey = jax.random.split(key)
    params = init_encoder_params(
        pkey, input_dim, latent_dim, rnn_input_dim, rnn_output_dim, rnn_layers
    )
    mini_batch = jax.random.normal(xkey, (B, T, input_dim), jnp.float32)

    outs = encoder_forward(params, mini_batch, rnn_layers)
    outs = jax.block_until_ready(outs)

    assert all(o.shape == (B, latent_dim) for o in outs)
    assert all(bool(jnp.all(jnp.isfinite(o))) for o in outs)
    print("KERNEL_OK")
</pallas_src>

<mosaic_0001>
module attributes {stable_mosaic.version = 11 : i64} {
  func.func @_mlp_kernel(%arg0: memref<16x16xf32, #tpu.memory_space<vmem>>, %arg1: memref<16x200xf32, #tpu.memory_space<vmem>>, %arg2: memref<1x200xf32, #tpu.memory_space<vmem>>, %arg3: memref<200x32xf32, #tpu.memory_space<vmem>>, %arg4: memref<1x32xf32, #tpu.memory_space<vmem>>, %arg5: memref<16x32xf32, #tpu.memory_space<vmem>>) attributes {dimension_semantics = [], scalar_prefetch = 0 : i64, scratch_operands = 0 : i64, tpu.core_type = #tpu.core_type<tc>} {
    %c0 = arith.constant 0 : index
    %c0_0 = arith.constant 0 : index
    %0 = vector.load %arg0[%c0, %c0_0] : memref<16x16xf32, #tpu.memory_space<vmem>>, vector<16x16xf32>
    %c0_1 = arith.constant 0 : index
    %c0_2 = arith.constant 0 : index
    %1 = vector.load %arg1[%c0_1, %c0_2] : memref<16x200xf32, #tpu.memory_space<vmem>>, vector<16x200xf32>
    %cst = arith.constant dense<0.000000e+00> : vector<16x200xf32>
    %2 = tpu.matmul %0, %1, %cst {dimension_numbers = #tpu.dot_dimension_numbers<[1], [0], [0], [1], [0, 0, 1, 1], [], []>} : vector<16x16xf32>, vector<16x200xf32>, vector<16x200xf32> -> vector<16x200xf32>
    %c0_3 = arith.constant 0 : index
    %c0_4 = arith.constant 0 : index
    %3 = vector.load %arg2[%c0_3, %c0_4] : memref<1x200xf32, #tpu.memory_space<vmem>>, vector<1x200xf32>
    %4 = vector.broadcast %3 : vector<1x200xf32> to vector<16x200xf32>
    %5 = arith.addf %2, %4 : vector<16x200xf32>
    %cst_5 = arith.constant 0.000000e+00 : f32
    %6 = vector.broadcast %cst_5 : f32 to vector<16x200xf32>
    %7 = arith.maximumf %5, %6 : vector<16x200xf32>
    %c0_6 = arith.constant 0 : index
    %c0_7 = arith.constant 0 : index
    %8 = vector.load %arg3[%c0_6, %c0_7] : memref<200x32xf32, #tpu.memory_space<vmem>>, vector<200x32xf32>
    %cst_8 = arith.constant dense<0.000000e+00> : vector<16x32xf32>
    %9 = tpu.matmul %7, %8, %cst_8 {dimension_numbers = #tpu.dot_dimension_numbers<[1], [0], [0], [1], [0, 0, 1, 1], [], []>} : vector<16x200xf32>, vector<200x32xf32>, vector<16x32xf32> -> vector<16x32xf32>
    %c0_9 = arith.constant 0 : index
    %c0_10 = arith.constant 0 : index
    %10 = vector.load %arg4[%c0_9, %c0_10] : memref<1x32xf32, #tpu.memory_space<vmem>>, vector<1x32xf32>
    %11 = vector.broadcast %10 : vector<1x32xf32> to vector<16x32xf32>
    %12 = arith.addf %9, %11 : vector<16x32xf32>
    %c0_11 = arith.constant 0 : index
    %c0_12 = arith.constant 0 : index
    %13 = vector.load %arg5[%c0_11, %c0_12] : memref<16x32xf32, #tpu.memory_space<vmem>>, vector<16x32xf32>
    tpu.vector_store %arg5[%c0_11, %c0_12], %12 {strides = array<i32>} : memref<16x32xf32, #tpu.memory_space<vmem>>, vector<16x32xf32>,
    return
  }
}

module attributes {stable_mosaic.version = 11 : i64} {
  func.func @kernel(%arg0: memref<16x32xf32, #tpu.memory_space<vmem>>, %arg1: memref<32x32xf32, #tpu.memory_space<vmem>>, %arg2: memref<32x32xf32, #tpu.memory_space<vmem>>, %arg3: memref<1x32xf32, #tpu.memory_space<vmem>>, %arg4: memref<32x32xf32, #tpu.memory_space<vmem>>, %arg5: memref<32x32xf32, #tpu.memory_space<vmem>>, %arg6: memref<1x32xf32, #tpu.memory_space<vmem>>, %arg7: memref<32x8xf32, #tpu.memory_space<vmem>>, %arg8: memref<1x8xf32, #tpu.memory_space<vmem>>, %arg9: memref<32x8xf32, #tpu.memory_space<vmem>>, %arg10: memref<1x8xf32, #tpu.memory_space<vmem>>, %arg11: memref<2x8xf32, #tpu.memory_space<vmem>>, %arg12: memref<2x8xf32, #tpu.memory_space<vmem>>, %arg13: memref<16x32xf32, #tpu.memory_space<vmem>>) attributes {dimension_semantics = [], scalar_prefetch = 0 : i64, scratch_operands = 1 : i64, tpu.core_type = #tpu.core_type<tc>} {
    %c0 = arith.constant 0 : index
    %c0_0 = arith.constant 0 : index
    %0 = vector.load %arg0[%c0, %c0_0] : memref<16x32xf32, #tpu.memory_space<vmem>>, vector<16x32xf32>
    %c0_1 = arith.constant 0 : index
    %c0_2 = arith.constant 0 : index
    %1 = vector.load %arg1[%c0_1, %c0_2] : memref<32x32xf32, #tpu.memory_space<vmem>>, vector<32x32xf32>
    %c0_3 = arith.constant 0 : index
    %c0_4 = arith.constant 0 : index
    %2 = vector.load %arg2[%c0_3, %c0_4] : memref<32x32xf32, #tpu.memory_space<vmem>>, vector<32x32xf32>
    %c0_5 = arith.constant 0 : index
    %c0_6 = arith.constant 0 : index
    %3 = vector.load %arg3[%c0_5, %c0_6] : memref<1x32xf32, #tpu.memory_space<vmem>>, vector<1x32xf32>
    %cst = arith.constant dense<0.000000e+00> : vector<16x32xf32>
    %4 = tpu.matmul %0, %1, %cst {dimension_numbers = #tpu.dot_dimension_numbers<[1], [0], [0], [1], [0, 0, 1, 1], [], []>} : vector<16x32xf32>, vector<32x32xf32>, vector<16x32xf32> -> vector<16x32xf32>
    %5 = vector.broadcast %3 : vector<1x32xf32> to vector<16x32xf32>
    %6 = arith.addf %4, %5 : vector<16x32xf32>
    %cst_7 = arith.constant 0.000000e+00 : f32
    %7 = vector.broadcast %cst_7 : f32 to vector<2x32xf32>
    %8 = vector.extract_strided_slice %6 {offsets = [14, 0], sizes = [2, 32], strides = [1, 1]} : vector<16x32xf32> to vector<2x32xf32>
    %cst_8 = arith.constant dense<0.000000e+00> : vector<2x32xf32>
    %9 = tpu.matmul %7, %2, %cst_8 {dimension_numbers = #tpu.dot_dimension_numbers<[1], [0], [0], [1], [0, 0, 1, 1], [], []>} : vector<2x32xf32>, vector<32x32xf32>, vector<2x32xf32> -> vector<2x32xf32>
    %10 = arith.addf %8, %9 : vector<2x32xf32>
    %cst_9 = arith.constant 0.000000e+00 : f32
    %11 = vector.broadcast %cst_9 : f32 to vector<2x32xf32>
    %12 = arith.maximumf %10, %11 : vector<2x32xf32>
    %c0_10 = arith.constant 0 : index
    %c0_11 = arith.constant 0 : index
    %13 = vector.load %arg13[%c0_10, %c0_11] : memref<16x32xf32, #tpu.memory_space<vmem>>, vector<2x32xf32>
    tpu.vector_store %arg13[%c0_10, %c0_11], %12 {strides = array<i32>} : memref<16x32xf32, #tpu.memory_space<vmem>>, vector<2x32xf32>,
    %14 = vector.extract_strided_slice %6 {offsets = [12, 0], sizes = [2, 32], strides = [1, 1]} : vector<16x32xf32> to vector<2x32xf32>
    %cst_12 = arith.constant dense<0.000000e+00> : vector<2x32xf32>
    %15 = tpu.matmul %12, %2, %cst_12 {dimension_numbers = #tpu.dot_dimension_numbers<[1], [0], [0], [1], [0, 0, 1, 1], [], []>} : vector<2x32xf32>, vector<32x32xf32>, vector<2x32xf32> -> vector<2x32xf32>
    %16 = arith.addf %14, %15 : vector<2x32xf32>
    %cst_13 = arith.constant 0.000000e+00 : f32
    %17 = vector.broadcast %cst_13 : f32 to vector<2x32xf32>
    %18 = arith.maximumf %16, %17 : vector<2x32xf32>
    %c2 = arith.constant 2 : index
    %c0_14 = arith.constant 0 : index
    %19 = vector.load %arg13[%c2, %c0_14] : memref<16x32xf32, #tpu.memory_space<vmem>>, vector<2x32xf32>
    tpu.vector_store %arg13[%c2, %c0_14], %18 {strides = array<i32>} : memref<16x32xf32, #tpu.memory_space<vmem>>, vector<2x32xf32>,
    %20 = vector.extract_strided_slice %6 {offsets = [10, 0], sizes = [2, 32], strides = [1, 1]} : vector<16x32xf32> to vector<2x32xf32>
    %cst_15 = arith.constant dense<0.000000e+00> : vector<2x32xf32>
    %21 = tpu.matmul %18, %2, %cst_15 {dimension_numbers = #tpu.dot_dimension_numbers<[1], [0], [0], [1], [0, 0, 1, 1], [], []>} : vector<2x32xf32>, vector<32x32xf32>, vector<2x32xf32> -> vector<2x32xf32>
    %22 = arith.addf %20, %21 : vector<2x32xf32>
    %cst_16 = arith.constant 0.000000e+00 : f32
    %23 = vector.broadcast %cst_16 : f32 to vector<2x32xf32>
    %24 = arith.maximumf %22, %23 : vector<2x32xf32>
    %c4 = arith.constant 4 : index
    %c0_17 = arith.constant 0 : index
    %25 = vector.load %arg13[%c4, %c0_17] : memref<16x32xf32, #tpu.memory_space<vmem>>, vector<2x32xf32>
    tpu.vector_store %arg13[%c4, %c0_17], %24 {strides = array<i32>} : memref<16x32xf32, #tpu.memory_space<vmem>>, vector<2x32xf32>,
    %26 = vector.extract_strided_slice %6 {offsets = [8, 0], sizes = [2, 32], strides = [1, 1]} : vector<16x32xf32> to vector<2x32xf32>
    %cst_18 = arith.constant dense<0.000000e+00> : vector<2x32xf32>
    %27 = tpu.matmul %24, %2, %cst_18 {dimension_numbers = #tpu.dot_dimension_numbers<[1], [0], [0], [1], [0, 0, 1, 1], [], []>} : vector<2x32xf32>, vector<32x32xf32>, vector<2x32xf32> -> vector<2x32xf32>
    %28 = arith.addf %26, %27 : vector<2x32xf32>
    %cst_19 = arith.constant 0.000000e+00 : f32
    %29 = vector.broadcast %cst_19 : f32 to vector<2x32xf32>
    %30 = arith.maximumf %28, %29 : vector<2x32xf32>
    %c6 = arith.constant 6 : index
    %c0_20 = arith.constant 0 : index
    %31 = vector.load %arg13[%c6, %c0_20] : memref<16x32xf32, #tpu.memory_space<vmem>>, vector<2x32xf32>
    tpu.vector_store %arg13[%c6, %c0_20], %30 {strides = array<i32>} : memref<16x32xf32, #tpu.memory_space<vmem>>, vector<2x32xf32>,
    %32 = vector.extract_strided_slice %6 {offsets = [6, 0], sizes = [2, 32], strides = [1, 1]} : vector<16x32xf32> to vector<2x32xf32>
    %cst_21 = arith.constant dense<0.000000e+00> : vector<2x32xf32>
    %33 = tpu.matmul %30, %2, %cst_21 {dimension_numbers = #tpu.dot_dimension_numbers<[1], [0], [0], [1], [0, 0, 1, 1], [], []>} : vector<2x32xf32>, vector<32x32xf32>, vector<2x32xf32> -> vector<2x32xf32>
    %34 = arith.addf %32, %33 : vector<2x32xf32>
    %cst_22 = arith.constant 0.000000e+00 : f32
    %35 = vector.broadcast %cst_22 : f32 to vector<2x32xf32>
    %36 = arith.maximumf %34, %35 : vector<2x32xf32>
    %c8 = arith.constant 8 : index
    %c0_23 = arith.constant 0 : index
    %37 = vector.load %arg13[%c8, %c0_23] : memref<16x32xf32, #tpu.memory_space<vmem>>, vector<2x32xf32>
    tpu.vector_store %arg13[%c8, %c0_23], %36 {strides = array<i32>} : memref<16x32xf32, #tpu.memory_space<vmem>>, vector<2x32xf32>,
    %38 = vector.extract_strided_slice %6 {offsets = [4, 0], sizes = [2, 32], strides = [1, 1]} : vector<16x32xf32> to vector<2x32xf32>
    %cst_24 = arith.constant dense<0.000000e+00> : vector<2x32xf32>
    %39 = tpu.matmul %36, %2, %cst_24 {dimension_numbers = #tpu.dot_dimension_numbers<[1], [0], [0], [1], [0, 0, 1, 1], [], []>} : vector<2x32xf32>, vector<32x32xf32>, vector<2x32xf32> -> vector<2x32xf32>
    %40 = arith.addf %38, %39 : vector<2x32xf32>
    %cst_25 = arith.constant 0.000000e+00 : f32
    %41 = vector.broadcast %cst_25 : f32 to vector<2x32xf32>
    %42 = arith.maximumf %40, %41 : vector<2x32xf32>
    %c10 = arith.constant 10 : index
    %c0_26 = arith.constant 0 : index
    %43 = vector.load %arg13[%c10, %c0_26] : memref<16x32xf32, #tpu.memory_space<vmem>>, vector<2x32xf32>
    tpu.vector_store %arg13[%c10, %c0_26], %42 {strides = array<i32>} : memref<16x32xf32, #tpu.memory_space<vmem>>, vector<2x32xf32>,
    %44 = vector.extract_strided_slice %6 {offsets = [2, 0], sizes = [2, 32], strides = [1, 1]} : vector<16x32xf32> to vector<2x32xf32>
    %cst_27 = arith.constant dense<0.000000e+00> : vector<2x32xf32>
    %45 = tpu.matmul %42, %2, %cst_27 {dimension_numbers = #tpu.dot_dimension_numbers<[1], [0], [0], [1], [0, 0, 1, 1], [], []>} : vector<2x32xf32>, vector<32x32xf32>, vector<2x32xf32> -> vector<2x32xf32>
    %46 = arith.addf %44, %45 : vector<2x32xf32>
    %cst_28 = arith.constant 0.000000e+00 : f32
    %47 = vector.broadcast %cst_28 : f32 to vector<2x32xf32>
    %48 = arith.maximumf %46, %47 : vector<2x32xf32>
    %c12 = arith.constant 12 : index
    %c0_29 = arith.constant 0 : index
    %49 = vector.load %arg13[%c12, %c0_29] : memref<16x32xf32, #tpu.memory_space<vmem>>, vector<2x32xf32>
    tpu.vector_store %arg13[%c12, %c0_29], %48 {strides = array<i32>} : memref<16x32xf32, #tpu.memory_space<vmem>>, vector<2x32xf32>,
    %50 = vector.extract_strided_slice %6 {offsets = [0, 0], sizes = [2, 32], strides = [1, 1]} : vector<16x32xf32> to vector<2x32xf32>
    %cst_30 = arith.constant dense<0.000000e+00> : vector<2x32xf32>
    %51 = tpu.matmul %48, %2, %cst_30 {dimension_numbers = #tpu.dot_dimension_numbers<[1], [0], [0], [1], [0, 0, 1, 1], [], []>} : vector<2x32xf32>, vector<32x32xf32>, vector<2x32xf32> -> vector<2x32xf32>
    %52 = arith.addf %50, %51 : vector<2x32xf32>
    %cst_31 = arith.constant 0.000000e+00 : f32
    %53 = vector.broadcast %cst_31 : f32 to vector<2x32xf32>
    %54 = arith.maximumf %52, %53 : vector<2x32xf32>
    %c14 = arith.constant 14 : index
    %c0_32 = arith.constant 0 : index
    %55 = vector.load %arg13[%c14, %c0_32] : memref<16x32xf32, #tpu.memory_space<vmem>>, vector<2x32xf32>
    tpu.vector_store %arg13[%c14, %c0_32], %54 {strides = array<i32>} : memref<16x32xf32, #tpu.memory_space<vmem>>, vector<2x32xf32>,
    %c0_33 = arith.constant 0 : index
    %c0_34 = arith.constant 0 : index
    %56 = vector.load %arg13[%c0_33, %c0_34] : memref<16x32xf32, #tpu.memory_space<vmem>>, vector<16x32xf32>
    %c0_35 = arith.constant 0 : index
    %c0_36 = arith.constant 0 : index
    %57 = vector.load %arg4[%c0_35, %c0_36] : memref<32x32xf32, #tpu.memory_space<vmem>>, vector<32x32xf32>
    %c0_37 = arith.constant 0 : index
    %c0_38 = arith.constant 0 : index
    %58 = vector.load %arg5[%c0_37, %c0_38] : memref<32x32xf32, #tpu.memory_space<vmem>>, vector<32x32xf32>
    %c0_39 = arith.constant 0 : index
    %c0_40 = arith.constant 0 : index
    %59 = vector.load %arg6[%c0_39, %c0_40] : memref<1x32xf32, #tpu.memory_space<vmem>>, vector<1x32xf32>
    %cst_41 = arith.constant dense<0.000000e+00> : vector<16x32xf32>
    %60 = tpu.matmul %56, %57, %cst_41 {dimension_numbers = #tpu.dot_dimension_numbers<[1], [0], [0], [1], [0, 0, 1, 1], [], []>} : vector<16x32xf32>, vector<32x32xf32>, vector<16x32xf32> -> vector<16x32xf32>
    %61 = vector.broadcast %59 : vector<1x32xf32> to vector<16x32xf32>
    %62 = arith.addf %60, %61 : vector<16x32xf32>
    %cst_42 = arith.constant 0.000000e+00 : f32
    %63 = vector.broadcast %cst_42 : f32 to vector<2x32xf32>
    %64 = vector.extract_strided_slice %62 {offsets = [0, 0], sizes = [2, 32], strides = [1, 1]} : vector<16x32xf32> to vector<2x32xf32>
    %cst_43 = arith.constant dense<0.000000e+00> : vector<2x32xf32>
    %65 = tpu.matmul %63, %58, %cst_43 {dimension_numbers = #tpu.dot_dimension_numbers<[1], [0], [0], [1], [0, 0, 1, 1], [], []>} : vector<2x32xf32>, vector<32x32xf32>, vector<2x32xf32> -> vector<2x32xf32>
    %66 = arith.addf %64, %65 : vector<2x32xf32>
    %cst_44 = arith.constant 0.000000e+00 : f32
    %67 = vector.broadcast %cst_44 : f32 to vector<2x32xf32>
    %68 = arith.maximumf %66, %67 : vector<2x32xf32>
    %69 = vector.extract_strided_slice %62 {offsets = [2, 0], sizes = [2, 32], strides = [1, 1]} : vector<16x32xf32> to vector<2x32xf32>
    %cst_45 = arith.constant dense<0.000000e+00> : vector<2x32xf32>
    %70 = tpu.matmul %68, %58, %cst_45 {dimension_numbers = #tpu.dot_dimension_numbers<[1], [0], [0], [1], [0, 0, 1, 1], [], []>} : vector<2x32xf32>, vector<32x32xf32>, vector<2x32xf32> -> vector<2x32xf32>
    %71 = arith.addf %69, %70 : vector<2x32xf32>
    %cst_46 = arith.constant 0.000000e+00 : f32
    %72 = vector.broadcast %cst_46 : f32 to vector<2x32xf32>
    %73 = arith.maximumf %71, %72 : vector<2x32xf32>
    %74 = vector.extract_strided_slice %62 {offsets = [4, 0], sizes = [2, 32], strides = [1, 1]} : vector<16x32xf32> to vector<2x32xf32>
    %cst_47 = arith.constant dense<0.000000e+00> : vector<2x32xf32>
    %75 = tpu.matmul %73, %58, %cst_47 {dimension_numbers = #tpu.dot_dimension_numbers<[1], [0], [0], [1], [0, 0, 1, 1], [], []>} : vector<2x32xf32>, vector<32x32xf32>, vector<2x32xf32> -> vector<2x32xf32>
    %76 = arith.addf %74, %75 : vector<2x32xf32>
    %cst_48 = arith.constant 0.000000e+00 : f32
    %77 = vector.broadcast %cst_48 : f32 to vector<2x32xf32>
    %78 = arith.maximumf %76, %77 : vector<2x32xf32>
    %79 = vector.extract_strided_slice %62 {offsets = [6, 0], sizes = [2, 32], strides = [1, 1]} : vector<16x32xf32> to vector<2x32xf32>
    %cst_49 = arith.constant dense<0.000000e+00> : vector<2x32xf32>
    %80 = tpu.matmul %78, %58, %cst_49 {dimension_numbers = #tpu.dot_dimension_numbers<[1], [0], [0], [1], [0, 0, 1, 1], [], []>} : vector<2x32xf32>, vector<32x32xf32>, vector<2x32xf32> -> vector<2x32xf32>
    %81 = arith.addf %79, %80 : vector<2x32xf32>
    %cst_50 = arith.constant 0.000000e+00 : f32
    %82 = vector.broadcast %cst_50 : f32 to vector<2x32xf32>
    %83 = arith.maximumf %81, %82 : vector<2x32xf32>
    %84 = vector.extract_strided_slice %62 {offsets = [8, 0], sizes = [2, 32], strides = [1, 1]} : vector<16x32xf32> to vector<2x32xf32>
    %cst_51 = arith.constant dense<0.000000e+00> : vector<2x32xf32>
    %85 = tpu.matmul %83, %58, %cst_51 {dimension_numbers = #tpu.dot_dimension_numbers<[1], [0], [0], [1], [0, 0, 1, 1], [], []>} : vector<2x32xf32>, vector<32x32xf32>, vector<2x32xf32> -> vector<2x32xf32>
    %86 = arith.addf %84, %85 : vector<2x32xf32>
    %cst_52 = arith.constant 0.000000e+00 : f32
    %87 = vector.broadcast %cst_52 : f32 to vector<2x32xf32>
    %88 = arith.maximumf %86, %87 : vector<2x32xf32>
    %89 = vector.extract_strided_slice %62 {offsets = [10, 0], sizes = [2, 32], strides = [1, 1]} : vector<16x32xf32> to vector<2x32xf32>
    %cst_53 = arith.constant dense<0.000000e+00> : vector<2x32xf32>
    %90 = tpu.matmul %88, %58, %cst_53 {dimension_numbers = #tpu.dot_dimension_numbers<[1], [0], [0], [1], [0, 0, 1, 1], [], []>} : vector<2x32xf32>, vector<32x32xf32>, vector<2x32xf32> -> vector<2x32xf32>
    %91 = arith.addf %89, %90 : vector<2x32xf32>
    %cst_54 = arith.constant 0.000000e+00 : f32
    %92 = vector.broadcast %cst_54 : f32 to vector<2x32xf32>
    %93 = arith.maximumf %91, %92 : vector<2x32xf32>
    %94 = vector.extract_strided_slice %62 {offsets = [12, 0], sizes = [2, 32], strides = [1, 1]} : vector<16x32xf32> to vector<2x32xf32>
    %cst_55 = arith.constant dense<0.000000e+00> : vector<2x32xf32>
    %95 = tpu.matmul %93, %58, %cst_55 {dimension_numbers = #tpu.dot_dimension_numbers<[1], [0], [0], [1], [0, 0, 1, 1], [], []>} : vector<2x32xf32>, vector<32x32xf32>, vector<2x32xf32> -> vector<2x32xf32>
    %96 = arith.addf %94, %95 : vector<2x32xf32>
    %cst_56 = arith.constant 0.000000e+00 : f32
    %97 = vector.broadcast %cst_56 : f32 to vector<2x32xf32>
    %98 = arith.maximumf %96, %97 : vector<2x32xf32>
    %99 = vector.extract_strided_slice %62 {offsets = [14, 0], sizes = [2, 32], strides = [1, 1]} : vector<16x32xf32> to vector<2x32xf32>
    %cst_57 = arith.constant dense<0.000000e+00> : vector<2x32xf32>
    %100 = tpu.matmul %98, %58, %cst_57 {dimension_numbers = #tpu.dot_dimension_numbers<[1], [0], [0], [1], [0, 0, 1, 1], [], []>} : vector<2x32xf32>, vector<32x32xf32>, vector<2x32xf32> -> vector<2x32xf32>
    %101 = arith.addf %99, %100 : vector<2x32xf32>
    %cst_58 = arith.constant 0.000000e+00 : f32
    %102 = vector.broadcast %cst_58 : f32 to vector<2x32xf32>
    %103 = arith.maximumf %101, %102 : vector<2x32xf32>
    %c0_59 = arith.constant 0 : index
    %c0_60 = arith.constant 0 : index
    %104 = vector.load %arg7[%c0_59, %c0_60] : memref<32x8xf32, #tpu.memory_space<vmem>>, vector<32x8xf32>
    %cst_61 = arith.constant dense<0.000000e+00> : vector<2x8xf32>
    %105 = tpu.matmul %103, %104, %cst_61 {dimension_numbers = #tpu.dot_dimension_numbers<[1], [0], [0], [1], [0, 0, 1, 1], [], []>} : vector<2x32xf32>, vector<32x8xf32>, vector<2x8xf32> -> vector<2x8xf32>
    %c0_62 = arith.constant 0 : index
    %c0_63 = arith.constant 0 : index
    %106 = vector.load %arg8[%c0_62, %c0_63] : memref<1x8xf32, #tpu.memory_space<vmem>>, vector<1x8xf32>
    %107 = vector.broadcast %106 : vector<1x8xf32> to vector<2x8xf32>
    %108 = arith.addf %105, %107 : vector<2x8xf32>
    %c0_64 = arith.constant 0 : index
    %c0_65 = arith.constant 0 : index
    %109 = vector.load %arg11[%c0_64, %c0_65] : memref<2x8xf32, #tpu.memory_space<vmem>>, vector<2x8xf32>
    tpu.vector_store %arg11[%c0_64, %c0_65], %108 {strides = array<i32>} : memref<2x8xf32, #tpu.memory_space<vmem>>, vector<2x8xf32>,
    %c0_66 = arith.constant 0 : index
    %c0_67 = arith.constant 0 : index
    %110 = vector.load %arg9[%c0_66, %c0_67] : memref<32x8xf32, #tpu.memory_space<vmem>>, vector<32x8xf32>
    %cst_68 = arith.constant dense<0.000000e+00> : vector<2x8xf32>
    %111 = tpu.matmul %103, %110, %cst_68 {dimension_numbers = #tpu.dot_dimension_numbers<[1], [0], [0], [1], [0, 0, 1, 1], [], []>} : vector<2x32xf32>, vector<32x8xf32>, vector<2x8xf32> -> vector<2x8xf32>
    %c0_69 = arith.constant 0 : index
    %c0_70 = arith.constant 0 : index
    %112 = vector.load %arg10[%c0_69, %c0_70] : memref<1x8xf32, #tpu.memory_space<vmem>>, vector<1x8xf32>
    %113 = vector.broadcast %112 : vector<1x8xf32> to vector<2x8xf32>
    %114 = arith.addf %111, %113 : vector<2x8xf32>
    %c0_71 = arith.constant 0 : index
    %c0_72 = arith.constant 0 : index
    %115 = vector.load %arg12[%c0_71, %c0_72] : memref<2x8xf32, #tpu.memory_space<vmem>>, vector<2x8xf32>
    tpu.vector_store %arg12[%c0_71, %c0_72], %114 {strides = array<i32>} : memref<2x8xf32, #tpu.memory_space<vmem>>, vector<2x8xf32>,
    return
  }
}

module attributes {stable_mosaic.version = 11 : i64} {
  func.func @kernel(%arg0: memref<16x32xf32, #tpu.memory_space<vmem>>, %arg1: memref<32x128xf32, #tpu.memory_space<vmem>>, %arg2: memref<4x32x32xf32, #tpu.memory_space<vmem>>, %arg3: memref<1x128xf32, #tpu.memory_space<vmem>>, %arg4: memref<32x128xf32, #tpu.memory_space<vmem>>, %arg5: memref<4x32x32xf32, #tpu.memory_space<vmem>>, %arg6: memref<1x128xf32, #tpu.memory_space<vmem>>, %arg7: memref<64x128xf32, #tpu.memory_space<vmem>>, %arg8: memref<4x32x32xf32, #tpu.memory_space<vmem>>, %arg9: memref<1x128xf32, #tpu.memory_space<vmem>>, %arg10: memref<64x128xf32, #tpu.memory_space<vmem>>, %arg11: memref<4x32x32xf32, #tpu.memory_space<vmem>>, %arg12: memref<1x128xf32, #tpu.memory_space<vmem>>, %arg13: memref<64x8xf32, #tpu.memory_space<vmem>>, %arg14: memref<1x8xf32, #tpu.memory_space<vmem>>, %arg15: memref<64x8xf32, #tpu.memory_space<vmem>>, %arg16: memref<1x8xf32, #tpu.memory_space<vmem>>, %arg17: memref<2x8xf32, #tpu.memory_space<vmem>>, %arg18: memref<2x8xf32, #tpu.memory_space<vmem>>, %arg19: memref<16x64xf32, #tpu.memory_space<vmem>>) attributes {dimension_semantics = [], scalar_prefetch = 0 : i64, scratch_operands = 1 : i64, tpu.core_type = #tpu.core_type<tc>} {
    %c0 = arith.constant 0 : index
    %c0_0 = arith.constant 0 : index
    %0 = vector.load %arg0[%c0, %c0_0] : memref<16x32xf32, #tpu.memory_space<vmem>>, vector<16x32xf32>
    %c0_1 = arith.constant 0 : index
    %c0_2 = arith.constant 0 : index
    %1 = vector.load %arg1[%c0_1, %c0_2] : memref<32x128xf32, #tpu.memory_space<vmem>>, vector<32x128xf32>
    %cst = arith.constant dense<0.000000e+00> : vector<16x128xf32>
    %2 = tpu.matmul %0, %1, %cst {dimension_numbers = #tpu.dot_dimension_numbers<[1], [0], [0], [1], [0, 0, 1, 1], [], []>} : vector<16x32xf32>, vector<32x128xf32>, vector<16x128xf32> -> vector<16x128xf32>
    %c0_3 = arith.constant 0 : index
    %c0_4 = arith.constant 0 : index
    %3 = vector.load %arg3[%c0_3, %c0_4] : memref<1x128xf32, #tpu.memory_space<vmem>>, vector<1x128xf32>
    %4 = vector.broadcast %3 : vector<1x128xf32> to vector<16x128xf32>
    %5 = arith.addf %2, %4 : vector<16x128xf32>
    %6 = vector.extract_strided_slice %5 {offsets = [0, 0], sizes = [16, 32], strides = [1, 1]} : vector<16x128xf32> to vector<16x32xf32>
    %7 = vector.extract_strided_slice %5 {offsets = [0, 32], sizes = [16, 32], strides = [1, 1]} : vector<16x128xf32> to vector<16x32xf32>
    %8 = vector.extract_strided_slice %5 {offsets = [0, 64], sizes = [16, 32], strides = [1, 1]} : vector<16x128xf32> to vector<16x32xf32>
    %9 = vector.extract_strided_slice %5 {offsets = [0, 96], sizes = [16, 32], strides = [1, 1]} : vector<16x128xf32> to vector<16x32xf32>
    %c0_5 = arith.constant 0 : index
    %c0_6 = arith.constant 0 : index
    %c0_7 = arith.constant 0 : index
    %10 = vector.load %arg2[%c0_5, %c0_6, %c0_7] : memref<4x32x32xf32, #tpu.memory_space<vmem>>, vector<1x32x32xf32>
    %11 = vector.shape_cast %10 : vector<1x32x32xf32> to vector<32x32xf32>
    %c1 = arith.constant 1 : index
    %c0_8 = arith.constant 0 : index
    %c0_9 = arith.constant 0 : index
    %12 = vector.load %arg2[%c1, %c0_8, %c0_9] : memref<4x32x32xf32, #tpu.memory_space<vmem>>, vector<1x32x32xf32>
    %13 = vector.shape_cast %12 : vector<1x32x32xf32> to vector<32x32xf32>
    %c2 = arith.constant 2 : index
    %c0_10 = arith.constant 0 : index
    %c0_11 = arith.constant 0 : index
    %14 = vector.load %arg2[%c2, %c0_10, %c0_11] : memref<4x32x32xf32, #tpu.memory_space<vmem>>, vector<1x32x32xf32>
    %15 = vector.shape_cast %14 : vector<1x32x32xf32> to vector<32x32xf32>
    %c3 = arith.constant 3 : index
    %c0_12 = arith.constant 0 : index
    %c0_13 = arith.constant 0 : index
    %16 = vector.load %arg2[%c3, %c0_12, %c0_13] : memref<4x32x32xf32, #tpu.memory_space<vmem>>, vector<1x32x32xf32>
    %17 = vector.shape_cast %16 : vector<1x32x32xf32> to vector<32x32xf32>
    %cst_14 = arith.constant 0.000000e+00 : f32
    %18 = vector.broadcast %cst_14 : f32 to vector<2x32xf32>
    %cst_15 = arith.constant 0.000000e+00 : f32
    %19 = vector.broadcast %cst_15 : f32 to vector<2x32xf32>
    %20 = vector.extract_strided_slice %6 {offsets = [0, 0], sizes = [2, 32], strides = [1, 1]} : vector<16x32xf32> to vector<2x32xf32>
    %cst_16 = arith.constant dense<0.000000e+00> : vector<2x32xf32>
    %21 = tpu.matmul %18, %11, %cst_16 {dimension_numbers = #tpu.dot_dimension_numbers<[1], [0], [0], [1], [0, 0, 1, 1], [], []>} : vector<2x32xf32>, vector<32x32xf32>, vector<2x32xf32> -> vector<2x32xf32>
    %22 = arith.addf %20, %21 : vector<2x32xf32>
    %23 = arith.negf %22 : vector<2x32xf32>
    %24 = math.exp %23 : vector<2x32xf32>
    %cst_17 = arith.constant 1.000000e+00 : f32
    %25 = vector.broadcast %cst_17 : f32 to vector<2x32xf32>
    %26 = arith.addf %25, %24 : vector<2x32xf32>
    %27 = arith.divf %25, %26 : vector<2x32xf32>
    %28 = vector.extract_strided_slice %7 {offsets = [0, 0], sizes = [2, 32], strides = [1, 1]} : vector<16x32xf32> to vector<2x32xf32>
    %cst_18 = arith.constant dense<0.000000e+00> : vector<2x32xf32>
    %29 = tpu.matmul %18, %13, %cst_18 {dimension_numbers = #tpu.dot_dimension_numbers<[1], [0], [0], [1], [0, 0, 1, 1], [], []>} : vector<2x32xf32>, vector<32x32xf32>, vector<2x32xf32> -> vector<2x32xf32>
    %30 = arith.addf %28, %29 : vector<2x32xf32>
    %31 = arith.negf %30 : vector<2x32xf32>
    %32 = math.exp %31 : vector<2x32xf32>
    %cst_19 = arith.constant 1.000000e+00 : f32
    %33 = vector.broadcast %cst_19 : f32 to vector<2x32xf32>
    %34 = arith.addf %33, %32 : vector<2x32xf32>
    %35 = arith.divf %33, %34 : vector<2x32xf32>
    %36 = vector.extract_strided_slice %8 {offsets = [0, 0], sizes = [2, 32], strides = [1, 1]} : vector<16x32xf32> to vector<2x32xf32>
    %cst_20 = arith.constant dense<0.000000e+00> : vector<2x32xf32>
    %37 = tpu.matmul %18, %15, %cst_20 {dimension_numbers = #tpu.dot_dimension_numbers<[1], [0], [0], [1], [0, 0, 1, 1], [], []>} : vector<2x32xf32>, vector<32x32xf32>, vector<2x32xf32> -> vector<2x32xf32>
    %38 = arith.addf %36, %37 : vector<2x32xf32>
    %39 = math.tanh %38 : vector<2x32xf32>
    %40 = vector.extract_strided_slice %9 {offsets = [0, 0], sizes = [2, 32], strides = [1, 1]} : vector<16x32xf32> to vector<2x32xf32>
    %cst_21 = arith.constant dense<0.000000e+00> : vector<2x32xf32>
    %41 = tpu.matmul %18, %17, %cst_21 {dimension_numbers = #tpu.dot_dimension_numbers<[1], [0], [0], [1], [0, 0, 1, 1], [], []>} : vector<2x32xf32>, vector<32x32xf32>, vector<2x32xf32> -> vector<2x32xf32>
    %42 = arith.addf %40, %41 : vector<2x32xf32>
    %43 = arith.negf %42 : vector<2x32xf32>
    %44 = math.exp %43 : vector<2x32xf32>
    %cst_22 = arith.constant 1.000000e+00 : f32
    %45 = vector.broadcast %cst_22 : f32 to vector<2x32xf32>
    %46 = arith.addf %45, %44 : vector<2x32xf32>
    %47 = arith.divf %45, %46 : vector<2x32xf32>
    %48 = arith.mulf %35, %19 : vector<2x32xf32>
    %49 = arith.mulf %27, %39 : vector<2x32xf32>
    %50 = arith.addf %48, %49 : vector<2x32xf32>
    %51 = math.tanh %50 : vector<2x32xf32>
    %52 = arith.mulf %47, %51 : vector<2x32xf32>
    %c0_23 = arith.constant 0 : index
    %c0_24 = arith.constant 0 : index
    %53 = vector.load %arg19[%c0_23, %c0_24] : memref<16x64xf32, #tpu.memory_space<vmem>>, vector<2x32xf32>
    tpu.vector_store %arg19[%c0_23, %c0_24], %52 {strides = array<i32>} : memref<16x64xf32, #tpu.memory_space<vmem>>, vector<2x32xf32>,
    %54 = vector.extract_strided_slice %6 {offsets = [2, 0], sizes = [2, 32], strides = [1, 1]} : vector<16x32xf32> to vector<2x32xf32>
    %cst_25 = arith.constant dense<0.000000e+00> : vector<2x32xf32>
    %55 = tpu.matmul %52, %11, %cst_25 {dimension_numbers = #tpu.dot_dimension_numbers<[1], [0], [0], [1], [0, 0, 1, 1], [], []>} : vector<2x32xf32>, vector<32x32xf32>, vector<2x32xf32> -> vector<2x32xf32>
    %56 = arith.addf %54, %55 : vector<2x32xf32>
    %57 = arith.negf %56 : vector<2x32xf32>
    %58 = math.exp %57 : vector<2x32xf32>
    %cst_26 = arith.constant 1.000000e+00 : f32
    %59 = vector.broadcast %cst_26 : f32 to vector<2x32xf32>
    %60 = arith.addf %59, %58 : vector<2x32xf32>
    %61 = arith.divf %59, %60 : vector<2x32xf32>
    %62 = vector.extract_strided_slice %7 {offsets = [2, 0], sizes = [2, 32], strides = [1, 1]} : vector<16x32xf32> to vector<2x32xf32>
    %cst_27 = arith.constant dense<0.000000e+00> : vector<2x32xf32>
    %63 = tpu.matmul %52, %13, %cst_27 {dimension_numbers = #tpu.dot_dimension_numbers<[1], [0], [0], [1], [0, 0, 1, 1], [], []>} : vector<2x32xf32>, vector<32x32xf32>, vector<2x32xf32> -> vector<2x32xf32>
    %64 = arith.addf %62, %63 : vector<2x32xf32>
    %65 = arith.negf %64 : vector<2x32xf32>
    %66 = math.exp %65 : vector<2x32xf32>
    %cst_28 = arith.constant 1.000000e+00 : f32
    %67 = vector.broadcast %cst_28 : f32 to vector<2x32xf32>
    %68 = arith.addf %67, %66 : vector<2x32xf32>
    %69 = arith.divf %67, %68 : vector<2x32xf32>
    %70 = vector.extract_strided_slice %8 {offsets = [2, 0], sizes = [2, 32], strides = [1, 1]} : vector<16x32xf32> to vector<2x32xf32>
    %cst_29 = arith.constant dense<0.000000e+00> : vector<2x32xf32>
    %71 = tpu.matmul %52, %15, %cst_29 {dimension_numbers = #tpu.dot_dimension_numbers<[1], [0], [0], [1], [0, 0, 1, 1], [], []>} : vector<2x32xf32>, vector<32x32xf32>, vector<2x32xf32> -> vector<2x32xf32>
    %72 = arith.addf %70, %71 : vector<2x32xf32>
    %73 = math.tanh %72 : vector<2x32xf32>
    %74 = vector.extract_strided_slice %9 {offsets = [2, 0], sizes = [2, 32], strides = [1, 1]} : vector<16x32xf32> to vector<2x32xf32>
    %cst_30 = arith.constant dense<0.000000e+00> : vector<2x32xf32>
    %75 = tpu.matmul %52, %17, %cst_30 {dimension_numbers = #tpu.dot_dimension_numbers<[1], [0], [0], [1], [0, 0, 1, 1], [], []>} : vector<2x32xf32>, vector<32x32xf32>, vector<2x32xf32> -> vector<2x32xf32>
    %76 = arith.addf %74, %75 : vector<2x32xf32>
    %77 = arith.negf %76 : vector<2x32xf32>
    %78 = math.exp %77 : vector<2x32xf32>
    %cst_31 = arith.constant 1.000000e+00 : f32
    %79 = vector.broadcast %cst_31 : f32 to vector<2x32xf32>
    %80 = arith.addf %79, %78 : vector<2x32xf32>
    %81 = arith.divf %79, %80 : vector<2x32xf32>
    %82 = arith.mulf %69, %50 : vector<2x32xf32>
    %83 = arith.mulf %61, %73 : vector<2x32xf32>
    %84 = arith.addf %82, %83 : vector<2x32xf32>
    %85 = math.tanh %84 : vector<2x32xf32>
    %86 = arith.mulf %81, %85 : vector<2x32xf32>
    %c2_32 = arith.constant 2 : index
    %c0_33 = arith.constant 0 : index
    %87 = vector.load %arg19[%c2_32, %c0_33] : memref<16x64xf32, #tpu.memory_space<vmem>>, vector<2x32xf32>
    tpu.vector_store %arg19[%c2_32, %c0_33], %86 {strides = array<i32>} : memref<16x64xf32, #tpu.memory_space<vmem>>, vector<2x32xf32>,
    %88 = vector.extract_strided_slice %6 {offsets = [4, 0], sizes = [2, 32], strides = [1, 1]} : vector<16x32xf32> to vector<2x32xf32>
    %cst_34 = arith.constant dense<0.000000e+00> : vector<2x32xf32>
    %89 = tpu.matmul %86, %11, %cst_34 {dimension_numbers = #tpu.dot_dimension_numbers<[1], [0], [0], [1], [0, 0, 1, 1], [], []>} : vector<2x32xf32>, vector<32x32xf32>, vector<2x32xf32> -> vector<2x32xf32>
    %90 = arith.addf %88, %89 : vector<2x32xf32>
    %91 = arith.negf %90 : vector<2x32xf32>
    %92 = math.exp %91 : vector<2x32xf32>
    %cst_35 = arith.constant 1.000000e+00 : f32
    %93 = vector.broadcast %cst_35 : f32 to vector<2x32xf32>
    %94 = arith.addf %93, %92 : vector<2x32xf32>
    %95 = arith.divf %93, %94 : vector<2x32xf32>
    %96 = vector.extract_strided_slice %7 {offsets = [4, 0], sizes = [2, 32], strides = [1, 1]} : vector<16x32xf32> to vector<2x32xf32>
    %cst_36 = arith.constant dense<0.000000e+00> : vector<2x32xf32>
    %97 = tpu.matmul %86, %13, %cst_36 {dimension_numbers = #tpu.dot_dimension_numbers<[1], [0], [0], [1], [0, 0, 1, 1], [], []>} : vector<2x32xf32>, vector<32x32xf32>, vector<2x32xf32> -> vector<2x32xf32>
    %98 = arith.addf %96, %97 : vector<2x32xf32>
    %99 = arith.negf %98 : vector<2x32xf32>
    %100 = math.exp %99 : vector<2x32xf32>
    %cst_37 = arith.constant 1.000000e+00 : f32
    %101 = vector.broadcast %cst_37 : f32 to vector<2x32xf32>
    %102 = arith.addf %101, %100 : vector<2x32xf32>
    %103 = arith.divf %101, %102 : vector<2x32xf32>
    %104 = vector.extract_strided_slice %8 {offsets = [4, 0], sizes = [2, 32], strides = [1, 1]} : vector<16x32xf32> to vector<2x32xf32>
    %cst_38 = arith.constant dense<0.000000e+00> : vector<2x32xf32>
    %105 = tpu.matmul %86, %15, %cst_38 {dimension_numbers = #tpu.dot_dimension_numbers<[1], [0], [0], [1], [0, 0, 1, 1], [], []>} : vector<2x32xf32>, vector<32x32xf32>, vector<2x32xf32> -> vector<2x32xf32>
    %106 = arith.addf %104, %105 : vector<2x32xf32>
    %107 = math.tanh %106 : vector<2x32xf32>
    %108 = vector.extract_strided_slice %9 {offsets = [4, 0], sizes = [2, 32], strides = [1, 1]} : vector<16x32xf32> to vector<2x32xf32>
    %cst_39 = arith.constant dense<0.000000e+00> : vector<2x32xf32>
    %109 = tpu.matmul %86, %17, %cst_39 {dimension_numbers = #tpu.dot_dimension_numbers<[1], [0], [0], [1], [0, 0, 1, 1], [], []>} : vector<2x32xf32>, vector<32x32xf32>, vector<2x32xf32> -> vector<2x32xf32>
    %110 = arith.addf %108, %109 : vector<2x32xf32>
    %111 = arith.negf %110 : vector<2x32xf32>
    %112 = math.exp %111 : vector<2x32xf32>
    %cst_40 = arith.constant 1.000000e+00 : f32
    %113 = vector.broadcast %cst_40 : f32 to vector<2x32xf32>
    %114 = arith.addf %113, %112 : vector<2x32xf32>
    %115 = arith.divf %113, %114 : vector<2x32xf32>
    %116 = arith.mulf %103, %84 : vector<2x32xf32>
    %117 = arith.mulf %95, %107 : vector<2x32xf32>
    %118 = arith.addf %116, %117 : vector<2x32xf32>
    %119 = math.tanh %118 : vector<2x32xf32>
    %120 = arith.mulf %115, %119 : vector<2x32xf32>
    %c4 = arith.constant 4 : index
    %c0_41 = arith.constant 0 : index
    %121 = vector.load %arg19[%c4, %c0_41] : memref<16x64xf32, #tpu.memory_space<vmem>>, vector<2x32xf32>
    tpu.vector_store %arg19[%c4, %c0_41], %120 {strides = array<i32>} : memref<16x64xf32, #tpu.memory_space<vmem>>, vector<2x32xf32>,
    %122 = vector.extract_strided_slice %6 {offsets = [6, 0], sizes = [2, 32], strides = [1, 1]} : vector<16x32xf32> to vector<2x32xf32>
    %cst_42 = arith.constant dense<0.000000e+00> : vector<2x32xf32>
    %123 = tpu.matmul %120, %11, %cst_42 {dimension_numbers = #tpu.dot_dimension_numbers<[1], [0], [0], [1], [0, 0, 1, 1], [], []>} : vector<2x32xf32>, vector<32x32xf32>, vector<2x32xf32> -> vector<2x32xf32>
    %124 = arith.addf %122, %123 : vector<2x32xf32>
    %125 = arith.negf %124 : vector<2x32xf32>
    %126 = math.exp %125 : vector<2x32xf32>
    %cst_43 = arith.constant 1.000000e+00 : f32
    %127 = vector.broadcast %cst_43 : f32 to vector<2x32xf32>
    %128 = arith.addf %127, %126 : vector<2x32xf32>
    %129 = arith.divf %127, %128 : vector<2x32xf32>
    %130 = vector.extract_strided_slice %7 {offsets = [6, 0], sizes = [2, 32], strides = [1, 1]} : vector<16x32xf32> to vector<2x32xf32>
    %cst_44 = arith.constant dense<0.000000e+00> : vector<2x32xf32>
    %131 = tpu.matmul %120, %13, %cst_44 {dimension_numbers = #tpu.dot_dimension_numbers<[1], [0], [0], [1], [0, 0, 1, 1], [], []>} : vector<2x32xf32>, vector<32x32xf32>, vector<2x32xf32> -> vector<2x32xf32>
    %132 = arith.addf %130, %131 : vector<2x32xf32>
    %133 = arith.negf %132 : vector<2x32xf32>
    %134 = math.exp %133 : vector<2x32xf32>
    %cst_45 = arith.constant 1.000000e+00 : f32
    %135 = vector.broadcast %cst_45 : f32 to vector<2x32xf32>
    %136 = arith.addf %135, %134 : vector<2x32xf32>
    %137 = arith.divf %135, %136 : vector<2x32xf32>
    %138 = vector.extract_strided_slice %8 {offsets = [6, 0], sizes = [2, 32], strides = [1, 1]} : vector<16x32xf32> to vector<2x32xf32>
    %cst_46 = arith.constant dense<0.000000e+00> : vector<2x32xf32>
    %139 = tpu.matmul %120, %15, %cst_46 {dimension_numbers = #tpu.dot_dimension_numbers<[1], [0], [0], [1], [0, 0, 1, 1], [], []>} : vector<2x32xf32>, vector<32x32xf32>, vector<2x32xf32> -> vector<2x32xf32>
    %140 = arith.addf %138, %139 : vector<2x32xf32>
    %141 = math.tanh %140 : vector<2x32xf32>
    %142 = vector.extract_strided_slice %9 {offsets = [6, 0], sizes = [2, 32], strides = [1, 1]} : vector<16x32xf32> to vector<2x32xf32>
    %cst_47 = arith.constant dense<0.000000e+00> : vector<2x32xf32>
    %143 = tpu.matmul %120, %17, %cst_47 {dimension_numbers = #tpu.dot_dimension_numbers<[1], [0], [0], [1], [0, 0, 1, 1], [], []>} : vector<2x32xf32>, vector<32x32xf32>, vector<2x32xf32> -> vector<2x32xf32>
    %144 = arith.addf %142, %143 : vector<2x32xf32>
    %145 = arith.negf %144 : vector<2x32xf32>
    %146 = math.exp %145 : vector<2x32xf32>
    %cst_48 = arith.constant 1.000000e+00 : f32
    %147 = vector.broadcast %cst_48 : f32 to vector<2x32xf32>
    %148 = arith.addf %147, %146 : vector<2x32xf32>
    %149 = arith.divf %147, %148 : vector<2x32xf32>
    %150 = arith.mulf %137, %118 : vector<2x32xf32>
    %151 = arith.mulf %129, %141 : vector<2x32xf32>
    %152 = arith.addf %150, %151 : vector<2x32xf32>
    %153 = math.tanh %152 : vector<2x32xf32>
    %154 = arith.mulf %149, %153 : vector<2x32xf32>
    %c6 = arith.constant 6 : index
    %c0_49 = arith.constant 0 : index
    %155 = vector.load %arg19[%c6, %c0_49] : memref<16x64xf32, #tpu.memory_space<vmem>>, vector<2x32xf32>
    tpu.vector_store %arg19[%c6, %c0_49], %154 {strides = array<i32>} : memref<16x64xf32, #tpu.memory_space<vmem>>, vector<2x32xf32>,
    %156 = vector.extract_strided_slice %6 {offsets = [8, 0], sizes = [2, 32], strides = [1, 1]} : vector<16x32xf32> to vector<2x32xf32>
    %cst_50 = arith.constant dense<0.000000e+00> : vector<2x32xf32>
    %157 = tpu.matmul %154, %11, %cst_50 {dimension_numbers = #tpu.dot_dimension_numbers<[1], [0], [0], [1], [0, 0, 1, 1], [], []>} : vector<2x32xf32>, vector<32x32xf32>, vector<2x32xf32> -> vector<2x32xf32>
    %158 = arith.addf %156, %157 : vector<2x32xf32>
    %159 = arith.negf %158 : vector<2x32xf32>
    %160 = math.exp %159 : vector<2x32xf32>
    %cst_51 = arith.constant 1.000000e+00 : f32
    %161 = vector.broadcast %cst_51 : f32 to vector<2x32xf32>
    %162 = arith.addf %161, %160 : vector<2x32xf32>
    %163 = arith.divf %161, %162 : vector<2x32xf32>
    %164 = vector.extract_strided_slice %7 {offsets = [8, 0], sizes = [2, 32], strides = [1, 1]} : vector<16x32xf32> to vector<2x32xf32>
    %cst_52 = arith.constant dense<0.000000e+00> : vector<2x32xf32>
    %165 = tpu.matmul %154, %13, %cst_52 {dimension_numbers = #tpu.dot_dimension_numbers<[1], [0], [0], [1], [0, 0, 1, 1], [], []>} : vector<2x32xf32>, vector<32x32xf32>, vector<2x32xf32> -> vector<2x32xf32>
    %166 = arith.addf %164, %165 : vector<2x32xf32>
    %167 = arith.negf %166 : vector<2x32xf32>
    %168 = math.exp %167 : vector<2x32xf32>
    %cst_53 = arith.constant 1.000000e+00 : f32
    %169 = vector.broadcast %cst_53 : f32 to vector<2x32xf32>
    %170 = arith.addf %169, %168 : vector<2x32xf32>
    %171 = arith.divf %169, %170 : vector<2x32xf32>
    %172 = vector.extract_strided_slice %8 {offsets = [8, 0], sizes = [2, 32], strides = [1, 1]} : vector<16x32xf32> to vector<2x32xf32>
    %cst_54 = arith.constant dense<0.000000e+00> : vector<2x32xf32>
    %173 = tpu.matmul %154, %15, %cst_54 {dimension_numbers = #tpu.dot_dimension_numbers<[1], [0], [0], [1], [0, 0, 1, 1], [], []>} : vector<2x32xf32>, vector<32x32xf32>, vector<2x32xf32> -> vector<2x32xf32>
    %174 = arith.addf %172, %173 : vector<2x32xf32>
    %175 = math.tanh %174 : vector<2x32xf32>
    %176 = vector.extract_strided_slice %9 {offsets = [8, 0], sizes = [2, 32], strides = [1, 1]} : vector<16x32xf32> to vector<2x32xf32>
    %cst_55 = arith.constant dense<0.000000e+00> : vector<2x32xf32>
    %177 = tpu.matmul %154, %17, %cst_55 {dimension_numbers = #tpu.dot_dimension_numbers<[1], [0], [0], [1], [0, 0, 1, 1], [], []>} : vector<2x32xf32>, vector<32x32xf32>, vector<2x32xf32> -> vector<2x32xf32>
    %178 = arith.addf %176, %177 : vector<2x32xf32>
    %179 = arith.negf %178 : vector<2x32xf32>
    %180 = math.exp %179 : vector<2x32xf32>
    %cst_56 = arith.constant 1.000000e+00 : f32
    %181 = vector.broadcast %cst_56 : f32 to vector<2x32xf32>
    %182 = arith.addf %181, %180 : vector<2x32xf32>
    %183 = arith.divf %181, %182 : vector<2x32xf32>
    %184 = arith.mulf %171, %152 : vector<2x32xf32>
    %185 = arith.mulf %163, %175 : vector<2x32xf32>
    %186 = arith.addf %184, %185 : vector<2x32xf32>
    %187 = math.tanh %186 : vector<2x32xf32>
    %188 = arith.mulf %183, %187 : vector<2x32xf32>
    %c8 = arith.constant 8 : index
    %c0_57 = arith.constant 0 : index
    %189 = vector.load %arg19[%c8, %c0_57] : memref<16x64xf32, #tpu.memory_space<vmem>>, vector<2x32xf32>
    tpu.vector_store %arg19[%c8, %c0_57], %188 {strides = array<i32>} : memref<16x64xf32, #tpu.memory_space<vmem>>, vector<2x32xf32>,
    %190 = vector.extract_strided_slice %6 {offsets = [10, 0], sizes = [2, 32], strides = [1, 1]} : vector<16x32xf32> to vector<2x32xf32>
    %cst_58 = arith.constant dense<0.000000e+00> : vector<2x32xf32>
    %191 = tpu.matmul %188, %11, %cst_58 {dimension_numbers = #tpu.dot_dimension_numbers<[1], [0], [0], [1], [0, 0, 1, 1], [], []>} : vector<2x32xf32>, vector<32x32xf32>, vector<2x32xf32> -> vector<2x32xf32>
    %192 = arith.addf %190, %191 : vector<2x32xf32>
    %193 = arith.negf %192 : vector<2x32xf32>
    %194 = math.exp %193 : vector<2x32xf32>
    %cst_59 = arith.constant 1.000000e+00 : f32
    %195 = vector.broadcast %cst_59 : f32 to vector<2x32xf32>
    %196 = arith.addf %195, %194 : vector<2x32xf32>
    %197 = arith.divf %195, %196 : vector<2x32xf32>
    %198 = vector.extract_strided_slice %7 {offsets = [10, 0], sizes = [2, 32], strides = [1, 1]} : vector<16x32xf32> to vector<2x32xf32>
    %cst_60 = arith.constant dense<0.000000e+00> : vector<2x32xf32>
    %199 = tpu.matmul %188, %13, %cst_60 {dimension_numbers = #tpu.dot_dimension_numbers<[1], [0], [0], [1], [0, 0, 1, 1], [], []>} : vector<2x32xf32>, vector<32x32xf32>, vector<2x32xf32> -> vector<2x32xf32>
    %200 = arith.addf %198, %199 : vector<2x32xf32>
    %201 = arith.negf %200 : vector<2x32xf32>
    %202 = math.exp %201 : vector<2x32xf32>
    %cst_61 = arith.constant 1.000000e+00 : f32
    %203 = vector.broadcast %cst_61 : f32 to vector<2x32xf32>
    %204 = arith.addf %203, %202 : vector<2x32xf32>
    %205 = arith.divf %203, %204 : vector<2x32xf32>
    %206 = vector.extract_strided_slice %8 {offsets = [10, 0], sizes = [2, 32], strides = [1, 1]} : vector<16x32xf32> to vector<2x32xf32>
    %cst_62 = arith.constant dense<0.000000e+00> : vector<2x32xf32>
    %207 = tpu.matmul %188, %15, %cst_62 {dimension_numbers = #tpu.dot_dimension_numbers<[1], [0], [0], [1], [0, 0, 1, 1], [], []>} : vector<2x32xf32>, vector<32x32xf32>, vector<2x32xf32> -> vector<2x32xf32>
    %208 = arith.addf %206, %207 : vector<2x32xf32>
    %209 = math.tanh %208 : vector<2x32xf32>
    %210 = vector.extract_strided_slice %9 {offsets = [10, 0], sizes = [2, 32], strides = [1, 1]} : vector<16x32xf32> to vector<2x32xf32>
    %cst_63 = arith.constant dense<0.000000e+00> : vector<2x32xf32>
    %211 = tpu.matmul %188, %17, %cst_63 {dimension_numbers = #tpu.dot_dimension_numbers<[1], [0], [0], [1], [0, 0, 1, 1], [], []>} : vector<2x32xf32>, vector<32x32xf32>, vector<2x32xf32> -> vector<2x32xf32>
    %212 = arith.addf %210, %211 : vector<2x32xf32>
    %213 = arith.negf %212 : vector<2x32xf32>
    %214 = math.exp %213 : vector<2x32xf32>
    %cst_64 = arith.constant 1.000000e+00 : f32
    %215 = vector.broadcast %cst_64 : f32 to vector<2x32xf32>
    %216 = arith.addf %215, %214 : vector<2x32xf32>
    %217 = arith.divf %215, %216 : vector<2x32xf32>
    %218 = arith.mulf %205, %186 : vector<2x32xf32>
    %219 = arith.mulf %197, %209 : vector<2x32xf32>
    %220 = arith.addf %218, %219 : vector<2x32xf32>
    %221 = math.tanh %220 : vector<2x32xf32>
    %222 = arith.mulf %217, %221 : vector<2x32xf32>
    %c10 = arith.constant 10 : index
    %c0_65 = arith.constant 0 : index
    %223 = vector.load %arg19[%c10, %c0_65] : memref<16x64xf32, #tpu.memory_space<vmem>>, vector<2x32xf32>
    tpu.vector_store %arg19[%c10, %c0_65], %222 {strides = array<i32>} : memref<16x64xf32, #tpu.memory_space<vmem>>, vector<2x32xf32>,
    %224 = vector.extract_strided_slice %6 {offsets = [12, 0], sizes = [2, 32], strides = [1, 1]} : vector<16x32xf32> to vector<2x32xf32>
    %cst_66 = arith.constant dense<0.000000e+00> : vector<2x32xf32>
    %225 = tpu.matmul %222, %11, %cst_66 {dimension_numbers = #tpu.dot_dimension_numbers<[1], [0], [0], [1], [0, 0, 1, 1], [], []>} : vector<2x32xf32>, vector<32x32xf32>, vector<2x32xf32> -> vector<2x32xf32>
    %226 = arith.addf %224, %225 : vector<2x32xf32>
    %227 = arith.negf %226 : vector<2x32xf32>
    %228 = math.exp %227 : vector<2x32xf32>
    %cst_67 = arith.constant 1.000000e+00 : f32
    %229 = vector.broadcast %cst_67 : f32 to vector<2x32xf32>
    %230 = arith.addf %229, %228 : vector<2x32xf32>
    %231 = arith.divf %229, %230 : vector<2x32xf32>
    %232 = vector.extract_strided_slice %7 {offsets = [12, 0], sizes = [2, 32], strides = [1, 1]} : vector<16x32xf32> to vector<2x32xf32>
    %cst_68 = arith.constant dense<0.000000e+00> : vector<2x32xf32>
    %233 = tpu.matmul %222, %13, %cst_68 {dimension_numbers = #tpu.dot_dimension_numbers<[1], [0], [0], [1], [0, 0, 1, 1], [], []>} : vector<2x32xf32>, vector<32x32xf32>, vector<2x32xf32> -> vector<2x32xf32>
    %234 = arith.addf %232, %233 : vector<2x32xf32>
    %235 = arith.negf %234 : vector<2x32xf32>
    %236 = math.exp %235 : vector<2x32xf32>
    %cst_69 = arith.constant 1.000000e+00 : f32
    %237 = vector.broadcast %cst_69 : f32 to vector<2x32xf32>
    %238 = arith.addf %237, %236 : vector<2x32xf32>
    %239 = arith.divf %237, %238 : vector<2x32xf32>
    %240 = vector.extract_strided_slice %8 {offsets = [12, 0], sizes = [2, 32], strides = [1, 1]} : vector<16x32xf32> to vector<2x32xf32>
    %cst_70 = arith.constant dense<0.000000e+00> : vector<2x32xf32>
    %241 = tpu.matmul %222, %15, %cst_70 {dimension_numbers = #tpu.dot_dimension_numbers<[1], [0], [0], [1], [0, 0, 1, 1], [], []>} : vector<2x32xf32>, vector<32x32xf32>, vector<2x32xf32> -> vector<2x32xf32>
    %242 = arith.addf %240, %241 : vector<2x32xf32>
    %243 = math.tanh %242 : vector<2x32xf32>
    %244 = vector.extract_strided_slice %9 {offsets = [12, 0], sizes = [2, 32], strides = [1, 1]} : vector<16x32xf32> to vector<2x32xf32>
    %cst_71 = arith.constant dense<0.000000e+00> : vector<2x32xf32>
    %245 = tpu.matmul %222, %17, %cst_71 {dimension_numbers = #tpu.dot_dimension_numbers<[1], [0], [0], [1], [0, 0, 1, 1], [], []>} : vector<2x32xf32>, vector<32x32xf32>, vector<2x32xf32> -> vector<2x32xf32>
    %246 = arith.addf %244, %245 : vector<2x32xf32>
    %247 = arith.negf %246 : vector<2x32xf32>
    %248 = math.exp %247 : vector<2x32xf32>
    %cst_72 = arith.constant 1.000000e+00 : f32
    %249 = vector.broadcast %cst_72 : f32 to vector<2x32xf32>
    %250 = arith.addf %249, %248 : vector<2x32xf32>
    %251 = arith.divf %249, %250 : vector<2x32xf32>
    %252 = arith.mulf %239, %220 : vector<2x32xf32>
    %253 = arith.mulf %231, %243 : vector<2x32xf32>
    %254 = arith.addf %252, %253 : vector<2x32xf32>
    %255 = math.tanh %254 : vector<2x32xf32>
    %256 = arith.mulf %251, %255 : vector<2x32xf32>
    %c12 = arith.constant 12 : index
    %c0_73 = arith.constant 0 : index
    %257 = vector.load %arg19[%c12, %c0_73] : memref<16x64xf32, #tpu.memory_space<vmem>>, vector<2x32xf32>
    tpu.vector_store %arg19[%c12, %c0_73], %256 {strides = array<i32>} : memref<16x64xf32, #tpu.memory_space<vmem>>, vector<2x32xf32>,
    %258 = vector.extract_strided_slice %6 {offsets = [14, 0], sizes = [2, 32], strides = [1, 1]} : vector<16x32xf32> to vector<2x32xf32>
    %cst_74 = arith.constant dense<0.000000e+00> : vector<2x32xf32>
    %259 = tpu.matmul %256, %11, %cst_74 {dimension_numbers = #tpu.dot_dimension_numbers<[1], [0], [0], [1], [0, 0, 1, 1], [], []>} : vector<2x32xf32>, vector<32x32xf32>, vector<2x32xf32> -> vector<2x32xf32>
    %260 = arith.addf %258, %259 : vector<2x32xf32>
    %261 = arith.negf %260 : vector<2x32xf32>
    %262 = math.exp %261 : vector<2x32xf32>
    %cst_75 = arith.constant 1.000000e+00 : f32
    %263 = vector.broadcast %cst_75 : f32 to vector<2x32xf32>
    %264 = arith.addf %263, %262 : vector<2x32xf32>
    %265 = arith.divf %263, %264 : vector<2x32xf32>
    %266 = vector.extract_strided_slice %7 {offsets = [14, 0], sizes = [2, 32], strides = [1, 1]} : vector<16x32xf32> to vector<2x32xf32>
    %cst_76 = arith.constant dense<0.000000e+00> : vector<2x32xf32>
    %267 = tpu.matmul %256, %13, %cst_76 {dimension_numbers = #tpu.dot_dimension_numbers<[1], [0], [0], [1], [0, 0, 1, 1], [], []>} : vector<2x32xf32>, vector<32x32xf32>, vector<2x32xf32> -> vector<2x32xf32>
    %268 = arith.addf %266, %267 : vector<2x32xf32>
    %269 = arith.negf %268 : vector<2x32xf32>
    %270 = math.exp %269 : vector<2x32xf32>
    %cst_77 = arith.constant 1.000000e+00 : f32
    %271 = vector.broadcast %cst_77 : f32 to vector<2x32xf32>
    %272 = arith.addf %271, %270 : vector<2x32xf32>
    %273 = arith.divf %271, %272 : vector<2x32xf32>
    %274 = vector.extract_strided_slice %8 {offsets = [14, 0], sizes = [2, 32], strides = [1, 1]} : vector<16x32xf32> to vector<2x32xf32>
    %cst_78 = arith.constant dense<0.000000e+00> : vector<2x32xf32>
    %275 = tpu.matmul %256, %15, %cst_78 {dimension_numbers = #tpu.dot_dimension_numbers<[1], [0], [0], [1], [0, 0, 1, 1], [], []>} : vector<2x32xf32>, vector<32x32xf32>, vector<2x32xf32> -> vector<2x32xf32>
    %276 = arith.addf %274, %275 : vector<2x32xf32>
    %277 = math.tanh %276 : vector<2x32xf32>
    %278 = vector.extract_strided_slice %9 {offsets = [14, 0], sizes = [2, 32], strides = [1, 1]} : vector<16x32xf32> to vector<2x32xf32>
    %cst_79 = arith.constant dense<0.000000e+00> : vector<2x32xf32>
    %279 = tpu.matmul %256, %17, %cst_79 {dimension_numbers = #tpu.dot_dimension_numbers<[1], [0], [0], [1], [0, 0, 1, 1], [], []>} : vector<2x32xf32>, vector<32x32xf32>, vector<2x32xf32> -> vector<2x32xf32>
    %280 = arith.addf %278, %279 : vector<2x32xf32>
    %281 = arith.negf %280 : vector<2x32xf32>
    %282 = math.exp %281 : vector<2x32xf32>
    %cst_80 = arith.constant 1.000000e+00 : f32
    %283 = vector.broadcast %cst_80 : f32 to vector<2x32xf32>
    %284 = arith.addf %283, %282 : vector<2x32xf32>
    %285 = arith.divf %283, %284 : vector<2x32xf32>
    %286 = arith.mulf %273, %254 : vector<2x32xf32>
    %287 = arith.mulf %265, %277 : vector<2x32xf32>
    %288 = arith.addf %286, %287 : vector<2x32xf32>
    %289 = math.tanh %288 : vector<2x32xf32>
    %290 = arith.mulf %285, %289 : vector<2x32xf32>
    %c14 = arith.constant 14 : index
    %c0_81 = arith.constant 0 : index
    %291 = vector.load %arg19[%c14, %c0_81] : memref<16x64xf32, #tpu.memory_space<vmem>>, vector<2x32xf32>
    tpu.vector_store %arg19[%c14, %c0_81], %290 {strides = array<i32>} : memref<16x64xf32, #tpu.memory_space<vmem>>, vector<2x32xf32>,
    %c0_82 = arith.constant 0 : index
    %c0_83 = arith.constant 0 : index
    %292 = vector.load %arg4[%c0_82, %c0_83] : memref<32x128xf32, #tpu.memory_space<vmem>>, vector<32x128xf32>
    %cst_84 = arith.constant dense<0.000000e+00> : vector<16x128xf32>
    %293 = tpu.matmul %0, %292, %cst_84 {dimension_numbers = #tpu.dot_dimension_numbers<[1], [0], [0], [1], [0, 0, 1, 1], [], []>} : vector<16x32xf32>, vector<32x128xf32>, vector<16x128xf32> -> vector<16x128xf32>
    %c0_85 = arith.constant 0 : index
    %c0_86 = arith.constant 0 : index
    %294 = vector.load %arg6[%c0_85, %c0_86] : memref<1x128xf32, #tpu.memory_space<vmem>>, vector<1x128xf32>
    %295 = vector.broadcast %294 : vector<1x128xf32> to vector<16x128xf32>
    %296 = arith.addf %293, %295 : vector<16x128xf32>
    %297 = vector.extract_strided_slice %296 {offsets = [0, 0], sizes = [16, 32], strides = [1, 1]} : vector<16x128xf32> to vector<16x32xf32>
    %298 = vector.extract_strided_slice %296 {offsets = [0, 32], sizes = [16, 32], strides = [1, 1]} : vector<16x128xf32> to vector<16x32xf32>
    %299 = vector.extract_strided_slice %296 {offsets = [0, 64], sizes = [16, 32], strides = [1, 1]} : vector<16x128xf32> to vector<16x32xf32>
    %300 = vector.extract_strided_slice %296 {offsets = [0, 96], sizes = [16, 32], strides = [1, 1]} : vector<16x128xf32> to vector<16x32xf32>
    %c0_87 = arith.constant 0 : index
    %c0_88 = arith.constant 0 : index
    %c0_89 = arith.constant 0 : index
    %301 = vector.load %arg5[%c0_87, %c0_88, %c0_89] : memref<4x32x32xf32, #tpu.memory_space<vmem>>, vector<1x32x32xf32>
    %302 = vector.shape_cast %301 : vector<1x32x32xf32> to vector<32x32xf32>
    %c1_90 = arith.constant 1 : index
    %c0_91 = arith.constant 0 : index
    %c0_92 = arith.constant 0 : index
    %303 = vector.load %arg5[%c1_90, %c0_91, %c0_92] : memref<4x32x32xf32, #tpu.memory_space<vmem>>, vector<1x32x32xf32>
    %304 = vector.shape_cast %303 : vector<1x32x32xf32> to vector<32x32xf32>
    %c2_93 = arith.constant 2 : index
    %c0_94 = arith.constant 0 : index
    %c0_95 = arith.constant 0 : index
    %305 = vector.load %arg5[%c2_93, %c0_94, %c0_95] : memref<4x32x32xf32, #tpu.memory_space<vmem>>, vector<1x32x32xf32>
    %306 = vector.shape_cast %305 : vector<1x32x32xf32> to vector<32x32xf32>
    %c3_96 = arith.constant 3 : index
    %c0_97 = arith.constant 0 : index
    %c0_98 = arith.constant 0 : index
    %307 = vector.load %arg5[%c3_96, %c0_97, %c0_98] : memref<4x32x32xf32, #tpu.memory_space<vmem>>, vector<1x32x32xf32>
    %308 = vector.shape_cast %307 : vector<1x32x32xf32> to vector<32x32xf32>
    %cst_99 = arith.constant 0.000000e+00 : f32
    %309 = vector.broadcast %cst_99 : f32 to vector<2x32xf32>
    %cst_100 = arith.constant 0.000000e+00 : f32
    %310 = vector.broadcast %cst_100 : f32 to vector<2x32xf32>
    %311 = vector.extract_strided_slice %297 {offsets = [14, 0], sizes = [2, 32], strides = [1, 1]} : vector<16x32xf32> to vector<2x32xf32>
    %cst_101 = arith.constant dense<0.000000e+00> : vector<2x32xf32>
    %312 = tpu.matmul %309, %302, %cst_101 {dimension_numbers = #tpu.dot_dimension_numbers<[1], [0], [0], [1], [0, 0, 1, 1], [], []>} : vector<2x32xf32>, vector<32x32xf32>, vector<2x32xf32> -> vector<2x32xf32>
    %313 = arith.addf %311, %312 : vector<2x32xf32>
    %314 = arith.negf %313 : vector<2x32xf32>
    %315 = math.exp %314 : vector<2x32xf32>
    %cst_102 = arith.constant 1.000000e+00 : f32
    %316 = vector.broadcast %cst_102 : f32 to vector<2x32xf32>
    %317 = arith.addf %316, %315 : vector<2x32xf32>
    %318 = arith.divf %316, %317 : vector<2x32xf32>
    %319 = vector.extract_strided_slice %298 {offsets = [14, 0], sizes = [2, 32], strides = [1, 1]} : vector<16x32xf32> to vector<2x32xf32>
    %cst_103 = arith.constant dense<0.000000e+00> : vector<2x32xf32>
    %320 = tpu.matmul %309, %304, %cst_103 {dimension_numbers = #tpu.dot_dimension_numbers<[1], [0], [0], [1], [0, 0, 1, 1], [], []>} : vector<2x32xf32>, vector<32x32xf32>, vector<2x32xf32> -> vector<2x32xf32>
    %321 = arith.addf %319, %320 : vector<2x32xf32>
    %322 = arith.negf %321 : vector<2x32xf32>
    %323 = math.exp %322 : vector<2x32xf32>
    %cst_104 = arith.constant 1.000000e+00 : f32
    %324 = vector.broadcast %cst_104 : f32 to vector<2x32xf32>
    %325 = arith.addf %324, %323 : vector<2x32xf32>
    %326 = arith.divf %324, %325 : vector<2x32xf32>
    %327 = vector.extract_strided_slice %299 {offsets = [14, 0], sizes = [2, 32], strides = [1, 1]} : vector<16x32xf32> to vector<2x32xf32>
    %cst_105 = arith.constant dense<0.000000e+00> : vector<2x32xf32>
    %328 = tpu.matmul %309, %306, %cst_105 {dimension_numbers = #tpu.dot_dimension_numbers<[1], [0], [0], [1], [0, 0, 1, 1], [], []>} : vector<2x32xf32>, vector<32x32xf32>, vector<2x32xf32> -> vector<2x32xf32>
    %329 = arith.addf %327, %328 : vector<2x32xf32>
    %330 = math.tanh %329 : vector<2x32xf32>
    %331 = vector.extract_strided_slice %300 {offsets = [14, 0], sizes = [2, 32], strides = [1, 1]} : vector<16x32xf32> to vector<2x32xf32>
    %cst_106 = arith.constant dense<0.000000e+00> : vector<2x32xf32>
    %332 = tpu.matmul %309, %308, %cst_106 {dimension_numbers = #tpu.dot_dimension_numbers<[1], [0], [0], [1], [0, 0, 1, 1], [], []>} : vector<2x32xf32>, vector<32x32xf32>, vector<2x32xf32> -> vector<2x32xf32>
    %333 = arith.addf %331, %332 : vector<2x32xf32>
    %334 = arith.negf %333 : vector<2x32xf32>
    %335 = math.exp %334 : vector<2x32xf32>
    %cst_107 = arith.constant 1.000000e+00 : f32
    %336 = vector.broadcast %cst_107 : f32 to vector<2x32xf32>
    %337 = arith.addf %336, %335 : vector<2x32xf32>
    %338 = arith.divf %336, %337 : vector<2x32xf32>
    %339 = arith.mulf %326, %310 : vector<2x32xf32>
    %340 = arith.mulf %318, %330 : vector<2x32xf32>
    %341 = arith.addf %339, %340 : vector<2x32xf32>
    %342 = math.tanh %341 : vector<2x32xf32>
    %343 = arith.mulf %338, %342 : vector<2x32xf32>
    %c14_108 = arith.constant 14 : index
    %c32 = arith.constant 32 : index
    %344 = vector.load %arg19[%c14_108, %c32] : memref<16x64xf32, #tpu.memory_space<vmem>>, vector<2x32xf32>
    tpu.vector_store %arg19[%c14_108, %c32], %343 {strides = array<i32>} : memref<16x64xf32, #tpu.memory_space<vmem>>, vector<2x32xf32>,
    %345 = vector.extract_strided_slice %297 {offsets = [12, 0], sizes = [2, 32], strides = [1, 1]} : vector<16x32xf32> to vector<2x32xf32>
    %cst_109 = arith.constant dense<0.000000e+00> : vector<2x32xf32>
    %346 = tpu.matmul %343, %302, %cst_109 {dimension_numbers = #tpu.dot_dimension_numbers<[1], [0], [0], [1], [0, 0, 1, 1], [], []>} : vector<2x32xf32>, vector<32x32xf32>, vector<2x32xf32> -> vector<2x32xf32>
    %347 = arith.addf %345, %346 : vector<2x32xf32>
    %348 = arith.negf %347 : vector<2x32xf32>
    %349 = math.exp %348 : vector<2x32xf32>
    %cst_110 = arith.constant 1.000000e+00 : f32
    %350 = vector.broadcast %cst_110 : f32 to vector<2x32xf32>
    %351 = arith.addf %350, %349 : vector<2x32xf32>
    %352 = arith.divf %350, %351 : vector<2x32xf32>
    %353 = vector.extract_strided_slice %298 {offsets = [12, 0], sizes = [2, 32], strides = [1, 1]} : vector<16x32xf32> to vector<2x32xf32>
    %cst_111 = arith.constant dense<0.000000e+00> : vector<2x32xf32>
    %354 = tpu.matmul %343, %304, %cst_111 {dimension_numbers = #tpu.dot_dimension_numbers<[1], [0], [0], [1], [0, 0, 1, 1], [], []>} : vector<2x32xf32>, vector<32x32xf32>, vector<2x32xf32> -> vector<2x32xf32>
    %355 = arith.addf %353, %354 : vector<2x32xf32>
    %356 = arith.negf %355 : vector<2x32xf32>
    %357 = math.exp %356 : vector<2x32xf32>
    %cst_112 = arith.constant 1.000000e+00 : f32
    %358 = vector.broadcast %cst_112 : f32 to vector<2x32xf32>
    %359 = arith.addf %358, %357 : vector<2x32xf32>
    %360 = arith.divf %358, %359 : vector<2x32xf32>
    %361 = vector.extract_strided_slice %299 {offsets = [12, 0], sizes = [2, 32], strides = [1, 1]} : vector<16x32xf32> to vector<2x32xf32>
    %cst_113 = arith.constant dense<0.000000e+00> : vector<2x32xf32>
    %362 = tpu.matmul %343, %306, %cst_113 {dimension_numbers = #tpu.dot_dimension_numbers<[1], [0], [0], [1], [0, 0, 1, 1], [], []>} : vector<2x32xf32>, vector<32x32xf32>, vector<2x32xf32> -> vector<2x32xf32>
    %363 = arith.addf %361, %362 : vector<2x32xf32>
    %364 = math.tanh %363 : vector<2x32xf32>
    %365 = vector.extract_strided_slice %300 {offsets = [12, 0], sizes = [2, 32], strides = [1, 1]} : vector<16x32xf32> to vector<2x32xf32>
    %cst_114 = arith.constant dense<0.000000e+00> : vector<2x32xf32>
    %366 = tpu.matmul %343, %308, %cst_114 {dimension_numbers = #tpu.dot_dimension_numbers<[1], [0], [0], [1], [0, 0, 1, 1], [], []>} : vector<2x32xf32>, vector<32x32xf32>, vector<2x32xf32> -> vector<2x32xf32>
    %367 = arith.addf %365, %366 : vector<2x32xf32>
    %368 = arith.negf %367 : vector<2x32xf32>
    %369 = math.exp %368 : vector<2x32xf32>
    %cst_115 = arith.constant 1.000000e+00 : f32
    %370 = vector.broadcast %cst_115 : f32 to vector<2x32xf32>
    %371 = arith.addf %370, %369 : vector<2x32xf32>
    %372 = arith.divf %370, %371 : vector<2x32xf32>
    %373 = arith.mulf %360, %341 : vector<2x32xf32>
    %374 = arith.mulf %352, %364 : vector<2x32xf32>
    %375 = arith.addf %373, %374 : vector<2x32xf32>
    %376 = math.tanh %375 : vector<2x32xf32>
    %377 = arith.mulf %372, %376 : vector<2x32xf32>
    %c12_116 = arith.constant 12 : index
    %c32_117 = arith.constant 32 : index
    %378 = vector.load %arg19[%c12_116, %c32_117] : memref<16x64xf32, #tpu.memory_space<vmem>>, vector<2x32xf32>
    tpu.vector_store %arg19[%c12_116, %c32_117], %377 {strides = array<i32>} : memref<16x64xf32, #tpu.memory_space<vmem>>, vector<2x32xf32>,
    %379 = vector.extract_strided_slice %297 {offsets = [10, 0], sizes = [2, 32], strides = [1, 1]} : vector<16x32xf32> to vector<2x32xf32>
    %cst_118 = arith.constant dense<0.000000e+00> : vector<2x32xf32>
    %380 = tpu.matmul %377, %302, %cst_118 {dimension_numbers = #tpu.dot_dimension_numbers<[1], [0], [0], [1], [0, 0, 1, 1], [], []>} : vector<2x32xf32>, vector<32x32xf32>, vector<2x32xf32> -> vector<2x32xf32>
    %381 = arith.addf %379, %380 : vector<2x32xf32>
    %382 = arith.negf %381 : vector<2x32xf32>
    %383 = math.exp %382 : vector<2x32xf32>
    %cst_119 = arith.constant 1.000000e+00 : f32
    %384 = vector.broadcast %cst_119 : f32 to vector<2x32xf32>
    %385 = arith.addf %384, %383 : vector<2x32xf32>
    %386 = arith.divf %384, %385 : vector<2x32xf32>
    %387 = vector.extract_strided_slice %298 {offsets = [10, 0], sizes = [2, 32], strides = [1, 1]} : vector<16x32xf32> to vector<2x32xf32>
    %cst_120 = arith.constant dense<0.000000e+00> : vector<2x32xf32>
    %388 = tpu.matmul %377, %304, %cst_120 {dimension_numbers = #tpu.dot_dimension_numbers<[1], [0], [0], [1], [0, 0, 1, 1], [], []>} : vector<2x32xf32>, vector<32x32xf32>, vector<2x32xf32> -> vector<2x32xf32>
    %389 = arith.addf %387, %388 : vector<2x32xf32>
    %390 = arith.negf %389 : vector<2x32xf32>
    %391 = math.exp %390 : vector<2x32xf32>
    %cst_121 = arith.constant 1.000000e+00 : f32
    %392 = vector.broadcast %cst_121 : f32 to vector<2x32xf32>
    %393 = arith.addf %392, %391 : vector<2x32xf32>
    %394 = arith.divf %392, %393 : vector<2x32xf32>
    %395 = vector.extract_strided_slice %299 {offsets = [10, 0], sizes = [2, 32], strides = [1, 1]} : vector<16x32xf32> to vector<2x32xf32>
    %cst_122 = arith.constant dense<0.000000e+00> : vector<2x32xf32>
    %396 = tpu.matmul %377, %306, %cst_122 {dimension_numbers = #tpu.dot_dimension_numbers<[1], [0], [0], [1], [0, 0, 1, 1], [], []>} : vector<2x32xf32>, vector<32x32xf32>, vector<2x32xf32> -> vector<2x32xf32>
    %397 = arith.addf %395, %396 : vector<2x32xf32>
    %398 = math.tanh %397 : vector<2x32xf32>
    %399 = vector.extract_strided_slice %300 {offsets = [10, 0], sizes = [2, 32], strides = [1, 1]} : vector<16x32xf32> to vector<2x32xf32>
    %cst_123 = arith.constant dense<0.000000e+00> : vector<2x32xf32>
    %400 = tpu.matmul %377, %308, %cst_123 {dimension_numbers = #tpu.dot_dimension_numbers<[1], [0], [0], [1], [0, 0, 1, 1], [], []>} : vector<2x32xf32>, vector<32x32xf32>, vector<2x32xf32> -> vector<2x32xf32>
    %401 = arith.addf %399, %400 : vector<2x32xf32>
    %402 = arith.negf %401 : vector<2x32xf32>
    %403 = math.exp %402 : vector<2x32xf32>
    %cst_124 = arith.constant 1.000000e+00 : f32
    %404 = vector.broadcast %cst_124 : f32 to vector<2x32xf32>
    %405 = arith.addf %404, %403 : vector<2x32xf32>
    %406 = arith.divf %404, %405 : vector<2x32xf32>
    %407 = arith.mulf %394, %375 : vector<2x32xf32>
    %408 = arith.mulf %386, %398 : vector<2x32xf32>
    %409 = arith.addf %407, %408 : vector<2x32xf32>
    %410 = math.tanh %409 : vector<2x32xf32>
    %411 = arith.mulf %406, %410 : vector<2x32xf32>
    %c10_125 = arith.constant 10 : index
    %c32_126 = arith.constant 32 : index
    %412 = vector.load %arg19[%c10_125, %c32_126] : memref<16x64xf32, #tpu.memory_space<vmem>>, vector<2x32xf32>
    tpu.vector_store %arg19[%c10_125, %c32_126], %411 {strides = array<i32>} : memref<16x64xf32, #tpu.memory_space<vmem>>, vector<2x32xf32>,
    %413 = vector.extract_strided_slice %297 {offsets = [8, 0], sizes = [2, 32], strides = [1, 1]} : vector<16x32xf32> to vector<2x32xf32>
    %cst_127 = arith.constant dense<0.000000e+00> : vector<2x32xf32>
    %414 = tpu.matmul %411, %302, %cst_127 {dimension_numbers = #tpu.dot_dimension_numbers<[1], [0], [0], [1], [0, 0, 1, 1], [], []>} : vector<2x32xf32>, vector<32x32xf32>, vector<2x32xf32> -> vector<2x32xf32>
    %415 = arith.addf %413, %414 : vector<2x32xf32>
    %416 = arith.negf %415 : vector<2x32xf32>
    %417 = math.exp %416 : vector<2x32xf32>
    %cst_128 = arith.constant 1.000000e+00 : f32
    %418 = vector.broadcast %cst_128 : f32 to vector<2x32xf32>
    %419 = arith.addf %418, %417 : vector<2x32xf32>
    %420 = arith.divf %418, %419 : vector<2x32xf32>
    %421 = vector.extract_strided_slice %298 {offsets = [8, 0], sizes = [2, 32], strides = [1, 1]} : vector<16x32xf32> to vector<2x32xf32>
    %cst_129 = arith.constant dense<0.000000e+00> : vector<2x32xf32>
    %422 = tpu.matmul %411, %304, %cst_129 {dimension_numbers = #tpu.dot_dimension_numbers<[1], [0], [0], [1], [0, 0, 1, 1], [], []>} : vector<2x32xf32>, vector<32x32xf32>, vector<2x32xf32> -> vector<2x32xf32>
    %423 = arith.addf %421, %422 : vector<2x32xf32>
    %424 = arith.negf %423 : vector<2x32xf32>
    %425 = math.exp %424 : vector<2x32xf32>
    %cst_130 = arith.constant 1.000000e+00 : f32
    %426 = vector.broadcast %cst_130 : f32 to vector<2x32xf32>
    %427 = arith.addf %426, %425 : vector<2x32xf32>
    %428 = arith.divf %426, %427 : vector<2x32xf32>
    %429 = vector.extract_strided_slice %299 {offsets = [8, 0], sizes = [2, 32], strides = [1, 1]} : vector<16x32xf32> to vector<2x32xf32>
    %cst_131 = arith.constant dense<0.000000e+00> : vector<2x32xf32>
    %430 = tpu.matmul %411, %306, %cst_131 {dimension_numbers = #tpu.dot_dimension_numbers<[1], [0], [0], [1], [0, 0, 1, 1], [], []>} : vector<2x32xf32>, vector<32x32xf32>, vector<2x32xf32> -> vector<2x32xf32>
    %431 = arith.addf %429, %430 : vector<2x32xf32>
    %432 = math.tanh %431 : vector<2x32xf32>
    %433 = vector.extract_strided_slice %300 {offsets = [8, 0], sizes = [2, 32], strides = [1, 1]} : vector<16x32xf32> to vector<2x32xf32>
    %cst_132 = arith.constant dense<0.000000e+00> : vector<2x32xf32>
    %434 = tpu.matmul %411, %308, %cst_132 {dimension_numbers = #tpu.dot_dimension_numbers<[1], [0], [0], [1], [0, 0, 1, 1], [], []>} : vector<2x32xf32>, vector<32x32xf32>, vector<2x32xf32> -> vector<2x32xf32>
    %435 = arith.addf %433, %434 : vector<2x32xf32>
    %436 = arith.negf %435 : vector<2x32xf32>
    %437 = math.exp %436 : vector<2x32xf32>
    %cst_133 = arith.constant 1.000000e+00 : f32
    %438 = vector.broadcast %cst_133 : f32 to vector<2x32xf32>
    %439 = arith.addf %438, %437 : vector<2x32xf32>
    %440 = arith.divf %438, %439 : vector<2x32xf32>
    %441 = arith.mulf %428, %409 : vector<2x32xf32>
    %442 = arith.mulf %420, %432 : vector<2x32xf32>
    %443 = arith.addf %441, %442 : vector<2x32xf32>
    %444 = math.tanh %443 : vector<2x32xf32>
    %445 = arith.mulf %440, %444 : vector<2x32xf32>
    %c8_134 = arith.constant 8 : index
    %c32_135 = arith.constant 32 : index
    %446 = vector.load %arg19[%c8_134, %c32_135] : memref<16x64xf32, #tpu.memory_space<vmem>>, vector<2x32xf32>
    tpu.vector_store %arg19[%c8_134, %c32_135], %445 {strides = array<i32>} : memref<16x64xf32, #tpu.memory_space<vmem>>, vector<2x32xf32>,
    %447 = vector.extract_strided_slice %297 {offsets = [6, 0], sizes = [2, 32], strides = [1, 1]} : vector<16x32xf32> to vector<2x32xf32>
    %cst_136 = arith.constant dense<0.000000e+00> : vector<2x32xf32>
    %448 = tpu.matmul %445, %302, %cst_136 {dimension_numbers = #tpu.dot_dimension_numbers<[1], [0], [0], [1], [0, 0, 1, 1], [], []>} : vector<2x32xf32>, vector<32x32xf32>, vector<2x32xf32> -> vector<2x32xf32>
    %449 = arith.addf %447, %448 : vector<2x32xf32>
    %450 = arith.negf %449 : vector<2x32xf32>
    %451 = math.exp %450 : vector<2x32xf32>
    %cst_137 = arith.constant 1.000000e+00 : f32
    %452 = vector.broadcast %cst_137 : f32 to vector<2x32xf32>
    %453 = arith.addf %452, %451 : vector<2x32xf32>
    %454 = arith.divf %452, %453 : vector<2x32xf32>
    %455 = vector.extract_strided_slice %298 {offsets = [6, 0], sizes = [2, 32], strides = [1, 1]} : vector<16x32xf32> to vector<2x32xf32>
    %cst_138 = arith.constant dense<0.000000e+00> : vector<2x32xf32>
    %456 = tpu.matmul %445, %304, %cst_138 {dimension_numbers = #tpu.dot_dimension_numbers<[1], [0], [0], [1], [0, 0, 1, 1], [], []>} : vector<2x32xf32>, vector<32x32xf32>, vector<2x32xf32> -> vector<2x32xf32>
    %457 = arith.addf %455, %456 : vector<2x32xf32>
    %458 = arith.negf %457 : vector<2x32xf32>
    %459 = math.exp %458 : vector<2x32xf32>
    %cst_139 = arith.constant 1.000000e+00 : f32
    %460 = vector.broadcast %cst_139 : f32 to vector<2x32xf32>
    %461 = arith.addf %460, %459 : vector<2x32xf32>
    %462 = arith.divf %460, %461 : vector<2x32xf32>
    %463 = vector.extract_strided_slice %299 {offsets = [6, 0], sizes = [2, 32], strides = [1, 1]} : vector<16x32xf32> to vector<2x32xf32>
    %cst_140 = arith.constant dense<0.000000e+00> : vector<2x32xf32>
    %464 = tpu.matmul %445, %306, %cst_140 {dimension_numbers = #tpu.dot_dimension_numbers<[1], [0], [0], [1], [0, 0, 1, 1], [], []>} : vector<2x32xf32>, vector<32x32xf32>, vector<2x32xf32> -> vector<2x32xf32>
    %465 = arith.addf %463, %464 : vector<2x32xf32>
    %466 = math.tanh %465 : vector<2x32xf32>
    %467 = vector.extract_strided_slice %300 {offsets = [6, 0], sizes = [2, 32], strides = [1, 1]} : vector<16x32xf32> to vector<2x32xf32>
    %cst_141 = arith.constant dense<0.000000e+00> : vector<2x32xf32>
    %468 = tpu.matmul %445, %308, %cst_141 {dimension_numbers = #tpu.dot_dimension_numbers<[1], [0], [0], [1], [0, 0, 1, 1], [], []>} : vector<2x32xf32>, vector<32x32xf32>, vector<2x32xf32> -> vector<2x32xf32>
    %469 = arith.addf %467, %468 : vector<2x32xf32>
    %470 = arith.negf %469 : vector<2x32xf32>
    %471 = math.exp %470 : vector<2x32xf32>
    %cst_142 = arith.constant 1.000000e+00 : f32
    %472 = vector.broadcast %cst_142 : f32 to vector<2x32xf32>
    %473 = arith.addf %472, %471 : vector<2x32xf32>
    %474 = arith.divf %472, %473 : vector<2x32xf32>
    %475 = arith.mulf %462, %443 : vector<2x32xf32>
    %476 = arith.mulf %454, %466 : vector<2x32xf32>
    %477 = arith.addf %475, %476 : vector<2x32xf32>
    %478 = math.tanh %477 : vector<2x32xf32>
    %479 = arith.mulf %474, %478 : vector<2x32xf32>
    %c6_143 = arith.constant 6 : index
    %c32_144 = arith.constant 32 : index
    %480 = vector.load %arg19[%c6_143, %c32_144] : memref<16x64xf32, #tpu.memory_space<vmem>>, vector<2x32xf32>
    tpu.vector_store %arg19[%c6_143, %c32_144], %479 {strides = array<i32>} : memref<16x64xf32, #tpu.memory_space<vmem>>, vector<2x32xf32>,
    %481 = vector.extract_strided_slice %297 {offsets = [4, 0], sizes = [2, 32], strides = [1, 1]} : vector<16x32xf32> to vector<2x32xf32>
    %cst_145 = arith.constant dense<0.000000e+00> : vector<2x32xf32>
    %482 = tpu.matmul %479, %302, %cst_145 {dimension_numbers = #tpu.dot_dimension_numbers<[1], [0], [0], [1], [0, 0, 1, 1], [], []>} : vector<2x32xf32>, vector<32x32xf32>, vector<2x32xf32> -> vector<2x32xf32>
    %483 = arith.addf %481, %482 : vector<2x32xf32>
    %484 = arith.negf %483 : vector<2x32xf32>
    %485 = math.exp %484 : vector<2x32xf32>
    %cst_146 = arith.constant 1.000000e+00 : f32
    %486 = vector.broadcast %cst_146 : f32 to vector<2x32xf32>
    %487 = arith.addf %486, %485 : vector<2x32xf32>
    %488 = arith.divf %486, %487 : vector<2x32xf32>
    %489 = vector.extract_strided_slice %298 {offsets = [4, 0], sizes = [2, 32], strides = [1, 1]} : vector<16x32xf32> to vector<2x32xf32>
    %cst_147 = arith.constant dense<0.000000e+00> : vector<2x32xf32>
    %490 = tpu.matmul %479, %304, %cst_147 {dimension_numbers = #tpu.dot_dimension_numbers<[1], [0], [0], [1], [0, 0, 1, 1], [], []>} : vector<2x32xf32>, vector<32x32xf32>, vector<2x32xf32> -> vector<2x32xf32>
    %491 = arith.addf %489, %490 : vector<2x32xf32>
    %492 = arith.negf %491 : vector<2x32xf32>
    %493 = math.exp %492 : vector<2x32xf32>
    %cst_148 = arith.constant 1.000000e+00 : f32
    %494 = vector.broadcast %cst_148 : f32 to vector<2x32xf32>
    %495 = arith.addf %494, %493 : vector<2x32xf32>
    %496 = arith.divf %494, %495 : vector<2x32xf32>
    %497 = vector.extract_strided_slice %299 {offsets = [4, 0], sizes = [2, 32], strides = [1, 1]} : vector<16x32xf32> to vector<2x32xf32>
    %cst_149 = arith.constant dense<0.000000e+00> : vector<2x32xf32>
    %498 = tpu.matmul %479, %306, %cst_149 {dimension_numbers = #tpu.dot_dimension_numbers<[1], [0], [0], [1], [0, 0, 1, 1], [], []>} : vector<2x32xf32>, vector<32x32xf32>, vector<2x32xf32> -> vector<2x32xf32>
    %499 = arith.addf %497, %498 : vector<2x32xf32>
    %500 = math.tanh %499 : vector<2x32xf32>
    %501 = vector.extract_strided_slice %300 {offsets = [4, 0], sizes = [2, 32], strides = [1, 1]} : vector<16x32xf32> to vector<2x32xf32>
    %cst_150 = arith.constant dense<0.000000e+00> : vector<2x32xf32>
    %502 = tpu.matmul %479, %308, %cst_150 {dimension_numbers = #tpu.dot_dimension_numbers<[1], [0], [0], [1], [0, 0, 1, 1], [], []>} : vector<2x32xf32>, vector<32x32xf32>, vector<2x32xf32> -> vector<2x32xf32>
    %503 = arith.addf %501, %502 : vector<2x32xf32>
    %504 = arith.negf %503 : vector<2x32xf32>
    %505 = math.exp %504 : vector<2x32xf32>
    %cst_151 = arith.constant 1.000000e+00 : f32
    %506 = vector.broadcast %cst_151 : f32 to vector<2x32xf32>
    %507 = arith.addf %506, %505 : vector<2x32xf32>
    %508 = arith.divf %506, %507 : vector<2x32xf32>
    %509 = arith.mulf %496, %477 : vector<2x32xf32>
    %510 = arith.mulf %488, %500 : vector<2x32xf32>
    %511 = arith.addf %509, %510 : vector<2x32xf32>
    %512 = math.tanh %511 : vector<2x32xf32>
    %513 = arith.mulf %508, %512 : vector<2x32xf32>
    %c4_152 = arith.constant 4 : index
    %c32_153 = arith.constant 32 : index
    %514 = vector.load %arg19[%c4_152, %c32_153] : memref<16x64xf32, #tpu.memory_space<vmem>>, vector<2x32xf32>
    tpu.vector_store %arg19[%c4_152, %c32_153], %513 {strides = array<i32>} : memref<16x64xf32, #tpu.memory_space<vmem>>, vector<2x32xf32>,
    %515 = vector.extract_strided_slice %297 {offsets = [2, 0], sizes = [2, 32], strides = [1, 1]} : vector<16x32xf32> to vector<2x32xf32>
    %cst_154 = arith.constant dense<0.000000e+00> : vector<2x32xf32>
    %516 = tpu.matmul %513, %302, %cst_154 {dimension_numbers = #tpu.dot_dimension_numbers<[1], [0], [0], [1], [0, 0, 1, 1], [], []>} : vector<2x32xf32>, vector<32x32xf32>, vector<2x32xf32> -> vector<2x32xf32>
    %517 = arith.addf %515, %516 : vector<2x32xf32>
    %518 = arith.negf %517 : vector<2x32xf32>
    %519 = math.exp %518 : vector<2x32xf32>
    %cst_155 = arith.constant 1.000000e+00 : f32
    %520 = vector.broadcast %cst_155 : f32 to vector<2x32xf32>
    %521 = arith.addf %520, %519 : vector<2x32xf32>
    %522 = arith.divf %520, %521 : vector<2x32xf32>
    %523 = vector.extract_strided_slice %298 {offsets = [2, 0], sizes = [2, 32], strides = [1, 1]} : vector<16x32xf32> to vector<2x32xf32>
    %cst_156 = arith.constant dense<0.000000e+00> : vector<2x32xf32>
    %524 = tpu.matmul %513, %304, %cst_156 {dimension_numbers = #tpu.dot_dimension_numbers<[1], [0], [0], [1], [0, 0, 1, 1], [], []>} : vector<2x32xf32>, vector<32x32xf32>, vector<2x32xf32> -> vector<2x32xf32>
    %525 = arith.addf %523, %524 : vector<2x32xf32>
    %526 = arith.negf %525 : vector<2x32xf32>
    %527 = math.exp %526 : vector<2x32xf32>
    %cst_157 = arith.constant 1.000000e+00 : f32
    %528 = vector.broadcast %cst_157 : f32 to vector<2x32xf32>
    %529 = arith.addf %528, %527 : vector<2x32xf32>
    %530 = arith.divf %528, %529 : vector<2x32xf32>
    %531 = vector.extract_strided_slice %299 {offsets = [2, 0], sizes = [2, 32], strides = [1, 1]} : vector<16x32xf32> to vector<2x32xf32>
    %cst_158 = arith.constant dense<0.000000e+00> : vector<2x32xf32>
    %532 = tpu.matmul %513, %306, %cst_158 {dimension_numbers = #tpu.dot_dimension_numbers<[1], [0], [0], [1], [0, 0, 1, 1], [], []>} : vector<2x32xf32>, vector<32x32xf32>, vector<2x32xf32> -> vector<2x32xf32>
    %533 = arith.addf %531, %532 : vector<2x32xf32>
    %534 = math.tanh %533 : vector<2x32xf32>
    %535 = vector.extract_strided_slice %300 {offsets = [2, 0], sizes = [2, 32], strides = [1, 1]} : vector<16x32xf32> to vector<2x32xf32>
    %cst_159 = arith.constant dense<0.000000e+00> : vector<2x32xf32>
    %536 = tpu.matmul %513, %308, %cst_159 {dimension_numbers = #tpu.dot_dimension_numbers<[1], [0], [0], [1], [0, 0, 1, 1], [], []>} : vector<2x32xf32>, vector<32x32xf32>, vector<2x32xf32> -> vector<2x32xf32>
    %537 = arith.addf %535, %536 : vector<2x32xf32>
    %538 = arith.negf %537 : vector<2x32xf32>
    %539 = math.exp %538 : vector<2x32xf32>
    %cst_160 = arith.constant 1.000000e+00 : f32
    %540 = vector.broadcast %cst_160 : f32 to vector<2x32xf32>
    %541 = arith.addf %540, %539 : vector<2x32xf32>
    %542 = arith.divf %540, %541 : vector<2x32xf32>
    %543 = arith.mulf %530, %511 : vector<2x32xf32>
    %544 = arith.mulf %522, %534 : vector<2x32xf32>
    %545 = arith.addf %543, %544 : vector<2x32xf32>
    %546 = math.tanh %545 : vector<2x32xf32>
    %547 = arith.mulf %542, %546 : vector<2x32xf32>
    %c2_161 = arith.constant 2 : index
    %c32_162 = arith.constant 32 : index
    %548 = vector.load %arg19[%c2_161, %c32_162] : memref<16x64xf32, #tpu.memory_space<vmem>>, vector<2x32xf32>
    tpu.vector_store %arg19[%c2_161, %c32_162], %547 {strides = array<i32>} : memref<16x64xf32, #tpu.memory_space<vmem>>, vector<2x32xf32>,
    %549 = vector.extract_strided_slice %297 {offsets = [0, 0], sizes = [2, 32], strides = [1, 1]} : vector<16x32xf32> to vector<2x32xf32>
    %cst_163 = arith.constant dense<0.000000e+00> : vector<2x32xf32>
    %550 = tpu.matmul %547, %302, %cst_163 {dimension_numbers = #tpu.dot_dimension_numbers<[1], [0], [0], [1], [0, 0, 1, 1], [], []>} : vector<2x32xf32>, vector<32x32xf32>, vector<2x32xf32> -> vector<2x32xf32>
    %551 = arith.addf %549, %550 : vector<2x32xf32>
    %552 = arith.negf %551 : vector<2x32xf32>
    %553 = math.exp %552 : vector<2x32xf32>
    %cst_164 = arith.constant 1.000000e+00 : f32
    %554 = vector.broadcast %cst_164 : f32 to vector<2x32xf32>
    %555 = arith.addf %554, %553 : vector<2x32xf32>
    %556 = arith.divf %554, %555 : vector<2x32xf32>
    %557 = vector.extract_strided_slice %298 {offsets = [0, 0], sizes = [2, 32], strides = [1, 1]} : vector<16x32xf32> to vector<2x32xf32>
    %cst_165 = arith.constant dense<0.000000e+00> : vector<2x32xf32>
    %558 = tpu.matmul %547, %304, %cst_165 {dimension_numbers = #tpu.dot_dimension_numbers<[1], [0], [0], [1], [0, 0, 1, 1], [], []>} : vector<2x32xf32>, vector<32x32xf32>, vector<2x32xf32> -> vector<2x32xf32>
    %559 = arith.addf %557, %558 : vector<2x32xf32>
    %560 = arith.negf %559 : vector<2x32xf32>
    %561 = math.exp %560 : vector<2x32xf32>
    %cst_166 = arith.constant 1.000000e+00 : f32
    %562 = vector.broadcast %cst_166 : f32 to vector<2x32xf32>
    %563 = arith.addf %562, %561 : vector<2x32xf32>
    %564 = arith.divf %562, %563 : vector<2x32xf32>
    %565 = vector.extract_strided_slice %299 {offsets = [0, 0], sizes = [2, 32], strides = [1, 1]} : vector<16x32xf32> to vector<2x32xf32>
    %cst_167 = arith.constant dense<0.000000e+00> : vector<2x32xf32>
    %566 = tpu.matmul %547, %306, %cst_167 {dimension_numbers = #tpu.dot_dimension_numbers<[1], [0], [0], [1], [0, 0, 1, 1], [], []>} : vector<2x32xf32>, vector<32x32xf32>, vector<2x32xf32> -> vector<2x32xf32>
    %567 = arith.addf %565, %566 : vector<2x32xf32>
    %568 = math.tanh %567 : vector<2x32xf32>
    %569 = vector.extract_strided_slice %300 {offsets = [0, 0], sizes = [2, 32], strides = [1, 1]} : vector<16x32xf32> to vector<2x32xf32>
    %cst_168 = arith.constant dense<0.000000e+00> : vector<2x32xf32>
    %570 = tpu.matmul %547, %308, %cst_168 {dimension_numbers = #tpu.dot_dimension_numbers<[1], [0], [0], [1], [0, 0, 1, 1], [], []>} : vector<2x32xf32>, vector<32x32xf32>, vector<2x32xf32> -> vector<2x32xf32>
    %571 = arith.addf %569, %570 : vector<2x32xf32>
    %572 = arith.negf %571 : vector<2x32xf32>
    %573 = math.exp %572 : vector<2x32xf32>
    %cst_169 = arith.constant 1.000000e+00 : f32
    %574 = vector.broadcast %cst_169 : f32 to vector<2x32xf32>
    %575 = arith.addf %574, %573 : vector<2x32xf32>
    %576 = arith.divf %574, %575 : vector<2x32xf32>
    %577 = arith.mulf %564, %545 : vector<2x32xf32>
    %578 = arith.mulf %556, %568 : vector<2x32xf32>
    %579 = arith.addf %577, %578 : vector<2x32xf32>
    %580 = math.tanh %579 : vector<2x32xf32>
    %581 = arith.mulf %576, %580 : vector<2x32xf32>
    %c0_170 = arith.constant 0 : index
    %c32_171 = arith.constant 32 : index
    %582 = vector.load %arg19[%c0_170, %c32_171] : memref<16x64xf32, #tpu.memory_space<vmem>>, vector<2x32xf32>
    tpu.vector_store %arg19[%c0_170, %c32_171], %581 {strides = array<i32>} : memref<16x64xf32, #tpu.memory_space<vmem>>, vector<2x32xf32>,
    %c0_172 = arith.constant 0 : index
    %c0_173 = arith.constant 0 : index
    %583 = vector.load %arg19[%c0_172, %c0_173] : memref<16x64xf32, #tpu.memory_space<vmem>>, vector<16x64xf32>
    %c0_174 = arith.constant 0 : index
    %c0_175 = arith.constant 0 : index
    %584 = vector.load %arg7[%c0_174, %c0_175] : memref<64x128xf32, #tpu.memory_space<vmem>>, vector<64x128xf32>
    %cst_176 = arith.constant dense<0.000000e+00> : vector<16x128xf32>
    %585 = tpu.matmul %583, %584, %cst_176 {dimension_numbers = #tpu.dot_dimension_numbers<[1], [0], [0], [1], [0, 0, 1, 1], [], []>} : vector<16x64xf32>, vector<64x128xf32>, vector<16x128xf32> -> vector<16x128xf32>
    %c0_177 = arith.constant 0 : index
    %c0_178 = arith.constant 0 : index
    %586 = vector.load %arg9[%c0_177, %c0_178] : memref<1x128xf32, #tpu.memory_space<vmem>>, vector<1x128xf32>
    %587 = vector.broadcast %586 : vector<1x128xf32> to vector<16x128xf32>
    %588 = arith.addf %585, %587 : vector<16x128xf32>
    %589 = vector.extract_strided_slice %588 {offsets = [0, 0], sizes = [16, 32], strides = [1, 1]} : vector<16x128xf32> to vector<16x32xf32>
    %590 = vector.extract_strided_slice %588 {offsets = [0, 32], sizes = [16, 32], strides = [1, 1]} : vector<16x128xf32> to vector<16x32xf32>
    %591 = vector.extract_strided_slice %588 {offsets = [0, 64], sizes = [16, 32], strides = [1, 1]} : vector<16x128xf32> to vector<16x32xf32>
    %592 = vector.extract_strided_slice %588 {offsets = [0, 96], sizes = [16, 32], strides = [1, 1]} : vector<16x128xf32> to vector<16x32xf32>
    %c0_179 = arith.constant 0 : index
    %c0_180 = arith.constant 0 : index
    %c0_181 = arith.constant 0 : index
    %593 = vector.load %arg8[%c0_179, %c0_180, %c0_181] : memref<4x32x32xf32, #tpu.memory_space<vmem>>, vector<1x32x32xf32>
    %594 = vector.shape_cast %593 : vector<1x32x32xf32> to vector<32x32xf32>
    %c1_182 = arith.constant 1 : index
    %c0_183 = arith.constant 0 : index
    %c0_184 = arith.constant 0 : index
    %595 = vector.load %arg8[%c1_182, %c0_183, %c0_184] : memref<4x32x32xf32, #tpu.memory_space<vmem>>, vector<1x32x32xf32>
    %596 = vector.shape_cast %595 : vector<1x32x32xf32> to vector<32x32xf32>
    %c2_185 = arith.constant 2 : index
    %c0_186 = arith.constant 0 : index
    %c0_187 = arith.constant 0 : index
    %597 = vector.load %arg8[%c2_185, %c0_186, %c0_187] : memref<4x32x32xf32, #tpu.memory_space<vmem>>, vector<1x32x32xf32>
    %598 = vector.shape_cast %597 : vector<1x32x32xf32> to vector<32x32xf32>
    %c3_188 = arith.constant 3 : index
    %c0_189 = arith.constant 0 : index
    %c0_190 = arith.constant 0 : index
    %599 = vector.load %arg8[%c3_188, %c0_189, %c0_190] : memref<4x32x32xf32, #tpu.memory_space<vmem>>, vector<1x32x32xf32>
    %600 = vector.shape_cast %599 : vector<1x32x32xf32> to vector<32x32xf32>
    %cst_191 = arith.constant 0.000000e+00 : f32
    %601 = vector.broadcast %cst_191 : f32 to vector<2x32xf32>
    %cst_192 = arith.constant 0.000000e+00 : f32
    %602 = vector.broadcast %cst_192 : f32 to vector<2x32xf32>
    %603 = vector.extract_strided_slice %589 {offsets = [0, 0], sizes = [2, 32], strides = [1, 1]} : vector<16x32xf32> to vector<2x32xf32>
    %cst_193 = arith.constant dense<0.000000e+00> : vector<2x32xf32>
    %604 = tpu.matmul %601, %594, %cst_193 {dimension_numbers = #tpu.dot_dimension_numbers<[1], [0], [0], [1], [0, 0, 1, 1], [], []>} : vector<2x32xf32>, vector<32x32xf32>, vector<2x32xf32> -> vector<2x32xf32>
    %605 = arith.addf %603, %604 : vector<2x32xf32>
    %606 = arith.negf %605 : vector<2x32xf32>
    %607 = math.exp %606 : vector<2x32xf32>
    %cst_194 = arith.constant 1.000000e+00 : f32
    %608 = vector.broadcast %cst_194 : f32 to vector<2x32xf32>
    %609 = arith.addf %608, %607 : vector<2x32xf32>
    %610 = arith.divf %608, %609 : vector<2x32xf32>
    %611 = vector.extract_strided_slice %590 {offsets = [0, 0], sizes = [2, 32], strides = [1, 1]} : vector<16x32xf32> to vector<2x32xf32>
    %cst_195 = arith.constant dense<0.000000e+00> : vector<2x32xf32>
    %612 = tpu.matmul %601, %596, %cst_195 {dimension_numbers = #tpu.dot_dimension_numbers<[1], [0], [0], [1], [0, 0, 1, 1], [], []>} : vector<2x32xf32>, vector<32x32xf32>, vector<2x32xf32> -> vector<2x32xf32>
    %613 = arith.addf %611, %612 : vector<2x32xf32>
    %614 = arith.negf %613 : vector<2x32xf32>
    %615 = math.exp %614 : vector<2x32xf32>
    %cst_196 = arith.constant 1.000000e+00 : f32
    %616 = vector.broadcast %cst_196 : f32 to vector<2x32xf32>
    %617 = arith.addf %616, %615 : vector<2x32xf32>
    %618 = arith.divf %616, %617 : vector<2x32xf32>
    %619 = vector.extract_strided_slice %591 {offsets = [0, 0], sizes = [2, 32], strides = [1, 1]} : vector<16x32xf32> to vector<2x32xf32>
    %cst_197 = arith.constant dense<0.000000e+00> : vector<2x32xf32>
    %620 = tpu.matmul %601, %598, %cst_197 {dimension_numbers = #tpu.dot_dimension_numbers<[1], [0], [0], [1], [0, 0, 1, 1], [], []>} : vector<2x32xf32>, vector<32x32xf32>, vector<2x32xf32> -> vector<2x32xf32>
    %621 = arith.addf %619, %620 : vector<2x32xf32>
    %622 = math.tanh %621 : vector<2x32xf32>
    %623 = vector.extract_strided_slice %592 {offsets = [0, 0], sizes = [2, 32], strides = [1, 1]} : vector<16x32xf32> to vector<2x32xf32>
    %cst_198 = arith.constant dense<0.000000e+00> : vector<2x32xf32>
    %624 = tpu.matmul %601, %600, %cst_198 {dimension_numbers = #tpu.dot_dimension_numbers<[1], [0], [0], [1], [0, 0, 1, 1], [], []>} : vector<2x32xf32>, vector<32x32xf32>, vector<2x32xf32> -> vector<2x32xf32>
    %625 = arith.addf %623, %624 : vector<2x32xf32>
    %626 = arith.negf %625 : vector<2x32xf32>
    %627 = math.exp %626 : vector<2x32xf32>
    %cst_199 = arith.constant 1.000000e+00 : f32
    %628 = vector.broadcast %cst_199 : f32 to vector<2x32xf32>
    %629 = arith.addf %628, %627 : vector<2x32xf32>
    %630 = arith.divf %628, %629 : vector<2x32xf32>
    %631 = arith.mulf %618, %602 : vector<2x32xf32>
    %632 = arith.mulf %610, %622 : vector<2x32xf32>
    %633 = arith.addf %631, %632 : vector<2x32xf32>
    %634 = math.tanh %633 : vector<2x32xf32>
    %635 = arith.mulf %630, %634 : vector<2x32xf32>
    %636 = vector.extract_strided_slice %589 {offsets = [2, 0], sizes = [2, 32], strides = [1, 1]} : vector<16x32xf32> to vector<2x32xf32>
    %cst_200 = arith.constant dense<0.000000e+00> : vector<2x32xf32>
    %637 = tpu.matmul %635, %594, %cst_200 {dimension_numbers = #tpu.dot_dimension_numbers<[1], [0], [0], [1], [0, 0, 1, 1], [], []>} : vector<2x32xf32>, vector<32x32xf32>, vector<2x32xf32> -> vector<2x32xf32>
    %638 = arith.addf %636, %637 : vector<2x32xf32>
    %639 = arith.negf %638 : vector<2x32xf32>
    %640 = math.exp %639 : vector<2x32xf32>
    %cst_201 = arith.constant 1.000000e+00 : f32
    %641 = vector.broadcast %cst_201 : f32 to vector<2x32xf32>
    %642 = arith.addf %641, %640 : vector<2x32xf32>
    %643 = arith.divf %641, %642 : vector<2x32xf32>
    %644 = vector.extract_strided_slice %590 {offsets = [2, 0], sizes = [2, 32], strides = [1, 1]} : vector<16x32xf32> to vector<2x32xf32>
    %cst_202 = arith.constant dense<0.000000e+00> : vector<2x32xf32>
    %645 = tpu.matmul %635, %596, %cst_202 {dimension_numbers = #tpu.dot_dimension_numbers<[1], [0], [0], [1], [0, 0, 1, 1], [], []>} : vector<2x32xf32>, vector<32x32xf32>, vector<2x32xf32> -> vector<2x32xf32>
    %646 = arith.addf %644, %645 : vector<2x32xf32>
    %647 = arith.negf %646 : vector<2x32xf32>
    %648 = math.exp %647 : vector<2x32xf32>
    %cst_203 = arith.constant 1.000000e+00 : f32
    %649 = vector.broadcast %cst_203 : f32 to vector<2x32xf32>
    %650 = arith.addf %649, %648 : vector<2x32xf32>
    %651 = arith.divf %649, %650 : vector<2x32xf32>
    %652 = vector.extract_strided_slice %591 {offsets = [2, 0], sizes = [2, 32], strides = [1, 1]} : vector<16x32xf32> to vector<2x32xf32>
    %cst_204 = arith.constant dense<0.000000e+00> : vector<2x32xf32>
    %653 = tpu.matmul %635, %598, %cst_204 {dimension_numbers = #tpu.dot_dimension_numbers<[1], [0], [0], [1], [0, 0, 1, 1], [], []>} : vector<2x32xf32>, vector<32x32xf32>, vector<2x32xf32> -> vector<2x32xf32>
    %654 = arith.addf %652, %653 : vector<2x32xf32>
    %655 = math.tanh %654 : vector<2x32xf32>
    %656 = vector.extract_strided_slice %592 {offsets = [2, 0], sizes = [2, 32], strides = [1, 1]} : vector<16x32xf32> to vector<2x32xf32>
    %cst_205 = arith.constant dense<0.000000e+00> : vector<2x32xf32>
    %657 = tpu.matmul %635, %600, %cst_205 {dimension_numbers = #tpu.dot_dimension_numbers<[1], [0], [0], [1], [0, 0, 1, 1], [], []>} : vector<2x32xf32>, vector<32x32xf32>, vector<2x32xf32> -> vector<2x32xf32>
    %658 = arith.addf %656, %657 : vector<2x32xf32>
    %659 = arith.negf %658 : vector<2x32xf32>
    %660 = math.exp %659 : vector<2x32xf32>
    %cst_206 = arith.constant 1.000000e+00 : f32
    %661 = vector.broadcast %cst_206 : f32 to vector<2x32xf32>
    %662 = arith.addf %661, %660 : vector<2x32xf32>
    %663 = arith.divf %661, %662 : vector<2x32xf32>
    %664 = arith.mulf %651, %633 : vector<2x32xf32>
    %665 = arith.mulf %643, %655 : vector<2x32xf32>
    %666 = arith.addf %664, %665 : vector<2x32xf32>
    %667 = math.tanh %666 : vector<2x32xf32>
    %668 = arith.mulf %663, %667 : vector<2x32xf32>
    %669 = vector.extract_strided_slice %589 {offsets = [4, 0], sizes = [2, 32], strides = [1, 1]} : vector<16x32xf32> to vector<2x32xf32>
    %cst_207 = arith.constant dense<0.000000e+00> : vector<2x32xf32>
    %670 = tpu.matmul %668, %594, %cst_207 {dimension_numbers = #tpu.dot_dimension_numbers<[1], [0], [0], [1], [0, 0, 1, 1], [], []>} : vector<2x32xf32>, vector<32x32xf32>, vector<2x32xf32> -> vector<2x32xf32>
    %671 = arith.addf %669, %670 : vector<2x32xf32>
    %672 = arith.negf %671 : vector<2x32xf32>
    %673 = math.exp %672 : vector<2x32xf32>
    %cst_208 = arith.constant 1.000000e+00 : f32
    %674 = vector.broadcast %cst_208 : f32 to vector<2x32xf32>
    %675 = arith.addf %674, %673 : vector<2x32xf32>
    %676 = arith.divf %674, %675 : vector<2x32xf32>
    %677 = vector.extract_strided_slice %590 {offsets = [4, 0], sizes = [2, 32], strides = [1, 1]} : vector<16x32xf32> to vector<2x32xf32>
    %cst_209 = arith.constant dense<0.000000e+00> : vector<2x32xf32>
    %678 = tpu.matmul %668, %596, %cst_209 {dimension_numbers = #tpu.dot_dimension_numbers<[1], [0], [0], [1], [0, 0, 1, 1], [], []>} : vector<2x32xf32>, vector<32x32xf32>, vector<2x32xf32> -> vector<2x32xf32>
    %679 = arith.addf %677, %678 : vector<2x32xf32>
    %680 = arith.negf %679 : vector<2x32xf32>
    %681 = math.exp %680 : vector<2x32xf32>
    %cst_210 = arith.constant 1.000000e+00 : f32
    %682 = vector.broadcast %cst_210 : f32 to vector<2x32xf32>
    %683 = arith.addf %682, %681 : vector<2x32xf32>
    %684 = arith.divf %682, %683 : vector<2x32xf32>
    %685 = vector.extract_strided_slice %591 {offsets = [4, 0], sizes = [2, 32], strides = [1, 1]} : vector<16x32xf32> to vector<2x32xf32>
    %cst_211 = arith.constant dense<0.000000e+00> : vector<2x32xf32>
    %686 = tpu.matmul %668, %598, %cst_211 {dimension_numbers = #tpu.dot_dimension_numbers<[1], [0], [0], [1], [0, 0, 1, 1], [], []>} : vector<2x32xf32>, vector<32x32xf32>, vector<2x32xf32> -> vector<2x32xf32>
    %687 = arith.addf %685, %686 : vector<2x32xf32>
    %688 = math.tanh %687 : vector<2x32xf32>
    %689 = vector.extract_strided_slice %592 {offsets = [4, 0], sizes = [2, 32], strides = [1, 1]} : vector<16x32xf32> to vector<2x32xf32>
    %cst_212 = arith.constant dense<0.000000e+00> : vector<2x32xf32>
    %690 = tpu.matmul %668, %600, %cst_212 {dimension_numbers = #tpu.dot_dimension_numbers<[1], [0], [0], [1], [0, 0, 1, 1], [], []>} : vector<2x32xf32>, vector<32x32xf32>, vector<2x32xf32> -> vector<2x32xf32>
    %691 = arith.addf %689, %690 : vector<2x32xf32>
    %692 = arith.negf %691 : vector<2x32xf32>
    %693 = math.exp %692 : vector<2x32xf32>
    %cst_213 = arith.constant 1.000000e+00 : f32
    %694 = vector.broadcast %cst_213 : f32 to vector<2x32xf32>
    %695 = arith.addf %694, %693 : vector<2x32xf32>
    %696 = arith.divf %694, %695 : vector<2x32xf32>
    %697 = arith.mulf %684, %666 : vector<2x32xf32>
    %698 = arith.mulf %676, %688 : vector<2x32xf32>
    %699 = arith.addf %697, %698 : vector<2x32xf32>
    %700 = math.tanh %699 : vector<2x32xf32>
    %701 = arith.mulf %696, %700 : vector<2x32xf32>
    %702 = vector.extract_strided_slice %589 {offsets = [6, 0], sizes = [2, 32], strides = [1, 1]} : vector<16x32xf32> to vector<2x32xf32>
    %cst_214 = arith.constant dense<0.000000e+00> : vector<2x32xf32>
    %703 = tpu.matmul %701, %594, %cst_214 {dimension_numbers = #tpu.dot_dimension_numbers<[1], [0], [0], [1], [0, 0, 1, 1], [], []>} : vector<2x32xf32>, vector<32x32xf32>, vector<2x32xf32> -> vector<2x32xf32>
    %704 = arith.addf %702, %703 : vector<2x32xf32>
    %705 = arith.negf %704 : vector<2x32xf32>
    %706 = math.exp %705 : vector<2x32xf32>
    %cst_215 = arith.constant 1.000000e+00 : f32
    %707 = vector.broadcast %cst_215 : f32 to vector<2x32xf32>
    %708 = arith.addf %707, %706 : vector<2x32xf32>
    %709 = arith.divf %707, %708 : vector<2x32xf32>
    %710 = vector.extract_strided_slice %590 {offsets = [6, 0], sizes = [2, 32], strides = [1, 1]} : vector<16x32xf32> to vector<2x32xf32>
    %cst_216 = arith.constant dense<0.000000e+00> : vector<2x32xf32>
    %711 = tpu.matmul %701, %596, %cst_216 {dimension_numbers = #tpu.dot_dimension_numbers<[1], [0], [0], [1], [0, 0, 1, 1], [], []>} : vector<2x32xf32>, vector<32x32xf32>, vector<2x32xf32> -> vector<2x32xf32>
    %712 = arith.addf %710, %711 : vector<2x32xf32>
    %713 = arith.negf %712 : vector<2x32xf32>
    %714 = math.exp %713 : vector<2x32xf32>
    %cst_217 = arith.constant 1.000000e+00 : f32
    %715 = vector.broadcast %cst_217 : f32 to vector<2x32xf32>
    %716 = arith.addf %715, %714 : vector<2x32xf32>
    %717 = arith.divf %715, %716 : vector<2x32xf32>
    %718 = vector.extract_strided_slice %591 {offsets = [6, 0], sizes = [2, 32], strides = [1, 1]} : vector<16x32xf32> to vector<2x32xf32>
    %cst_218 = arith.constant dense<0.000000e+00> : vector<2x32xf32>
    %719 = tpu.matmul %701, %598, %cst_218 {dimension_numbers = #tpu.dot_dimension_numbers<[1], [0], [0], [1], [0, 0, 1, 1], [], []>} : vector<2x32xf32>, vector<32x32xf32>, vector<2x32xf32> -> vector<2x32xf32>
    %720 = arith.addf %718, %719 : vector<2x32xf32>
    %721 = math.tanh %720 : vector<2x32xf32>
    %722 = vector.extract_strided_slice %592 {offsets = [6, 0], sizes = [2, 32], strides = [1, 1]} : vector<16x32xf32> to vector<2x32xf32>
    %cst_219 = arith.constant dense<0.000000e+00> : vector<2x32xf32>
    %723 = tpu.matmul %701, %600, %cst_219 {dimension_numbers = #tpu.dot_dimension_numbers<[1], [0], [0], [1], [0, 0, 1, 1], [], []>} : vector<2x32xf32>, vector<32x32xf32>, vector<2x32xf32> -> vector<2x32xf32>
    %724 = arith.addf %722, %723 : vector<2x32xf32>
    %725 = arith.negf %724 : vector<2x32xf32>
    %726 = math.exp %725 : vector<2x32xf32>
    %cst_220 = arith.constant 1.000000e+00 : f32
    %727 = vector.broadcast %cst_220 : f32 to vector<2x32xf32>
    %728 = arith.addf %727, %726 : vector<2x32xf32>
    %729 = arith.divf %727, %728 : vector<2x32xf32>
    %730 = arith.mulf %717, %699 : vector<2x32xf32>
    %731 = arith.mulf %709, %721 : vector<2x32xf32>
    %732 = arith.addf %730, %731 : vector<2x32xf32>
    %733 = math.tanh %732 : vector<2x32xf32>
    %734 = arith.mulf %729, %733 : vector<2x32xf32>
    %735 = vector.extract_strided_slice %589 {offsets = [8, 0], sizes = [2, 32], strides = [1, 1]} : vector<16x32xf32> to vector<2x32xf32>
    %cst_221 = arith.constant dense<0.000000e+00> : vector<2x32xf32>
    %736 = tpu.matmul %734, %594, %cst_221 {dimension_numbers = #tpu.dot_dimension_numbers<[1], [0], [0], [1], [0, 0, 1, 1], [], []>} : vector<2x32xf32>, vector<32x32xf32>, vector<2x32xf32> -> vector<2x32xf32>
    %737 = arith.addf %735, %736 : vector<2x32xf32>
    %738 = arith.negf %737 : vector<2x32xf32>
    %739 = math.exp %738 : vector<2x32xf32>
    %cst_222 = arith.constant 1.000000e+00 : f32
    %740 = vector.broadcast %cst_222 : f32 to vector<2x32xf32>
    %741 = arith.addf %740, %739 : vector<2x32xf32>
    %742 = arith.divf %740, %741 : vector<2x32xf32>
    %743 = vector.extract_strided_slice %590 {offsets = [8, 0], sizes = [2, 32], strides = [1, 1]} : vector<16x32xf32> to vector<2x32xf32>
    %cst_223 = arith.constant dense<0.000000e+00> : vector<2x32xf32>
    %744 = tpu.matmul %734, %596, %cst_223 {dimension_numbers = #tpu.dot_dimension_numbers<[1], [0], [0], [1], [0, 0, 1, 1], [], []>} : vector<2x32xf32>, vector<32x32xf32>, vector<2x32xf32> -> vector<2x32xf32>
    %745 = arith.addf %743, %744 : vector<2x32xf32>
    %746 = arith.negf %745 : vector<2x32xf32>
    %747 = math.exp %746 : vector<2x32xf32>
    %cst_224 = arith.constant 1.000000e+00 : f32
    %748 = vector.broadcast %cst_224 : f32 to vector<2x32xf32>
    %749 = arith.addf %748, %747 : vector<2x32xf32>
    %750 = arith.divf %748, %749 : vector<2x32xf32>
    %751 = vector.extract_strided_slice %591 {offsets = [8, 0], sizes = [2, 32], strides = [1, 1]} : vector<16x32xf32> to vector<2x32xf32>
    %cst_225 = arith.constant dense<0.000000e+00> : vector<2x32xf32>
    %752 = tpu.matmul %734, %598, %cst_225 {dimension_numbers = #tpu.dot_dimension_numbers<[1], [0], [0], [1], [0, 0, 1, 1], [], []>} : vector<2x32xf32>, vector<32x32xf32>, vector<2x32xf32> -> vector<2x32xf32>
    %753 = arith.addf %751, %752 : vector<2x32xf32>
    %754 = math.tanh %753 : vector<2x32xf32>
    %755 = vector.extract_strided_slice %592 {offsets = [8, 0], sizes = [2, 32], strides = [1, 1]} : vector<16x32xf32> to vector<2x32xf32>
    %cst_226 = arith.constant dense<0.000000e+00> : vector<2x32xf32>
    %756 = tpu.matmul %734, %600, %cst_226 {dimension_numbers = #tpu.dot_dimension_numbers<[1], [0], [0], [1], [0, 0, 1, 1], [], []>} : vector<2x32xf32>, vector<32x32xf32>, vector<2x32xf32> -> vector<2x32xf32>
    %757 = arith.addf %755, %756 : vector<2x32xf32>
    %758 = arith.negf %757 : vector<2x32xf32>
    %759 = math.exp %758 : vector<2x32xf32>
    %cst_227 = arith.constant 1.000000e+00 : f32
    %760 = vector.broadcast %cst_227 : f32 to vector<2x32xf32>
    %761 = arith.addf %760, %759 : vector<2x32xf32>
    %762 = arith.divf %760, %761 : vector<2x32xf32>
    %763 = arith.mulf %750, %732 : vector<2x32xf32>
    %764 = arith.mulf %742, %754 : vector<2x32xf32>
    %765 = arith.addf %763, %764 : vector<2x32xf32>
    %766 = math.tanh %765 : vector<2x32xf32>
    %767 = arith.mulf %762, %766 : vector<2x32xf32>
    %768 = vector.extract_strided_slice %589 {offsets = [10, 0], sizes = [2, 32], strides = [1, 1]} : vector<16x32xf32> to vector<2x32xf32>
    %cst_228 = arith.constant dense<0.000000e+00> : vector<2x32xf32>
    %769 = tpu.matmul %767, %594, %cst_228 {dimension_numbers = #tpu.dot_dimension_numbers<[1], [0], [0], [1], [0, 0, 1, 1], [], []>} : vector<2x32xf32>, vector<32x32xf32>, vector<2x32xf32> -> vector<2x32xf32>
    %770 = arith.addf %768, %769 : vector<2x32xf32>
    %771 = arith.negf %770 : vector<2x32xf32>
    %772 = math.exp %771 : vector<2x32xf32>
    %cst_229 = arith.constant 1.000000e+00 : f32
    %773 = vector.broadcast %cst_229 : f32 to vector<2x32xf32>
    %774 = arith.addf %773, %772 : vector<2x32xf32>
    %775 = arith.divf %773, %774 : vector<2x32xf32>
    %776 = vector.extract_strided_slice %590 {offsets = [10, 0], sizes = [2, 32], strides = [1, 1]} : vector<16x32xf32> to vector<2x32xf32>
    %cst_230 = arith.constant dense<0.000000e+00> : vector<2x32xf32>
    %777 = tpu.matmul %767, %596, %cst_230 {dimension_numbers = #tpu.dot_dimension_numbers<[1], [0], [0], [1], [0, 0, 1, 1], [], []>} : vector<2x32xf32>, vector<32x32xf32>, vector<2x32xf32> -> vector<2x32xf32>
    %778 = arith.addf %776, %777 : vector<2x32xf32>
    %779 = arith.negf %778 : vector<2x32xf32>
    %780 = math.exp %779 : vector<2x32xf32>
    %cst_231 = arith.constant 1.000000e+00 : f32
    %781 = vector.broadcast %cst_231 : f32 to vector<2x32xf32>
    %782 = arith.addf %781, %780 : vector<2x32xf32>
    %783 = arith.divf %781, %782 : vector<2x32xf32>
    %784 = vector.extract_strided_slice %591 {offsets = [10, 0], sizes = [2, 32], strides = [1, 1]} : vector<16x32xf32> to vector<2x32xf32>
    %cst_232 = arith.constant dense<0.000000e+00> : vector<2x32xf32>
    %785 = tpu.matmul %767, %598, %cst_232 {dimension_numbers = #tpu.dot_dimension_numbers<[1], [0], [0], [1], [0, 0, 1, 1], [], []>} : vector<2x32xf32>, vector<32x32xf32>, vector<2x32xf32> -> vector<2x32xf32>
    %786 = arith.addf %784, %785 : vector<2x32xf32>
    %787 = math.tanh %786 : vector<2x32xf32>
    %788 = vector.extract_strided_slice %592 {offsets = [10, 0], sizes = [2, 32], strides = [1, 1]} : vector<16x32xf32> to vector<2x32xf32>
    %cst_233 = arith.constant dense<0.000000e+00> : vector<2x32xf32>
    %789 = tpu.matmul %767, %600, %cst_233 {dimension_numbers = #tpu.dot_dimension_numbers<[1], [0], [0], [1], [0, 0, 1, 1], [], []>} : vector<2x32xf32>, vector<32x32xf32>, vector<2x32xf32> -> vector<2x32xf32>
    %790 = arith.addf %788, %789 : vector<2x32xf32>
    %791 = arith.negf %790 : vector<2x32xf32>
    %792 = math.exp %791 : vector<2x32xf32>
    %cst_234 = arith.constant 1.000000e+00 : f32
    %793 = vector.broadcast %cst_234 : f32 to vector<2x32xf32>
    %794 = arith.addf %793, %792 : vector<2x32xf32>
    %795 = arith.divf %793, %794 : vector<2x32xf32>
    %796 = arith.mulf %783, %765 : vector<2x32xf32>
    %797 = arith.mulf %775, %787 : vector<2x32xf32>
    %798 = arith.addf %796, %797 : vector<2x32xf32>
    %799 = math.tanh %798 : vector<2x32xf32>
    %800 = arith.mulf %795, %799 : vector<2x32xf32>
    %801 = vector.extract_strided_slice %589 {offsets = [12, 0], sizes = [2, 32], strides = [1, 1]} : vector<16x32xf32> to vector<2x32xf32>
    %cst_235 = arith.constant dense<0.000000e+00> : vector<2x32xf32>
    %802 = tpu.matmul %800, %594, %cst_235 {dimension_numbers = #tpu.dot_dimension_numbers<[1], [0], [0], [1], [0, 0, 1, 1], [], []>} : vector<2x32xf32>, vector<32x32xf32>, vector<2x32xf32> -> vector<2x32xf32>
    %803 = arith.addf %801, %802 : vector<2x32xf32>
    %804 = arith.negf %803 : vector<2x32xf32>
    %805 = math.exp %804 : vector<2x32xf32>
    %cst_236 = arith.constant 1.000000e+00 : f32
    %806 = vector.broadcast %cst_236 : f32 to vector<2x32xf32>
    %807 = arith.addf %806, %805 : vector<2x32xf32>
    %808 = arith.divf %806, %807 : vector<2x32xf32>
    %809 = vector.extract_strided_slice %590 {offsets = [12, 0], sizes = [2, 32], strides = [1, 1]} : vector<16x32xf32> to vector<2x32xf32>
    %cst_237 = arith.constant dense<0.000000e+00> : vector<2x32xf32>
    %810 = tpu.matmul %800, %596, %cst_237 {dimension_numbers = #tpu.dot_dimension_numbers<[1], [0], [0], [1], [0, 0, 1, 1], [], []>} : vector<2x32xf32>, vector<32x32xf32>, vector<2x32xf32> -> vector<2x32xf32>
    %811 = arith.addf %809, %810 : vector<2x32xf32>
    %812 = arith.negf %811 : vector<2x32xf32>
    %813 = math.exp %812 : vector<2x32xf32>
    %cst_238 = arith.constant 1.000000e+00 : f32
    %814 = vector.broadcast %cst_238 : f32 to vector<2x32xf32>
    %815 = arith.addf %814, %813 : vector<2x32xf32>
    %816 = arith.divf %814, %815 : vector<2x32xf32>
    %817 = vector.extract_strided_slice %591 {offsets = [12, 0], sizes = [2, 32], strides = [1, 1]} : vector<16x32xf32> to vector<2x32xf32>
    %cst_239 = arith.constant dense<0.000000e+00> : vector<2x32xf32>
    %818 = tpu.matmul %800, %598, %cst_239 {dimension_numbers = #tpu.dot_dimension_numbers<[1], [0], [0], [1], [0, 0, 1, 1], [], []>} : vector<2x32xf32>, vector<32x32xf32>, vector<2x32xf32> -> vector<2x32xf32>
    %819 = arith.addf %817, %818 : vector<2x32xf32>
    %820 = math.tanh %819 : vector<2x32xf32>
    %821 = vector.extract_strided_slice %592 {offsets = [12, 0], sizes = [2, 32], strides = [1, 1]} : vector<16x32xf32> to vector<2x32xf32>
    %cst_240 = arith.constant dense<0.000000e+00> : vector<2x32xf32>
    %822 = tpu.matmul %800, %600, %cst_240 {dimension_numbers = #tpu.dot_dimension_numbers<[1], [0], [0], [1], [0, 0, 1, 1], [], []>} : vector<2x32xf32>, vector<32x32xf32>, vector<2x32xf32> -> vector<2x32xf32>
    %823 = arith.addf %821, %822 : vector<2x32xf32>
    %824 = arith.negf %823 : vector<2x32xf32>
    %825 = math.exp %824 : vector<2x32xf32>
    %cst_241 = arith.constant 1.000000e+00 : f32
    %826 = vector.broadcast %cst_241 : f32 to vector<2x32xf32>
    %827 = arith.addf %826, %825 : vector<2x32xf32>
    %828 = arith.divf %826, %827 : vector<2x32xf32>
    %829 = arith.mulf %816, %798 : vector<2x32xf32>
    %830 = arith.mulf %808, %820 : vector<2x32xf32>
    %831 = arith.addf %829, %830 : vector<2x32xf32>
    %832 = math.tanh %831 : vector<2x32xf32>
    %833 = arith.mulf %828, %832 : vector<2x32xf32>
    %834 = vector.extract_strided_slice %589 {offsets = [14, 0], sizes = [2, 32], strides = [1, 1]} : vector<16x32xf32> to vector<2x32xf32>
    %cst_242 = arith.constant dense<0.000000e+00> : vector<2x32xf32>
    %835 = tpu.matmul %833, %594, %cst_242 {dimension_numbers = #tpu.dot_dimension_numbers<[1], [0], [0], [1], [0, 0, 1, 1], [], []>} : vector<2x32xf32>, vector<32x32xf32>, vector<2x32xf32> -> vector<2x32xf32>
    %836 = arith.addf %834, %835 : vector<2x32xf32>
    %837 = arith.negf %836 : vector<2x32xf32>
    %838 = math.exp %837 : vector<2x32xf32>
    %cst_243 = arith.constant 1.000000e+00 : f32
    %839 = vector.broadcast %cst_243 : f32 to vector<2x32xf32>
    %840 = arith.addf %839, %838 : vector<2x32xf32>
    %841 = arith.divf %839, %840 : vector<2x32xf32>
    %842 = vector.extract_strided_slice %590 {offsets = [14, 0], sizes = [2, 32], strides = [1, 1]} : vector<16x32xf32> to vector<2x32xf32>
    %cst_244 = arith.constant dense<0.000000e+00> : vector<2x32xf32>
    %843 = tpu.matmul %833, %596, %cst_244 {dimension_numbers = #tpu.dot_dimension_numbers<[1], [0], [0], [1], [0, 0, 1, 1], [], []>} : vector<2x32xf32>, vector<32x32xf32>, vector<2x32xf32> -> vector<2x32xf32>
    %844 = arith.addf %842, %843 : vector<2x32xf32>
    %845 = arith.negf %844 : vector<2x32xf32>
    %846 = math.exp %845 : vector<2x32xf32>
    %cst_245 = arith.constant 1.000000e+00 : f32
    %847 = vector.broadcast %cst_245 : f32 to vector<2x32xf32>
    %848 = arith.addf %847, %846 : vector<2x32xf32>
    %849 = arith.divf %847, %848 : vector<2x32xf32>
    %850 = vector.extract_strided_slice %591 {offsets = [14, 0], sizes = [2, 32], strides = [1, 1]} : vector<16x32xf32> to vector<2x32xf32>
    %cst_246 = arith.constant dense<0.000000e+00> : vector<2x32xf32>
    %851 = tpu.matmul %833, %598, %cst_246 {dimension_numbers = #tpu.dot_dimension_numbers<[1], [0], [0], [1], [0, 0, 1, 1], [], []>} : vector<2x32xf32>, vector<32x32xf32>, vector<2x32xf32> -> vector<2x32xf32>
    %852 = arith.addf %850, %851 : vector<2x32xf32>
    %853 = math.tanh %852 : vector<2x32xf32>
    %854 = vector.extract_strided_slice %592 {offsets = [14, 0], sizes = [2, 32], strides = [1, 1]} : vector<16x32xf32> to vector<2x32xf32>
    %cst_247 = arith.constant dense<0.000000e+00> : vector<2x32xf32>
    %855 = tpu.matmul %833, %600, %cst_247 {dimension_numbers = #tpu.dot_dimension_numbers<[1], [0], [0], [1], [0, 0, 1, 1], [], []>} : vector<2x32xf32>, vector<32x32xf32>, vector<2x32xf32> -> vector<2x32xf32>
    %856 = arith.addf %854, %855 : vector<2x32xf32>
    %857 = arith.negf %856 : vector<2x32xf32>
    %858 = math.exp %857 : vector<2x32xf32>
    %cst_248 = arith.constant 1.000000e+00 : f32
    %859 = vector.broadcast %cst_248 : f32 to vector<2x32xf32>
    %860 = arith.addf %859, %858 : vector<2x32xf32>
    %861 = arith.divf %859, %860 : vector<2x32xf32>
    %862 = arith.mulf %849, %831 : vector<2x32xf32>
    %863 = arith.mulf %841, %853 : vector<2x32xf32>
    %864 = arith.addf %862, %863 : vector<2x32xf32>
    %865 = math.tanh %864 : vector<2x32xf32>
    %866 = arith.mulf %861, %865 : vector<2x32xf32>
    %c0_249 = arith.constant 0 : index
    %c0_250 = arith.constant 0 : index
    %867 = vector.load %arg10[%c0_249, %c0_250] : memref<64x128xf32, #tpu.memory_space<vmem>>, vector<64x128xf32>
    %cst_251 = arith.constant dense<0.000000e+00> : vector<16x128xf32>
    %868 = tpu.matmul %583, %867, %cst_251 {dimension_numbers = #tpu.dot_dimension_numbers<[1], [0], [0], [1], [0, 0, 1, 1], [], []>} : vector<16x64xf32>, vector<64x128xf32>, vector<16x128xf32> -> vector<16x128xf32>
    %c0_252 = arith.constant 0 : index
    %c0_253 = arith.constant 0 : index
    %869 = vector.load %arg12[%c0_252, %c0_253] : memref<1x128xf32, #tpu.memory_space<vmem>>, vector<1x128xf32>
    %870 = vector.broadcast %869 : vector<1x128xf32> to vector<16x128xf32>
    %871 = arith.addf %868, %870 : vector<16x128xf32>
    %872 = vector.extract_strided_slice %871 {offsets = [0, 0], sizes = [16, 32], strides = [1, 1]} : vector<16x128xf32> to vector<16x32xf32>
    %873 = vector.extract_strided_slice %871 {offsets = [0, 32], sizes = [16, 32], strides = [1, 1]} : vector<16x128xf32> to vector<16x32xf32>
    %874 = vector.extract_strided_slice %871 {offsets = [0, 64], sizes = [16, 32], strides = [1, 1]} : vector<16x128xf32> to vector<16x32xf32>
    %875 = vector.extract_strided_slice %871 {offsets = [0, 96], sizes = [16, 32], strides = [1, 1]} : vector<16x128xf32> to vector<16x32xf32>
    %c0_254 = arith.constant 0 : index
    %c0_255 = arith.constant 0 : index
    %c0_256 = arith.constant 0 : index
    %876 = vector.load %arg11[%c0_254, %c0_255, %c0_256] : memref<4x32x32xf32, #tpu.memory_space<vmem>>, vector<1x32x32xf32>
    %877 = vector.shape_cast %876 : vector<1x32x32xf32> to vector<32x32xf32>
    %c1_257 = arith.constant 1 : index
    %c0_258 = arith.constant 0 : index
    %c0_259 = arith.constant 0 : index
    %878 = vector.load %arg11[%c1_257, %c0_258, %c0_259] : memref<4x32x32xf32, #tpu.memory_space<vmem>>, vector<1x32x32xf32>
    %879 = vector.shape_cast %878 : vector<1x32x32xf32> to vector<32x32xf32>
    %c2_260 = arith.constant 2 : index
    %c0_261 = arith.constant 0 : index
    %c0_262 = arith.constant 0 : index
    %880 = vector.load %arg11[%c2_260, %c0_261, %c0_262] : memref<4x32x32xf32, #tpu.memory_space<vmem>>, vector<1x32x32xf32>
    %881 = vector.shape_cast %880 : vector<1x32x32xf32> to vector<32x32xf32>
    %c3_263 = arith.constant 3 : index
    %c0_264 = arith.constant 0 : index
    %c0_265 = arith.constant 0 : index
    %882 = vector.load %arg11[%c3_263, %c0_264, %c0_265] : memref<4x32x32xf32, #tpu.memory_space<vmem>>, vector<1x32x32xf32>
    %883 = vector.shape_cast %882 : vector<1x32x32xf32> to vector<32x32xf32>
    %cst_266 = arith.constant 0.000000e+00 : f32
    %884 = vector.broadcast %cst_266 : f32 to vector<2x32xf32>
    %cst_267 = arith.constant 0.000000e+00 : f32
    %885 = vector.broadcast %cst_267 : f32 to vector<2x32xf32>
    %886 = vector.extract_strided_slice %872 {offsets = [14, 0], sizes = [2, 32], strides = [1, 1]} : vector<16x32xf32> to vector<2x32xf32>
    %cst_268 = arith.constant dense<0.000000e+00> : vector<2x32xf32>
    %887 = tpu.matmul %884, %877, %cst_268 {dimension_numbers = #tpu.dot_dimension_numbers<[1], [0], [0], [1], [0, 0, 1, 1], [], []>} : vector<2x32xf32>, vector<32x32xf32>, vector<2x32xf32> -> vector<2x32xf32>
    %888 = arith.addf %886, %887 : vector<2x32xf32>
    %889 = arith.negf %888 : vector<2x32xf32>
    %890 = math.exp %889 : vector<2x32xf32>
    %cst_269 = arith.constant 1.000000e+00 : f32
    %891 = vector.broadcast %cst_269 : f32 to vector<2x32xf32>
    %892 = arith.addf %891, %890 : vector<2x32xf32>
    %893 = arith.divf %891, %892 : vector<2x32xf32>
    %894 = vector.extract_strided_slice %873 {offsets = [14, 0], sizes = [2, 32], strides = [1, 1]} : vector<16x32xf32> to vector<2x32xf32>
    %cst_270 = arith.constant dense<0.000000e+00> : vector<2x32xf32>
    %895 = tpu.matmul %884, %879, %cst_270 {dimension_numbers = #tpu.dot_dimension_numbers<[1], [0], [0], [1], [0, 0, 1, 1], [], []>} : vector<2x32xf32>, vector<32x32xf32>, vector<2x32xf32> -> vector<2x32xf32>
    %896 = arith.addf %894, %895 : vector<2x32xf32>
    %897 = arith.negf %896 : vector<2x32xf32>
    %898 = math.exp %897 : vector<2x32xf32>
    %cst_271 = arith.constant 1.000000e+00 : f32
    %899 = vector.broadcast %cst_271 : f32 to vector<2x32xf32>
    %900 = arith.addf %899, %898 : vector<2x32xf32>
    %901 = arith.divf %899, %900 : vector<2x32xf32>
    %902 = vector.extract_strided_slice %874 {offsets = [14, 0], sizes = [2, 32], strides = [1, 1]} : vector<16x32xf32> to vector<2x32xf32>
    %cst_272 = arith.constant dense<0.000000e+00> : vector<2x32xf32>
    %903 = tpu.matmul %884, %881, %cst_272 {dimension_numbers = #tpu.dot_dimension_numbers<[1], [0], [0], [1], [0, 0, 1, 1], [], []>} : vector<2x32xf32>, vector<32x32xf32>, vector<2x32xf32> -> vector<2x32xf32>
    %904 = arith.addf %902, %903 : vector<2x32xf32>
    %905 = math.tanh %904 : vector<2x32xf32>
    %906 = vector.extract_strided_slice %875 {offsets = [14, 0], sizes = [2, 32], strides = [1, 1]} : vector<16x32xf32> to vector<2x32xf32>
    %cst_273 = arith.constant dense<0.000000e+00> : vector<2x32xf32>
    %907 = tpu.matmul %884, %883, %cst_273 {dimension_numbers = #tpu.dot_dimension_numbers<[1], [0], [0], [1], [0, 0, 1, 1], [], []>} : vector<2x32xf32>, vector<32x32xf32>, vector<2x32xf32> -> vector<2x32xf32>
    %908 = arith.addf %906, %907 : vector<2x32xf32>
    %909 = arith.negf %908 : vector<2x32xf32>
    %910 = math.exp %909 : vector<2x32xf32>
    %cst_274 = arith.constant 1.000000e+00 : f32
    %911 = vector.broadcast %cst_274 : f32 to vector<2x32xf32>
    %912 = arith.addf %911, %910 : vector<2x32xf32>
    %913 = arith.divf %911, %912 : vector<2x32xf32>
    %914 = arith.mulf %901, %885 : vector<2x32xf32>
    %915 = arith.mulf %893, %905 : vector<2x32xf32>
    %916 = arith.addf %914, %915 : vector<2x32xf32>
    %917 = math.tanh %916 : vector<2x32xf32>
    %918 = arith.mulf %913, %917 : vector<2x32xf32>
    %c0_275 = arith.constant 0 : index
    %c0_276 = arith.constant 0 : index
    %919 = vector.load %arg13[%c0_275, %c0_276] : memref<64x8xf32, #tpu.memory_space<vmem>>, vector<32x8xf32>
    %cst_277 = arith.constant dense<0.000000e+00> : vector<2x8xf32>
    %920 = tpu.matmul %866, %919, %cst_277 {dimension_numbers = #tpu.dot_dimension_numbers<[1], [0], [0], [1], [0, 0, 1, 1], [], []>} : vector<2x32xf32>, vector<32x8xf32>, vector<2x8xf32> -> vector<2x8xf32>
    %c32_278 = arith.constant 32 : index
    %c0_279 = arith.constant 0 : index
    %921 = vector.load %arg13[%c32_278, %c0_279] : memref<64x8xf32, #tpu.memory_space<vmem>>, vector<32x8xf32>
    %cst_280 = arith.constant dense<0.000000e+00> : vector<2x8xf32>
    %922 = tpu.matmul %918, %921, %cst_280 {dimension_numbers = #tpu.dot_dimension_numbers<[1], [0], [0], [1], [0, 0, 1, 1], [], []>} : vector<2x32xf32>, vector<32x8xf32>, vector<2x8xf32> -> vector<2x8xf32>
    %923 = arith.addf %920, %922 : vector<2x8xf32>
    %c0_281 = arith.constant 0 : index
    %c0_282 = arith.constant 0 : index
    %924 = vector.load %arg14[%c0_281, %c0_282] : memref<1x8xf32, #tpu.memory_space<vmem>>, vector<1x8xf32>
    %925 = vector.broadcast %924 : vector<1x8xf32> to vector<2x8xf32>
    %926 = arith.addf %923, %925 : vector<2x8xf32>
    %c0_283 = arith.constant 0 : index
    %c0_284 = arith.constant 0 : index
    %927 = vector.load %arg17[%c0_283, %c0_284] : memref<2x8xf32, #tpu.memory_space<vmem>>, vector<2x8xf32>
    tpu.vector_store %arg17[%c0_283, %c0_284], %926 {strides = array<i32>} : memref<2x8xf32, #tpu.memory_space<vmem>>, vector<2x8xf32>,
    %c0_285 = arith.constant 0 : index
    %c0_286 = arith.constant 0 : index
    %928 = vector.load %arg15[%c0_285, %c0_286] : memref<64x8xf32, #tpu.memory_space<vmem>>, vector<32x8xf32>
    %cst_287 = arith.constant dense<0.000000e+00> : vector<2x8xf32>
    %929 = tpu.matmul %866, %928, %cst_287 {dimension_numbers = #tpu.dot_dimension_numbers<[1], [0], [0], [1], [0, 0, 1, 1], [], []>} : vector<2x32xf32>, vector<32x8xf32>, vector<2x8xf32> -> vector<2x8xf32>
    %c32_288 = arith.constant 32 : index
    %c0_289 = arith.constant 0 : index
    %930 = vector.load %arg15[%c32_288, %c0_289] : memref<64x8xf32, #tpu.memory_space<vmem>>, vector<32x8xf32>
    %cst_290 = arith.constant dense<0.000000e+00> : vector<2x8xf32>
    %931 = tpu.matmul %918, %930, %cst_290 {dimension_numbers = #tpu.dot_dimension_numbers<[1], [0], [0], [1], [0, 0, 1, 1], [], []>} : vector<2x32xf32>, vector<32x8xf32>, vector<2x8xf32> -> vector<2x8xf32>
    %932 = arith.addf %929, %931 : vector<2x8xf32>
    %c0_291 = arith.constant 0 : index
    %c0_292 = arith.constant 0 : index
    %933 = vector.load %arg16[%c0_291, %c0_292] : memref<1x8xf32, #tpu.memory_space<vmem>>, vector<1x8xf32>
    %934 = vector.broadcast %933 : vector<1x8xf32> to vector<2x8xf32>
    %935 = arith.addf %932, %934 : vector<2x8xf32>
    %c0_293 = arith.constant 0 : index
    %c0_294 = arith.constant 0 : index
    %936 = vector.load %arg18[%c0_293, %c0_294] : memref<2x8xf32, #tpu.memory_space<vmem>>, vector<2x8xf32>
    tpu.vector_store %arg18[%c0_293, %c0_294], %935 {strides = array<i32>} : memref<2x8xf32, #tpu.memory_space<vmem>>, vector<2x8xf32>,
    return
  }
}

</mosaic_0001>

<bundles_post_ra>
// kernel: encoder_forward.3
= control target key start
LH: loop header
LB: loop body
LE: loop exit
PB: predicated region body
PF: predicated region fallthrough
CT: control target
= control target key end

     0   :  { %v253_v3 = vmov 0.0   ;;  %vm38_vm0 = vcmask 130048   ;;  %v28_v32 = vlaneseq  ;;  %vm158_vm1 = vcmask 588800   ;;  %s418_s1 = inlined_call_operand.vmem [shape: f32[16,200], index: 1, kind: input, shape index: {}]   ;;  %s419_s0 = inlined_call_operand.vmem [shape: f32[16,16], index: 0, kind: input, shape index: {}]   ;;  %s420_s3 = inlined_call_operand.vmem [shape: f32[200,32], index: 3, kind: input, shape index: {}]   ;;  %s421_s2 = inlined_call_operand.vmem [shape: f32[1,200], index: 2, kind: input, shape index: {}]   ;;  %s422_s4 = inlined_call_operand.vmem [shape: f32[1,32], index: 4, kind: input, shape index: {}]   ;;  %s423_s5 = inlined_call_operand.vmem [shape: f32[16,32], index: 5, kind: output, shape index: {}]  }
   0x1   :  { %v25_v0 = vld [vmem:[%s418_s1 + $0x18] sm:$0xff]  ;;  %v24_v1 = vld [vmem:[%s418_s1 + $0x10] sm:$0xff]  ;;  %v23_v2 = vld [vmem:[%s418_s1 + $0x8] sm:$0xff]  ;;  %109 = vmatprep.mubr.f32.mxu0 %v253_v3  ;;  %165 = vmatprep.subr.mxu1 %v253_v3  ;;  %vm240_vm2 = vcmask 261120  }
   0x2   :  { %73 = vmatprep.subr.mxu0 %v25_v0  ;;  %v22_v4 = vld [vmem:[%s418_s1] sm:$0xff]  ;;  %v141_v6 = vld [vmem:[%s420_s3 + $0x78] sm:$0xff]  ;;  %v140_v7 = vld [vmem:[%s420_s3 + $0x70] sm:$0xff]  ;;  %v29_v33 = vshrl.u32 %v28_v32, 7 }
   0x3   :  { %74 = vmatpush1.msra.mxu0 %v24_v1  ;;  %v20_v5 = vld [vmem:[%s419_s0] sm:$0xff]  ;;  %166 = vmatpush1.msra.mxu1 %v141_v6  ;;  %v139_v8 = vld [vmem:[%s420_s3 + $0x68] sm:$0xff]  ;;  %v137_v11 = vld [vmem:[%s420_s3 + $0x58] sm:$0xff] }
   0x4   :  { %75 = vmatprep.subr.mxu0 %v23_v2  ;;  %167 = vmatprep.subr.mxu1 %v253_v3  ;;  %v21_v9 = vld [vmem:[%s419_s0 + $0x8] sm:$0xff]  ;;  %v138_v10 = vld [vmem:[%s420_s3 + $0x60] sm:$0xff]  ;;  %v136_v12 = vld [vmem:[%s420_s3 + $0x50] sm:$0xff]  ;;  %v30_v34 = vsub.s32 0, %v29_v33  ;;  %v34_v36 = vsub.s32 1, %v29_v33 }
   0x5   :  { %76 = vmatpush1.msra.mxu0 %v22_v4  ;;  %168 = vmatpush1.msra.mxu1 %v140_v7  ;;  %v135_v13 = vld [vmem:[%s420_s3 + $0x48] sm:$0xff]  ;;  %v134_v14 = vld [vmem:[%s420_s3 + $0x40] sm:$0xff]  ;;  %v133_v15 = vld [vmem:[%s420_s3 + $0x38] sm:$0xff] }
   0x6   :  { %247 = vmatmul.mubr.msk.f32.vlgmr.msra.gmra.mxu0 %vm38_vm0, %v20_v5  ;;  %169 = vmatprep.subr.mxu1 %v253_v3  ;;  %v132_v16 = vld [vmem:[%s420_s3 + $0x30] sm:$0xff]  ;;  %v131_v17 = vld [vmem:[%s420_s3 + $0x28] sm:$0xff]  ;;  %v130_v18 = vld [vmem:[%s420_s3 + $0x20] sm:$0xff] }
   0x7   :  { %115 = vmatprep.mubr.f32.mxu0 %v253_v3  ;;  %170 = vmatpush1.msra.mxu1 %v139_v8  ;;  %v129_v19 = vld [vmem:[%s420_s3 + $0x18] sm:$0xff]  ;;  %v128_v20 = vld [vmem:[%s420_s3 + $0x10] sm:$0xff]  ;;  %v127_v21 = vld [vmem:[%s420_s3 + $0x8] sm:$0xff] }
   0x8   :  { %171 = vmatprep.subr.mxu1 %v253_v3  ;;  %v126_v22 = vld [vmem:[%s420_s3] sm:$0xff]  ;;  %v149_v24 = vld [vmem:[%s420_s3 + $0xb8] sm:$0xff]  ;;  %v148_v25 = vld [vmem:[%s420_s3 + $0xb0] sm:$0xff] }
   0x9   :  { %172 = vmatpush1.msra.mxu1 %v138_v10  ;;  %v150_v23 = vld [vmem:[%s420_s3 + $0xc0] sm:$0xff]  ;;  %v147_v26 = vld [vmem:[%s420_s3 + $0xa8] sm:$0xff]  ;;  %v145_v28 = vld [vmem:[%s420_s3 + $0x98] sm:$0xff] }
   0xa   :  { %248 = vmatmul.mubr.msk.f32.gmra.mxu0 %vm38_vm0, %v21_v9  ;;  %173 = vmatprep.subr.mxu1 %v253_v3  ;;  %v146_v27 = vld [vmem:[%s420_s3 + $0xa0] sm:$0xff]  ;;  %v144_v29 = vld [vmem:[%s420_s3 + $0x90] sm:$0xff]  ;;  %v143_v30 = vld [vmem:[%s420_s3 + $0x88] sm:$0xff] }
   0xb   :  { %174 = vmatpush1.msra.mxu1 %v137_v11  ;;  %v142_v31 = vld [vmem:[%s420_s3 + $0x80] sm:$0xff] }
   0xc   :  { %175 = vmatprep.subr.mxu1 %v253_v3  ;;  %v26_v35 = vld [vmem:[%s421_s2] sm:$0x3] }
   0xd   :  { %176 = vmatpush1.msra.mxu1 %v136_v12  ;;  %v31_v37 = vrot.slane %v26_v35, %v30_v34  ;;  %v35_v38 = vrot.slane %v26_v35, %v34_v36  ;;  %v249_v51 = vld [vmem:[%s422_s4] ss:$0 sm:$0xff] }
   0xe   :  { %177 = vmatprep.subr.mxu1 %v253_v3 }
   0xf   :  { %178 = vmatpush1.msra.mxu1 %v135_v13 }
  0x10   :  { %179 = vmatprep.subr.mxu1 %v253_v3 }
  0x11   :  { %180 = vmatpush1.msra.mxu1 %v134_v14 }
  0x12   :  { %181 = vmatprep.subr.mxu1 %v253_v3 }
  0x13   :  { %182 = vmatpush1.msra.mxu1 %v133_v15 }
  0x14   :  { %183 = vmatprep.subr.mxu1 %v253_v3 }
  0x15   :  { %184 = vmatpush1.msra.mxu1 %v132_v16 }
  0x16   :  { %185 = vmatprep.subr.mxu1 %v253_v3 }
  0x17   :  { %186 = vmatpush1.msra.mxu1 %v131_v17 }
  0x18   :  { %187 = vmatprep.subr.mxu1 %v253_v3 }
  0x19   :  { %188 = vmatpush1.msra.mxu1 %v130_v18 }
  0x1a   :  { %189 = vmatprep.subr.mxu1 %v253_v3 }
  0x1b   :  { %190 = vmatpush1.msra.mxu1 %v129_v19 }
  0x1c   :  { %191 = vmatprep.subr.mxu1 %v253_v3 }
  0x1d   :  { %192 = vmatpush1.msra.mxu1 %v128_v20 }
  0x1e   :  { %193 = vmatprep.subr.mxu1 %v253_v3 }
  0x1f   :  { %194 = vmatpush1.msra.mxu1 %v127_v21 }
  0x20   :  { %195 = vmatprep.subr.mxu1 %v253_v3 }
  0x21   :  { %196 = vmatpush1.msra.mxu1 %v126_v22 }
  0x22   :  { %211 = vmatprep.subr.mxu1 %v253_v3 }
  0x23   :  { %212 = vmatpush2.msra.mxu1 %v150_v23 }
  0x24   :  { %213 = vmatprep.subr.mxu1 %v253_v3 }
  0x25   :  { %214 = vmatpush2.msra.mxu1 %v149_v24 }
  0x26   :  { %215 = vmatprep.subr.mxu1 %v253_v3 }
  0x27   :  { %216 = vmatpush2.msra.mxu1 %v148_v25 }
  0x28   :  { %217 = vmatprep.subr.mxu1 %v253_v3 }
  0x29   :  { %218 = vmatpush2.msra.mxu1 %v147_v26 }
  0x2a   :  { %219 = vmatprep.subr.mxu1 %v253_v3 }
  0x2b   :  { %220 = vmatpush2.msra.mxu1 %v146_v27 }
  0x2c   :  { %221 = vmatprep.subr.mxu1 %v253_v3 }
  0x2d   :  { %222 = vmatpush2.msra.mxu1 %v145_v28 }
  0x2e   :  { %223 = vmatprep.subr.mxu1 %v253_v3 }
  0x2f   :  { %224 = vmatpush2.msra.mxu1 %v144_v29 }
  0x30   :  { %225 = vmatprep.subr.mxu1 %v253_v3 }
  0x31   :  { %226 = vmatpush2.msra.mxu1 %v143_v30 }
  0x32   :  { %227 = vmatprep.subr.mxu1 %v253_v3 }
  0x33   :  { %228 = vmatpush2.msra.mxu1 %v142_v31 }
  0xc6   :  { %v111_v39 = vpop.f32.mrf.mxu0 }
  0xc7   :  { %v112_v40 = vadd.f32 %v111_v39, %v31_v37 }
  0xc8   :  { %v113_v41 = vpop.f32.mrf.mxu0 }
  0xc9   :  { %v114_v42 = vadd.f32 %v113_v41, %v35_v38  ;;  %v122_v45 = vmax.f32 %v112_v40, 0.0 }
  0xca   :  { %v117_v43 = vpop.f32.mrf.mxu0 }
  0xcb   :  { %v123_v44 = vmax.f32 %v114_v42, 0.0  ;;  %v118_v46 = vadd.f32 %v117_v43, %v31_v37 }
  0xcc   :  { %v119_v47 = vpop.f32.mrf.mxu0 }
  0xcd   :  { %v120_v48 = vadd.f32 %v119_v47, %v35_v38  ;;  %250 = vmatprep.mubr.msk.f32.mxu1 %vm158_vm1, %v123_v44  ;;  %v124_v50 = vmax.f32 %v118_v46, 0.0 }
  0xce   :  { %230 = vmatmul.mubr.f32.vlgmr.msra.gmra.mxu1 %v122_v45 }
  0xcf   :  { %v125_v49 = vmax.f32 %v120_v48, 0.0 }
  0xd1   :  { %251 = vmatprep.mubr.msk.f32.mxu1 %vm158_vm1, %v125_v49 }
  0xd2   :  { %235 = vmatmul.mubr.f32.gmra.mxu1 %v124_v50 }
 0x18e   :  { %v231_v52 = vpop.f32.mrf.mxu1 }
 0x18f   :  { %v232_v53 = vadd.f32 %v249_v51, %v231_v52 }
 0x190   :  { %v233_v54 = vpop.f32.mrf.mxu1 }
 0x191   :  { %241 = vst.msk [vmem:[%s423_s5] sm:$0xff] %vm240_vm2, %v232_v53 }
 0x192   :  { %v236_v55 = vpop.f32.mrf.mxu1 }
 0x193   :  { %v237_v56 = vadd.f32 %v249_v51, %v236_v55 }
 0x194   :  { %v238_v57 = vpop.f32.mrf.mxu1 }
 0x195   :  { %242 = vst.msk [vmem:[%s423_s5 + $0x8] sm:$0xff] %vm240_vm2, %v237_v56 }

// kernel: encoder_forward.4
= control target key start
LH: loop header
LB: loop body
LE: loop exit
PB: predicated region body
PF: predicated region fallthrough
CT: control target
= control target key end

     0   :  { %18 = vsyncpa [#allocation4], 0  ;;  %v2086_v3 = vmov 0.0   ;;  %s2485_s0 = inlined_call_operand.vmem [shape: f32[16,32], index: 0, kind: input, shape index: {}]   ;;  %s2486_s1 = inlined_call_operand.vmem [shape: f32[32,32], index: 1, kind: input, shape index: {}]   ;;  %s2487_s2 = inlined_call_operand.vmem [shape: f32[32,32], index: 2, kind: input, shape index: {}]   ;;  %s2488_s3 = inlined_call_operand.vmem [shape: f32[1,32], index: 3, kind: input, shape index: {}]   ;;  %s2489_s4 = inlined_call_operand.vmem [shape: f32[32,32], index: 4, kind: input, shape index: {}]   ;;  %s2490_s5 = inlined_call_operand.vmem [shape: f32[32,32], index: 5, kind: input, shape index: {}]   ;;  %s2491_s6 = inlined_call_operand.vmem [shape: f32[1,32], index: 6, kind: input, shape index: {}]   ;;  %s2492_s7 = inlined_call_operand.vmem [shape: f32[32,8], index: 7, kind: input, shape index: {}]   ;;  %s2493_s8 = inlined_call_operand.vmem [shape: f32[1,8], index: 8, kind: input, shape index: {}]   ;;  %s2494_s9 = inlined_call_operand.vmem [shape: f32[32,8], index: 9, kind: input, shape index: {}]   ;;  %s2495_s10 = inlined_call_operand.vmem [shape: f32[1,8], index: 10, kind: input, shape index: {}]   ;;  %s2496_s11 = inlined_call_operand.hbm [shape: f32[2,8], index: 11, kind: output, shape index: {0}]   ;;  %s2497_s12 = inlined_call_operand.hbm [shape: f32[2,8], index: 12, kind: output, shape index: {1}]  }
   0x1   :  { %v47_v0 = vld [vmem:[%s2486_s1 + $0x18] sm:$0xff]  ;;  %v46_v2 = vld [vmem:[%s2486_s1 + $0x10] sm:$0xff]  ;;  %1829 = vmatprep.subr.mxu1 %v2086_v3  ;;  %v45_v5 = vld [vmem:[%s2486_s1 + $0x8] sm:$0xff] }
   0x2   :  { %v2161_v1 = vld [vmem:[%s2487_s2 + $0x18] sm:$0xff]  ;;  %1818 = vmatprep.subr.mxu0 %v47_v0  ;;  %v2170_v4 = vld [vmem:[%s2487_s2 + $0x10] sm:$0xff]  ;;  %v2180_v6 = vld [vmem:[%s2487_s2 + $0x8] sm:$0xff] }
   0x3   :  { %1819 = vmatpush3.msra.mxu0 %v47_v0  ;;  %1830 = vmatpush3.msra.mxu1 %v2161_v1 }
   0x4   :  { %1820 = vmatprep.subr.mxu0 %v46_v2  ;;  %1831 = vmatprep.subr.mxu1 %v2086_v3 }
   0x5   :  { %19 = vsyncpa [#allocation6], 0  ;;  %1821 = vmatpush3.msra.mxu0 %v46_v2  ;;  %1832 = vmatpush3.msra.mxu1 %v2170_v4  ;;  %v44_v7 = vld [vmem:[%s2486_s1] sm:$0xff]  ;;  %vm59_vm0 = vcmask 261120   ;;  %v43_v10 = vld [vmem:[%s2485_s0 + $0x8] sm:$0xff]  ;;  %vm2087_vm1 = vmmov 0  }
   0x6   :  { %1822 = vmatprep.subr.mxu0 %v45_v5  ;;  %1833 = vmatprep.subr.mxu1 %v2086_v3  ;;  %v42_v8 = vld [vmem:[%s2485_s0] sm:$0xff]  ;;  %vm219_vm2 = vcmask 261126   ;;  %vm300_vm3 = vcmask 259076   ;;  %vm381_vm4 = vcmask 257026   ;;  %vm459_vm5 = vcmask 254976   ;;  %v782_v57 = vld [vmem:[%s2489_s4 + $0x18] sm:$0xff] }
   0x7   :  { %1823 = vmatpush3.msra.mxu0 %v45_v5  ;;  %1834 = vmatpush3.msra.mxu1 %v2180_v6  ;;  %v2194_v9 = vld [vmem:[%s2487_s2] sm:$0xff]  ;;  %v781_v58 = vld [vmem:[%s2489_s4 + $0x10] sm:$0xff]  ;;  %v2315_v59 = vld [vmem:[%s2490_s5 + $0x18] sm:$0xff]  ;;  %s2089_s16 = smov [#allocation5]   ;;  %vm1580_vm6 = vcmask 58368  }
   0x8   :  { %1824 = vmatprep.subr.mxu0 %v44_v7  ;;  %1835 = vmatprep.subr.mxu1 %v2086_v3  ;;  %v2231_v11 = vld [vmem:[%s2488_s3] ss:$0 sm:$0xff]  ;;  %v780_v60 = vld [vmem:[%s2489_s4 + $0x8] sm:$0xff]  ;;  %v2324_v61 = vld [vmem:[%s2490_s5 + $0x10] sm:$0xff]  ;;  %s1680_s17 = sshll.u32 %s2089_s16, 4  ;;  %s1681_s17 = int_to_ptr.vmem [resolvable:$true] %s1680_s17 }
   0x9   :  { %1825 = vmatpush3.msra.mxu0 %v44_v7  ;;  %1826 = vmatprep.mubr.msk.f32.mxu0 %vm59_vm0, %v42_v8  ;;  %v2330_v62 = vld [vmem:[%s2490_s5 + $0x8] sm:$0xff]  ;;  %v779_v63 = vld [vmem:[%s2489_s4] sm:$0xff] }
   0xa   :  { %1836 = vmatpush3.msra.mxu1 %v2194_v9  ;;  %1837 = vmatprep.mubr.msk.f32.mxu1 %vm2087_vm1, %v2086_v3  ;;  %v2342_v0 = vld [vmem:[%s2490_s5] sm:$0xff] }
   0xb   :  { %1827 = vmatmul.mubr.msk.f32.vlgmr.msra.gmra.mxu0 %vm59_vm0, %v43_v10  ;;  %1838 = vmatmul.mubr.f32.vlgmr.msra.gmra.mxu1 %v2086_v3 }
   0xc   :  { %1840 = vmatprep.subr.mxu0 %v2086_v3  ;;  %1848 = vmatprep.mubr.msk.f32.mxu0 %vm2087_vm1, %v2086_v3 }
   0xd   :  { %1841 = vmatpush3.msra.mxu0 %v2161_v1  ;;  %1851 = vmatprep.subr.mxu1 %v2086_v3 }
   0xe   :  { %1842 = vmatprep.subr.mxu0 %v2086_v3  ;;  %1852 = vmatpush3.msra.mxu1 %v2161_v1 }
   0xf   :  { %1843 = vmatpush3.msra.mxu0 %v2170_v4  ;;  %1853 = vmatprep.subr.mxu1 %v2086_v3 }
  0x10   :  { %1844 = vmatprep.subr.mxu0 %v2086_v3  ;;  %1854 = vmatpush3.msra.mxu1 %v2170_v4 }
  0x11   :  { %1845 = vmatpush3.msra.mxu0 %v2180_v6  ;;  %1855 = vmatprep.subr.mxu1 %v2086_v3 }
  0x12   :  { %1846 = vmatprep.subr.mxu0 %v2086_v3  ;;  %1856 = vmatpush3.msra.mxu1 %v2180_v6 }
  0x13   :  { %1847 = vmatpush3.msra.mxu0 %v2194_v9  ;;  %1857 = vmatprep.subr.mxu1 %v2086_v3 }
  0x14   :  { %1858 = vmatpush3.msra.mxu1 %v2194_v9  ;;  %1859 = vmatprep.mubr.msk.f32.mxu1 %vm2087_vm1, %v2086_v3 }
  0x15   :  { %1862 = vmatprep.subr.mxu0 %v2086_v3  ;;  %1873 = vmatprep.subr.mxu1 %v2086_v3 }
  0xcb   :  { %v1828_v12 = vpop.f32.mrf.mxu0  ;;  %v210_v13 = vpop.f32.mrf.mxu1 }
  0xcc   :  { %v138_v14 = vadd.f32 %v1828_v12, %v2231_v11  ;;  %v215_v15 = vrot.slane %v210_v13, 2 }
  0xcd   :  { %v1839_v16 = vpop.f32.mrf.mxu1  ;;  %v132_v20 = vpop.f32.mrf.mxu0 }
  0xce   :  { %v217_v17 = vadd.f32 %v215_v15, %v138_v14  ;;  %v2282_v38 = vadd.f32 %v2231_v11, %v132_v20 }
  0xd0   :  { %v218_v18 = vmax.f32 %v217_v17, 0.0 }
  0xd2   :  { %220 = vst.msk [vmem:[#allocation2 - $0x6] sm:$0xc0] %vm219_vm2, %v218_v18  ;;  %v222_v19 = vrot.slane %v218_v18, 6 }
  0xd4   :  { %1849 = vmatmul.mubr.msk.f32.vlgmr.msra.gmra.mxu0 %vm59_vm0, %v222_v19 }
  0xd5   :  { %1863 = vmatpush3.msra.mxu0 %v2161_v1  ;;  %1870 = vmatprep.mubr.msk.f32.mxu0 %vm2087_vm1, %v2086_v3 }
  0xd6   :  { %1864 = vmatprep.subr.mxu0 %v2086_v3 }
  0xd7   :  { %1865 = vmatpush3.msra.mxu0 %v2170_v4 }
  0xd8   :  { %1866 = vmatprep.subr.mxu0 %v2086_v3 }
  0xd9   :  { %1867 = vmatpush3.msra.mxu0 %v2180_v6 }
  0xda   :  { %1868 = vmatprep.subr.mxu0 %v2086_v3 }
  0xdb   :  { %1869 = vmatpush3.msra.mxu0 %v2194_v9 }
  0xdc   :  { %1884 = vmatprep.subr.mxu0 %v2086_v3 }
 0x194   :  { %v291_v21 = vpop.f32.mrf.mxu0 }
 0x195   :  { %v296_v22 = vrot.slane %v291_v21, 4 }
 0x196   :  { %v1850_v23 = vpop.f32.mrf.mxu0 }
 0x197   :  { %v298_v24 = vadd.f32 %v296_v22, %v138_v14 }
 0x199   :  { %v299_v25 = vmax.f32 %v298_v24, 0.0 }
 0x19b   :  { %301 = vst.msk [vmem:[#allocation2 - $0x2] sm:$0x30] %vm300_vm3, %v299_v25  ;;  %v303_v26 = vrot.slane %v299_v25, 4 }
 0x19d   :  { %1860 = vmatmul.mubr.msk.f32.vlgmr.msra.gmra.mxu1 %vm59_vm0, %v303_v26 }
 0x19e   :  { %1874 = vmatpush3.msra.mxu1 %v2161_v1  ;;  %1881 = vmatprep.mubr.msk.f32.mxu1 %vm2087_vm1, %v2086_v3 }
 0x19f   :  { %1875 = vmatprep.subr.mxu1 %v2086_v3 }
 0x1a0   :  { %1876 = vmatpush3.msra.mxu1 %v2170_v4 }
 0x1a1   :  { %1877 = vmatprep.subr.mxu1 %v2086_v3 }
 0x1a2   :  { %1878 = vmatpush3.msra.mxu1 %v2180_v6 }
 0x1a3   :  { %1879 = vmatprep.subr.mxu1 %v2086_v3 }
 0x1a4   :  { %1880 = vmatpush3.msra.mxu1 %v2194_v9 }
 0x1a5   :  { %1895 = vmatprep.subr.mxu1 %v2086_v3 }
 0x25d   :  { %v372_v27 = vpop.f32.mrf.mxu1 }
 0x25e   :  { %v377_v28 = vrot.slane %v372_v27, 6 }
 0x25f   :  { %v1861_v29 = vpop.f32.mrf.mxu1 }
 0x260   :  { %v379_v30 = vadd.f32 %v377_v28, %v138_v14 }
 0x262   :  { %v380_v31 = vmax.f32 %v379_v30, 0.0 }
 0x264   :  { %382 = vst.msk [vmem:[#allocation2 + $0x2] sm:$0xc] %vm381_vm4, %v380_v31  ;;  %v384_v32 = vrot.slane %v380_v31, 2 }
 0x266   :  { %1871 = vmatmul.mubr.msk.f32.vlgmr.msra.gmra.mxu0 %vm59_vm0, %v384_v32 }
 0x267   :  { %1885 = vmatpush3.msra.mxu0 %v2161_v1  ;;  %1892 = vmatprep.mubr.msk.f32.mxu0 %vm2087_vm1, %v2086_v3 }
 0x268   :  { %1886 = vmatprep.subr.mxu0 %v2086_v3 }
 0x269   :  { %1887 = vmatpush3.msra.mxu0 %v2170_v4 }
 0x26a   :  { %1888 = vmatprep.subr.mxu0 %v2086_v3 }
 0x26b   :  { %1889 = vmatpush3.msra.mxu0 %v2180_v6 }
 0x26c   :  { %1890 = vmatprep.subr.mxu0 %v2086_v3 }
 0x26d   :  { %1891 = vmatpush3.msra.mxu0 %v2194_v9 }
 0x26e   :  { %1906 = vmatprep.subr.mxu0 %v2086_v3 }
 0x326   :  { %v453_v33 = vpop.f32.mrf.mxu0 }
 0x327   :  { %v457_v34 = vadd.f32 %v453_v33, %v138_v14 }
 0x328   :  { %v1872_v35 = vpop.f32.mrf.mxu0 }
 0x329   :  { %v458_v36 = vmax.f32 %v457_v34, 0.0 }
 0x32b   :  { %460 = vst.msk [vmem:[#allocation2 + $0x6] sm:$0x3] %vm459_vm5, %v458_v36  ;;  %1882 = vmatmul.mubr.msk.f32.vlgmr.msra.gmra.mxu1 %vm59_vm0, %v458_v36 }
 0x32c   :  { %1896 = vmatpush3.msra.mxu1 %v2161_v1  ;;  %1903 = vmatprep.mubr.msk.f32.mxu1 %vm2087_vm1, %v2086_v3 }
 0x32d   :  { %1897 = vmatprep.subr.mxu1 %v2086_v3 }
 0x32e   :  { %1898 = vmatpush3.msra.mxu1 %v2170_v4 }
 0x32f   :  { %1899 = vmatprep.subr.mxu1 %v2086_v3 }
 0x330   :  { %1900 = vmatpush3.msra.mxu1 %v2180_v6 }
 0x331   :  { %1901 = vmatprep.subr.mxu1 %v2086_v3 }
 0x332   :  { %1902 = vmatpush3.msra.mxu1 %v2194_v9  ;;  %v777_v50 = vld [vmem:[#allocation2] sm:$0xff] }
 0x333   :  { %1917 = vmatprep.subr.mxu1 %v782_v57 }
 0x3eb   :  { %v530_v37 = vpop.f32.mrf.mxu1 }
 0x3ec   :  { %v535_v39 = vrot.slane %v530_v37, 2 }
 0x3ed   :  { %v1883_v40 = vpop.f32.mrf.mxu1 }
 0x3ee   :  { %v537_v41 = vadd.f32 %v535_v39, %v2282_v38 }
 0x3f0   :  { %v538_v42 = vmax.f32 %v537_v41, 0.0 }
 0x3f2   :  { %539 = vst.msk [vmem:[#allocation2 + $0x2] sm:$0xc0] %vm219_vm2, %v538_v42  ;;  %v541_v43 = vrot.slane %v538_v42, 6 }
 0x3f4   :  { %1893 = vmatmul.mubr.msk.f32.vlgmr.msra.gmra.mxu0 %vm59_vm0, %v541_v43 }
 0x3f5   :  { %1907 = vmatpush3.msra.mxu0 %v2161_v1  ;;  %1914 = vmatprep.mubr.msk.f32.mxu0 %vm2087_vm1, %v2086_v3 }
 0x3f6   :  { %1908 = vmatprep.subr.mxu0 %v2086_v3 }
 0x3f7   :  { %1909 = vmatpush3.msra.mxu0 %v2170_v4 }
 0x3f8   :  { %1910 = vmatprep.subr.mxu0 %v2086_v3 }
 0x3f9   :  { %1911 = vmatpush3.msra.mxu0 %v2180_v6 }
 0x3fa   :  { %1912 = vmatprep.subr.mxu0 %v2086_v3 }
 0x3fb   :  { %1913 = vmatpush3.msra.mxu0 %v2194_v9  ;;  %v1702_v9 = vld [vmem:[%s2491_s6] ss:$0 sm:$0xff] }
 0x3fc   :  { %1928 = vmatprep.subr.mxu0 %v2086_v3 }
 0x4b4   :  { %v610_v44 = vpop.f32.mrf.mxu0 }
 0x4b5   :  { %v615_v45 = vrot.slane %v610_v44, 4 }
 0x4b6   :  { %v1894_v46 = vpop.f32.mrf.mxu0 }
 0x4b7   :  { %v617_v47 = vadd.f32 %v615_v45, %v2282_v38 }
 0x4b9   :  { %v618_v48 = vmax.f32 %v617_v47, 0.0 }
 0x4bb   :  { %619 = vst.msk [vmem:[#allocation2 + $0x6] sm:$0x30] %vm300_vm3, %v618_v48  ;;  %v621_v49 = vrot.slane %v618_v48, 4 }
 0x4bd   :  { %1904 = vmatmul.mubr.msk.f32.vlgmr.msra.gmra.mxu1 %vm59_vm0, %v621_v49 }
 0x4be   :  { %1925 = vmatprep.mubr.msk.f32.mxu1 %vm59_vm0, %v777_v50  ;;  %1918 = vmatpush3.msra.mxu1 %v782_v57  ;;  %v1498_v50 = vld [vmem:[%s2492_s7 + $0x18] sm:$0xff]  ;;  %v1582_v57 = vld [vmem:[%s2494_s9] sm:$0xff] }
 0x4bf   :  { %1919 = vmatprep.subr.mxu1 %v781_v58 }
 0x4c0   :  { %1920 = vmatpush3.msra.mxu1 %v781_v58 }
 0x4c1   :  { %1921 = vmatprep.subr.mxu1 %v780_v60 }
 0x4c2   :  { %1922 = vmatpush3.msra.mxu1 %v780_v60 }
 0x4c3   :  { %1923 = vmatprep.subr.mxu1 %v779_v63 }
 0x4c4   :  { %1924 = vmatpush3.msra.mxu1 %v779_v63 }
 0x4c5   :  { %1939 = vmatprep.subr.mxu1 %v2086_v3 }
 0x57d   :  { %v690_v51 = vpop.f32.mrf.mxu1 }
 0x57e   :  { %v695_v52 = vrot.slane %v690_v51, 6  ;;  %v1585_v51 = vld [vmem:[%s2494_s9 + $0x18] sm:$0xff] }
 0x57f   :  { %v1905_v53 = vpop.f32.mrf.mxu1 }
 0x580   :  { %v697_v54 = vadd.f32 %v695_v52, %v2282_v38  ;;  %v1497_v52 = vld [vmem:[%s2492_s7 + $0x10] sm:$0xff] }
 0x581   :  { %v1584_v53 = vld [vmem:[%s2494_s9 + $0x10] sm:$0xff] }
 0x582   :  { %v698_v55 = vmax.f32 %v697_v54, 0.0  ;;  %v1496_v54 = vld [vmem:[%s2492_s7 + $0x8] sm:$0xff] }
 0x584   :  { %699 = vst.msk [vmem:[#allocation2 + $0xa] sm:$0xc] %vm381_vm4, %v698_v55  ;;  %v701_v56 = vrot.slane %v698_v55, 2  ;;  %v1583_v55 = vld [vmem:[%s2494_s9 + $0x8] sm:$0xff]  ;;  %s2088_s9 = smov [#allocation3]  }
 0x585   :  { %s1670_s15 = sshll.u32 %s2088_s9, 4  ;;  %s1671_s15 = int_to_ptr.vmem [resolvable:$true] %s1670_s15 }
 0x586   :  { %1915 = vmatmul.mubr.msk.f32.vlgmr.msra.gmra.mxu0 %vm59_vm0, %v701_v56  ;;  %v1495_v56 = vld [vmem:[%s2492_s7] sm:$0xff]  ;;  %p2047_p1 = scmp.lt.s32.totalorder %s1671_s15, %s1671_s15 }
 0x587   :  { %1936 = vmatprep.mubr.msk.f32.mxu0 %vm2087_vm1, %v2086_v3  ;;  %1929 = vmatpush3.msra.mxu0 %v2315_v59 }
 0x588   :  { %1930 = vmatprep.subr.mxu0 %v2086_v3 }
 0x589   :  { %1931 = vmatpush3.msra.mxu0 %v2324_v61 }
 0x58a   :  { %1932 = vmatprep.subr.mxu0 %v2086_v3 }
 0x58b   :  { %1933 = vmatpush3.msra.mxu0 %v2330_v62 }
 0x58c   :  { %1934 = vmatprep.subr.mxu0 %v2086_v3 }
 0x58d   :  { %1935 = vmatpush3.msra.mxu0 %v2342_v0 }
 0x58e   :  { %1937 = vmatmul.mubr.f32.vlgmr.msra.gmra.mxu0 %v2086_v3  ;;  %1950 = vmatprep.subr.mxu0 %v2086_v3 }
 0x58f   :  { %1951 = vmatpush3.msra.mxu0 %v2315_v59  ;;  %1958 = vmatprep.mubr.msk.f32.mxu0 %vm2087_vm1, %v2086_v3 }
 0x590   :  { %1952 = vmatprep.subr.mxu0 %v2086_v3 }
 0x591   :  { %1953 = vmatpush3.msra.mxu0 %v2324_v61 }
 0x592   :  { %1954 = vmatprep.subr.mxu0 %v2086_v3 }
 0x593   :  { %1955 = vmatpush3.msra.mxu0 %v2330_v62 }
 0x594   :  { %1956 = vmatprep.subr.mxu0 %v2086_v3 }
 0x595   :  { %1957 = vmatpush3.msra.mxu0 %v2342_v0 }
 0x596   :  { %1972 = vmatprep.subr.mxu0 %v2086_v3 }
 0x646   :  { %v770_v1 = vpop.f32.mrf.mxu0 }
 0x647   :  { %v774_v2 = vadd.f32 %v770_v1, %v2282_v38 }
 0x648   :  { %v1916_v4 = vpop.f32.mrf.mxu0 }
 0x649   :  { %v775_v5 = vmax.f32 %v774_v2, 0.0 }
 0x64b   :  { %776 = vst.msk [vmem:[#allocation2 + $0xe] sm:$0x3] %vm459_vm5, %v775_v5 }
 0x64e   :  { %v941_v7 = vpop.f32.mrf.mxu0 }
 0x650   :  { %v1938_v8 = vpop.f32.mrf.mxu0 }
 0x652   :  { %v778_v6 = vld [vmem:[#allocation2 + $0x8] sm:$0xff] }
 0x653   :  { %1926 = vmatmul.mubr.msk.f32.vlgmr.msra.gmra.mxu1 %vm59_vm0, %v778_v6 }
 0x654   :  { %1940 = vmatpush3.msra.mxu1 %v2315_v59  ;;  %1947 = vmatprep.mubr.msk.f32.mxu1 %vm2087_vm1, %v2086_v3 }
 0x655   :  { %1941 = vmatprep.subr.mxu1 %v2086_v3 }
 0x656   :  { %1942 = vmatpush3.msra.mxu1 %v2324_v61 }
 0x657   :  { %1943 = vmatprep.subr.mxu1 %v2086_v3 }
 0x658   :  { %1944 = vmatpush3.msra.mxu1 %v2330_v62 }
 0x659   :  { %1945 = vmatprep.subr.mxu1 %v2086_v3 }
 0x65a   :  { %1946 = vmatpush3.msra.mxu1 %v2342_v0 }
 0x65b   :  { %1961 = vmatprep.subr.mxu1 %v2086_v3 }
 0x713   :  { %v1927_v10 = vpop.f32.mrf.mxu1 }
 0x714   :  { %v2374_v11 = vadd.f32 %v1927_v10, %v1702_v9 }
 0x715   :  { %v866_v12 = vpop.f32.mrf.mxu1 }
 0x716   :  { %v867_v13 = vadd.f32 %v1702_v9, %v866_v12 }
 0x718   :  { %v945_v14 = vadd.f32 %v941_v7, %v867_v13 }
 0x71a   :  { %v946_v15 = vmax.f32 %v945_v14, 0.0 }
 0x71c   :  { %1948 = vmatmul.mubr.msk.f32.vlgmr.msra.gmra.mxu1 %vm59_vm0, %v946_v15 }
 0x71d   :  { %1962 = vmatpush3.msra.mxu1 %v2315_v59  ;;  %1969 = vmatprep.mubr.msk.f32.mxu1 %vm2087_vm1, %v2086_v3 }
 0x71e   :  { %1963 = vmatprep.subr.mxu1 %v2086_v3 }
 0x71f   :  { %1964 = vmatpush3.msra.mxu1 %v2324_v61 }
 0x720   :  { %1965 = vmatprep.subr.mxu1 %v2086_v3 }
 0x721   :  { %1966 = vmatpush3.msra.mxu1 %v2330_v62 }
 0x722   :  { %1967 = vmatprep.subr.mxu1 %v2086_v3 }
 0x723   :  { %1968 = vmatpush3.msra.mxu1 %v2342_v0 }
 0x724   :  { %1983 = vmatprep.subr.mxu1 %v2086_v3 }
 0x7dc   :  { %v1016_v16 = vpop.f32.mrf.mxu1 }
 0x7dd   :  { %v1021_v17 = vrot.slane %v1016_v16, 6 }
 0x7de   :  { %v1949_v18 = vpop.f32.mrf.mxu1 }
 0x7df   :  { %v1023_v19 = vadd.f32 %v1021_v17, %v867_v13 }
 0x7e1   :  { %v1024_v20 = vmax.f32 %v1023_v19, 0.0 }
 0x7e3   :  { %v1026_v21 = vrot.slane %v1024_v20, 2 }
 0x7e5   :  { %1959 = vmatmul.mubr.msk.f32.vlgmr.msra.gmra.mxu0 %vm59_vm0, %v1026_v21 }
 0x7e6   :  { %1973 = vmatpush3.msra.mxu0 %v2315_v59  ;;  %1980 = vmatprep.mubr.msk.f32.mxu0 %vm2087_vm1, %v2086_v3 }
 0x7e7   :  { %1974 = vmatprep.subr.mxu0 %v2086_v3 }
 0x7e8   :  { %1975 = vmatpush3.msra.mxu0 %v2324_v61 }
 0x7e9   :  { %1976 = vmatprep.subr.mxu0 %v2086_v3 }
 0x7ea   :  { %1977 = vmatpush3.msra.mxu0 %v2330_v62 }
 0x7eb   :  { %1978 = vmatprep.subr.mxu0 %v2086_v3 }
 0x7ec   :  { %1979 = vmatpush3.msra.mxu0 %v2342_v0 }
 0x7ed   :  { %1994 = vmatprep.subr.mxu0 %v2086_v3 }
 0x8a5   :  { %v1095_v22 = vpop.f32.mrf.mxu0 }
 0x8a6   :  { %v1100_v23 = vrot.slane %v1095_v22, 4 }
 0x8a7   :  { %v1960_v24 = vpop.f32.mrf.mxu0 }
 0x8a8   :  { %v1102_v25 = vadd.f32 %v1100_v23, %v867_v13 }
 0x8aa   :  { %v1103_v26 = vmax.f32 %v1102_v25, 0.0 }
 0x8ac   :  { %v1105_v27 = vrot.slane %v1103_v26, 4 }
 0x8ae   :  { %1970 = vmatmul.mubr.msk.f32.vlgmr.msra.gmra.mxu1 %vm59_vm0, %v1105_v27 }
 0x8af   :  { %1984 = vmatpush3.msra.mxu1 %v2315_v59  ;;  %1991 = vmatprep.mubr.msk.f32.mxu1 %vm2087_vm1, %v2086_v3 }
 0x8b0   :  { %1985 = vmatprep.subr.mxu1 %v2086_v3 }
 0x8b1   :  { %1986 = vmatpush3.msra.mxu1 %v2324_v61 }
 0x8b2   :  { %1987 = vmatprep.subr.mxu1 %v2086_v3 }
 0x8b3   :  { %1988 = vmatpush3.msra.mxu1 %v2330_v62 }
 0x8b4   :  { %1989 = vmatprep.subr.mxu1 %v2086_v3 }
 0x8b5   :  { %1990 = vmatpush3.msra.mxu1 %v2342_v0 }
 0x8b6   :  { %2005 = vmatprep.subr.mxu1 %v2086_v3 }
 0x96e   :  { %v1174_v28 = vpop.f32.mrf.mxu1 }
 0x96f   :  { %v1179_v29 = vrot.slane %v1174_v28, 2 }
 0x970   :  { %v1971_v30 = vpop.f32.mrf.mxu1 }
 0x971   :  { %v1181_v31 = vadd.f32 %v1179_v29, %v867_v13 }
 0x973   :  { %v1182_v32 = vmax.f32 %v1181_v31, 0.0 }
 0x975   :  { %v1184_v33 = vrot.slane %v1182_v32, 6 }
 0x977   :  { %1981 = vmatmul.mubr.msk.f32.vlgmr.msra.gmra.mxu0 %vm59_vm0, %v1184_v33 }
 0x978   :  { %1995 = vmatpush3.msra.mxu0 %v2315_v59  ;;  %2002 = vmatprep.mubr.msk.f32.mxu0 %vm2087_vm1, %v2086_v3 }
 0x979   :  { %1996 = vmatprep.subr.mxu0 %v2086_v3 }
 0x97a   :  { %1997 = vmatpush3.msra.mxu0 %v2324_v61 }
 0x97b   :  { %1998 = vmatprep.subr.mxu0 %v2086_v3 }
 0x97c   :  { %1999 = vmatpush3.msra.mxu0 %v2330_v62 }
 0x97d   :  { %2000 = vmatprep.subr.mxu0 %v2086_v3 }
 0x97e   :  { %2001 = vmatpush3.msra.mxu0 %v2342_v0 }
 0x97f   :  { %2016 = vmatprep.subr.mxu0 %v2086_v3 }
 0xa37   :  { %v1253_v34 = vpop.f32.mrf.mxu0 }
 0xa38   :  { %v1257_v35 = vadd.f32 %v1253_v34, %v2374_v11 }
 0xa39   :  { %v1982_v36 = vpop.f32.mrf.mxu0 }
 0xa3a   :  { %v1258_v37 = vmax.f32 %v1257_v35, 0.0 }
 0xa3c   :  { %1992 = vmatmul.mubr.msk.f32.vlgmr.msra.gmra.mxu1 %vm59_vm0, %v1258_v37 }
 0xa3d   :  { %2006 = vmatpush3.msra.mxu1 %v2315_v59  ;;  %2013 = vmatprep.mubr.msk.f32.mxu1 %vm2087_vm1, %v2086_v3 }
 0xa3e   :  { %2007 = vmatprep.subr.mxu1 %v2086_v3 }
 0xa3f   :  { %2008 = vmatpush3.msra.mxu1 %v2324_v61 }
 0xa40   :  { %2009 = vmatprep.subr.mxu1 %v2086_v3 }
 0xa41   :  { %2010 = vmatpush3.msra.mxu1 %v2330_v62 }
 0xa42   :  { %2011 = vmatprep.subr.mxu1 %v2086_v3 }
 0xa43   :  { %2012 = vmatpush3.msra.mxu1 %v2342_v0  ;;  %v1714_v0 = vld [vmem:[%s2495_s10] ss:$0 sm:$0xff] }
 0xa44   :  { %2027 = vmatprep.subr.mxu1 %v2086_v3 }
 0xafc   :  { %v1328_v38 = vpop.f32.mrf.mxu1 }
 0xafd   :  { %v1333_v39 = vrot.slane %v1328_v38, 6 }
 0xafe   :  { %v1993_v40 = vpop.f32.mrf.mxu1 }
 0xaff   :  { %v1335_v41 = vadd.f32 %v1333_v39, %v2374_v11 }
 0xb01   :  { %v1336_v42 = vmax.f32 %v1335_v41, 0.0 }
 0xb03   :  { %v1338_v43 = vrot.slane %v1336_v42, 2 }
 0xb05   :  { %2003 = vmatmul.mubr.msk.f32.vlgmr.msra.gmra.mxu0 %vm59_vm0, %v1338_v43 }
 0xb06   :  { %2024 = vmatprep.mubr.msk.f32.mxu0 %vm2087_vm1, %v2086_v3  ;;  %2017 = vmatpush3.msra.mxu0 %v1498_v50 }
 0xb07   :  { %2018 = vmatprep.subr.mxu0 %v2086_v3 }
 0xb08   :  { %2019 = vmatpush3.msra.mxu0 %v1497_v52 }
 0xb09   :  { %2020 = vmatprep.subr.mxu0 %v2086_v3 }
 0xb0a   :  { %2021 = vmatpush3.msra.mxu0 %v1496_v54 }
 0xb0b   :  { %2022 = vmatprep.subr.mxu0 %v2086_v3 }
 0xb0c   :  { %2023 = vmatpush3.msra.mxu0 %v1495_v56 }
 0xbc5   :  { %v1407_v44 = vpop.f32.mrf.mxu0 }
 0xbc6   :  { %v1412_v45 = vrot.slane %v1407_v44, 4 }
 0xbc7   :  { %v2004_v46 = vpop.f32.mrf.mxu0 }
 0xbc8   :  { %v1414_v47 = vadd.f32 %v1412_v45, %v2374_v11 }
 0xbca   :  { %v1415_v48 = vmax.f32 %v1414_v47, 0.0 }
 0xbcc   :  { %v1417_v49 = vrot.slane %v1415_v48, 4 }
 0xbce   :  { %2014 = vmatmul.mubr.msk.f32.vlgmr.msra.gmra.mxu1 %vm59_vm0, %v1417_v49 }
 0xbcf   :  { %2035 = vmatprep.mubr.msk.f32.mxu1 %vm2087_vm1, %v2086_v3  ;;  %2028 = vmatpush3.msra.mxu1 %v1585_v51 }
 0xbd0   :  { %2029 = vmatprep.subr.mxu1 %v2086_v3 }
 0xbd1   :  { %2030 = vmatpush3.msra.mxu1 %v1584_v53 }
 0xbd2   :  { %2031 = vmatprep.subr.mxu1 %v2086_v3 }
 0xbd3   :  { %2032 = vmatpush3.msra.mxu1 %v1583_v55 }
 0xbd4   :  { %2033 = vmatprep.subr.mxu1 %v2086_v3  ;;  %v1712_v3 = vld [vmem:[%s2493_s8] ss:$0 sm:$0xff]  ;;  %s2042_s8 = scalar_lea.vmem %s1671_s15, 32 }
 0xbd5   :  { %2034 = vmatpush3.msra.mxu1 %v1582_v57  ;;  %p2043_p0 = scmp.ne.s32.totalorder %s1671_s15, %s2042_s8  ;;  %p2048_p2 = scmp.lt.s32.totalorder %s2042_s8, %s2042_s8 }
 0xbd7   :  { %p2049_p3 = por %p2048_p2, %p2047_p1 }
 0xbd9   :  { %p2050_p4 = pnand %p2049_p3, %p2043_p0 }
 0xc8e   :  { %v1486_v58 = vpop.f32.mrf.mxu1 }
 0xc8f   :  { %v1491_v59 = vrot.slane %v1486_v58, 2 }
 0xc90   :  { %v2015_v60 = vpop.f32.mrf.mxu1 }
 0xc91   :  { %v1493_v61 = vadd.f32 %v1491_v59, %v2374_v11 }
 0xc93   :  { %v1494_v62 = vmax.f32 %v1493_v61, 0.0 }
 0xc95   :  { %v1507_v63 = vrot.slane %v1494_v62, 6 }
 0xc97   :  { %2025 = vmatmul.mubr.msk.f32.vlgmr.msra.gmra.mxu0 %vm59_vm0, %v1507_v63  ;;  %2036 = vmatmul.mubr.msk.f32.vlgmr.msra.gmra.mxu1 %vm59_vm0, %v1507_v63 }
 0xd57   :  { %v1576_v1 = vpop.f32.mrf.mxu0  ;;  %v1659_v2 = vpop.f32.mrf.mxu1 }
 0xd58   :  { %v1577_v4 = vadd.f32 %v1712_v3, %v1576_v1  ;;  %v1660_v5 = vadd.f32 %v1714_v0, %v1659_v2 }
 0xd59   :  { %v2026_v6 = vpop.f32.mrf.mxu0  ;;  %v2037_v7 = vpop.f32.mrf.mxu1 }
 0xd5a   :  { %1581 = vst.msk [vmem:[#allocation3] sm:$0x3] %vm1580_vm6, %v1577_v4  ;;  %1663 = vst.msk [vmem:[#allocation5] sm:$0x3] %vm1580_vm6, %v1660_v5 }
 0xd5b   :  { %2053 = shalt.err (!%p2050_p4)
}
 0xd5c   :  { %1673 = dma.vmem_to_hbm [thread:$0]  %s1671_s15, 32, %s2496_s11, [#allocation4]  }
 0xd5d   :  { %s2062_s4 = scalar_lea.vmem %s1681_s17, 32  ;;  %p2067_p6 = scmp.lt.s32.totalorder %s1681_s17, %s1681_s17 }
 0xd5e   :  { %p2063_p5 = scmp.ne.s32.totalorder %s1681_s17, %s2062_s4  ;;  %p2068_p7 = scmp.lt.s32.totalorder %s2062_s4, %s2062_s4 }
 0xd60   :  { %p2069_p8 = por %p2068_p7, %p2067_p6 }
 0xd62   :  { %p2070_p9 = pnand %p2069_p8, %p2063_p5 }
 0xd64   :  { %2073 = shalt.err (!%p2070_p9)
}
 0xd65   :  { %1683 = dma.vmem_to_hbm [thread:$0]  %s1681_s17, 32, %s2497_s12, [#allocation6]  }
 0xd66   :  { %2082 = dma.done.wait [#allocation4], 32  }
 0xd67   :  { %2083 = vsyncadd [#allocation4], 4294967264 }
 0xd68   :  { %2084 = dma.done.wait [#allocation6], 32  }
 0xd69   :  { %2085 = vsyncadd [#allocation6], 4294967264 }
 0xd6a   :  { %1690 = vsyncpa [#allocation4], 1 }
 0xd6b   :  { %1691 = vsyncpa [#allocation6], 1 }

// kernel: encoder_forward.5
= control target key start
LH: loop header
LB: loop body
LE: loop exit
PB: predicated region body
PF: predicated region fallthrough
CT: control target
= control target key end

     0   :  { %s14414_s0 = inlined_call_operand.vmem [shape: f32[16,32], index: 0, kind: input, shape index: {}]   ;;  %s14415_s1 = inlined_call_operand.vmem [shape: f32[32,128], index: 1, kind: input, shape index: {}]   ;;  %s14416_s2 = inlined_call_operand.vmem [shape: f32[4,32,32], index: 2, kind: input, shape index: {}]   ;;  %s14417_s3 = inlined_call_operand.vmem [shape: f32[1,128], index: 3, kind: input, shape index: {}]   ;;  %s14418_s4 = inlined_call_operand.hbm [shape: f32[32,128], index: 4, kind: input, shape index: {}]   ;;  %s14419_s5 = inlined_call_operand.vmem [shape: f32[4,32,32], index: 5, kind: input, shape index: {}]   ;;  %s14420_s6 = inlined_call_operand.vmem [shape: f32[1,128], index: 6, kind: input, shape index: {}]   ;;  %s14421_s7 = inlined_call_operand.vmem [shape: f32[64,128], index: 7, kind: input, shape index: {}]   ;;  %s14422_s8 = inlined_call_operand.vmem [shape: f32[4,32,32], index: 8, kind: input, shape index: {}]   ;;  %s14423_s9 = inlined_call_operand.vmem [shape: f32[1,128], index: 9, kind: input, shape index: {}]   ;;  %s14424_s10 = inlined_call_operand.vmem [shape: f32[64,128], index: 10, kind: input, shape index: {}]   ;;  %s14425_s11 = inlined_call_operand.vmem [shape: f32[4,32,32], index: 11, kind: input, shape index: {}]   ;;  %s14426_s12 = inlined_call_operand.vmem [shape: f32[1,128], index: 12, kind: input, shape index: {}]   ;;  %s14427_s13 = inlined_call_operand.vmem [shape: f32[64,8], index: 13, kind: input, shape index: {}]   ;;  %s14428_s14 = inlined_call_operand.vmem [shape: f32[1,8], index: 14, kind: input, shape index: {}]   ;;  %s14429_s15 = inlined_call_operand.vmem [shape: f32[64,8], index: 15, kind: input, shape index: {}]   ;;  %s14430_s16 = inlined_call_operand.vmem [shape: f32[1,8], index: 16, kind: input, shape index: {}]   ;;  %s14431_s17 = inlined_call_operand.hbm [shape: f32[2,8], index: 17, kind: output, shape index: {0}]   ;;  %s14432_s18 = inlined_call_operand.hbm [shape: f32[2,8], index: 18, kind: output, shape index: {1}]  }
   0x1   :  { %14436 = sst [smem:[#allocation12_spill]] %s14414_s0 }
   0x2   :  { %14437 = sst [smem:[#allocation13_spill]] %s14415_s1 }
   0x3   :  { %14438 = sst [smem:[#allocation14_spill]] %s14416_s2 }
   0x4   :  { %24 = vsyncpa [#allocation4], 0 }
   0x5   :  { %25 = vsyncpa [#allocation5], 0 }
   0x6   :  { %26 = vsyncpa [#allocation8], 0  ;;  %s12055_s27 = smov [#allocation3]  }
   0x7   :  { %s40_s28 = sshll.u32 %s12055_s27, 4  ;;  %s41_s28 = int_to_ptr.vmem [resolvable:$true] %s40_s28 }
   0x8   :  { %s11997_s29 = scalar_lea.vmem %s41_s28, 512  ;;  %p12002_p1 = scmp.lt.s32.totalorder %s41_s28, %s41_s28 }
   0x9   :  { %p11998_p0 = scmp.ne.s32.totalorder %s41_s28, %s11997_s29  ;;  %p12003_p2 = scmp.lt.s32.totalorder %s11997_s29, %s11997_s29 }
   0xb   :  { %p12004_p3 = por %p12003_p2, %p12002_p1 }
   0xd   :  { %p12005_p4 = pnand %p12004_p3, %p11998_p0 }
   0xf   :  { %12008 = shalt.err (!%p12005_p4)
}
  0x10   :  { %s12056_s30 = smov 128   ;;  %s12057_s0 = smov 8  }
  0x11   :  { %46 = dma.hbm_to_vmem [thread:$0]  %s14418_s4, 512, %s41_s28, [#allocation4], %s12056_s30, %s12056_s30, %s12057_s0  }
  0x12   :  { %12049 = dma.done.wait [#allocation4], 512  }
  0x13   :  { %12050 = vsyncadd [#allocation4], 4294966784  ;;  %v12058_v0 = vmov 0.0   ;;  %vm12059_vm0 = vmmov 0   ;;  %s14439_s22 = sld [smem:[#allocation13_spill]]  ;;  %vm87_vm1 = vcmask 261120  }
  0x14   :  { %10334 = vmatprep.subr.mxu1 %v12058_v0  ;;  %10342 = vmatprep.mubr.msk.f32.mxu1 %vm12059_vm0, %v12058_v0  ;;  %s14440_s24 = sld [smem:[#allocation14_spill]]  ;;  %v9546_v25 = vld [vmem:[%s14417_s3] ss:$0 sm:$0xff]  ;;  %s12061_s4 = smov 32   ;;  %vm527_vm2 = vcmask 254976   ;;  %vm876_vm3 = vcmask 257026  }
  0x15   :  { %s14441_s25 = sld [smem:[#allocation12_spill]]  ;;  %s12062_s3 = smov 96   ;;  %vm1580_vm4 = vcmask 261126   ;;  %vm1228_vm5 = vcmask 259076   ;;  %vm3424_vm6 = vcmask 523526   ;;  %vm4128_vm7 = vcmask 519426  }
  0x16   :  { %vm3776_vm8 = vcmask 521476   ;;  %vm4474_vm9 = vcmask 517376   ;;  %vm5890_vm10 = vcmask 523264   ;;  %vm9358_vm11 = vcmask 58368  }
  0x19   :  { %v79_v1 = vld [vmem:[%s14439_s22 + $0x18] sm:$0xff]  ;;  %v78_v3 = vld [vmem:[%s14439_s22 + $0x10] sm:$0xff]  ;;  %v77_v5 = vld [vmem:[%s14439_s22 + $0x8] sm:$0xff] }
  0x1a   :  { %v12172_v2 = vld [vmem:[%s14440_s24 + $0x18] sm:$0xff]  ;;  %10323 = vmatprep.subr.mxu0 %v79_v1  ;;  %v12181_v4 = vld [vmem:[%s14440_s24 + $0x10] sm:$0xff]  ;;  %v12190_v6 = vld [vmem:[%s14440_s24 + $0x8] sm:$0xff] }
  0x1b   :  { %10335 = vmatpush3.msra.mxu1 %v12172_v2  ;;  %10324 = vmatpush3.msra.mxu0 %v79_v1  ;;  %v76_v7 = vld [vmem:[%s14439_s22] sm:$0xff]  ;;  %v75_v10 = vld [vmem:[%s14441_s25 + $0x8] sm:$0xff]  ;;  %v12215_v11 = vld [vmem:[%s14440_s24 + $0x58] sm:$0xff]  ;;  %s12060_s22 = smov 64  }
  0x1c   :  { %10336 = vmatprep.subr.mxu1 %v12058_v0  ;;  %10325 = vmatprep.subr.mxu0 %v78_v3  ;;  %v12200_v8 = vld [vmem:[%s14440_s24] sm:$0xff]  ;;  %v12220_v12 = vld [vmem:[%s14440_s24 + $0x38] sm:$0xff]  ;;  %v12229_v13 = vld [vmem:[%s14440_s24 + $0x50] sm:$0xff] }
  0x1d   :  { %10337 = vmatpush3.msra.mxu1 %v12181_v4  ;;  %10326 = vmatpush3.msra.mxu0 %v78_v3  ;;  %v74_v9 = vld [vmem:[%s14441_s25] sm:$0xff]  ;;  %v12234_v14 = vld [vmem:[%s14440_s24 + $0x30] sm:$0xff]  ;;  %v12243_v15 = vld [vmem:[%s14440_s24 + $0x48] sm:$0xff] }
  0x1e   :  { %10338 = vmatprep.subr.mxu1 %v12058_v0  ;;  %10327 = vmatprep.subr.mxu0 %v77_v5  ;;  %v12248_v16 = vld [vmem:[%s14440_s24 + $0x28] sm:$0xff]  ;;  %v12257_v17 = vld [vmem:[%s14440_s24 + $0x40] sm:$0xff]  ;;  %v12277_v19 = vld [vmem:[%s14440_s24 + $0x78] sm:$0xff] }
  0x1f   :  { %10339 = vmatpush3.msra.mxu1 %v12190_v6  ;;  %10328 = vmatpush3.msra.mxu0 %v77_v5  ;;  %v12264_v18 = vld [vmem:[%s14440_s24 + $0x20] sm:$0xff]  ;;  %v12285_v20 = vld [vmem:[%s14440_s24 + $0x70] sm:$0xff]  ;;  %v12295_v21 = vld [vmem:[%s14440_s24 + $0x68] sm:$0xff] }
  0x20   :  { %10340 = vmatprep.subr.mxu1 %v12058_v0  ;;  %10329 = vmatprep.subr.mxu0 %v76_v7  ;;  %v12304_v22 = vld [vmem:[%s14440_s24 + $0x60] sm:$0xff] }
  0x21   :  { %10341 = vmatpush3.msra.mxu1 %v12200_v8  ;;  %10330 = vmatpush3.msra.mxu0 %v76_v7 }
  0x22   :  { %10331 = vmatprep.mubr.msk.f32.mxu0 %vm87_vm1, %v74_v9  ;;  %10343 = vmatmul.mubr.f32.vlgmr.msra.gmra.mxu1 %v12058_v0 }
  0x23   :  { %10356 = vmatprep.subr.mxu1 %v12058_v0  ;;  %10332 = vmatmul.mubr.msk.f32.vlgmr.msra.gmra.mxu0 %vm87_vm1, %v75_v10 }
  0x24   :  { %10345 = vmatprep.subr.mxu0 %v12058_v0  ;;  %10357 = vmatpush3.msra.mxu1 %v12215_v11 }
  0x25   :  { %10346 = vmatpush3.msra.mxu0 %v12220_v12  ;;  %10358 = vmatprep.subr.mxu1 %v12058_v0 }
  0x26   :  { %10347 = vmatprep.subr.mxu0 %v12058_v0  ;;  %10359 = vmatpush3.msra.mxu1 %v12229_v13 }
  0x27   :  { %10348 = vmatpush3.msra.mxu0 %v12234_v14  ;;  %10360 = vmatprep.subr.mxu1 %v12058_v0 }
  0x28   :  { %10349 = vmatprep.subr.mxu0 %v12058_v0  ;;  %10361 = vmatpush3.msra.mxu1 %v12243_v15 }
  0x29   :  { %10350 = vmatpush3.msra.mxu0 %v12248_v16  ;;  %10362 = vmatprep.subr.mxu1 %v12058_v0 }
  0x2a   :  { %10351 = vmatprep.subr.mxu0 %v12058_v0  ;;  %10363 = vmatpush3.msra.mxu1 %v12257_v17 }
  0x2b   :  { %10364 = vmatprep.mubr.msk.f32.mxu1 %vm12059_vm0, %v12058_v0  ;;  %10352 = vmatpush3.msra.mxu0 %v12264_v18 }
  0x2c   :  { %10353 = vmatprep.mubr.msk.f32.mxu0 %vm12059_vm0, %v12058_v0  ;;  %10365 = vmatmul.mubr.f32.vlgmr.msra.gmra.mxu1 %v12058_v0 }
  0x2d   :  { %10354 = vmatmul.mubr.f32.vlgmr.msra.gmra.mxu0 %v12058_v0  ;;  %10367 = vmatprep.subr.mxu0 %v12058_v0 }
  0x2e   :  { %10375 = vmatprep.mubr.msk.f32.mxu0 %vm12059_vm0, %v12058_v0  ;;  %10368 = vmatpush3.msra.mxu0 %v12277_v19 }
  0x2f   :  { %10378 = vmatprep.subr.mxu1 %v12058_v0  ;;  %10369 = vmatprep.subr.mxu0 %v12058_v0 }
  0x30   :  { %10379 = vmatpush3.msra.mxu1 %v12172_v2  ;;  %10370 = vmatpush3.msra.mxu0 %v12285_v20 }
  0x31   :  { %10380 = vmatprep.subr.mxu1 %v12058_v0  ;;  %10371 = vmatprep.subr.mxu0 %v12058_v0 }
  0x32   :  { %10381 = vmatpush3.msra.mxu1 %v12181_v4  ;;  %10372 = vmatpush3.msra.mxu0 %v12295_v21 }
  0x33   :  { %10382 = vmatprep.subr.mxu1 %v12058_v0  ;;  %10373 = vmatprep.subr.mxu0 %v12058_v0 }
  0x34   :  { %10383 = vmatpush3.msra.mxu1 %v12190_v6  ;;  %10374 = vmatpush3.msra.mxu0 %v12304_v22 }
  0x35   :  { %10384 = vmatprep.subr.mxu1 %v12058_v0  ;;  %10376 = vmatmul.mubr.f32.vlgmr.msra.gmra.mxu0 %v12058_v0 }
  0x36   :  { %10389 = vmatprep.subr.mxu0 %v12058_v0  ;;  %10385 = vmatpush3.msra.mxu1 %v12200_v8 }
  0x37   :  { %10390 = vmatpush3.msra.mxu0 %v12220_v12  ;;  %10386 = vmatprep.mubr.msk.f32.mxu1 %vm12059_vm0, %v12058_v0 }
  0x38   :  { %10391 = vmatprep.subr.mxu0 %v12058_v0  ;;  %10397 = vmatprep.mubr.msk.f32.mxu0 %vm12059_vm0, %v12058_v0 }
  0x39   :  { %10392 = vmatpush3.msra.mxu0 %v12234_v14  ;;  %10400 = vmatprep.subr.mxu1 %v12058_v0 }
  0x3a   :  { %10393 = vmatprep.subr.mxu0 %v12058_v0 }
  0x3b   :  { %10394 = vmatpush3.msra.mxu0 %v12248_v16 }
  0x3c   :  { %10395 = vmatprep.subr.mxu0 %v12058_v0 }
  0x3d   :  { %10396 = vmatpush3.msra.mxu0 %v12264_v18 }
  0x3e   :  { %10411 = vmatprep.subr.mxu0 %v12058_v0 }
  0xe2   :  { %v257_v23 = vpop.f32.mrf.mxu1 }
  0xe3   :  { %v10333_v24 = vpop.f32.mrf.mxu0 }
  0xe4   :  { %v12332_v26 = vadd.f32 %v10333_v24, %v9546_v25  ;;  %v10344_v27 = vpop.f32.mrf.mxu1 }
  0xe5   :  { %v160_v28 = vpop.f32.mrf.mxu0 }
  0xe6   :  { %v12336_v35 = vadd.f32 %v9546_v25, %v160_v28 }
  0xe8   :  { %v261_v39 = vadd.f32 %v257_v23, %v12336_v35 }
  0xea   :  { %v9561_v40 = vmul.f32 -1.442695, %v261_v39 }
  0xec   :  { %v415_v29 = vpop.f32.mrf.mxu1 }
  0xed   :  { %v334_v30 = vpop.f32.mrf.mxu0  ;;  %420 = vrot.lane.b32.xlu0 %v415_v29, %s12060_s22 }
  0xee   :  { %339 = vrot.lane.b32.xlu1 %v334_v30, %s12061_s4  ;;  %v10366_v31 = vpop.f32.mrf.mxu1 }
  0xef   :  { %v10355_v32 = vpop.f32.mrf.mxu0 }
  0xf5   :  { %v491_v33 = vpop.f32.mrf.mxu0 }
  0xf7   :  { %v10377_v34 = vpop.f32.mrf.mxu0 }
 0x15f   :  { %v421_v36 = vpop.permute.xlu0 %420 }
 0x160   :  { %v423_v37 = vadd.f32 %v421_v36, %v12336_v35  ;;  %v340_v46 = vpop.permute.xlu1 %339 }
 0x161   :  { %v342_v47 = vadd.f32 %v340_v46, %v12336_v35 }
 0x162   :  { %11537 = vtanh.f32 %v423_v37 }
 0x163   :  { %11539 = vpow2.f32 %v9561_v40  ;;  %v9562_v48 = vmul.f32 -1.442695, %v342_v47 }
 0x16f   :  { %v11538_v38 = vpop.eup %11537 }
 0x170   :  { %508 = vrot.lane.b32.xlu0 %v11538_v38, %s12060_s22  ;;  %v11540_v41 = vpop.eup %11539 }
 0x171   :  { %v265_v42 = vadd.f32 1.0, %v11540_v41 }
 0x173   :  { %11541 = vrcp.f32 %v265_v42 }
 0x174   :  { %496 = vrot.lane.b32.xlu0 %v491_v33, %s12062_s3  ;;  %11543 = vpow2.f32 %v9562_v48 }
 0x180   :  { %v11542_v43 = vpop.eup %11541 }
 0x181   :  { %v11544_v49 = vpop.eup %11543 }
 0x182   :  { %v346_v50 = vadd.f32 1.0, %v11544_v49 }
 0x184   :  { %11545 = vrcp.f32 %v346_v50 }
 0x191   :  { %v11546_v51 = vpop.eup %11545 }
 0x192   :  { %v506_v52 = vmul.f32 0.0, %v11546_v51 }
 0x1e2   :  { %v509_v44 = vpop.permute.xlu0 %508 }
 0x1e3   :  { %v511_v45 = vmul.f32 %v11542_v43, %v509_v44 }
 0x1e5   :  { %513 = vrot.lane.b32.xlu1 %v511_v45, %s12061_s4 }
 0x1e6   :  { %v497_v56 = vpop.permute.xlu0 %496 }
 0x1e7   :  { %v499_v57 = vadd.f32 %v497_v56, %v12336_v35 }
 0x1e9   :  { %v9563_v58 = vmul.f32 -1.442695, %v499_v57 }
 0x257   :  { %v514_v53 = vpop.permute.xlu1 %513 }
 0x258   :  { %v12344_v54 = vadd.f32 %v514_v53, %v506_v52 }
 0x25a   :  { %11547 = vtanh.f32 %v12344_v54  ;;  %v853_v48 = vrot.slane %v12344_v54, 6 }
 0x25b   :  { %11549 = vpow2.f32 %v9563_v58 }
 0x267   :  { %v11548_v55 = vpop.eup %11547 }
 0x268   :  { %519 = vrot.lane.b32.xlu1 %v11548_v55, %s12060_s22  ;;  %v11550_v59 = vpop.eup %11549 }
 0x269   :  { %v503_v60 = vadd.f32 1.0, %v11550_v59 }
 0x26b   :  { %11551 = vrcp.f32 %v503_v60 }
 0x278   :  { %v11552_v61 = vpop.eup %11551 }
 0x2da   :  { %v520_v62 = vpop.permute.xlu1 %519 }
 0x2db   :  { %v522_v63 = vmul.f32 %v11552_v61, %v520_v62 }
 0x2dd   :  { %524 = vrot.lane.b32.xlu0 %v522_v63, %s12061_s4 }
 0x34f   :  { %v525_v1 = vpop.permute.xlu0 %524 }
 0x350   :  { %10387 = vmatmul.mubr.msk.f32.vlgmr.msra.gmra.mxu1 %vm87_vm1, %v525_v1  ;;  %10398 = vmatmul.mubr.msk.f32.vlgmr.msra.gmra.mxu0 %vm87_vm1, %v525_v1  ;;  %528 = vst.msk [vmem:[#allocation2] sm:$0x3] %vm527_vm2, %v525_v1 }
 0x351   :  { %10401 = vmatpush3.msra.mxu1 %v12215_v11  ;;  %10412 = vmatpush3.msra.mxu0 %v12277_v19 }
 0x352   :  { %10402 = vmatprep.subr.mxu1 %v12058_v0  ;;  %10413 = vmatprep.subr.mxu0 %v12058_v0 }
 0x353   :  { %10403 = vmatpush3.msra.mxu1 %v12229_v13  ;;  %10414 = vmatpush3.msra.mxu0 %v12285_v20 }
 0x354   :  { %10404 = vmatprep.subr.mxu1 %v12058_v0  ;;  %10415 = vmatprep.subr.mxu0 %v12058_v0 }
 0x355   :  { %10405 = vmatpush3.msra.mxu1 %v12243_v15  ;;  %10416 = vmatpush3.msra.mxu0 %v12295_v21 }
 0x356   :  { %10406 = vmatprep.subr.mxu1 %v12058_v0  ;;  %10417 = vmatprep.subr.mxu0 %v12058_v0 }
 0x357   :  { %10407 = vmatpush3.msra.mxu1 %v12257_v17  ;;  %10408 = vmatprep.mubr.msk.f32.mxu1 %vm12059_vm0, %v12058_v0 }
 0x358   :  { %10418 = vmatpush3.msra.mxu0 %v12304_v22  ;;  %10419 = vmatprep.mubr.msk.f32.mxu0 %vm12059_vm0, %v12058_v0 }
 0x359   :  { %10409 = vmatmul.mubr.msk.f32.vlgmr.msra.gmra.mxu1 %vm87_vm1, %v525_v1  ;;  %10420 = vmatmul.mubr.msk.f32.vlgmr.msra.gmra.mxu0 %vm87_vm1, %v525_v1 }
 0x35a   :  { %10422 = vmatprep.subr.mxu1 %v12058_v0  ;;  %10433 = vmatprep.subr.mxu0 %v12058_v0 }
 0x35b   :  { %10423 = vmatpush3.msra.mxu1 %v12172_v2  ;;  %10434 = vmatpush3.msra.mxu0 %v12220_v12 }
 0x35c   :  { %10424 = vmatprep.subr.mxu1 %v12058_v0  ;;  %10435 = vmatprep.subr.mxu0 %v12058_v0 }
 0x35d   :  { %10425 = vmatpush3.msra.mxu1 %v12181_v4  ;;  %10436 = vmatpush3.msra.mxu0 %v12234_v14 }
 0x35e   :  { %10426 = vmatprep.subr.mxu1 %v12058_v0  ;;  %10437 = vmatprep.subr.mxu0 %v12058_v0 }
 0x35f   :  { %10427 = vmatpush3.msra.mxu1 %v12190_v6  ;;  %10438 = vmatpush3.msra.mxu0 %v12248_v16 }
 0x360   :  { %10428 = vmatprep.subr.mxu1 %v12058_v0  ;;  %10439 = vmatprep.subr.mxu0 %v12058_v0 }
 0x361   :  { %10429 = vmatpush3.msra.mxu1 %v12200_v8  ;;  %10440 = vmatpush3.msra.mxu0 %v12264_v18 }
 0x362   :  { %10430 = vmatprep.mubr.msk.f32.mxu1 %vm12059_vm0, %v12058_v0  ;;  %10441 = vmatprep.mubr.msk.f32.mxu0 %vm12059_vm0, %v12058_v0 }
 0x363   :  { %10444 = vmatprep.subr.mxu1 %v12058_v0  ;;  %10455 = vmatprep.subr.mxu0 %v12058_v0 }
 0x410   :  { %v597_v3 = vpop.f32.mrf.mxu1  ;;  %v677_v5 = vpop.f32.mrf.mxu0 }
 0x411   :  { %v682_v28 = vrot.slane %v677_v5, 6  ;;  %v602_v33 = vrot.slane %v597_v3, 6 }
 0x412   :  { %v10388_v7 = vpop.f32.mrf.mxu1  ;;  %v10399_v9 = vpop.f32.mrf.mxu0 }
 0x413   :  { %v604_v34 = vadd.f32 %v602_v33, %v12336_v35 }
 0x415   :  { %v9565_v36 = vmul.f32 -1.442695, %v604_v34 }
 0x419   :  { %v759_v10 = vpop.f32.mrf.mxu1  ;;  %v836_v23 = vpop.f32.mrf.mxu0 }
 0x41a   :  { %v764_v24 = vrot.slane %v759_v10, 6  ;;  %v841_v29 = vrot.slane %v836_v23, 6 }
 0x41b   :  { %v10410_v25 = vpop.f32.mrf.mxu1  ;;  %v10421_v27 = vpop.f32.mrf.mxu0 }
 0x41c   :  { %765 = vrot.lane.b32.xlu1 %v764_v24, %s12060_s22 }
 0x420   :  { %683 = vrot.lane.b32.xlu1 %v682_v28, %s12061_s4 }
 0x424   :  { %842 = vrot.lane.b32.xlu1 %v841_v29, %s12062_s3 }
 0x48e   :  { %v766_v30 = vpop.permute.xlu1 %765 }
 0x48f   :  { %v768_v31 = vadd.f32 %v766_v30, %v12336_v35 }
 0x491   :  { %11553 = vtanh.f32 %v768_v31 }
 0x492   :  { %11555 = vpow2.f32 %v9565_v36  ;;  %v684_v42 = vpop.permute.xlu1 %683 }
 0x493   :  { %v686_v43 = vadd.f32 %v684_v42, %v12336_v35 }
 0x495   :  { %v9567_v44 = vmul.f32 -1.442695, %v686_v43 }
 0x496   :  { %v843_v53 = vpop.permute.xlu1 %842 }
 0x497   :  { %v845_v55 = vadd.f32 %v843_v53, %v12336_v35 }
 0x499   :  { %v9570_v56 = vmul.f32 -1.442695, %v845_v55 }
 0x49e   :  { %v11554_v32 = vpop.eup %11553 }
 0x49f   :  { %857 = vrot.lane.b32.xlu0 %v11554_v32, %s12060_s22  ;;  %v11556_v37 = vpop.eup %11555 }
 0x4a0   :  { %v608_v38 = vadd.f32 1.0, %v11556_v37 }
 0x4a2   :  { %11557 = vrcp.f32 %v608_v38 }
 0x4a3   :  { %11559 = vpow2.f32 %v9567_v44 }
 0x4af   :  { %v11558_v39 = vpop.eup %11557 }
 0x4b0   :  { %v11560_v45 = vpop.eup %11559 }
 0x4b1   :  { %v690_v46 = vadd.f32 1.0, %v11560_v45 }
 0x4b3   :  { %11561 = vrcp.f32 %v690_v46 }
 0x4c0   :  { %v11562_v47 = vpop.eup %11561 }
 0x4c1   :  { %v855_v49 = vmul.f32 %v11562_v47, %v853_v48 }
 0x511   :  { %v858_v40 = vpop.permute.xlu0 %857 }
 0x512   :  { %v860_v41 = vmul.f32 %v11558_v39, %v858_v40 }
 0x514   :  { %862 = vrot.lane.b32.xlu0 %v860_v41, %s12061_s4 }
 0x586   :  { %v863_v50 = vpop.permute.xlu0 %862 }
 0x587   :  { %v12404_v51 = vadd.f32 %v863_v50, %v855_v49 }
 0x589   :  { %11563 = vtanh.f32 %v12404_v51  ;;  %v1205_v46 = vrot.slane %v12404_v51, 6 }
 0x58a   :  { %11565 = vpow2.f32 %v9570_v56 }
 0x596   :  { %v11564_v52 = vpop.eup %11563 }
 0x597   :  { %868 = vrot.lane.b32.xlu0 %v11564_v52, %s12060_s22  ;;  %v11566_v57 = vpop.eup %11565 }
 0x598   :  { %v849_v58 = vadd.f32 1.0, %v11566_v57 }
 0x59a   :  { %11567 = vrcp.f32 %v849_v58 }
 0x5a7   :  { %v11568_v59 = vpop.eup %11567 }
 0x609   :  { %v869_v60 = vpop.permute.xlu0 %868 }
 0x60a   :  { %v12409_v54 = vmul.f32 %v11568_v59, %v869_v60 }
 0x60c   :  { %v878_v61 = vrot.slane %v12409_v54, 2 }
 0x60e   :  { %879 = vrot.lane.b32.xlu1 %v878_v61, %s12061_s4 }
 0x680   :  { %v880_v62 = vpop.permute.xlu1 %879 }
 0x681   :  { %10431 = vmatmul.mubr.msk.f32.vlgmr.msra.gmra.mxu1 %vm87_vm1, %v880_v62  ;;  %10442 = vmatmul.mubr.msk.f32.vlgmr.msra.gmra.mxu0 %vm87_vm1, %v880_v62 }
 0x682   :  { %10445 = vmatpush3.msra.mxu1 %v12215_v11  ;;  %10456 = vmatpush3.msra.mxu0 %v12277_v19 }
 0x683   :  { %10446 = vmatprep.subr.mxu1 %v12058_v0  ;;  %10457 = vmatprep.subr.mxu0 %v12058_v0 }
 0x684   :  { %10447 = vmatpush3.msra.mxu1 %v12229_v13  ;;  %10458 = vmatpush3.msra.mxu0 %v12285_v20 }
 0x685   :  { %10448 = vmatprep.subr.mxu1 %v12058_v0  ;;  %10459 = vmatprep.subr.mxu0 %v12058_v0 }
 0x686   :  { %10449 = vmatpush3.msra.mxu1 %v12243_v15  ;;  %10460 = vmatpush3.msra.mxu0 %v12295_v21 }
 0x687   :  { %10450 = vmatprep.subr.mxu1 %v12058_v0  ;;  %10461 = vmatprep.subr.mxu0 %v12058_v0 }
 0x688   :  { %10451 = vmatpush3.msra.mxu1 %v12257_v17  ;;  %10452 = vmatprep.mubr.msk.f32.mxu1 %vm12059_vm0, %v12058_v0 }
 0x689   :  { %10462 = vmatpush3.msra.mxu0 %v12304_v22  ;;  %10463 = vmatprep.mubr.msk.f32.mxu0 %vm12059_vm0, %v12058_v0 }
 0x68a   :  { %10453 = vmatmul.mubr.msk.f32.vlgmr.msra.gmra.mxu1 %vm87_vm1, %v880_v62  ;;  %10464 = vmatmul.mubr.msk.f32.vlgmr.msra.gmra.mxu0 %vm87_vm1, %v880_v62 }
 0x68b   :  { %10466 = vmatprep.subr.mxu1 %v12058_v0  ;;  %10477 = vmatprep.subr.mxu0 %v12058_v0 }
 0x68c   :  { %10467 = vmatpush3.msra.mxu1 %v12172_v2  ;;  %10478 = vmatpush3.msra.mxu0 %v12220_v12 }
 0x68d   :  { %10468 = vmatprep.subr.mxu1 %v12058_v0  ;;  %10479 = vmatprep.subr.mxu0 %v12058_v0 }
 0x68e   :  { %10469 = vmatpush3.msra.mxu1 %v12181_v4  ;;  %10480 = vmatpush3.msra.mxu0 %v12234_v14 }
 0x68f   :  { %10470 = vmatprep.subr.mxu1 %v12058_v0  ;;  %10481 = vmatprep.subr.mxu0 %v12058_v0 }
 0x690   :  { %10471 = vmatpush3.msra.mxu1 %v12190_v6  ;;  %10482 = vmatpush3.msra.mxu0 %v12248_v16 }
 0x691   :  { %10472 = vmatprep.subr.mxu1 %v12058_v0  ;;  %10483 = vmatprep.subr.mxu0 %v12058_v0 }
 0x692   :  { %10473 = vmatpush3.msra.mxu1 %v12200_v8  ;;  %10484 = vmatpush3.msra.mxu0 %v12264_v18 }
 0x693   :  { %10474 = vmatprep.mubr.msk.f32.mxu1 %vm12059_vm0, %v12058_v0  ;;  %10485 = vmatprep.mubr.msk.f32.mxu0 %vm12059_vm0, %v12058_v0 }
 0x694   :  { %10488 = vmatprep.subr.mxu1 %v12058_v0  ;;  %10499 = vmatprep.subr.mxu0 %v12058_v0 }
 0x741   :  { %v949_v63 = vpop.f32.mrf.mxu1  ;;  %v1029_v1 = vpop.f32.mrf.mxu0 }
 0x742   :  { %v1034_v25 = vrot.slane %v1029_v1, 4  ;;  %v954_v31 = vrot.slane %v949_v63, 4 }
 0x743   :  { %v10432_v3 = vpop.f32.mrf.mxu1  ;;  %v10443_v5 = vpop.f32.mrf.mxu0 }
 0x744   :  { %v956_v32 = vadd.f32 %v954_v31, %v12336_v35 }
 0x746   :  { %v9572_v33 = vmul.f32 -1.442695, %v956_v32 }
 0x74a   :  { %v1111_v7 = vpop.f32.mrf.mxu1  ;;  %v1188_v9 = vpop.f32.mrf.mxu0 }
 0x74b   :  { %v1116_v10 = vrot.slane %v1111_v7, 4  ;;  %v1193_v27 = vrot.slane %v1188_v9, 4 }
 0x74c   :  { %v10454_v23 = vpop.f32.mrf.mxu1  ;;  %v10465_v24 = vpop.f32.mrf.mxu0 }
 0x74d   :  { %1117 = vrot.lane.b32.xlu0 %v1116_v10, %s12060_s22 }
 0x751   :  { %1035 = vrot.lane.b32.xlu0 %v1034_v25, %s12061_s4 }
 0x755   :  { %1194 = vrot.lane.b32.xlu0 %v1193_v27, %s12062_s3 }
 0x7bf   :  { %v1118_v28 = vpop.permute.xlu0 %1117 }
 0x7c0   :  { %v1120_v29 = vadd.f32 %v1118_v28, %v12336_v35 }
 0x7c2   :  { %11569 = vtanh.f32 %v1120_v29 }
 0x7c3   :  { %11571 = vpow2.f32 %v9572_v33  ;;  %v1036_v40 = vpop.permute.xlu0 %1035 }
 0x7c4   :  { %v1038_v41 = vadd.f32 %v1036_v40, %v12336_v35 }
 0x7c6   :  { %v9574_v42 = vmul.f32 -1.442695, %v1038_v41 }
 0x7c7   :  { %v1195_v52 = vpop.permute.xlu0 %1194 }
 0x7c8   :  { %v1197_v53 = vadd.f32 %v1195_v52, %v12336_v35 }
 0x7ca   :  { %v9577_v55 = vmul.f32 -1.442695, %v1197_v53 }
 0x7cf   :  { %v11570_v30 = vpop.eup %11569 }
 0x7d0   :  { %1209 = vrot.lane.b32.xlu1 %v11570_v30, %s12060_s22  ;;  %v11572_v34 = vpop.eup %11571 }
 0x7d1   :  { %v960_v36 = vadd.f32 1.0, %v11572_v34 }
 0x7d3   :  { %11573 = vrcp.f32 %v960_v36 }
 0x7d4   :  { %11575 = vpow2.f32 %v9574_v42 }
 0x7e0   :  { %v11574_v37 = vpop.eup %11573 }
 0x7e1   :  { %v11576_v43 = vpop.eup %11575 }
 0x7e2   :  { %v1042_v44 = vadd.f32 1.0, %v11576_v43 }
 0x7e4   :  { %11577 = vrcp.f32 %v1042_v44 }
 0x7f1   :  { %v11578_v45 = vpop.eup %11577 }
 0x7f2   :  { %v1207_v47 = vmul.f32 %v11578_v45, %v1205_v46 }
 0x842   :  { %v1210_v38 = vpop.permute.xlu1 %1209 }
 0x843   :  { %v1212_v39 = vmul.f32 %v11574_v37, %v1210_v38 }
 0x845   :  { %1214 = vrot.lane.b32.xlu1 %v1212_v39, %s12061_s4 }
 0x8b7   :  { %v1215_v48 = vpop.permute.xlu1 %1214 }
 0x8b8   :  { %v12466_v49 = vadd.f32 %v1215_v48, %v1207_v47 }
 0x8ba   :  { %11579 = vtanh.f32 %v12466_v49  ;;  %v1557_v45 = vrot.slane %v12466_v49, 6 }
 0x8bb   :  { %11581 = vpow2.f32 %v9577_v55 }
 0x8c7   :  { %v11580_v50 = vpop.eup %11579 }
 0x8c8   :  { %1220 = vrot.lane.b32.xlu1 %v11580_v50, %s12060_s22  ;;  %v11582_v56 = vpop.eup %11581 }
 0x8c9   :  { %v1201_v57 = vadd.f32 1.0, %v11582_v56 }
 0x8cb   :  { %11583 = vrcp.f32 %v1201_v57 }
 0x8d8   :  { %v11584_v58 = vpop.eup %11583 }
 0x93a   :  { %v1221_v59 = vpop.permute.xlu1 %1220 }
 0x93b   :  { %v12471_v51 = vmul.f32 %v11584_v58, %v1221_v59 }
 0x93d   :  { %v1230_v60 = vrot.slane %v12471_v51, 4 }
 0x93f   :  { %1231 = vrot.lane.b32.xlu0 %v1230_v60, %s12061_s4 }
 0x9b1   :  { %v1232_v61 = vpop.permute.xlu0 %1231 }
 0x9b2   :  { %10475 = vmatmul.mubr.msk.f32.vlgmr.msra.gmra.mxu1 %vm87_vm1, %v1232_v61  ;;  %10486 = vmatmul.mubr.msk.f32.vlgmr.msra.gmra.mxu0 %vm87_vm1, %v1232_v61 }
 0x9b3   :  { %10489 = vmatpush3.msra.mxu1 %v12215_v11  ;;  %10500 = vmatpush3.msra.mxu0 %v12277_v19 }
 0x9b4   :  { %10490 = vmatprep.subr.mxu1 %v12058_v0  ;;  %10501 = vmatprep.subr.mxu0 %v12058_v0 }
 0x9b5   :  { %10491 = vmatpush3.msra.mxu1 %v12229_v13  ;;  %10502 = vmatpush3.msra.mxu0 %v12285_v20 }
 0x9b6   :  { %10492 = vmatprep.subr.mxu1 %v12058_v0  ;;  %10503 = vmatprep.subr.mxu0 %v12058_v0 }
 0x9b7   :  { %10493 = vmatpush3.msra.mxu1 %v12243_v15  ;;  %10504 = vmatpush3.msra.mxu0 %v12295_v21 }
 0x9b8   :  { %10494 = vmatprep.subr.mxu1 %v12058_v0  ;;  %10505 = vmatprep.subr.mxu0 %v12058_v0 }
 0x9b9   :  { %10495 = vmatpush3.msra.mxu1 %v12257_v17  ;;  %10496 = vmatprep.mubr.msk.f32.mxu1 %vm12059_vm0, %v12058_v0 }
 0x9ba   :  { %10506 = vmatpush3.msra.mxu0 %v12304_v22  ;;  %10507 = vmatprep.mubr.msk.f32.mxu0 %vm12059_vm0, %v12058_v0 }
 0x9bb   :  { %10497 = vmatmul.mubr.msk.f32.vlgmr.msra.gmra.mxu1 %vm87_vm1, %v1232_v61  ;;  %10508 = vmatmul.mubr.msk.f32.vlgmr.msra.gmra.mxu0 %vm87_vm1, %v1232_v61 }
 0x9bc   :  { %10510 = vmatprep.subr.mxu1 %v12058_v0  ;;  %10521 = vmatprep.subr.mxu0 %v12058_v0 }
 0x9bd   :  { %10511 = vmatpush3.msra.mxu1 %v12172_v2  ;;  %10522 = vmatpush3.msra.mxu0 %v12220_v12 }
 0x9be   :  { %10512 = vmatprep.subr.mxu1 %v12058_v0  ;;  %10523 = vmatprep.subr.mxu0 %v12058_v0 }
 0x9bf   :  { %10513 = vmatpush3.msra.mxu1 %v12181_v4  ;;  %10524 = vmatpush3.msra.mxu0 %v12234_v14 }
 0x9c0   :  { %10514 = vmatprep.subr.mxu1 %v12058_v0  ;;  %10525 = vmatprep.subr.mxu0 %v12058_v0 }
 0x9c1   :  { %10515 = vmatpush3.msra.mxu1 %v12190_v6  ;;  %10526 = vmatpush3.msra.mxu0 %v12248_v16 }
 0x9c2   :  { %10516 = vmatprep.subr.mxu1 %v12058_v0  ;;  %10527 = vmatprep.subr.mxu0 %v12058_v0 }
 0x9c3   :  { %10517 = vmatpush3.msra.mxu1 %v12200_v8  ;;  %10528 = vmatpush3.msra.mxu0 %v12264_v18 }
 0x9c4   :  { %10518 = vmatprep.mubr.msk.f32.mxu1 %vm12059_vm0, %v12058_v0  ;;  %10529 = vmatprep.mubr.msk.f32.mxu0 %vm12059_vm0, %v12058_v0 }
 0x9c5   :  { %10532 = vmatprep.subr.mxu1 %v12058_v0  ;;  %10543 = vmatprep.subr.mxu0 %v12058_v0 }
 0xa72   :  { %v1301_v62 = vpop.f32.mrf.mxu1  ;;  %v1381_v63 = vpop.f32.mrf.mxu0 }
 0xa73   :  { %v1386_v24 = vrot.slane %v1381_v63, 2  ;;  %v1306_v30 = vrot.slane %v1301_v62, 2 }
 0xa74   :  { %v10476_v1 = vpop.f32.mrf.mxu1  ;;  %v10487_v3 = vpop.f32.mrf.mxu0 }
 0xa75   :  { %v1308_v31 = vadd.f32 %v1306_v30, %v12336_v35 }
 0xa77   :  { %v9579_v32 = vmul.f32 -1.442695, %v1308_v31 }
 0xa7b   :  { %v1463_v5 = vpop.f32.mrf.mxu1  ;;  %v1540_v7 = vpop.f32.mrf.mxu0 }
 0xa7c   :  { %v1468_v9 = vrot.slane %v1463_v5, 2  ;;  %v1545_v25 = vrot.slane %v1540_v7, 2 }
 0xa7d   :  { %v10498_v10 = vpop.f32.mrf.mxu1  ;;  %v10509_v23 = vpop.f32.mrf.mxu0 }
 0xa7e   :  { %1469 = vrot.lane.b32.xlu1 %v1468_v9, %s12060_s22 }
 0xa82   :  { %1387 = vrot.lane.b32.xlu1 %v1386_v24, %s12061_s4 }
 0xa86   :  { %1546 = vrot.lane.b32.xlu1 %v1545_v25, %s12062_s3 }
 0xaf0   :  { %v1470_v27 = vpop.permute.xlu1 %1469 }
 0xaf1   :  { %v1472_v28 = vadd.f32 %v1470_v27, %v12336_v35 }
 0xaf3   :  { %11585 = vtanh.f32 %v1472_v28 }
 0xaf4   :  { %11587 = vpow2.f32 %v9579_v32  ;;  %v1388_v39 = vpop.permute.xlu1 %1387 }
 0xaf5   :  { %v1390_v40 = vadd.f32 %v1388_v39, %v12336_v35 }
 0xaf7   :  { %v9581_v41 = vmul.f32 -1.442695, %v1390_v40 }
 0xaf8   :  { %v1547_v52 = vpop.permute.xlu1 %1546 }
 0xaf9   :  { %v1549_v53 = vadd.f32 %v1547_v52, %v12336_v35 }
 0xafb   :  { %v9584_v55 = vmul.f32 -1.442695, %v1549_v53 }
 0xb00   :  { %v11586_v29 = vpop.eup %11585 }
 0xb01   :  { %1561 = vrot.lane.b32.xlu0 %v11586_v29, %s12060_s22  ;;  %v11588_v33 = vpop.eup %11587 }
 0xb02   :  { %v1312_v34 = vadd.f32 1.0, %v11588_v33 }
 0xb04   :  { %11589 = vrcp.f32 %v1312_v34 }
 0xb05   :  { %11591 = vpow2.f32 %v9581_v41 }
 0xb11   :  { %v11590_v36 = vpop.eup %11589 }
 0xb12   :  { %v11592_v42 = vpop.eup %11591 }
 0xb13   :  { %v1394_v43 = vadd.f32 1.0, %v11592_v42 }
 0xb15   :  { %11593 = vrcp.f32 %v1394_v43  ;;  %v12602_v43 = vld [vmem:[%s14440_s24 + $0x58] sm:$0xff] }
 0xb22   :  { %v11594_v44 = vpop.eup %11593 }
 0xb23   :  { %v1559_v46 = vmul.f32 %v11594_v44, %v1557_v45  ;;  %v12611_v44 = vld [vmem:[%s14440_s24 + $0x50] sm:$0xff]  ;;  %v12667_v45 = vld [vmem:[%s14440_s24 + $0x8] sm:$0xff] }
 0xb73   :  { %v1562_v37 = vpop.permute.xlu0 %1561 }
 0xb74   :  { %v1564_v38 = vmul.f32 %v11590_v36, %v1562_v37 }
 0xb76   :  { %1566 = vrot.lane.b32.xlu0 %v1564_v38, %s12061_s4 }
 0xbe8   :  { %v1567_v47 = vpop.permute.xlu0 %1566 }
 0xbe9   :  { %v12528_v48 = vadd.f32 %v1567_v47, %v1559_v46  ;;  %v12673_v46 = vld [vmem:[%s14440_s24 + $0x28] sm:$0xff]  ;;  %v12681_v47 = vld [vmem:[%s14440_s24] sm:$0xff] }
 0xbeb   :  { %11595 = vtanh.f32 %v12528_v48  ;;  %v1903_v28 = vrot.slane %v12528_v48, 6  ;;  %v12687_v48 = vld [vmem:[%s14440_s24 + $0x20] sm:$0xff] }
 0xbec   :  { %11597 = vpow2.f32 %v9584_v55 }
 0xbf8   :  { %v11596_v50 = vpop.eup %11595 }
 0xbf9   :  { %1572 = vrot.lane.b32.xlu0 %v11596_v50, %s12060_s22  ;;  %v11598_v56 = vpop.eup %11597 }
 0xbfa   :  { %v1553_v57 = vadd.f32 1.0, %v11598_v56 }
 0xbfc   :  { %11599 = vrcp.f32 %v1553_v57 }
 0xc09   :  { %v11600_v58 = vpop.eup %11599 }
 0xc6b   :  { %v1573_v59 = vpop.permute.xlu0 %1572 }
 0xc6c   :  { %v12533_v49 = vmul.f32 %v11600_v58, %v1573_v59 }
 0xc6e   :  { %v1582_v60 = vrot.slane %v12533_v49, 6 }
 0xc70   :  { %1583 = vrot.lane.b32.xlu1 %v1582_v60, %s12061_s4 }
 0xce2   :  { %v1584_v61 = vpop.permute.xlu1 %1583 }
 0xce3   :  { %10519 = vmatmul.mubr.msk.f32.vlgmr.msra.gmra.mxu1 %vm87_vm1, %v1584_v61  ;;  %10530 = vmatmul.mubr.msk.f32.vlgmr.msra.gmra.mxu0 %vm87_vm1, %v1584_v61 }
 0xce4   :  { %10533 = vmatpush3.msra.mxu1 %v12215_v11  ;;  %10544 = vmatpush3.msra.mxu0 %v12277_v19 }
 0xce5   :  { %10534 = vmatprep.subr.mxu1 %v12058_v0  ;;  %10545 = vmatprep.subr.mxu0 %v12058_v0 }
 0xce6   :  { %10535 = vmatpush3.msra.mxu1 %v12229_v13  ;;  %10546 = vmatpush3.msra.mxu0 %v12285_v20 }
 0xce7   :  { %10536 = vmatprep.subr.mxu1 %v12058_v0  ;;  %10547 = vmatprep.subr.mxu0 %v12058_v0 }
 0xce8   :  { %10537 = vmatpush3.msra.mxu1 %v12243_v15  ;;  %10548 = vmatpush3.msra.mxu0 %v12295_v21 }
 0xce9   :  { %10538 = vmatprep.subr.mxu1 %v12058_v0  ;;  %10549 = vmatprep.subr.mxu0 %v12058_v0 }
 0xcea   :  { %10539 = vmatpush3.msra.mxu1 %v12257_v17  ;;  %10540 = vmatprep.mubr.msk.f32.mxu1 %vm12059_vm0, %v12058_v0 }
 0xceb   :  { %10550 = vmatpush3.msra.mxu0 %v12304_v22  ;;  %10551 = vmatprep.mubr.msk.f32.mxu0 %vm12059_vm0, %v12058_v0 }
 0xcec   :  { %10541 = vmatmul.mubr.msk.f32.vlgmr.msra.gmra.mxu1 %vm87_vm1, %v1584_v61  ;;  %10552 = vmatmul.mubr.msk.f32.vlgmr.msra.gmra.mxu0 %vm87_vm1, %v1584_v61 }
 0xced   :  { %10554 = vmatprep.subr.mxu1 %v12058_v0  ;;  %10565 = vmatprep.subr.mxu0 %v12058_v0 }
 0xcee   :  { %10555 = vmatpush3.msra.mxu1 %v12172_v2  ;;  %10566 = vmatpush3.msra.mxu0 %v12220_v12 }
 0xcef   :  { %10556 = vmatprep.subr.mxu1 %v12058_v0  ;;  %10567 = vmatprep.subr.mxu0 %v12058_v0 }
 0xcf0   :  { %10557 = vmatpush3.msra.mxu1 %v12181_v4  ;;  %10568 = vmatpush3.msra.mxu0 %v12234_v14 }
 0xcf1   :  { %10558 = vmatprep.subr.mxu1 %v12058_v0  ;;  %10569 = vmatprep.subr.mxu0 %v12058_v0 }
 0xcf2   :  { %10559 = vmatpush3.msra.mxu1 %v12190_v6  ;;  %10570 = vmatpush3.msra.mxu0 %v12248_v16 }
 0xcf3   :  { %10560 = vmatprep.subr.mxu1 %v12058_v0  ;;  %10571 = vmatprep.subr.mxu0 %v12058_v0 }
 0xcf4   :  { %10561 = vmatpush3.msra.mxu1 %v12200_v8  ;;  %10572 = vmatpush3.msra.mxu0 %v12264_v18 }
 0xcf5   :  { %10562 = vmatprep.mubr.msk.f32.mxu1 %vm12059_vm0, %v12058_v0  ;;  %10573 = vmatprep.mubr.msk.f32.mxu0 %vm12059_vm0, %v12058_v0 }
 0xcf6   :  { %10576 = vmatprep.subr.mxu1 %v12058_v0  ;;  %10587 = vmatprep.subr.mxu0 %v12058_v0 }
 0xda3   :  { %v1653_v2 = vpop.f32.mrf.mxu1  ;;  %v1730_v4 = vpop.f32.mrf.mxu0 }
 0xda4   :  { %v1657_v35 = vadd.f32 %v1653_v2, %v12332_v26 }
 0xda5   :  { %v10520_v6 = vpop.f32.mrf.mxu1  ;;  %v10531_v11 = vpop.f32.mrf.mxu0 }
 0xda6   :  { %v9586_v62 = vmul.f32 -1.442695, %v1657_v35 }
 0xdac   :  { %v1811_v12 = vpop.f32.mrf.mxu1  ;;  %v1887_v13 = vpop.f32.mrf.mxu0 }
 0xdad   :  { %1816 = vrot.lane.b32.xlu0 %v1811_v12, %s12060_s22 }
 0xdae   :  { %v10542_v8 = vpop.f32.mrf.mxu1  ;;  %v10553_v14 = vpop.f32.mrf.mxu0 }
 0xdb1   :  { %1735 = vrot.lane.b32.xlu0 %v1730_v4, %s12061_s4 }
 0xdb5   :  { %1892 = vrot.lane.b32.xlu0 %v1887_v13, %s12062_s3 }
 0xe1f   :  { %v1817_v15 = vpop.permute.xlu0 %1816 }
 0xe20   :  { %v1819_v16 = vadd.f32 %v1817_v15, %v12332_v26 }
 0xe22   :  { %11601 = vtanh.f32 %v1819_v16 }
 0xe23   :  { %11603 = vpow2.f32 %v9586_v62  ;;  %v1736_v9 = vpop.permute.xlu0 %1735 }
 0xe24   :  { %v1738_v10 = vadd.f32 %v1736_v9, %v12332_v26 }
 0xe26   :  { %v9588_v23 = vmul.f32 -1.442695, %v1738_v10 }
 0xe27   :  { %v1893_v33 = vpop.permute.xlu0 %1892 }
 0xe28   :  { %v1895_v34 = vadd.f32 %v1893_v33, %v12332_v26 }
 0xe2a   :  { %v9591_v36 = vmul.f32 -1.442695, %v1895_v34 }
 0xe2f   :  { %v11602_v18 = vpop.eup %11601 }
 0xe30   :  { %1907 = vrot.lane.b32.xlu1 %v11602_v18, %s12060_s22  ;;  %v11604_v63 = vpop.eup %11603 }
 0xe31   :  { %v1661_v1 = vadd.f32 1.0, %v11604_v63 }
 0xe33   :  { %11605 = vrcp.f32 %v1661_v1 }
 0xe34   :  { %11607 = vpow2.f32 %v9588_v23 }
 0xe40   :  { %v11606_v3 = vpop.eup %11605 }
 0xe41   :  { %v11608_v24 = vpop.eup %11607 }
 0xe42   :  { %v1742_v25 = vadd.f32 1.0, %v11608_v24 }
 0xe44   :  { %11609 = vrcp.f32 %v1742_v25 }
 0xe51   :  { %v11610_v27 = vpop.eup %11609 }
 0xe52   :  { %v1905_v29 = vmul.f32 %v11610_v27, %v1903_v28 }
 0xea2   :  { %v1908_v5 = vpop.permute.xlu1 %1907 }
 0xea3   :  { %v1910_v7 = vmul.f32 %v11606_v3, %v1908_v5 }
 0xea5   :  { %1912 = vrot.lane.b32.xlu1 %v1910_v7, %s12061_s4 }
 0xf17   :  { %v1913_v30 = vpop.permute.xlu1 %1912 }
 0xf18   :  { %v12590_v31 = vadd.f32 %v1913_v30, %v1905_v29 }
 0xf1a   :  { %11611 = vtanh.f32 %v12590_v31  ;;  %v2251_v9 = vrot.slane %v12590_v31, 6 }
 0xf1b   :  { %11613 = vpow2.f32 %v9591_v36 }
 0xf27   :  { %v11612_v32 = vpop.eup %11611 }
 0xf28   :  { %1918 = vrot.lane.b32.xlu1 %v11612_v32, %s12060_s22  ;;  %v11614_v37 = vpop.eup %11613 }
 0xf29   :  { %v1899_v38 = vadd.f32 1.0, %v11614_v37 }
 0xf2b   :  { %11615 = vrcp.f32 %v1899_v38  ;;  %v12720_v38 = vld [vmem:[%s14440_s24 + $0x78] sm:$0xff] }
 0xf38   :  { %v11616_v39 = vpop.eup %11615 }
 0xf9a   :  { %v1919_v40 = vpop.permute.xlu1 %1918 }
 0xf9b   :  { %v1921_v41 = vmul.f32 %v11616_v39, %v1919_v40  ;;  %v12729_v39 = vld [vmem:[%s14440_s24 + $0x70] sm:$0xff]  ;;  %v12738_v40 = vld [vmem:[%s14440_s24 + $0x68] sm:$0xff] }
 0xf9d   :  { %1923 = vrot.lane.b32.xlu0 %v1921_v41, %s12061_s4  ;;  %v12746_v41 = vld [vmem:[%s14440_s24 + $0x40] sm:$0xff] }
0x100f   :  { %v1924_v42 = vpop.permute.xlu0 %1923 }
0x1010   :  { %10563 = vmatmul.mubr.msk.f32.vlgmr.msra.gmra.mxu1 %vm87_vm1, %v1924_v42  ;;  %10574 = vmatmul.mubr.msk.f32.vlgmr.msra.gmra.mxu0 %vm87_vm1, %v1924_v42  ;;  %1926 = vst.msk [vmem:[#allocation2 + $0x8] sm:$0x3] %vm527_vm2, %v1924_v42 }
0x1011   :  { %10577 = vmatpush3.msra.mxu1 %v12602_v43  ;;  %10588 = vmatpush3.msra.mxu0 %v12277_v19  ;;  %v12620_v19 = vld [vmem:[%s14440_s24 + $0x48] sm:$0xff] }
0x1012   :  { %10578 = vmatprep.subr.mxu1 %v12058_v0  ;;  %10589 = vmatprep.subr.mxu0 %v12058_v0 }
0x1013   :  { %10579 = vmatpush3.msra.mxu1 %v12611_v44  ;;  %10590 = vmatpush3.msra.mxu0 %v12285_v20  ;;  %v12645_v20 = vld [vmem:[%s14440_s24 + $0x38] sm:$0xff] }
0x1014   :  { %10580 = vmatprep.subr.mxu1 %v12058_v0  ;;  %10591 = vmatprep.subr.mxu0 %v12058_v0 }
0x1015   :  { %10581 = vmatpush3.msra.mxu1 %v12620_v19  ;;  %10592 = vmatpush3.msra.mxu0 %v12295_v21  ;;  %v12653_v21 = vld [vmem:[%s14440_s24 + $0x10] sm:$0xff] }
0x1016   :  { %10582 = vmatprep.subr.mxu1 %v12058_v0  ;;  %10593 = vmatprep.subr.mxu0 %v12058_v0 }
0x1017   :  { %10583 = vmatpush3.msra.mxu1 %v12257_v17  ;;  %10584 = vmatprep.mubr.msk.f32.mxu1 %vm12059_vm0, %v12058_v0  ;;  %v12639_v17 = vld [vmem:[%s14440_s24 + $0x18] sm:$0xff] }
0x1018   :  { %10594 = vmatpush3.msra.mxu0 %v12304_v22  ;;  %10595 = vmatprep.mubr.msk.f32.mxu0 %vm12059_vm0, %v12058_v0  ;;  %v12659_v22 = vld [vmem:[%s14440_s24 + $0x30] sm:$0xff] }
0x1019   :  { %10585 = vmatmul.mubr.msk.f32.vlgmr.msra.gmra.mxu1 %vm87_vm1, %v1924_v42  ;;  %10596 = vmatmul.mubr.msk.f32.vlgmr.msra.gmra.mxu0 %vm87_vm1, %v1924_v42  ;;  %v12754_v42 = vld [vmem:[%s14440_s24 + $0x60] sm:$0xff] }
0x101a   :  { %10598 = vmatprep.subr.mxu1 %v12058_v0  ;;  %10609 = vmatprep.subr.mxu0 %v12058_v0 }
0x101b   :  { %10599 = vmatpush3.msra.mxu1 %v12639_v17  ;;  %10610 = vmatpush3.msra.mxu0 %v12645_v20 }
0x101c   :  { %10600 = vmatprep.subr.mxu1 %v12058_v0  ;;  %10611 = vmatprep.subr.mxu0 %v12058_v0 }
0x101d   :  { %10601 = vmatpush3.msra.mxu1 %v12653_v21  ;;  %10612 = vmatpush3.msra.mxu0 %v12659_v22 }
0x101e   :  { %10602 = vmatprep.subr.mxu1 %v12058_v0  ;;  %10613 = vmatprep.subr.mxu0 %v12058_v0 }
0x101f   :  { %10603 = vmatpush3.msra.mxu1 %v12667_v45  ;;  %10614 = vmatpush3.msra.mxu0 %v12673_v46 }
0x1020   :  { %10604 = vmatprep.subr.mxu1 %v12058_v0  ;;  %10615 = vmatprep.subr.mxu0 %v12058_v0 }
0x1021   :  { %10605 = vmatpush3.msra.mxu1 %v12681_v47  ;;  %10616 = vmatpush3.msra.mxu0 %v12687_v48 }
0x1022   :  { %10606 = vmatprep.mubr.msk.f32.mxu1 %vm12059_vm0, %v12058_v0  ;;  %10617 = vmatprep.mubr.msk.f32.mxu0 %vm12059_vm0, %v12058_v0 }
0x1023   :  { %10620 = vmatprep.subr.mxu1 %v12058_v0  ;;  %10631 = vmatprep.subr.mxu0 %v12058_v0 }
0x10d0   :  { %v1995_v50 = vpop.f32.mrf.mxu1  ;;  %v2075_v52 = vpop.f32.mrf.mxu0 }
0x10d1   :  { %v2080_v61 = vrot.slane %v2075_v52, 6  ;;  %v2000_v12 = vrot.slane %v1995_v50, 6 }
0x10d2   :  { %v10564_v53 = vpop.f32.mrf.mxu1  ;;  %v10575_v55 = vpop.f32.mrf.mxu0 }
0x10d3   :  { %v2002_v13 = vadd.f32 %v2000_v12, %v12332_v26 }
0x10d5   :  { %v9593_v8 = vmul.f32 -1.442695, %v2002_v13 }
0x10d9   :  { %v2157_v56 = vpop.f32.mrf.mxu1  ;;  %v2234_v57 = vpop.f32.mrf.mxu0 }
0x10da   :  { %v2162_v58 = vrot.slane %v2157_v56, 6  ;;  %v2239_v2 = vrot.slane %v2234_v57, 6 }
0x10db   :  { %v10586_v59 = vpop.f32.mrf.mxu1  ;;  %v10597_v60 = vpop.f32.mrf.mxu0 }
0x10dc   :  { %2163 = vrot.lane.b32.xlu1 %v2162_v58, %s12060_s22 }
0x10e0   :  { %2081 = vrot.lane.b32.xlu1 %v2080_v61, %s12061_s4 }
0x10e4   :  { %2240 = vrot.lane.b32.xlu1 %v2239_v2, %s12062_s3 }
0x114e   :  { %v2164_v4 = vpop.permute.xlu1 %2163 }
0x114f   :  { %v2166_v6 = vadd.f32 %v2164_v4, %v12332_v26 }
0x1151   :  { %11617 = vtanh.f32 %v2166_v6 }
0x1152   :  { %11619 = vpow2.f32 %v9593_v8  ;;  %v2082_v62 = vpop.permute.xlu1 %2081 }
0x1153   :  { %v2084_v63 = vadd.f32 %v2082_v62, %v12332_v26 }
0x1155   :  { %v9595_v1 = vmul.f32 -1.442695, %v2084_v63 }
0x1156   :  { %v2241_v27 = vpop.permute.xlu1 %2240 }
0x1157   :  { %v2243_v28 = vadd.f32 %v2241_v27, %v12332_v26 }
0x1159   :  { %v9598_v29 = vmul.f32 -1.442695, %v2243_v28 }
0x115e   :  { %v11618_v11 = vpop.eup %11617 }
0x115f   :  { %2255 = vrot.lane.b32.xlu0 %v11618_v11, %s12060_s22  ;;  %v11620_v14 = vpop.eup %11619 }
0x1160   :  { %v2006_v15 = vadd.f32 1.0, %v11620_v14 }
0x1162   :  { %11621 = vrcp.f32 %v2006_v15 }
0x1163   :  { %11623 = vpow2.f32 %v9595_v1 }
0x116f   :  { %v11622_v16 = vpop.eup %11621 }
0x1170   :  { %v11624_v3 = vpop.eup %11623 }
0x1171   :  { %v2088_v5 = vadd.f32 1.0, %v11624_v3 }
0x1173   :  { %11625 = vrcp.f32 %v2088_v5 }
0x1180   :  { %v11626_v7 = vpop.eup %11625 }
0x1181   :  { %v2253_v10 = vmul.f32 %v11626_v7, %v2251_v9 }
0x11d1   :  { %v2256_v18 = vpop.permute.xlu0 %2255 }
0x11d2   :  { %v2258_v35 = vmul.f32 %v11622_v16, %v2256_v18 }
0x11d4   :  { %2260 = vrot.lane.b32.xlu0 %v2258_v35, %s12061_s4 }
0x1246   :  { %v2261_v23 = vpop.permute.xlu0 %2260 }
0x1247   :  { %v12705_v24 = vadd.f32 %v2261_v23, %v2253_v10 }
0x1249   :  { %11627 = vtanh.f32 %v12705_v24  ;;  %v2602_v18 = vrot.slane %v12705_v24, 6 }
0x124a   :  { %11629 = vpow2.f32 %v9598_v29  ;;  %v12832_v29 = vld [vmem:[%s14419_s5 + $0x10] sm:$0xff] }
0x1256   :  { %v11628_v25 = vpop.eup %11627 }
0x1257   :  { %2266 = vrot.lane.b32.xlu0 %v11628_v25, %s12060_s22  ;;  %v11630_v30 = vpop.eup %11629 }
0x1258   :  { %v2247_v32 = vadd.f32 1.0, %v11630_v30  ;;  %v2978_v30 = vld [vmem:[#allocation3 + $0x8] sm:$0xff] }
0x125a   :  { %11631 = vrcp.f32 %v2247_v32  ;;  %v12839_v32 = vld [vmem:[%s14419_s5 + $0x8] sm:$0xff] }
0x1267   :  { %v11632_v33 = vpop.eup %11631 }
0x12c9   :  { %v2267_v34 = vpop.permute.xlu0 %2266 }
0x12ca   :  { %v12710_v31 = vmul.f32 %v11632_v33, %v2267_v34  ;;  %v2977_v33 = vld [vmem:[#allocation3] sm:$0xff]  ;;  %v12846_v34 = vld [vmem:[%s14419_s5] sm:$0xff] }
0x12cc   :  { %v2275_v36 = vrot.slane %v12710_v31, 2 }
0x12ce   :  { %2276 = vrot.lane.b32.xlu1 %v2275_v36, %s12061_s4  ;;  %v11953_v36 = vld [vmem:[%s14441_s25] sm:$0xff] }
0x1340   :  { %v2277_v37 = vpop.permute.xlu1 %2276 }
0x1341   :  { %10607 = vmatmul.mubr.msk.f32.vlgmr.msra.gmra.mxu1 %vm87_vm1, %v2277_v37  ;;  %10618 = vmatmul.mubr.msk.f32.vlgmr.msra.gmra.mxu0 %vm87_vm1, %v2277_v37 }
0x1342   :  { %10621 = vmatpush3.msra.mxu1 %v12602_v43  ;;  %10632 = vmatpush3.msra.mxu0 %v12720_v38 }
0x1343   :  { %10622 = vmatprep.subr.mxu1 %v12058_v0  ;;  %10633 = vmatprep.subr.mxu0 %v12058_v0 }
0x1344   :  { %10623 = vmatpush3.msra.mxu1 %v12611_v44  ;;  %10634 = vmatpush3.msra.mxu0 %v12729_v39 }
0x1345   :  { %10624 = vmatprep.subr.mxu1 %v12058_v0  ;;  %10635 = vmatprep.subr.mxu0 %v12058_v0 }
0x1346   :  { %10625 = vmatpush3.msra.mxu1 %v12620_v19  ;;  %10636 = vmatpush3.msra.mxu0 %v12738_v40 }
0x1347   :  { %10626 = vmatprep.subr.mxu1 %v12058_v0  ;;  %10637 = vmatprep.subr.mxu0 %v12058_v0 }
0x1348   :  { %10627 = vmatpush3.msra.mxu1 %v12746_v41  ;;  %10628 = vmatprep.mubr.msk.f32.mxu1 %vm12059_vm0, %v12058_v0 }
0x1349   :  { %10638 = vmatpush3.msra.mxu0 %v12754_v42  ;;  %10639 = vmatprep.mubr.msk.f32.mxu0 %vm12059_vm0, %v12058_v0 }
0x134a   :  { %10629 = vmatmul.mubr.msk.f32.vlgmr.msra.gmra.mxu1 %vm87_vm1, %v2277_v37  ;;  %10640 = vmatmul.mubr.msk.f32.vlgmr.msra.gmra.mxu0 %vm87_vm1, %v2277_v37  ;;  %v12860_v37 = vld [vmem:[%s14419_s5 + $0x38] sm:$0xff] }
0x134b   :  { %10642 = vmatprep.subr.mxu1 %v12058_v0  ;;  %10653 = vmatprep.subr.mxu0 %v12058_v0 }
0x134c   :  { %10643 = vmatpush3.msra.mxu1 %v12639_v17  ;;  %10654 = vmatpush3.msra.mxu0 %v12645_v20 }
0x134d   :  { %10644 = vmatprep.subr.mxu1 %v12058_v0  ;;  %10655 = vmatprep.subr.mxu0 %v12058_v0 }
0x134e   :  { %10645 = vmatpush3.msra.mxu1 %v12653_v21  ;;  %10656 = vmatpush3.msra.mxu0 %v12659_v22 }
0x134f   :  { %10646 = vmatprep.subr.mxu1 %v12058_v0  ;;  %10657 = vmatprep.subr.mxu0 %v12058_v0 }
0x1350   :  { %10647 = vmatpush3.msra.mxu1 %v12667_v45  ;;  %10658 = vmatpush3.msra.mxu0 %v12673_v46 }
0x1351   :  { %10648 = vmatprep.subr.mxu1 %v12058_v0  ;;  %10659 = vmatprep.subr.mxu0 %v12058_v0 }
0x1352   :  { %10649 = vmatpush3.msra.mxu1 %v12681_v47  ;;  %10660 = vmatpush3.msra.mxu0 %v12687_v48 }
0x1353   :  { %10650 = vmatprep.mubr.msk.f32.mxu1 %vm12059_vm0, %v12058_v0  ;;  %10661 = vmatprep.mubr.msk.f32.mxu0 %vm12059_vm0, %v12058_v0 }
0x1354   :  { %10664 = vmatprep.subr.mxu1 %v12058_v0  ;;  %10675 = vmatprep.subr.mxu0 %v12058_v0 }
0x1401   :  { %v2346_v17 = vpop.f32.mrf.mxu1  ;;  %v2426_v20 = vpop.f32.mrf.mxu0 }
0x1402   :  { %v2431_v48 = vrot.slane %v2426_v20, 4  ;;  %v2351_v58 = vrot.slane %v2346_v17, 4  ;;  %v12896_v17 = vld [vmem:[%s14419_s5 + $0x48] sm:$0xff]  ;;  %v12905_v20 = vld [vmem:[%s14419_s5 + $0x20] sm:$0xff] }
0x1403   :  { %v10608_v21 = vpop.f32.mrf.mxu1  ;;  %v10619_v22 = vpop.f32.mrf.mxu0 }
0x1404   :  { %v2353_v59 = vadd.f32 %v2351_v58, %v12332_v26  ;;  %v12910_v21 = vld [vmem:[%s14419_s5 + $0x40] sm:$0xff]  ;;  %v12925_v22 = vld [vmem:[%s14419_s5 + $0x78] sm:$0xff] }
0x1406   :  { %v9600_v60 = vmul.f32 -1.442695, %v2353_v59 }
0x140a   :  { %v2508_v45 = vpop.f32.mrf.mxu1  ;;  %v2585_v46 = vpop.f32.mrf.mxu0 }
0x140b   :  { %v2513_v50 = vrot.slane %v2508_v45, 4  ;;  %v2590_v53 = vrot.slane %v2585_v46, 4  ;;  %v12933_v45 = vld [vmem:[%s14419_s5 + $0x70] sm:$0xff]  ;;  %v12943_v46 = vld [vmem:[%s14419_s5 + $0x68] sm:$0xff] }
0x140c   :  { %v10630_v47 = vpop.f32.mrf.mxu1  ;;  %v10641_v52 = vpop.f32.mrf.mxu0 }
0x140d   :  { %2514 = vrot.lane.b32.xlu0 %v2513_v50, %s12060_s22  ;;  %v12952_v50 = vld [vmem:[%s14419_s5 + $0x60] sm:$0xff] }
0x1411   :  { %2432 = vrot.lane.b32.xlu0 %v2431_v48, %s12061_s4 }
0x1415   :  { %2591 = vrot.lane.b32.xlu0 %v2590_v53, %s12062_s3 }
0x147f   :  { %v2515_v55 = vpop.permute.xlu0 %2514 }
0x1480   :  { %v2517_v56 = vadd.f32 %v2515_v55, %v12332_v26 }
0x1482   :  { %11633 = vtanh.f32 %v2517_v56 }
0x1483   :  { %11635 = vpow2.f32 %v9600_v60  ;;  %v2433_v12 = vpop.permute.xlu0 %2432 }
0x1484   :  { %v2435_v13 = vadd.f32 %v2433_v12, %v12332_v26 }
0x1486   :  { %v9602_v8 = vmul.f32 -1.442695, %v2435_v13 }
0x1487   :  { %v2592_v3 = vpop.permute.xlu0 %2591 }
0x1488   :  { %v2594_v5 = vadd.f32 %v2592_v3, %v12332_v26 }
0x148a   :  { %v9605_v7 = vmul.f32 -1.442695, %v2594_v5 }
0x148f   :  { %v11634_v57 = vpop.eup %11633 }
0x1490   :  { %2606 = vrot.lane.b32.xlu1 %v11634_v57, %s12060_s22  ;;  %v11636_v61 = vpop.eup %11635 }
0x1491   :  { %v2357_v2 = vadd.f32 1.0, %v11636_v61 }
0x1493   :  { %11637 = vrcp.f32 %v2357_v2  ;;  %v9613_v2 = vld [vmem:[%s14420_s6] ss:$0 sm:$0xff] }
0x1494   :  { %11639 = vpow2.f32 %v9602_v8 }
0x14a0   :  { %v11638_v4 = vpop.eup %11637 }
0x14a1   :  { %v11640_v14 = vpop.eup %11639 }
0x14a2   :  { %v2439_v15 = vadd.f32 1.0, %v11640_v14 }
0x14a4   :  { %11641 = vrcp.f32 %v2439_v15 }
0x14b1   :  { %v11642_v16 = vpop.eup %11641 }
0x14b2   :  { %v2604_v35 = vmul.f32 %v11642_v16, %v2602_v18 }
0x1502   :  { %v2607_v6 = vpop.permute.xlu1 %2606 }
0x1503   :  { %v2609_v11 = vmul.f32 %v11638_v4, %v2607_v6 }
0x1505   :  { %2611 = vrot.lane.b32.xlu1 %v2609_v11, %s12061_s4 }
0x1577   :  { %v2612_v62 = vpop.permute.xlu1 %2611 }
0x1578   :  { %v12792_v63 = vadd.f32 %v2612_v62, %v2604_v35 }
0x157a   :  { %11643 = vtanh.f32 %v12792_v63 }
0x157b   :  { %11645 = vpow2.f32 %v9605_v7 }
0x1587   :  { %v11644_v1 = vpop.eup %11643 }
0x1588   :  { %2617 = vrot.lane.b32.xlu1 %v11644_v1, %s12060_s22  ;;  %v11646_v9 = vpop.eup %11645 }
0x1589   :  { %v2598_v10 = vadd.f32 1.0, %v11646_v9 }
0x158b   :  { %11647 = vrcp.f32 %v2598_v10 }
0x1598   :  { %v11648_v23 = vpop.eup %11647 }
0x15fa   :  { %v2618_v25 = vpop.permute.xlu1 %2617 }
0x15fb   :  { %v12797_v24 = vmul.f32 %v11648_v23, %v2618_v25 }
0x15fd   :  { %v2626_v27 = vrot.slane %v12797_v24, 4 }
0x15ff   :  { %2627 = vrot.lane.b32.xlu0 %v2626_v27, %s12061_s4 }
0x1671   :  { %v2628_v28 = vpop.permute.xlu0 %2627 }
0x1672   :  { %10651 = vmatmul.mubr.msk.f32.vlgmr.msra.gmra.mxu1 %vm87_vm1, %v2628_v28  ;;  %10662 = vmatmul.mubr.msk.f32.vlgmr.msra.gmra.mxu0 %vm87_vm1, %v2628_v28 }
0x1673   :  { %10665 = vmatpush3.msra.mxu1 %v12602_v43  ;;  %10676 = vmatpush3.msra.mxu0 %v12720_v38  ;;  %v2980_v43 = vld [vmem:[#allocation3 + $0x18] sm:$0xff]  ;;  %v12865_v38 = vld [vmem:[%s14419_s5 + $0x58] sm:$0xff] }
0x1674   :  { %10666 = vmatprep.subr.mxu1 %v12058_v0  ;;  %10677 = vmatprep.subr.mxu0 %v12058_v0 }
0x1675   :  { %10667 = vmatpush3.msra.mxu1 %v12611_v44  ;;  %10678 = vmatpush3.msra.mxu0 %v12729_v39  ;;  %v12824_v44 = vld [vmem:[%s14419_s5 + $0x18] sm:$0xff]  ;;  %v11954_v39 = vld [vmem:[%s14441_s25 + $0x8] sm:$0xff] }
0x1676   :  { %10668 = vmatprep.subr.mxu1 %v12058_v0  ;;  %10679 = vmatprep.subr.mxu0 %v12058_v0 }
0x1677   :  { %10669 = vmatpush3.msra.mxu1 %v12620_v19  ;;  %10680 = vmatpush3.msra.mxu0 %v12738_v40  ;;  %v2979_v19 = vld [vmem:[#allocation3 + $0x10] sm:$0xff]  ;;  %v12877_v40 = vld [vmem:[%s14419_s5 + $0x30] sm:$0xff] }
0x1678   :  { %10670 = vmatprep.subr.mxu1 %v12058_v0  ;;  %10681 = vmatprep.subr.mxu0 %v12058_v0 }
0x1679   :  { %10671 = vmatpush3.msra.mxu1 %v12746_v41  ;;  %10672 = vmatprep.mubr.msk.f32.mxu1 %vm12059_vm0, %v12058_v0  ;;  %v12882_v41 = vld [vmem:[%s14419_s5 + $0x50] sm:$0xff] }
0x167a   :  { %10682 = vmatpush3.msra.mxu0 %v12754_v42  ;;  %10683 = vmatprep.mubr.msk.f32.mxu0 %vm12059_vm0, %v12058_v0  ;;  %v12891_v42 = vld [vmem:[%s14419_s5 + $0x28] sm:$0xff] }
0x167b   :  { %10673 = vmatmul.mubr.msk.f32.vlgmr.msra.gmra.mxu1 %vm87_vm1, %v2628_v28  ;;  %10684 = vmatmul.mubr.msk.f32.vlgmr.msra.gmra.mxu0 %vm87_vm1, %v2628_v28 }
0x167c   :  { %10686 = vmatprep.subr.mxu1 %v2980_v43  ;;  %10697 = vmatprep.subr.mxu0 %v12058_v0 }
0x167d   :  { %10687 = vmatpush3.msra.mxu1 %v2980_v43  ;;  %10698 = vmatpush3.msra.mxu0 %v12824_v44 }
0x167e   :  { %10688 = vmatprep.subr.mxu1 %v2979_v19  ;;  %10699 = vmatprep.subr.mxu0 %v12058_v0 }
0x167f   :  { %10689 = vmatpush3.msra.mxu1 %v2979_v19  ;;  %10700 = vmatpush3.msra.mxu0 %v12832_v29 }
0x1680   :  { %10690 = vmatprep.subr.mxu1 %v2978_v30  ;;  %10701 = vmatprep.subr.mxu0 %v12058_v0 }
0x1681   :  { %10691 = vmatpush3.msra.mxu1 %v2978_v30  ;;  %10702 = vmatpush3.msra.mxu0 %v12839_v32 }
0x1682   :  { %10692 = vmatprep.subr.mxu1 %v2977_v33  ;;  %10703 = vmatprep.subr.mxu0 %v12058_v0 }
0x1683   :  { %10693 = vmatpush3.msra.mxu1 %v2977_v33  ;;  %10704 = vmatpush3.msra.mxu0 %v12846_v34 }
0x1684   :  { %10705 = vmatprep.mubr.msk.f32.mxu0 %vm12059_vm0, %v12058_v0  ;;  %10694 = vmatprep.mubr.msk.f32.mxu1 %vm87_vm1, %v11953_v36 }
0x1685   :  { %10706 = vmatmul.mubr.f32.vlgmr.msra.gmra.mxu0 %v12058_v0  ;;  %10708 = vmatprep.subr.mxu1 %v12058_v0 }
0x1686   :  { %10719 = vmatprep.subr.mxu0 %v12058_v0  ;;  %10695 = vmatmul.mubr.msk.f32.vlgmr.msra.gmra.mxu1 %vm87_vm1, %v11954_v39 }
0x1687   :  { %10709 = vmatpush3.msra.mxu1 %v12860_v37  ;;  %10720 = vmatpush3.msra.mxu0 %v12865_v38 }
0x1688   :  { %10710 = vmatprep.subr.mxu1 %v12058_v0  ;;  %10721 = vmatprep.subr.mxu0 %v12058_v0 }
0x1689   :  { %10711 = vmatpush3.msra.mxu1 %v12877_v40  ;;  %10722 = vmatpush3.msra.mxu0 %v12882_v41 }
0x168a   :  { %10712 = vmatprep.subr.mxu1 %v12058_v0  ;;  %10723 = vmatprep.subr.mxu0 %v12058_v0 }
0x168b   :  { %10713 = vmatpush3.msra.mxu1 %v12891_v42  ;;  %10724 = vmatpush3.msra.mxu0 %v12896_v17 }
0x168c   :  { %10714 = vmatprep.subr.mxu1 %v12058_v0  ;;  %10725 = vmatprep.subr.mxu0 %v12058_v0 }
0x168d   :  { %10715 = vmatpush3.msra.mxu1 %v12905_v20  ;;  %10726 = vmatpush3.msra.mxu0 %v12910_v21 }
0x168e   :  { %10727 = vmatprep.mubr.msk.f32.mxu0 %vm12059_vm0, %v12058_v0  ;;  %10716 = vmatprep.mubr.msk.f32.mxu1 %vm12059_vm0, %v12058_v0 }
0x168f   :  { %10728 = vmatmul.mubr.f32.vlgmr.msra.gmra.mxu0 %v12058_v0  ;;  %10730 = vmatprep.subr.mxu1 %v12058_v0 }
0x1690   :  { %10717 = vmatmul.mubr.f32.vlgmr.msra.gmra.mxu1 %v12058_v0  ;;  %10741 = vmatprep.subr.mxu0 %v12058_v0 }
0x1691   :  { %10731 = vmatpush3.msra.mxu1 %v12925_v22  ;;  %10738 = vmatprep.mubr.msk.f32.mxu1 %vm12059_vm0, %v12058_v0 }
0x1692   :  { %10732 = vmatprep.subr.mxu1 %v12058_v0  ;;  %10742 = vmatpush3.msra.mxu0 %v12824_v44 }
0x1693   :  { %10733 = vmatpush3.msra.mxu1 %v12933_v45  ;;  %10743 = vmatprep.subr.mxu0 %v12058_v0 }
0x1694   :  { %10734 = vmatprep.subr.mxu1 %v12058_v0  ;;  %10744 = vmatpush3.msra.mxu0 %v12832_v29 }
0x1695   :  { %10735 = vmatpush3.msra.mxu1 %v12943_v46  ;;  %10745 = vmatprep.subr.mxu0 %v12058_v0 }
0x1696   :  { %10736 = vmatprep.subr.mxu1 %v12058_v0  ;;  %10746 = vmatpush3.msra.mxu0 %v12839_v32 }
0x1697   :  { %10737 = vmatpush3.msra.mxu1 %v12952_v50  ;;  %10747 = vmatprep.subr.mxu0 %v12058_v0 }
0x1698   :  { %10739 = vmatmul.mubr.f32.vlgmr.msra.gmra.mxu1 %v12058_v0  ;;  %10752 = vmatprep.subr.mxu1 %v12058_v0 }
0x1699   :  { %10753 = vmatpush3.msra.mxu1 %v12860_v37  ;;  %10748 = vmatpush3.msra.mxu0 %v12846_v34 }
0x169a   :  { %10754 = vmatprep.subr.mxu1 %v12058_v0  ;;  %10749 = vmatprep.mubr.msk.f32.mxu0 %vm12059_vm0, %v12058_v0 }
0x169b   :  { %10755 = vmatpush3.msra.mxu1 %v12877_v40  ;;  %10760 = vmatprep.mubr.msk.f32.mxu1 %vm12059_vm0, %v12058_v0 }
0x169c   :  { %10756 = vmatprep.subr.mxu1 %v12058_v0  ;;  %10763 = vmatprep.subr.mxu0 %v12058_v0 }
0x169d   :  { %10757 = vmatpush3.msra.mxu1 %v12891_v42 }
0x169e   :  { %10758 = vmatprep.subr.mxu1 %v12058_v0 }
0x169f   :  { %10759 = vmatpush3.msra.mxu1 %v12905_v20 }
0x16a0   :  { %10774 = vmatprep.subr.mxu1 %v12058_v0 }
0x1732   :  { %v12977_v47 = vpop.f32.mrf.mxu1  ;;  %v12979_v52 = vpop.f32.mrf.mxu0 }
0x1734   :  { %v10652_v48 = vpop.f32.mrf.mxu1  ;;  %v10663_v53 = vpop.f32.mrf.mxu0 }
0x173b   :  { %v12981_v55 = vpop.f32.mrf.mxu1  ;;  %v12983_v56 = vpop.f32.mrf.mxu0 }
0x173d   :  { %v10674_v57 = vpop.f32.mrf.mxu1  ;;  %v10685_v58 = vpop.f32.mrf.mxu0 }
0x1745   :  { %v3148_v59 = vpop.f32.mrf.mxu0 }
0x1746   :  { %v10696_v60 = vpop.f32.mrf.mxu1  ;;  %v3153_v7 = vrot.slane %v3148_v59, 2 }
0x1747   :  { %v10707_v61 = vpop.f32.mrf.mxu0  ;;  %v12993_v62 = vadd.f32 %v10696_v60, %v9613_v2 }
0x1748   :  { %v3054_v4 = vpop.f32.mrf.mxu1 }
0x1749   :  { %v12988_v6 = vadd.f32 %v9613_v2, %v3054_v4  ;;  %v3155_v9 = vadd.f32 %v3153_v7, %v12993_v62 }
0x174b   :  { %v9628_v10 = vmul.f32 -1.442695, %v3155_v9 }
0x174f   :  { %v3310_v11 = vpop.f32.mrf.mxu0 }
0x1750   :  { %v3315_v12 = vrot.slane %v3310_v11, 2  ;;  %v3228_v13 = vpop.f32.mrf.mxu1 }
0x1751   :  { %v10729_v8 = vpop.f32.mrf.mxu0  ;;  %v3233_v14 = vrot.slane %v3228_v13, 2 }
0x1752   :  { %3316 = vrot.lane.b32.xlu1 %v3315_v12, %s12060_s22  ;;  %v10718_v15 = vpop.f32.mrf.mxu1 }
0x1756   :  { %3234 = vrot.lane.b32.xlu1 %v3233_v14, %s12061_s4 }
0x1758   :  { %v3387_v16 = vpop.f32.mrf.mxu1 }
0x1759   :  { %v3392_v18 = vrot.slane %v3387_v16, 2 }
0x175a   :  { %v10740_v35 = vpop.f32.mrf.mxu1 }
0x175b   :  { %3393 = vrot.lane.b32.xlu1 %v3392_v18, %s12062_s3 }
0x17c4   :  { %v3317_v1 = vpop.permute.xlu1 %3316 }
0x17c5   :  { %v3319_v3 = vadd.f32 %v3317_v1, %v12993_v62 }
0x17c7   :  { %11649 = vtanh.f32 %v3319_v3 }
0x17c8   :  { %11651 = vpow2.f32 %v9628_v10  ;;  %v3235_v19 = vpop.permute.xlu1 %3234 }
0x17c9   :  { %v3237_v30 = vadd.f32 %v3235_v19, %v12993_v62 }
0x17cb   :  { %v9629_v33 = vmul.f32 -1.442695, %v3237_v30 }
0x17cd   :  { %v3394_v60 = vpop.permute.xlu1 %3393 }
0x17ce   :  { %v3396_v61 = vadd.f32 %v3394_v60, %v12993_v62 }
0x17d0   :  { %v9630_v2 = vmul.f32 -1.442695, %v3396_v61 }
0x17d4   :  { %v11650_v5 = vpop.eup %11649 }
0x17d5   :  { %3405 = vrot.lane.b32.xlu0 %v11650_v5, %s12060_s22  ;;  %v11652_v23 = vpop.eup %11651 }
0x17d6   :  { %v3159_v25 = vadd.f32 1.0, %v11652_v23 }
0x17d8   :  { %11653 = vrcp.f32 %v3159_v25 }
0x17d9   :  { %11655 = vpow2.f32 %v9629_v33 }
0x17e5   :  { %v11654_v27 = vpop.eup %11653 }
0x17e6   :  { %v11656_v36 = vpop.eup %11655 }
0x17e7   :  { %v3241_v39 = vadd.f32 1.0, %v11656_v36 }
0x17e9   :  { %11657 = vrcp.f32 %v3241_v39 }
0x17f6   :  { %v11658_v48 = vpop.eup %11657 }
0x17f7   :  { %v3403_v53 = vmul.f32 0.0, %v11658_v48 }
0x1847   :  { %v3406_v28 = vpop.permute.xlu0 %3405 }
0x1848   :  { %v3408_v43 = vmul.f32 %v11654_v27, %v3406_v28 }
0x184a   :  { %3410 = vrot.lane.b32.xlu0 %v3408_v43, %s12061_s4 }
0x18bc   :  { %v3411_v57 = vpop.permute.xlu0 %3410 }
0x18bd   :  { %v13000_v58 = vadd.f32 %v3411_v57, %v3403_v53 }
0x18bf   :  { %11659 = vtanh.f32 %v13000_v58 }
0x18c0   :  { %11661 = vpow2.f32 %v9630_v2 }
0x18cc   :  { %v11660_v59 = vpop.eup %11659 }
0x18cd   :  { %3416 = vrot.lane.b32.xlu0 %v11660_v59, %s12060_s22  ;;  %v11662_v4 = vpop.eup %11661 }
0x18ce   :  { %v3400_v11 = vadd.f32 1.0, %v11662_v4 }
0x18d0   :  { %11663 = vrcp.f32 %v3400_v11 }
0x18dd   :  { %v11664_v12 = vpop.eup %11663 }
0x193f   :  { %v3417_v13 = vpop.permute.xlu0 %3416 }
0x1940   :  { %v13005_v8 = vmul.f32 %v11664_v12, %v3417_v13  ;;  %v3753_v12 = vrot.slane %v13000_v58, 2 }
0x1942   :  { %v3426_v14 = vrot.slane %v13005_v8, 6 }
0x1944   :  { %3427 = vrot.lane.b32.xlu1 %v3426_v14, %s12061_s4 }
0x19b6   :  { %v3428_v15 = vpop.permute.xlu1 %3427 }
0x19b7   :  { %10750 = vmatmul.mubr.msk.f32.vlgmr.msra.gmra.mxu0 %vm87_vm1, %v3428_v15  ;;  %10761 = vmatmul.mubr.msk.f32.vlgmr.msra.gmra.mxu1 %vm87_vm1, %v3428_v15 }
0x19b8   :  { %10764 = vmatpush3.msra.mxu0 %v12865_v38  ;;  %10775 = vmatpush3.msra.mxu1 %v12925_v22 }
0x19b9   :  { %10765 = vmatprep.subr.mxu0 %v12058_v0  ;;  %10776 = vmatprep.subr.mxu1 %v12058_v0 }
0x19ba   :  { %10766 = vmatpush3.msra.mxu0 %v12882_v41  ;;  %10777 = vmatpush3.msra.mxu1 %v12933_v45 }
0x19bb   :  { %10767 = vmatprep.subr.mxu0 %v12058_v0  ;;  %10778 = vmatprep.subr.mxu1 %v12058_v0 }
0x19bc   :  { %10768 = vmatpush3.msra.mxu0 %v12896_v17  ;;  %10779 = vmatpush3.msra.mxu1 %v12943_v46 }
0x19bd   :  { %10769 = vmatprep.subr.mxu0 %v12058_v0  ;;  %10780 = vmatprep.subr.mxu1 %v12058_v0 }
0x19be   :  { %10770 = vmatpush3.msra.mxu0 %v12910_v21  ;;  %10771 = vmatprep.mubr.msk.f32.mxu0 %vm12059_vm0, %v12058_v0 }
0x19bf   :  { %10781 = vmatpush3.msra.mxu1 %v12952_v50  ;;  %10782 = vmatprep.mubr.msk.f32.mxu1 %vm12059_vm0, %v12058_v0 }
0x19c0   :  { %10772 = vmatmul.mubr.msk.f32.vlgmr.msra.gmra.mxu0 %vm87_vm1, %v3428_v15  ;;  %10783 = vmatmul.mubr.msk.f32.vlgmr.msra.gmra.mxu1 %vm87_vm1, %v3428_v15 }
0x19c1   :  { %10785 = vmatprep.subr.mxu0 %v12058_v0  ;;  %10796 = vmatprep.subr.mxu1 %v12058_v0 }
0x19c2   :  { %10786 = vmatpush3.msra.mxu0 %v12824_v44  ;;  %10797 = vmatpush3.msra.mxu1 %v12860_v37 }
0x19c3   :  { %10787 = vmatprep.subr.mxu0 %v12058_v0  ;;  %10798 = vmatprep.subr.mxu1 %v12058_v0 }
0x19c4   :  { %10788 = vmatpush3.msra.mxu0 %v12832_v29  ;;  %10799 = vmatpush3.msra.mxu1 %v12877_v40 }
0x19c5   :  { %10789 = vmatprep.subr.mxu0 %v12058_v0  ;;  %10800 = vmatprep.subr.mxu1 %v12058_v0 }
0x19c6   :  { %10790 = vmatpush3.msra.mxu0 %v12839_v32  ;;  %10801 = vmatpush3.msra.mxu1 %v12891_v42 }
0x19c7   :  { %10791 = vmatprep.subr.mxu0 %v12058_v0  ;;  %10802 = vmatprep.subr.mxu1 %v12058_v0 }
0x19c8   :  { %10792 = vmatpush3.msra.mxu0 %v12846_v34  ;;  %10803 = vmatpush3.msra.mxu1 %v12905_v20 }
0x19c9   :  { %10793 = vmatprep.mubr.msk.f32.mxu0 %vm12059_vm0, %v12058_v0  ;;  %10804 = vmatprep.mubr.msk.f32.mxu1 %vm12059_vm0, %v12058_v0 }
0x19ca   :  { %10807 = vmatprep.subr.mxu0 %v12058_v0  ;;  %10818 = vmatprep.subr.mxu1 %v12058_v0 }
0x1a77   :  { %v3497_v16 = vpop.f32.mrf.mxu0  ;;  %v3577_v18 = vpop.f32.mrf.mxu1 }
0x1a78   :  { %v3582_v23 = vrot.slane %v3577_v18, 4  ;;  %v3502_v19 = vrot.slane %v3497_v16, 4 }
0x1a79   :  { %v10751_v35 = vpop.f32.mrf.mxu0  ;;  %v10762_v1 = vpop.f32.mrf.mxu1 }
0x1a7a   :  { %v3504_v30 = vadd.f32 %v3502_v19, %v12993_v62 }
0x1a7c   :  { %v9632_v33 = vmul.f32 -1.442695, %v3504_v30 }
0x1a80   :  { %v3659_v3 = vpop.f32.mrf.mxu0  ;;  %v3736_v5 = vpop.f32.mrf.mxu1 }
0x1a81   :  { %v3664_v7 = vrot.slane %v3659_v3, 4  ;;  %v3741_v25 = vrot.slane %v3736_v5, 4 }
0x1a82   :  { %v10773_v9 = vpop.f32.mrf.mxu0  ;;  %v10784_v10 = vpop.f32.mrf.mxu1 }
0x1a83   :  { %3665 = vrot.lane.b32.xlu0 %v3664_v7, %s12060_s22 }
0x1a87   :  { %3583 = vrot.lane.b32.xlu0 %v3582_v23, %s12061_s4 }
0x1a8b   :  { %3742 = vrot.lane.b32.xlu0 %v3741_v25, %s12062_s3 }
0x1af5   :  { %v3666_v27 = vpop.permute.xlu0 %3665 }
0x1af6   :  { %v3668_v28 = vadd.f32 %v3666_v27, %v12993_v62 }
0x1af8   :  { %11665 = vtanh.f32 %v3668_v28 }
0x1af9   :  { %11667 = vpow2.f32 %v9632_v33  ;;  %v3584_v59 = vpop.permute.xlu0 %3583 }
0x1afa   :  { %v3586_v60 = vadd.f32 %v3584_v59, %v12993_v62 }
0x1afc   :  { %v9634_v61 = vmul.f32 -1.442695, %v3586_v60 }
0x1afd   :  { %v3743_v18 = vpop.permute.xlu0 %3742 }
0x1afe   :  { %v3745_v35 = vadd.f32 %v3743_v18, %v12993_v62 }
0x1b00   :  { %v9637_v1 = vmul.f32 -1.442695, %v3745_v35 }
0x1b05   :  { %v11666_v43 = vpop.eup %11665 }
0x1b06   :  { %3757 = vrot.lane.b32.xlu1 %v11666_v43, %s12060_s22  ;;  %v11668_v36 = vpop.eup %11667 }
0x1b07   :  { %v3508_v39 = vadd.f32 1.0, %v11668_v36 }
0x1b09   :  { %11669 = vrcp.f32 %v3508_v39 }
0x1b0a   :  { %11671 = vpow2.f32 %v9634_v61 }
0x1b16   :  { %v11670_v48 = vpop.eup %11669 }
0x1b17   :  { %v11672_v2 = vpop.eup %11671 }
0x1b18   :  { %v3590_v4 = vadd.f32 1.0, %v11672_v2 }
0x1b1a   :  { %11673 = vrcp.f32 %v3590_v4 }
0x1b27   :  { %v11674_v11 = vpop.eup %11673 }
0x1b28   :  { %v3755_v13 = vmul.f32 %v11674_v11, %v3753_v12 }
0x1b78   :  { %v3758_v53 = vpop.permute.xlu1 %3757 }
0x1b79   :  { %v3760_v57 = vmul.f32 %v11670_v48, %v3758_v53 }
0x1b7b   :  { %3762 = vrot.lane.b32.xlu1 %v3760_v57, %s12061_s4 }
0x1bed   :  { %v3763_v14 = vpop.permute.xlu1 %3762 }
0x1bee   :  { %v13062_v15 = vadd.f32 %v3763_v14, %v3755_v13 }
0x1bf0   :  { %11675 = vtanh.f32 %v13062_v15 }
0x1bf1   :  { %11677 = vpow2.f32 %v9637_v1 }
0x1bfd   :  { %v11676_v16 = vpop.eup %11675 }
0x1bfe   :  { %3768 = vrot.lane.b32.xlu1 %v11676_v16, %s12060_s22  ;;  %v11678_v3 = vpop.eup %11677 }
0x1bff   :  { %v3749_v5 = vadd.f32 1.0, %v11678_v3 }
0x1c01   :  { %11679 = vrcp.f32 %v3749_v5 }
0x1c0e   :  { %v11680_v7 = vpop.eup %11679 }
0x1c70   :  { %v3769_v9 = vpop.permute.xlu1 %3768 }
0x1c71   :  { %v13067_v58 = vmul.f32 %v11680_v7, %v3769_v9  ;;  %v4105_v9 = vrot.slane %v13062_v15, 2 }
0x1c73   :  { %v3778_v10 = vrot.slane %v13067_v58, 4 }
0x1c75   :  { %3779 = vrot.lane.b32.xlu0 %v3778_v10, %s12061_s4 }
0x1ce7   :  { %v3780_v23 = vpop.permute.xlu0 %3779 }
0x1ce8   :  { %10794 = vmatmul.mubr.msk.f32.vlgmr.msra.gmra.mxu0 %vm87_vm1, %v3780_v23  ;;  %10805 = vmatmul.mubr.msk.f32.vlgmr.msra.gmra.mxu1 %vm87_vm1, %v3780_v23 }
0x1ce9   :  { %10808 = vmatpush3.msra.mxu0 %v12865_v38  ;;  %10819 = vmatpush3.msra.mxu1 %v12925_v22 }
0x1cea   :  { %10809 = vmatprep.subr.mxu0 %v12058_v0  ;;  %10820 = vmatprep.subr.mxu1 %v12058_v0 }
0x1ceb   :  { %10810 = vmatpush3.msra.mxu0 %v12882_v41  ;;  %10821 = vmatpush3.msra.mxu1 %v12933_v45 }
0x1cec   :  { %10811 = vmatprep.subr.mxu0 %v12058_v0  ;;  %10822 = vmatprep.subr.mxu1 %v12058_v0 }
0x1ced   :  { %10812 = vmatpush3.msra.mxu0 %v12896_v17  ;;  %10823 = vmatpush3.msra.mxu1 %v12943_v46 }
0x1cee   :  { %10813 = vmatprep.subr.mxu0 %v12058_v0  ;;  %10824 = vmatprep.subr.mxu1 %v12058_v0 }
0x1cef   :  { %10814 = vmatpush3.msra.mxu0 %v12910_v21  ;;  %10815 = vmatprep.mubr.msk.f32.mxu0 %vm12059_vm0, %v12058_v0 }
0x1cf0   :  { %10825 = vmatpush3.msra.mxu1 %v12952_v50  ;;  %10826 = vmatprep.mubr.msk.f32.mxu1 %vm12059_vm0, %v12058_v0 }
0x1cf1   :  { %10816 = vmatmul.mubr.msk.f32.vlgmr.msra.gmra.mxu0 %vm87_vm1, %v3780_v23  ;;  %10827 = vmatmul.mubr.msk.f32.vlgmr.msra.gmra.mxu1 %vm87_vm1, %v3780_v23 }
0x1cf2   :  { %10829 = vmatprep.subr.mxu0 %v12058_v0  ;;  %10840 = vmatprep.subr.mxu1 %v12058_v0 }
0x1cf3   :  { %10830 = vmatpush3.msra.mxu0 %v12824_v44  ;;  %10841 = vmatpush3.msra.mxu1 %v12860_v37 }
0x1cf4   :  { %10831 = vmatprep.subr.mxu0 %v12058_v0  ;;  %10842 = vmatprep.subr.mxu1 %v12058_v0 }
0x1cf5   :  { %10832 = vmatpush3.msra.mxu0 %v12832_v29  ;;  %10843 = vmatpush3.msra.mxu1 %v12877_v40 }
0x1cf6   :  { %10833 = vmatprep.subr.mxu0 %v12058_v0  ;;  %10844 = vmatprep.subr.mxu1 %v12058_v0 }
0x1cf7   :  { %10834 = vmatpush3.msra.mxu0 %v12839_v32  ;;  %10845 = vmatpush3.msra.mxu1 %v12891_v42 }
0x1cf8   :  { %10835 = vmatprep.subr.mxu0 %v12058_v0  ;;  %10846 = vmatprep.subr.mxu1 %v12058_v0 }
0x1cf9   :  { %10836 = vmatpush3.msra.mxu0 %v12846_v34  ;;  %10847 = vmatpush3.msra.mxu1 %v12905_v20 }
0x1cfa   :  { %10837 = vmatprep.mubr.msk.f32.mxu0 %vm12059_vm0, %v12058_v0  ;;  %10848 = vmatprep.mubr.msk.f32.mxu1 %vm12059_vm0, %v12058_v0 }
0x1cfb   :  { %10851 = vmatprep.subr.mxu0 %v12058_v0  ;;  %10862 = vmatprep.subr.mxu1 %v12058_v0 }
0x1da8   :  { %v3849_v25 = vpop.f32.mrf.mxu0  ;;  %v3929_v27 = vpop.f32.mrf.mxu1 }
0x1da9   :  { %v3934_v48 = vrot.slane %v3929_v27, 6  ;;  %v3854_v61 = vrot.slane %v3849_v25, 6 }
0x1daa   :  { %v10795_v28 = vpop.f32.mrf.mxu0  ;;  %v10806_v43 = vpop.f32.mrf.mxu1 }
0x1dab   :  { %v3856_v2 = vadd.f32 %v3854_v61, %v12993_v62 }
0x1dad   :  { %v9639_v4 = vmul.f32 -1.442695, %v3856_v2 }
0x1db1   :  { %v4011_v19 = vpop.f32.mrf.mxu0  ;;  %v4088_v30 = vpop.f32.mrf.mxu1 }
0x1db2   :  { %v4016_v33 = vrot.slane %v4011_v19, 6  ;;  %v4093_v53 = vrot.slane %v4088_v30, 6 }
0x1db3   :  { %v10817_v36 = vpop.f32.mrf.mxu0  ;;  %v10828_v39 = vpop.f32.mrf.mxu1 }
0x1db4   :  { %4017 = vrot.lane.b32.xlu1 %v4016_v33, %s12060_s22 }
0x1db8   :  { %3935 = vrot.lane.b32.xlu1 %v3934_v48, %s12061_s4 }
0x1dbc   :  { %4094 = vrot.lane.b32.xlu1 %v4093_v53, %s12062_s3 }
0x1e26   :  { %v4018_v57 = vpop.permute.xlu1 %4017 }
0x1e27   :  { %v4020_v59 = vadd.f32 %v4018_v57, %v12993_v62 }
0x1e29   :  { %11681 = vtanh.f32 %v4020_v59 }
0x1e2a   :  { %11683 = vpow2.f32 %v9639_v4  ;;  %v3936_v18 = vpop.permute.xlu1 %3935 }
0x1e2b   :  { %v3938_v35 = vadd.f32 %v3936_v18, %v12993_v62 }
0x1e2d   :  { %v9641_v1 = vmul.f32 -1.442695, %v3938_v35 }
0x1e2e   :  { %v4095_v28 = vpop.permute.xlu1 %4094 }
0x1e2f   :  { %v4097_v43 = vadd.f32 %v4095_v28, %v12993_v62 }
0x1e31   :  { %v9644_v19 = vmul.f32 -1.442695, %v4097_v43 }
0x1e36   :  { %v11682_v60 = vpop.eup %11681 }
0x1e37   :  { %4109 = vrot.lane.b32.xlu0 %v11682_v60, %s12060_s22  ;;  %v11684_v11 = vpop.eup %11683 }
0x1e38   :  { %v3860_v12 = vadd.f32 1.0, %v11684_v11 }
0x1e3a   :  { %11685 = vrcp.f32 %v3860_v12 }
0x1e3b   :  { %11687 = vpow2.f32 %v9641_v1 }
0x1e47   :  { %v11686_v13 = vpop.eup %11685 }
0x1e48   :  { %v11688_v3 = vpop.eup %11687 }
0x1e49   :  { %v3942_v5 = vadd.f32 1.0, %v11688_v3 }
0x1e4b   :  { %11689 = vrcp.f32 %v3942_v5 }
0x1e58   :  { %v11690_v7 = vpop.eup %11689 }
0x1e59   :  { %v4107_v10 = vmul.f32 %v11690_v7, %v4105_v9 }
0x1ea9   :  { %v4110_v14 = vpop.permute.xlu0 %4109 }
0x1eaa   :  { %v4112_v16 = vmul.f32 %v11686_v13, %v4110_v14 }
0x1eac   :  { %4114 = vrot.lane.b32.xlu0 %v4112_v16, %s12061_s4 }
0x1f1e   :  { %v4115_v23 = vpop.permute.xlu0 %4114 }
0x1f1f   :  { %v13124_v25 = vadd.f32 %v4115_v23, %v4107_v10 }
0x1f21   :  { %11691 = vtanh.f32 %v13124_v25 }
0x1f22   :  { %11693 = vpow2.f32 %v9644_v19 }
0x1f2e   :  { %v11692_v27 = vpop.eup %11691 }
0x1f2f   :  { %4120 = vrot.lane.b32.xlu0 %v11692_v27, %s12060_s22  ;;  %v11694_v30 = vpop.eup %11693 }
0x1f30   :  { %v4101_v33 = vadd.f32 1.0, %v11694_v30  ;;  %v4451_v30 = vrot.slane %v13124_v25, 2 }
0x1f32   :  { %11695 = vrcp.f32 %v4101_v33 }
0x1f3f   :  { %v11696_v36 = vpop.eup %11695 }
0x1fa1   :  { %v4121_v39 = vpop.permute.xlu0 %4120 }
0x1fa2   :  { %v13129_v15 = vmul.f32 %v11696_v36, %v4121_v39 }
0x1fa4   :  { %v4130_v48 = vrot.slane %v13129_v15, 2 }
0x1fa6   :  { %4131 = vrot.lane.b32.xlu1 %v4130_v48, %s12061_s4 }
0x2018   :  { %v4132_v53 = vpop.permute.xlu1 %4131 }
0x2019   :  { %10838 = vmatmul.mubr.msk.f32.vlgmr.msra.gmra.mxu0 %vm87_vm1, %v4132_v53  ;;  %10849 = vmatmul.mubr.msk.f32.vlgmr.msra.gmra.mxu1 %vm87_vm1, %v4132_v53 }
0x201a   :  { %10852 = vmatpush3.msra.mxu0 %v12865_v38  ;;  %10863 = vmatpush3.msra.mxu1 %v12925_v22 }
0x201b   :  { %10853 = vmatprep.subr.mxu0 %v12058_v0  ;;  %10864 = vmatprep.subr.mxu1 %v12058_v0 }
0x201c   :  { %10854 = vmatpush3.msra.mxu0 %v12882_v41  ;;  %10865 = vmatpush3.msra.mxu1 %v12933_v45 }
0x201d   :  { %10855 = vmatprep.subr.mxu0 %v12058_v0  ;;  %10866 = vmatprep.subr.mxu1 %v12058_v0 }
0x201e   :  { %10856 = vmatpush3.msra.mxu0 %v12896_v17  ;;  %10867 = vmatpush3.msra.mxu1 %v12943_v46 }
0x201f   :  { %10857 = vmatprep.subr.mxu0 %v12058_v0  ;;  %10868 = vmatprep.subr.mxu1 %v12058_v0 }
0x2020   :  { %10858 = vmatpush3.msra.mxu0 %v12910_v21  ;;  %10859 = vmatprep.mubr.msk.f32.mxu0 %vm12059_vm0, %v12058_v0 }
0x2021   :  { %10869 = vmatpush3.msra.mxu1 %v12952_v50  ;;  %10870 = vmatprep.mubr.msk.f32.mxu1 %vm12059_vm0, %v12058_v0 }
0x2022   :  { %10860 = vmatmul.mubr.msk.f32.vlgmr.msra.gmra.mxu0 %vm87_vm1, %v4132_v53  ;;  %10871 = vmatmul.mubr.msk.f32.vlgmr.msra.gmra.mxu1 %vm87_vm1, %v4132_v53 }
0x2023   :  { %10873 = vmatprep.subr.mxu0 %v12058_v0  ;;  %10884 = vmatprep.subr.mxu1 %v12058_v0 }
0x2024   :  { %10874 = vmatpush3.msra.mxu0 %v12824_v44  ;;  %10885 = vmatpush3.msra.mxu1 %v12860_v37 }
0x2025   :  { %10875 = vmatprep.subr.mxu0 %v12058_v0  ;;  %10886 = vmatprep.subr.mxu1 %v12058_v0 }
0x2026   :  { %10876 = vmatpush3.msra.mxu0 %v12832_v29  ;;  %10887 = vmatpush3.msra.mxu1 %v12877_v40 }
0x2027   :  { %10877 = vmatprep.subr.mxu0 %v12058_v0  ;;  %10888 = vmatprep.subr.mxu1 %v12058_v0 }
0x2028   :  { %10878 = vmatpush3.msra.mxu0 %v12839_v32  ;;  %10889 = vmatpush3.msra.mxu1 %v12891_v42 }
0x2029   :  { %10879 = vmatprep.subr.mxu0 %v12058_v0  ;;  %10890 = vmatprep.subr.mxu1 %v12058_v0 }
0x202a   :  { %10880 = vmatpush3.msra.mxu0 %v12846_v34  ;;  %10891 = vmatpush3.msra.mxu1 %v12905_v20 }
0x202b   :  { %10881 = vmatprep.mubr.msk.f32.mxu0 %vm12059_vm0, %v12058_v0  ;;  %10892 = vmatprep.mubr.msk.f32.mxu1 %vm12059_vm0, %v12058_v0 }
0x202c   :  { %10895 = vmatprep.subr.mxu0 %v12058_v0  ;;  %10906 = vmatprep.subr.mxu1 %v12058_v0 }
0x20d9   :  { %v4201_v57 = vpop.f32.mrf.mxu0  ;;  %v4278_v59 = vpop.f32.mrf.mxu1 }
0x20da   :  { %v4205_v18 = vadd.f32 %v4201_v57, %v12993_v62 }
0x20db   :  { %v10839_v60 = vpop.f32.mrf.mxu0  ;;  %v10850_v61 = vpop.f32.mrf.mxu1 }
0x20dc   :  { %v9646_v35 = vmul.f32 -1.442695, %v4205_v18 }
0x20e2   :  { %v4359_v2 = vpop.f32.mrf.mxu0  ;;  %v4435_v4 = vpop.f32.mrf.mxu1 }
0x20e3   :  { %4364 = vrot.lane.b32.xlu0 %v4359_v2, %s12060_s22 }
0x20e4   :  { %v10861_v11 = vpop.f32.mrf.mxu0  ;;  %v10872_v12 = vpop.f32.mrf.mxu1 }
0x20e7   :  { %4283 = vrot.lane.b32.xlu0 %v4278_v59, %s12061_s4 }
0x20eb   :  { %4440 = vrot.lane.b32.xlu0 %v4435_v4, %s12062_s3 }
0x2155   :  { %v4365_v13 = vpop.permute.xlu0 %4364 }
0x2156   :  { %v4367_v14 = vadd.f32 %v4365_v13, %v12993_v62 }
0x2158   :  { %11697 = vtanh.f32 %v4367_v14 }
0x2159   :  { %11699 = vpow2.f32 %v9646_v35  ;;  %v4284_v10 = vpop.permute.xlu0 %4283 }
0x215a   :  { %v4286_v23 = vadd.f32 %v4284_v10, %v12993_v62 }
0x215c   :  { %v9648_v27 = vmul.f32 -1.442695, %v4286_v23 }
0x215d   :  { %v4441_v53 = vpop.permute.xlu0 %4440 }
0x215e   :  { %v4443_v57 = vadd.f32 %v4441_v53, %v12993_v62 }
0x2160   :  { %v9651_v59 = vmul.f32 -1.442695, %v4443_v57 }
0x2165   :  { %v11698_v16 = vpop.eup %11697 }
0x2166   :  { %4455 = vrot.lane.b32.xlu1 %v11698_v16, %s12060_s22  ;;  %v11700_v1 = vpop.eup %11699 }
0x2167   :  { %v4209_v3 = vadd.f32 1.0, %v11700_v1 }
0x2169   :  { %11701 = vrcp.f32 %v4209_v3 }
0x216a   :  { %11703 = vpow2.f32 %v9648_v27 }
0x2176   :  { %v11702_v5 = vpop.eup %11701 }
0x2177   :  { %v11704_v28 = vpop.eup %11703 }
0x2178   :  { %v4290_v43 = vadd.f32 1.0, %v11704_v28 }
0x217a   :  { %11705 = vrcp.f32 %v4290_v43 }
0x2187   :  { %v11706_v19 = vpop.eup %11705 }
0x2188   :  { %v4453_v33 = vmul.f32 %v11706_v19, %v4451_v30 }
0x21d8   :  { %v4456_v7 = vpop.permute.xlu1 %4455 }
0x21d9   :  { %v4458_v9 = vmul.f32 %v11702_v5, %v4456_v7 }
0x21db   :  { %4460 = vrot.lane.b32.xlu1 %v4458_v9, %s12061_s4 }
0x224d   :  { %v4461_v36 = vpop.permute.xlu1 %4460 }
0x224e   :  { %v13186_v39 = vadd.f32 %v4461_v36, %v4453_v33 }
0x2250   :  { %11707 = vtanh.f32 %v13186_v39  ;;  %v4802_v43 = vrot.slane %v13186_v39, 2 }
0x2251   :  { %11709 = vpow2.f32 %v9651_v59 }
0x225d   :  { %v11708_v48 = vpop.eup %11707 }
0x225e   :  { %4466 = vrot.lane.b32.xlu1 %v11708_v48, %s12060_s22  ;;  %v11710_v60 = vpop.eup %11709 }
0x225f   :  { %v4447_v61 = vadd.f32 1.0, %v11710_v60 }
0x2261   :  { %11711 = vrcp.f32 %v4447_v61 }
0x226e   :  { %v11712_v2 = vpop.eup %11711 }
0x22d0   :  { %v4467_v4 = vpop.permute.xlu1 %4466 }
0x22d1   :  { %v13191_v25 = vmul.f32 %v11712_v2, %v4467_v4 }
0x22d3   :  { %4476 = vrot.lane.b32.xlu0 %v13191_v25, %s12061_s4 }
0x2345   :  { %v4477_v11 = vpop.permute.xlu0 %4476 }
0x2346   :  { %10882 = vmatmul.mubr.msk.f32.vlgmr.msra.gmra.mxu0 %vm87_vm1, %v4477_v11  ;;  %10893 = vmatmul.mubr.msk.f32.vlgmr.msra.gmra.mxu1 %vm87_vm1, %v4477_v11 }
0x2347   :  { %10896 = vmatpush3.msra.mxu0 %v12865_v38  ;;  %10907 = vmatpush3.msra.mxu1 %v12925_v22 }
0x2348   :  { %10897 = vmatprep.subr.mxu0 %v12058_v0  ;;  %10908 = vmatprep.subr.mxu1 %v12058_v0 }
0x2349   :  { %10898 = vmatpush3.msra.mxu0 %v12882_v41  ;;  %10909 = vmatpush3.msra.mxu1 %v12933_v45 }
0x234a   :  { %10899 = vmatprep.subr.mxu0 %v12058_v0  ;;  %10910 = vmatprep.subr.mxu1 %v12058_v0 }
0x234b   :  { %10900 = vmatpush3.msra.mxu0 %v12896_v17  ;;  %10911 = vmatpush3.msra.mxu1 %v12943_v46 }
0x234c   :  { %10901 = vmatprep.subr.mxu0 %v12058_v0  ;;  %10912 = vmatprep.subr.mxu1 %v12058_v0 }
0x234d   :  { %10902 = vmatpush3.msra.mxu0 %v12910_v21  ;;  %10903 = vmatprep.mubr.msk.f32.mxu0 %vm12059_vm0, %v12058_v0 }
0x234e   :  { %10913 = vmatpush3.msra.mxu1 %v12952_v50  ;;  %10914 = vmatprep.mubr.msk.f32.mxu1 %vm12059_vm0, %v12058_v0 }
0x234f   :  { %10904 = vmatmul.mubr.msk.f32.vlgmr.msra.gmra.mxu0 %vm87_vm1, %v4477_v11  ;;  %10915 = vmatmul.mubr.msk.f32.vlgmr.msra.gmra.mxu1 %vm87_vm1, %v4477_v11 }
0x2350   :  { %10917 = vmatprep.subr.mxu0 %v12058_v0  ;;  %10928 = vmatprep.subr.mxu1 %v12058_v0 }
0x2351   :  { %10918 = vmatpush3.msra.mxu0 %v12824_v44  ;;  %10929 = vmatpush3.msra.mxu1 %v12860_v37 }
0x2352   :  { %10919 = vmatprep.subr.mxu0 %v12058_v0  ;;  %10930 = vmatprep.subr.mxu1 %v12058_v0 }
0x2353   :  { %10920 = vmatpush3.msra.mxu0 %v12832_v29  ;;  %10931 = vmatpush3.msra.mxu1 %v12877_v40 }
0x2354   :  { %10921 = vmatprep.subr.mxu0 %v12058_v0  ;;  %10932 = vmatprep.subr.mxu1 %v12058_v0 }
0x2355   :  { %10922 = vmatpush3.msra.mxu0 %v12839_v32  ;;  %10933 = vmatpush3.msra.mxu1 %v12891_v42 }
0x2356   :  { %10923 = vmatprep.subr.mxu0 %v12058_v0  ;;  %10934 = vmatprep.subr.mxu1 %v12058_v0 }
0x2357   :  { %10924 = vmatpush3.msra.mxu0 %v12846_v34  ;;  %10935 = vmatpush3.msra.mxu1 %v12905_v20 }
0x2358   :  { %10925 = vmatprep.mubr.msk.f32.mxu0 %vm12059_vm0, %v12058_v0  ;;  %10936 = vmatprep.mubr.msk.f32.mxu1 %vm12059_vm0, %v12058_v0 }
0x2359   :  { %10939 = vmatprep.subr.mxu0 %v12058_v0  ;;  %10950 = vmatprep.subr.mxu1 %v12058_v0 }
0x2406   :  { %v4546_v44 = vpop.f32.mrf.mxu0  ;;  %v4626_v29 = vpop.f32.mrf.mxu1 }
0x2407   :  { %v4631_v17 = vrot.slane %v4626_v29, 2  ;;  %v4551_v13 = vrot.slane %v4546_v44, 2  ;;  %v13262_v44 = vld [vmem:[%s14419_s5 + $0x58] sm:$0xff]  ;;  %v13271_v29 = vld [vmem:[%s14419_s5 + $0x50] sm:$0xff] }
0x2408   :  { %v10883_v32 = vpop.f32.mrf.mxu0  ;;  %v10894_v37 = vpop.f32.mrf.mxu1 }
0x2409   :  { %v4553_v14 = vadd.f32 %v4551_v13, %v12988_v6  ;;  %v13318_v32 = vld [vmem:[%s14419_s5 + $0x10] sm:$0xff] }
0x240a   :  { %v13324_v37 = vld [vmem:[%s14419_s5 + $0x30] sm:$0xff] }
0x240b   :  { %v9653_v16 = vmul.f32 -1.442695, %v4553_v14 }
0x240f   :  { %v4708_v38 = vpop.f32.mrf.mxu0  ;;  %v4785_v40 = vpop.f32.mrf.mxu1 }
0x2410   :  { %v4713_v41 = vrot.slane %v4708_v38, 2  ;;  %v4790_v20 = vrot.slane %v4785_v40, 2  ;;  %v13332_v38 = vld [vmem:[%s14419_s5 + $0x8] sm:$0xff] }
0x2411   :  { %v10905_v34 = vpop.f32.mrf.mxu0  ;;  %v10916_v42 = vpop.f32.mrf.mxu1  ;;  %v13338_v40 = vld [vmem:[%s14419_s5 + $0x28] sm:$0xff] }
0x2412   :  { %4714 = vrot.lane.b32.xlu1 %v4713_v41, %s12060_s22  ;;  %v13346_v41 = vld [vmem:[%s14419_s5] sm:$0xff] }
0x2413   :  { %v13352_v34 = vld [vmem:[%s14419_s5 + $0x20] sm:$0xff] }
0x2416   :  { %4632 = vrot.lane.b32.xlu1 %v4631_v17, %s12061_s4 }
0x241a   :  { %4791 = vrot.lane.b32.xlu1 %v4790_v20, %s12062_s3 }
0x2484   :  { %v4715_v21 = vpop.permute.xlu1 %4714 }
0x2485   :  { %v4717_v62 = vadd.f32 %v4715_v21, %v12988_v6 }
0x2487   :  { %11713 = vtanh.f32 %v4717_v62 }
0x2488   :  { %11715 = vpow2.f32 %v9653_v16  ;;  %v4633_v7 = vpop.permute.xlu1 %4632 }
0x2489   :  { %v4635_v9 = vadd.f32 %v4633_v7, %v12988_v6 }
0x248b   :  { %v9655_v10 = vmul.f32 -1.442695, %v4635_v9 }
0x248c   :  { %v4792_v48 = vpop.permute.xlu1 %4791 }
0x248d   :  { %v4794_v53 = vadd.f32 %v4792_v48, %v12988_v6 }
0x248f   :  { %v9658_v57 = vmul.f32 -1.442695, %v4794_v53 }
0x2494   :  { %v11714_v12 = vpop.eup %11713 }
0x2495   :  { %4806 = vrot.lane.b32.xlu0 %v11714_v12, %s12060_s22  ;;  %v11716_v18 = vpop.eup %11715 }
0x2496   :  { %v4557_v35 = vadd.f32 1.0, %v11716_v18 }
0x2498   :  { %11717 = vrcp.f32 %v4557_v35 }
0x2499   :  { %11719 = vpow2.f32 %v9655_v10 }
0x24a5   :  { %v11718_v1 = vpop.eup %11717 }
0x24a6   :  { %v11720_v23 = vpop.eup %11719 }
0x24a7   :  { %v4639_v27 = vadd.f32 1.0, %v11720_v23 }
0x24a9   :  { %11721 = vrcp.f32 %v4639_v27 }
0x24b6   :  { %v11722_v28 = vpop.eup %11721 }
0x24b7   :  { %v4804_v19 = vmul.f32 %v11722_v28, %v4802_v43 }
0x2507   :  { %v4807_v3 = vpop.permute.xlu0 %4806 }
0x2508   :  { %v4809_v5 = vmul.f32 %v11718_v1, %v4807_v3 }
0x250a   :  { %4811 = vrot.lane.b32.xlu0 %v4809_v5, %s12061_s4 }
0x257c   :  { %v4812_v30 = vpop.permute.xlu0 %4811 }
0x257d   :  { %v13248_v33 = vadd.f32 %v4812_v30, %v4804_v19 }
0x257f   :  { %11723 = vtanh.f32 %v13248_v33 }
0x2580   :  { %11725 = vpow2.f32 %v9658_v57 }
0x258c   :  { %v11724_v36 = vpop.eup %11723 }
0x258d   :  { %4817 = vrot.lane.b32.xlu0 %v11724_v36, %s12060_s22  ;;  %v11726_v59 = vpop.eup %11725 }
0x258e   :  { %v4798_v60 = vadd.f32 1.0, %v11726_v59 }
0x2590   :  { %11727 = vrcp.f32 %v4798_v60  ;;  %v5153_v60 = vrot.slane %v13248_v33, 2 }
0x259d   :  { %v11728_v61 = vpop.eup %11727 }
0x25ff   :  { %v4818_v2 = vpop.permute.xlu0 %4817 }
0x2600   :  { %v13253_v39 = vmul.f32 %v11728_v61, %v4818_v2 }
0x2602   :  { %v4826_v4 = vrot.slane %v13253_v39, 6 }
0x2604   :  { %4827 = vrot.lane.b32.xlu1 %v4826_v4, %s12061_s4 }
0x2676   :  { %v4828_v11 = vpop.permute.xlu1 %4827 }
0x2677   :  { %10926 = vmatmul.mubr.msk.f32.vlgmr.msra.gmra.mxu0 %vm87_vm1, %v4828_v11  ;;  %10937 = vmatmul.mubr.msk.f32.vlgmr.msra.gmra.mxu1 %vm87_vm1, %v4828_v11 }
0x2678   :  { %10940 = vmatpush3.msra.mxu0 %v13262_v44  ;;  %10951 = vmatpush3.msra.mxu1 %v12925_v22  ;;  %v13280_v22 = vld [vmem:[%s14419_s5 + $0x48] sm:$0xff] }
0x2679   :  { %10941 = vmatprep.subr.mxu0 %v12058_v0  ;;  %10952 = vmatprep.subr.mxu1 %v12058_v0 }
0x267a   :  { %10942 = vmatpush3.msra.mxu0 %v13271_v29  ;;  %10953 = vmatpush3.msra.mxu1 %v12933_v45  ;;  %v13289_v45 = vld [vmem:[%s14419_s5 + $0x40] sm:$0xff] }
0x267b   :  { %10943 = vmatprep.subr.mxu0 %v12058_v0  ;;  %10954 = vmatprep.subr.mxu1 %v12058_v0 }
0x267c   :  { %10944 = vmatpush3.msra.mxu0 %v13280_v22  ;;  %10955 = vmatpush3.msra.mxu1 %v12943_v46  ;;  %v13304_v46 = vld [vmem:[%s14419_s5 + $0x18] sm:$0xff] }
0x267d   :  { %10945 = vmatprep.subr.mxu0 %v12058_v0  ;;  %10956 = vmatprep.subr.mxu1 %v12058_v0 }
0x267e   :  { %10946 = vmatpush3.msra.mxu0 %v13289_v45  ;;  %10947 = vmatprep.mubr.msk.f32.mxu0 %vm12059_vm0, %v12058_v0 }
0x267f   :  { %10957 = vmatpush3.msra.mxu1 %v12952_v50  ;;  %10958 = vmatprep.mubr.msk.f32.mxu1 %vm12059_vm0, %v12058_v0  ;;  %v13310_v50 = vld [vmem:[%s14419_s5 + $0x38] sm:$0xff] }
0x2680   :  { %10948 = vmatmul.mubr.msk.f32.vlgmr.msra.gmra.mxu0 %vm87_vm1, %v4828_v11  ;;  %10959 = vmatmul.mubr.msk.f32.vlgmr.msra.gmra.mxu1 %vm87_vm1, %v4828_v11 }
0x2681   :  { %10961 = vmatprep.subr.mxu0 %v12058_v0  ;;  %10972 = vmatprep.subr.mxu1 %v12058_v0 }
0x2682   :  { %10962 = vmatpush3.msra.mxu0 %v13304_v46  ;;  %10973 = vmatpush3.msra.mxu1 %v13310_v50 }
0x2683   :  { %10963 = vmatprep.subr.mxu0 %v12058_v0  ;;  %10974 = vmatprep.subr.mxu1 %v12058_v0 }
0x2684   :  { %10964 = vmatpush3.msra.mxu0 %v13318_v32  ;;  %10975 = vmatpush3.msra.mxu1 %v13324_v37 }
0x2685   :  { %10965 = vmatprep.subr.mxu0 %v12058_v0  ;;  %10976 = vmatprep.subr.mxu1 %v12058_v0 }
0x2686   :  { %10966 = vmatpush3.msra.mxu0 %v13332_v38  ;;  %10977 = vmatpush3.msra.mxu1 %v13338_v40 }
0x2687   :  { %10967 = vmatprep.subr.mxu0 %v12058_v0  ;;  %10978 = vmatprep.subr.mxu1 %v12058_v0 }
0x2688   :  { %10968 = vmatpush3.msra.mxu0 %v13346_v41  ;;  %10979 = vmatpush3.msra.mxu1 %v13352_v34 }
0x2689   :  { %10969 = vmatprep.mubr.msk.f32.mxu0 %vm12059_vm0, %v12058_v0  ;;  %10980 = vmatprep.mubr.msk.f32.mxu1 %vm12059_vm0, %v12058_v0 }
0x268a   :  { %10983 = vmatprep.subr.mxu0 %v12058_v0  ;;  %10994 = vmatprep.subr.mxu1 %v12058_v0 }
0x2737   :  { %v4897_v42 = vpop.f32.mrf.mxu0  ;;  %v4977_v17 = vpop.f32.mrf.mxu1 }
0x2738   :  { %v4982_v18 = vrot.slane %v4977_v17, 4  ;;  %v4902_v7 = vrot.slane %v4897_v42, 4 }
0x2739   :  { %v10927_v20 = vpop.f32.mrf.mxu0  ;;  %v10938_v21 = vpop.f32.mrf.mxu1 }
0x273a   :  { %v4904_v9 = vadd.f32 %v4902_v7, %v12988_v6 }
0x273c   :  { %v9660_v10 = vmul.f32 -1.442695, %v4904_v9 }
0x2740   :  { %v5059_v62 = vpop.f32.mrf.mxu0  ;;  %v5136_v12 = vpop.f32.mrf.mxu1 }
0x2741   :  { %v5064_v13 = vrot.slane %v5059_v62, 4  ;;  %v5141_v35 = vrot.slane %v5136_v12, 4 }
0x2742   :  { %v10949_v14 = vpop.f32.mrf.mxu0  ;;  %v10960_v16 = vpop.f32.mrf.mxu1 }
0x2743   :  { %5065 = vrot.lane.b32.xlu0 %v5064_v13, %s12060_s22 }
0x2747   :  { %4983 = vrot.lane.b32.xlu0 %v4982_v18, %s12061_s4  ;;  %v13385_v18 = vld [vmem:[%s14419_s5 + $0x78] sm:$0xff] }
0x274b   :  { %5142 = vrot.lane.b32.xlu0 %v5141_v35, %s12062_s3  ;;  %v13394_v35 = vld [vmem:[%s14419_s5 + $0x70] sm:$0xff] }
0x27b5   :  { %v5066_v1 = vpop.permute.xlu0 %5065 }
0x27b6   :  { %v5068_v3 = vadd.f32 %v5066_v1, %v12988_v6  ;;  %v13403_v1 = vld [vmem:[%s14419_s5 + $0x68] sm:$0xff] }
0x27b8   :  { %11729 = vtanh.f32 %v5068_v3  ;;  %v13414_v3 = vld [vmem:[%s14419_s5 + $0x60] sm:$0xff] }
0x27b9   :  { %11731 = vpow2.f32 %v9660_v10  ;;  %v4984_v30 = vpop.permute.xlu0 %4983 }
0x27ba   :  { %v4986_v36 = vadd.f32 %v4984_v30, %v12988_v6 }
0x27bc   :  { %v9662_v48 = vmul.f32 -1.442695, %v4986_v36 }
0x27bd   :  { %v5143_v42 = vpop.permute.xlu0 %5142 }
0x27be   :  { %v5145_v17 = vadd.f32 %v5143_v42, %v12988_v6 }
0x27c0   :  { %v9665_v20 = vmul.f32 -1.442695, %v5145_v17 }
0x27c5   :  { %v11730_v5 = vpop.eup %11729 }
0x27c6   :  { %5157 = vrot.lane.b32.xlu1 %v11730_v5, %s12060_s22  ;;  %v11732_v23 = vpop.eup %11731 }
0x27c7   :  { %v4908_v27 = vadd.f32 1.0, %v11732_v23 }
0x27c9   :  { %11733 = vrcp.f32 %v4908_v27 }
0x27ca   :  { %11735 = vpow2.f32 %v9662_v48 }
0x27d6   :  { %v11734_v28 = vpop.eup %11733 }
0x27d7   :  { %v11736_v53 = vpop.eup %11735 }
0x27d8   :  { %v4990_v57 = vadd.f32 1.0, %v11736_v53 }
0x27da   :  { %11737 = vrcp.f32 %v4990_v57 }
0x27e7   :  { %v11738_v59 = vpop.eup %11737 }
0x27e8   :  { %v5155_v61 = vmul.f32 %v11738_v59, %v5153_v60 }
0x2838   :  { %v5158_v43 = vpop.permute.xlu1 %5157 }
0x2839   :  { %v5160_v19 = vmul.f32 %v11734_v28, %v5158_v43 }
0x283b   :  { %5162 = vrot.lane.b32.xlu1 %v5160_v19, %s12061_s4 }
0x28ad   :  { %v5163_v2 = vpop.permute.xlu1 %5162 }
0x28ae   :  { %v13370_v4 = vadd.f32 %v5163_v2, %v5155_v61 }
0x28b0   :  { %11739 = vtanh.f32 %v13370_v4  ;;  %v5504_v17 = vrot.slane %v13370_v4, 2 }
0x28b1   :  { %11741 = vpow2.f32 %v9665_v20 }
0x28bd   :  { %v11740_v11 = vpop.eup %11739 }
0x28be   :  { %5168 = vrot.lane.b32.xlu1 %v11740_v11, %s12060_s22  ;;  %v11742_v21 = vpop.eup %11741 }
0x28bf   :  { %v5149_v62 = vadd.f32 1.0, %v11742_v21 }
0x28c1   :  { %11743 = vrcp.f32 %v5149_v62 }
0x28ce   :  { %v11744_v12 = vpop.eup %11743 }
0x2930   :  { %v5169_v13 = vpop.permute.xlu1 %5168 }
0x2931   :  { %v13375_v33 = vmul.f32 %v11744_v12, %v5169_v13  ;;  %v2864_v13 = vrot.slane %v12981_v55, 2 }
0x2933   :  { %v5177_v14 = vrot.slane %v13375_v33, 4 }
0x2935   :  { %5178 = vrot.lane.b32.xlu0 %v5177_v14, %s12061_s4 }
0x29a7   :  { %v5179_v16 = vpop.permute.xlu0 %5178 }
0x29a8   :  { %10970 = vmatmul.mubr.msk.f32.vlgmr.msra.gmra.mxu0 %vm87_vm1, %v5179_v16  ;;  %10981 = vmatmul.mubr.msk.f32.vlgmr.msra.gmra.mxu1 %vm87_vm1, %v5179_v16 }
0x29a9   :  { %10984 = vmatpush3.msra.mxu0 %v13262_v44  ;;  %10995 = vmatpush3.msra.mxu1 %v13385_v18 }
0x29aa   :  { %10985 = vmatprep.subr.mxu0 %v12058_v0  ;;  %10996 = vmatprep.subr.mxu1 %v12058_v0 }
0x29ab   :  { %10986 = vmatpush3.msra.mxu0 %v13271_v29  ;;  %10997 = vmatpush3.msra.mxu1 %v13394_v35 }
0x29ac   :  { %10987 = vmatprep.subr.mxu0 %v12058_v0  ;;  %10998 = vmatprep.subr.mxu1 %v12058_v0 }
0x29ad   :  { %10988 = vmatpush3.msra.mxu0 %v13280_v22  ;;  %10999 = vmatpush3.msra.mxu1 %v13403_v1 }
0x29ae   :  { %10989 = vmatprep.subr.mxu0 %v12058_v0  ;;  %11000 = vmatprep.subr.mxu1 %v12058_v0 }
0x29af   :  { %10990 = vmatpush3.msra.mxu0 %v13289_v45  ;;  %10991 = vmatprep.mubr.msk.f32.mxu0 %vm12059_vm0, %v12058_v0 }
0x29b0   :  { %11001 = vmatpush3.msra.mxu1 %v13414_v3  ;;  %11002 = vmatprep.mubr.msk.f32.mxu1 %vm12059_vm0, %v12058_v0 }
0x29b1   :  { %10992 = vmatmul.mubr.msk.f32.vlgmr.msra.gmra.mxu0 %vm87_vm1, %v5179_v16  ;;  %11003 = vmatmul.mubr.msk.f32.vlgmr.msra.gmra.mxu1 %vm87_vm1, %v5179_v16 }
0x29b2   :  { %11005 = vmatprep.subr.mxu0 %v12058_v0  ;;  %11016 = vmatprep.subr.mxu1 %v12058_v0 }
0x29b3   :  { %11006 = vmatpush3.msra.mxu0 %v13304_v46  ;;  %11017 = vmatpush3.msra.mxu1 %v13310_v50 }
0x29b4   :  { %11007 = vmatprep.subr.mxu0 %v12058_v0  ;;  %11018 = vmatprep.subr.mxu1 %v12058_v0 }
0x29b5   :  { %11008 = vmatpush3.msra.mxu0 %v13318_v32  ;;  %11019 = vmatpush3.msra.mxu1 %v13324_v37 }
0x29b6   :  { %11009 = vmatprep.subr.mxu0 %v12058_v0  ;;  %11020 = vmatprep.subr.mxu1 %v12058_v0 }
0x29b7   :  { %11010 = vmatpush3.msra.mxu0 %v13332_v38  ;;  %11021 = vmatpush3.msra.mxu1 %v13338_v40 }
0x29b8   :  { %11011 = vmatprep.subr.mxu0 %v12058_v0  ;;  %11022 = vmatprep.subr.mxu1 %v12058_v0 }
0x29b9   :  { %11012 = vmatpush3.msra.mxu0 %v13346_v41  ;;  %11023 = vmatpush3.msra.mxu1 %v13352_v34 }
0x29ba   :  { %11013 = vmatprep.mubr.msk.f32.mxu0 %vm12059_vm0, %v12058_v0  ;;  %11024 = vmatprep.mubr.msk.f32.mxu1 %vm12059_vm0, %v12058_v0 }
0x29bb   :  { %11027 = vmatprep.subr.mxu0 %v12058_v0  ;;  %11038 = vmatprep.subr.mxu1 %v12058_v0 }
0x2a68   :  { %v5248_v46 = vpop.f32.mrf.mxu0  ;;  %v5328_v50 = vpop.f32.mrf.mxu1 }
0x2a69   :  { %v5333_v34 = vrot.slane %v5328_v50, 6  ;;  %v5253_v28 = vrot.slane %v5248_v46, 6 }
0x2a6a   :  { %v10971_v32 = vpop.f32.mrf.mxu0  ;;  %v10982_v37 = vpop.f32.mrf.mxu1 }
0x2a6b   :  { %v5255_v43 = vadd.f32 %v5253_v28, %v12988_v6 }
0x2a6d   :  { %v9667_v19 = vmul.f32 -1.442695, %v5255_v43  ;;  %v2953_v43 = vrot.slane %v12792_v63, 6 }
0x2a71   :  { %v5410_v38 = vpop.f32.mrf.mxu0  ;;  %v5487_v40 = vpop.f32.mrf.mxu1 }
0x2a72   :  { %v5415_v5 = vrot.slane %v5410_v38, 6  ;;  %v5492_v9 = vrot.slane %v5487_v40, 6 }
0x2a73   :  { %v10993_v41 = vpop.f32.mrf.mxu0  ;;  %v11004_v7 = vpop.f32.mrf.mxu1 }
0x2a74   :  { %5416 = vrot.lane.b32.xlu1 %v5415_v5, %s12060_s22  ;;  %v2782_v7 = vrot.slane %v12979_v52, 2 }
0x2a78   :  { %5334 = vrot.lane.b32.xlu1 %v5333_v34, %s12061_s4  ;;  %v2702_v34 = vrot.slane %v12977_v47, 2 }
0x2a7c   :  { %5493 = vrot.lane.b32.xlu1 %v5492_v9, %s12062_s3  ;;  %v2704_v9 = vadd.f32 %v2702_v34, %v12332_v26 }
0x2ae6   :  { %v5417_v10 = vpop.permute.xlu1 %5416 }
0x2ae7   :  { %v5419_v23 = vadd.f32 %v5417_v10, %v12988_v6  ;;  %v9607_v10 = vmul.f32 -1.442695, %v2704_v9 }
0x2ae9   :  { %11745 = vtanh.f32 %v5419_v23 }
0x2aea   :  { %11747 = vpow2.f32 %v9667_v19  ;;  %v5335_v59 = vpop.permute.xlu1 %5334 }
0x2aeb   :  { %v5337_v60 = vadd.f32 %v5335_v59, %v12988_v6 }
0x2aed   :  { %v9669_v61 = vmul.f32 -1.442695, %v5337_v60 }
0x2aee   :  { %v5494_v14 = vpop.permute.xlu1 %5493 }
0x2aef   :  { %v5496_v16 = vadd.f32 %v5494_v14, %v12988_v6 }
0x2af1   :  { %v9672_v46 = vmul.f32 -1.442695, %v5496_v16 }
0x2af6   :  { %v11746_v27 = vpop.eup %11745 }
0x2af7   :  { %5508 = vrot.lane.b32.xlu0 %v11746_v27, %s12060_s22  ;;  %v11748_v30 = vpop.eup %11747 }
0x2af8   :  { %v5259_v36 = vadd.f32 1.0, %v11748_v30 }
0x2afa   :  { %11749 = vrcp.f32 %v5259_v36 }
0x2afb   :  { %11751 = vpow2.f32 %v9669_v61 }
0x2b07   :  { %v11750_v48 = vpop.eup %11749 }
0x2b08   :  { %v11752_v2 = vpop.eup %11751 }
0x2b09   :  { %v5341_v11 = vadd.f32 1.0, %v11752_v2 }
0x2b0b   :  { %11753 = vrcp.f32 %v5341_v11 }
0x2b18   :  { %v11754_v42 = vpop.eup %11753 }
0x2b19   :  { %v5506_v20 = vmul.f32 %v11754_v42, %v5504_v17 }
0x2b69   :  { %v5509_v53 = vpop.permute.xlu0 %5508 }
0x2b6a   :  { %v5511_v57 = vmul.f32 %v11750_v48, %v5509_v53 }
0x2b6c   :  { %5513 = vrot.lane.b32.xlu0 %v5511_v57, %s12061_s4 }
0x2bde   :  { %v5514_v21 = vpop.permute.xlu0 %5513 }
0x2bdf   :  { %v13452_v62 = vadd.f32 %v5514_v21, %v5506_v20 }
0x2be1   :  { %11755 = vtanh.f32 %v13452_v62 }
0x2be2   :  { %11757 = vpow2.f32 %v9672_v46 }
0x2bee   :  { %v11756_v12 = vpop.eup %11755 }
0x2bef   :  { %5519 = vrot.lane.b32.xlu0 %v11756_v12, %s12060_s22  ;;  %v11758_v50 = vpop.eup %11757 }
0x2bf0   :  { %v5500_v4 = vadd.f32 1.0, %v11758_v50 }
0x2bf2   :  { %11759 = vrcp.f32 %v5500_v4 }
0x2bf3   :  { %2865 = vrot.lane.b32.xlu0 %v2864_v13, %s12060_s22 }
0x2bff   :  { %v11760_v32 = vpop.eup %11759 }
0x2c61   :  { %v5520_v37 = vpop.permute.xlu0 %5519 }
0x2c62   :  { %v13459_v38 = vmul.f32 %v11760_v32, %v5520_v37 }
0x2c64   :  { %v5528_v40 = vrot.slane %v13459_v38, 2 }
0x2c65   :  { %v2866_v5 = vpop.permute.xlu0 %2865 }
0x2c66   :  { %v2868_v41 = vadd.f32 %v2866_v5, %v12332_v26  ;;  %5529 = vrot.lane.b32.xlu1 %v5528_v40, %s12061_s4 }
0x2c68   :  { %11761 = vtanh.f32 %v2868_v41 }
0x2c69   :  { %11763 = vpow2.f32 %v9607_v10 }
0x2c75   :  { %v11762_v55 = vpop.eup %11761 }
0x2c76   :  { %2957 = vrot.lane.b32.xlu0 %v11762_v55, %s12060_s22  ;;  %v11764_v23 = vpop.eup %11763 }
0x2c77   :  { %v2708_v27 = vadd.f32 1.0, %v11764_v23 }
0x2c79   :  { %11765 = vrcp.f32 %v2708_v27 }
0x2c7a   :  { %2783 = vrot.lane.b32.xlu0 %v2782_v7, %s12061_s4  ;;  %v5849_v7 = vrot.slane %v13452_v62, 2  ;;  %v5881_v62 = vld [vmem:[%s14421_s7 + $0x30] sm:$0xff] }
0x2c86   :  { %v11766_v47 = vpop.eup %11765 }
0x2cd8   :  { %v5530_v28 = vpop.permute.xlu1 %5529 }
0x2cd9   :  { %11014 = vmatmul.mubr.msk.f32.vlgmr.msra.gmra.mxu0 %vm87_vm1, %v5530_v28  ;;  %11025 = vmatmul.mubr.msk.f32.vlgmr.msra.gmra.mxu1 %vm87_vm1, %v5530_v28 }
0x2cda   :  { %11028 = vmatpush3.msra.mxu0 %v13262_v44  ;;  %11039 = vmatpush3.msra.mxu1 %v13385_v18 }
0x2cdb   :  { %11029 = vmatprep.subr.mxu0 %v12058_v0  ;;  %11040 = vmatprep.subr.mxu1 %v12058_v0 }
0x2cdc   :  { %11030 = vmatpush3.msra.mxu0 %v13271_v29  ;;  %11041 = vmatpush3.msra.mxu1 %v13394_v35  ;;  %v2941_v29 = vrot.slane %v12983_v56, 2 }
0x2cdd   :  { %11031 = vmatprep.subr.mxu0 %v12058_v0  ;;  %11042 = vmatprep.subr.mxu1 %v12058_v0 }
0x2cde   :  { %11032 = vmatpush3.msra.mxu0 %v13280_v22  ;;  %11043 = vmatpush3.msra.mxu1 %v13403_v1 }
0x2cdf   :  { %11033 = vmatprep.subr.mxu0 %v12058_v0  ;;  %11044 = vmatprep.subr.mxu1 %v12058_v0 }
0x2ce0   :  { %11034 = vmatpush3.msra.mxu0 %v13289_v45  ;;  %11035 = vmatprep.mubr.msk.f32.mxu0 %vm12059_vm0, %v12058_v0 }
0x2ce1   :  { %11045 = vmatpush3.msra.mxu1 %v13414_v3  ;;  %11046 = vmatprep.mubr.msk.f32.mxu1 %vm12059_vm0, %v12058_v0 }
0x2ce2   :  { %11036 = vmatmul.mubr.msk.f32.vlgmr.msra.gmra.mxu0 %vm87_vm1, %v5530_v28  ;;  %11047 = vmatmul.mubr.msk.f32.vlgmr.msra.gmra.mxu1 %vm87_vm1, %v5530_v28 }
0x2ce3   :  { %11068 = vmatprep.subr.mxu1 %v12058_v0  ;;  %11076 = vmatprep.mubr.msk.f32.mxu1 %vm12059_vm0, %v12058_v0 }
0x2ce8   :  { %v2958_v52 = vpop.permute.xlu0 %2957 }
0x2ce9   :  { %v2960_v44 = vmul.f32 %v11766_v47, %v2958_v52  ;;  %v5880_v52 = vld [vmem:[%s14421_s7 + $0x28] sm:$0xff] }
0x2ceb   :  { %2962 = vrot.lane.b32.xlu0 %v2960_v44, %s12061_s4 }
0x2cec   :  { %v2784_v22 = vpop.permute.xlu0 %2783 }
0x2ced   :  { %v2786_v45 = vadd.f32 %v2784_v22, %v12332_v26 }
0x2cef   :  { %2942 = vrot.lane.b32.xlu0 %v2941_v29, %s12062_s3  ;;  %v9609_v18 = vmul.f32 -1.442695, %v2786_v45 }
0x2cf1   :  { %11767 = vpow2.f32 %v9609_v18  ;;  %v5879_v18 = vld [vmem:[%s14421_s7 + $0x20] sm:$0xff] }
0x2cfe   :  { %v11768_v35 = vpop.eup %11767 }
0x2cff   :  { %v2790_v1 = vadd.f32 1.0, %v11768_v35  ;;  %v5878_v35 = vld [vmem:[%s14421_s7 + $0x18] sm:$0xff] }
0x2d01   :  { %11769 = vrcp.f32 %v2790_v1  ;;  %v5876_v1 = vld [vmem:[%s14421_s7 + $0x8] sm:$0xff] }
0x2d0e   :  { %v11770_v3 = vpop.eup %11769 }
0x2d0f   :  { %v2955_v19 = vmul.f32 %v11770_v3, %v2953_v43  ;;  %v13578_v3 = vld [vmem:[%s14422_s8 + $0x8] sm:$0xff]  ;;  %v5875_v43 = vld [vmem:[%s14421_s7] sm:$0xff] }
0x2d5d   :  { %v2963_v30 = vpop.permute.xlu0 %2962 }
0x2d5e   :  { %v2965_v36 = vadd.f32 %v2963_v30, %v2955_v19  ;;  %v13587_v19 = vld [vmem:[%s14422_s8] sm:$0xff] }
0x2d60   :  { %11771 = vtanh.f32 %v2965_v36 }
0x2d6d   :  { %v11772_v48 = vpop.eup %11771 }
0x2d6e   :  { %2968 = vrot.lane.b32.xlu0 %v11772_v48, %s12060_s22 }
0x2d72   :  { %873 = vrot.lane.b32.xlu0 %v12409_v54, %s12061_s4 }
0x2d76   :  { %1577 = vrot.lane.b32.xlu0 %v12533_v49, %s12061_s4 }
0x2d7a   :  { %2622 = vrot.lane.b32.xlu0 %v12797_v24, %s12061_s4 }
0x2d7e   :  { %4822 = vrot.lane.b32.xlu0 %v13253_v39, %s12060_s22  ;;  %v2943_v39 = vpop.permute.xlu0 %2942 }
0x2d7f   :  { %v2945_v5 = vadd.f32 %v2943_v39, %v12332_v26  ;;  %v5882_v26 = vld [vmem:[%s14421_s7 + $0x38] sm:$0xff]  ;;  %v13639_v39 = vld [vmem:[%s14422_s8 + $0x70] sm:$0xff] }
0x2d80   :  { %11049 = vmatprep.subr.mxu0 %v5882_v26 }
0x2d81   :  { %v9612_v41 = vmul.f32 -1.442695, %v2945_v5  ;;  %11050 = vmatpush3.msra.mxu0 %v5882_v26 }
0x2d82   :  { %5524 = vrot.lane.b32.xlu0 %v13459_v38, %s12060_s22  ;;  %11051 = vmatprep.subr.mxu0 %v5881_v62 }
0x2d83   :  { %11052 = vmatpush3.msra.mxu0 %v5881_v62 }
0x2d84   :  { %11053 = vmatprep.subr.mxu0 %v5880_v52 }
0x2d85   :  { %11054 = vmatpush3.msra.mxu0 %v5880_v52 }
0x2d86   :  { %3421 = vrot.lane.b32.xlu0 %v13005_v8, %s12060_s22  ;;  %11055 = vmatprep.subr.mxu0 %v5879_v18 }
0x2d87   :  { %11056 = vmatpush3.msra.mxu0 %v5879_v18 }
0x2d88   :  { %11057 = vmatprep.subr.mxu0 %v5878_v35 }
0x2d89   :  { %11058 = vmatpush3.msra.mxu0 %v5878_v35 }
0x2d8a   :  { %4125 = vrot.lane.b32.xlu0 %v13129_v15, %s12060_s22 }
0x2d99   :  { %v5599_v63 = vpop.f32.mrf.mxu0  ;;  %v5676_v54 = vpop.f32.mrf.mxu1 }
0x2d9a   :  { %v5603_v21 = vadd.f32 %v5599_v63, %v12988_v6  ;;  %v13596_v63 = vld [vmem:[%s14422_s8 + $0x38] sm:$0xff] }
0x2d9b   :  { %v11015_v56 = vpop.f32.mrf.mxu0  ;;  %v11026_v53 = vpop.f32.mrf.mxu1 }
0x2d9c   :  { %v9674_v12 = vmul.f32 -1.442695, %v5603_v21  ;;  %v13605_v53 = vld [vmem:[%s14422_s8 + $0x30] sm:$0xff] }
0x2da2   :  { %v5757_v49 = vpop.f32.mrf.mxu0  ;;  %v5833_v57 = vpop.f32.mrf.mxu1 }
0x2da3   :  { %5762 = vrot.lane.b32.xlu1 %v5757_v49, %s12060_s22  ;;  %v13615_v49 = vld [vmem:[%s14422_s8 + $0x28] sm:$0xff] }
0x2da4   :  { %v11037_v24 = vpop.f32.mrf.mxu0  ;;  %v11048_v59 = vpop.f32.mrf.mxu1 }
0x2da5   :  { %v13624_v24 = vld [vmem:[%s14422_s8 + $0x20] sm:$0xff] }
0x2de0   :  { %v2969_v60 = vpop.permute.xlu0 %2968 }
0x2de4   :  { %v874_v61 = vpop.permute.xlu0 %873 }
0x2de5   :  { %877 = vst.msk [vmem:[#allocation2] sm:$0xc] %vm876_vm3, %v874_v61  ;;  %v13648_v61 = vld [vmem:[%s14422_s8 + $0x68] sm:$0xff] }
0x2de8   :  { %v1578_v8 = vpop.permute.xlu0 %1577 }
0x2de9   :  { %1581 = vst.msk [vmem:[#allocation2] sm:$0xc0] %vm1580_vm4, %v1578_v8  ;;  %v13657_v8 = vld [vmem:[%s14422_s8 + $0x60] sm:$0xff] }
0x2dec   :  { %v2623_v15 = vpop.permute.xlu0 %2622 }
0x2ded   :  { %2625 = vst.msk [vmem:[#allocation2 + $0x8] sm:$0x30] %vm1228_vm5, %v2623_v15 }
0x2df0   :  { %v4823_v2 = vpop.permute.xlu0 %4822 }
0x2df1   :  { %4825 = vst.msk [vmem:[#allocation2] sm:$0xc0] %vm3424_vm6, %v4823_v2 }
0x2df4   :  { %v5525_v11 = vpop.permute.xlu0 %5524 }
0x2df5   :  { %5527 = vst.msk [vmem:[#allocation2] sm:$0xc] %vm4128_vm7, %v5525_v11 }
0x2e15   :  { %v5763_v42 = vpop.permute.xlu1 %5762 }
0x2e16   :  { %v5765_v17 = vadd.f32 %v5763_v42, %v12988_v6 }
0x2e18   :  { %11773 = vtanh.f32 %v5765_v17 }
0x2e19   :  { %11775 = vpow2.f32 %v9674_v12  ;;  %v13684_v12 = vld [vmem:[%s14422_s8 + $0x50] sm:$0xff] }
0x2e25   :  { %v11774_v20 = vpop.eup %11773 }
0x2e26   :  { %5853 = vrot.lane.b32.xlu1 %v11774_v20, %s12060_s22  ;;  %v11776_v13 = vpop.eup %11775  ;;  %v13678_v20 = vld [vmem:[%s14422_s8 + $0x58] sm:$0xff] }
0x2e27   :  { %v5607_v14 = vadd.f32 1.0, %v11776_v13  ;;  %v13693_v13 = vld [vmem:[%s14422_s8 + $0x48] sm:$0xff] }
0x2e29   :  { %11777 = vrcp.f32 %v5607_v14  ;;  %v13700_v14 = vld [vmem:[%s14422_s8 + $0x40] sm:$0xff] }
0x2e2a   :  { %5681 = vrot.lane.b32.xlu1 %v5676_v54, %s12061_s4  ;;  %v3422_v54 = vpop.permute.xlu0 %3421 }
0x2e2e   :  { %v4126_v59 = vpop.permute.xlu0 %4125 }
0x2e36   :  { %v11778_v16 = vpop.eup %11777 }
0x2e98   :  { %v5854_v46 = vpop.permute.xlu1 %5853 }
0x2e99   :  { %v5856_v50 = vmul.f32 %v11778_v16, %v5854_v46 }
0x2e9b   :  { %5858 = vrot.lane.b32.xlu1 %v5856_v50, %s12061_s4 }
0x2e9c   :  { %v5682_v4 = vpop.permute.xlu1 %5681 }
0x2e9d   :  { %v5684_v32 = vadd.f32 %v5682_v4, %v12988_v6 }
0x2e9f   :  { %5838 = vrot.lane.b32.xlu1 %v5833_v57, %s12062_s3  ;;  %v9676_v37 = vmul.f32 -1.442695, %v5684_v32 }
0x2ea1   :  { %11779 = vpow2.f32 %v9676_v37 }
0x2eae   :  { %v11780_v38 = vpop.eup %11779 }
0x2eaf   :  { %v5688_v40 = vadd.f32 1.0, %v11780_v38  ;;  %v9680_v38 = vld [vmem:[%s14423_s9] ss:$0 sm:$0xff] }
0x2eb1   :  { %11781 = vrcp.f32 %v5688_v40 }
0x2eb2   :  { %11783 = vpow2.f32 %v9612_v41 }
0x2ebe   :  { %v11782_v55 = vpop.eup %11781 }
0x2ebf   :  { %v5851_v34 = vmul.f32 %v11782_v55, %v5849_v7  ;;  %v11784_v23 = vpop.eup %11783 }
0x2ec0   :  { %v2949_v27 = vadd.f32 1.0, %v11784_v23 }
0x2f0d   :  { %v5859_v9 = vpop.permute.xlu1 %5858 }
0x2f0e   :  { %v5861_v10 = vadd.f32 %v5859_v9, %v5851_v34 }
0x2f10   :  { %11785 = vtanh.f32 %v5861_v10 }
0x2f11   :  { %11787 = vrcp.f32 %v2949_v27 }
0x2f1d   :  { %v11786_v28 = vpop.eup %11785 }
0x2f1e   :  { %5864 = vrot.lane.b32.xlu1 %v11786_v28, %s12060_s22  ;;  %v11788_v47 = vpop.eup %11787 }
0x2f1f   :  { %v2971_v44 = vmul.f32 %v11788_v47, %v2969_v60 }
0x2f22   :  { %1225 = vrot.lane.b32.xlu1 %v12471_v51, %s12061_s4  ;;  %v5839_v51 = vpop.permute.xlu1 %5838 }
0x2f26   :  { %2271 = vrot.lane.b32.xlu1 %v12710_v31, %s12061_s4  ;;  %v5841_v31 = vadd.f32 %v5839_v51, %v12988_v6  ;;  %v13558_v6 = vld [vmem:[%s14422_s8 + $0x18] sm:$0xff] }
0x2f27   :  { %11069 = vmatpush3.msra.mxu1 %v13558_v6 }
0x2f28   :  { %v9679_v29 = vmul.f32 -1.442695, %v5841_v31  ;;  %11070 = vmatprep.subr.mxu1 %v12058_v0 }
0x2f2a   :  { %2973 = vrot.lane.b32.xlu1 %v2971_v44, %s12061_s4  ;;  %11789 = vpow2.f32 %v9679_v29 }
0x2f2e   :  { %5173 = vrot.lane.b32.xlu1 %v13375_v33, %s12060_s22  ;;  %v13567_v33 = vld [vmem:[%s14422_s8 + $0x10] sm:$0xff] }
0x2f2f   :  { %11071 = vmatpush3.msra.mxu1 %v13567_v33 }
0x2f30   :  { %11072 = vmatprep.subr.mxu1 %v12058_v0 }
0x2f31   :  { %11073 = vmatpush3.msra.mxu1 %v13578_v3 }
0x2f32   :  { %3773 = vrot.lane.b32.xlu1 %v13067_v58, %s12060_s22  ;;  %v5877_v58 = vld [vmem:[%s14421_s7 + $0x10] sm:$0xff]  ;;  %11074 = vmatprep.subr.mxu1 %v12058_v0  ;;  %s12063_s7 = smov [#allocation6]  }
0x2f33   :  { %11059 = vmatprep.subr.mxu0 %v5877_v58  ;;  %11075 = vmatpush3.msra.mxu1 %v13587_v19  ;;  %s9523_s27 = sshll.u32 %s12063_s7, 4  ;;  %s9524_s27 = int_to_ptr.vmem [resolvable:$true] %s9523_s27 }
0x2f34   :  { %11060 = vmatpush3.msra.mxu0 %v5877_v58  ;;  %11079 = vmatprep.subr.mxu1 %v12058_v0  ;;  %p12014_p6 = scmp.lt.s32.totalorder %s9524_s27, %s9524_s27 }
0x2f35   :  { %11061 = vmatprep.subr.mxu0 %v5876_v1  ;;  %11077 = vmatmul.mubr.f32.vlgmr.msra.gmra.mxu1 %v12058_v0 }
0x2f36   :  { %11062 = vmatpush3.msra.mxu0 %v5876_v1  ;;  %11080 = vmatpush3.msra.mxu1 %v13596_v63 }
0x2f37   :  { %v11790_v22 = vpop.eup %11789  ;;  %11063 = vmatprep.subr.mxu0 %v5875_v43  ;;  %11081 = vmatprep.subr.mxu1 %v12058_v0 }
0x2f38   :  { %v5845_v45 = vadd.f32 1.0, %v11790_v22  ;;  %11064 = vmatpush3.msra.mxu0 %v5875_v43  ;;  %11087 = vmatprep.mubr.msk.f32.mxu1 %vm12059_vm0, %v12058_v0 }
0x2f39   :  { %11090 = vmatprep.subr.mxu0 %v12058_v0  ;;  %11082 = vmatpush3.msra.mxu1 %v13605_v53 }
0x2f3a   :  { %11791 = vrcp.f32 %v5845_v45  ;;  %11083 = vmatprep.subr.mxu1 %v12058_v0 }
0x2f3b   :  { %11084 = vmatpush3.msra.mxu1 %v13615_v49 }
0x2f3c   :  { %11085 = vmatprep.subr.mxu1 %v12058_v0 }
0x2f3d   :  { %11086 = vmatpush3.msra.mxu1 %v13624_v24 }
0x2f3e   :  { %11101 = vmatprep.subr.mxu1 %v12058_v0  ;;  %11088 = vmatmul.mubr.f32.vlgmr.msra.gmra.mxu1 %v12058_v0 }
0x2f3f   :  { %11109 = vmatprep.mubr.msk.f32.mxu1 %vm12059_vm0, %v12058_v0 }
0x2f47   :  { %v11792_v30 = vpop.eup %11791 }
0x2f90   :  { %v5865_v36 = vpop.permute.xlu1 %5864 }
0x2f91   :  { %v5867_v48 = vmul.f32 %v11792_v30, %v5865_v36 }
0x2f93   :  { %5869 = vrot.lane.b32.xlu1 %v5867_v48, %s12060_s22 }
0x2f94   :  { %v1226_v56 = vpop.permute.xlu1 %1225 }
0x2f95   :  { %1229 = vst.msk [vmem:[#allocation2] sm:$0x30] %vm1228_vm5, %v1226_v56 }
0x2f97   :  { %4471 = vrot.lane.b32.xlu1 %v13191_v25, %s12060_s22  ;;  %v13634_v25 = vld [vmem:[%s14422_s8 + $0x78] sm:$0xff] }
0x2f98   :  { %v2272_v57 = vpop.permute.xlu1 %2271  ;;  %11102 = vmatpush3.msra.mxu1 %v13634_v25 }
0x2f99   :  { %2274 = vst.msk [vmem:[#allocation2 + $0x8] sm:$0xc] %vm876_vm3, %v2272_v57  ;;  %11103 = vmatprep.subr.mxu1 %v12058_v0 }
0x2f9a   :  { %4129 = vst.msk [vmem:[#allocation2 + $0x8] sm:$0xc] %vm4128_vm7, %v4126_v59  ;;  %11104 = vmatpush3.msra.mxu1 %v13639_v39 }
0x2f9b   :  { %11105 = vmatprep.subr.mxu1 %v12058_v0 }
0x2f9c   :  { %v2974_v60 = vpop.permute.xlu1 %2973  ;;  %11106 = vmatpush3.msra.mxu1 %v13648_v61 }
0x2f9d   :  { %2976 = vst.msk [vmem:[#allocation2 + $0x8] sm:$0xc0] %vm1580_vm4, %v2974_v60  ;;  %11107 = vmatprep.subr.mxu1 %v12058_v0 }
0x2f9e   :  { %3425 = vst.msk [vmem:[#allocation2 + $0x8] sm:$0xc0] %vm3424_vm6, %v3422_v54  ;;  %11108 = vmatpush3.msra.mxu1 %v13657_v8 }
0x2f9f   :  { %11110 = vmatmul.mubr.f32.vlgmr.msra.gmra.mxu1 %v12058_v0  ;;  %11123 = vmatprep.subr.mxu1 %v12058_v0 }
0x2fa0   :  { %v5174_v15 = vpop.permute.xlu1 %5173  ;;  %11124 = vmatpush3.msra.mxu1 %v13596_v63  ;;  %11131 = vmatprep.mubr.msk.f32.mxu1 %vm12059_vm0, %v12058_v0 }
0x2fa1   :  { %5176 = vst.msk [vmem:[#allocation2] sm:$0x30] %vm3776_vm8, %v5174_v15  ;;  %11125 = vmatprep.subr.mxu1 %v12058_v0 }
0x2fa2   :  { %11126 = vmatpush3.msra.mxu1 %v13605_v53 }
0x2fa3   :  { %11127 = vmatprep.subr.mxu1 %v12058_v0 }
0x2fa4   :  { %v3774_v2 = vpop.permute.xlu1 %3773  ;;  %11128 = vmatpush3.msra.mxu1 %v13615_v49 }
0x2fa5   :  { %3777 = vst.msk [vmem:[#allocation2 + $0x8] sm:$0x30] %vm3776_vm8, %v3774_v2  ;;  %11129 = vmatprep.subr.mxu1 %v12058_v0 }
0x2fa6   :  { %11130 = vmatpush3.msra.mxu1 %v13624_v24 }
0x2fa7   :  { %11145 = vmatprep.subr.mxu1 %v12058_v0 }
0x2ff5   :  { %v6057_v16 = vpop.f32.mrf.mxu1 }
0x2ff7   :  { %v11078_v46 = vpop.f32.mrf.mxu1 }
0x2ffe   :  { %v6134_v50 = vpop.f32.mrf.mxu1 }
0x3000   :  { %v11089_v4 = vpop.f32.mrf.mxu1 }
0x3005   :  { %v5870_v11 = vpop.permute.xlu1 %5869 }
0x3006   :  { %5872 = vst.msk [vmem:[#allocation2] sm:$0x3] %vm4474_vm9, %v5870_v11 }
0x3009   :  { %v4472_v42 = vpop.permute.xlu1 %4471 }
0x300a   :  { %4475 = vst.msk [vmem:[#allocation2 + $0x8] sm:$0x3] %vm4474_vm9, %v4472_v42 }
0x300d   :  { %v5873_v17 = vld [vmem:[#allocation2] sm:$0xff] }
0x300e   :  { %11065 = vmatprep.mubr.msk.f32.mxu0 %vm5890_vm10, %v5873_v17 }
0x3011   :  { %v5874_v21 = vld [vmem:[#allocation2 + $0x8] sm:$0xff] }
0x3012   :  { %11066 = vmatmul.mubr.msk.f32.vlgmr.msra.gmra.mxu0 %vm5890_vm10, %v5874_v21 }
0x3013   :  { %11091 = vmatpush3.msra.mxu0 %v13678_v20  ;;  %11098 = vmatprep.mubr.msk.f32.mxu0 %vm12059_vm0, %v12058_v0 }
0x3014   :  { %11092 = vmatprep.subr.mxu0 %v12058_v0 }
0x3015   :  { %11093 = vmatpush3.msra.mxu0 %v13684_v12 }
0x3016   :  { %11094 = vmatprep.subr.mxu0 %v12058_v0 }
0x3017   :  { %11095 = vmatpush3.msra.mxu0 %v13693_v13 }
0x3018   :  { %11096 = vmatprep.subr.mxu0 %v12058_v0 }
0x3019   :  { %11097 = vmatpush3.msra.mxu0 %v13700_v14 }
0x301a   :  { %11099 = vmatmul.mubr.f32.vlgmr.msra.gmra.mxu0 %v12058_v0  ;;  %11112 = vmatprep.subr.mxu0 %v12058_v0 }
0x301b   :  { %11113 = vmatpush3.msra.mxu0 %v13558_v6  ;;  %11120 = vmatprep.mubr.msk.f32.mxu0 %vm12059_vm0, %v12058_v0 }
0x301c   :  { %11114 = vmatprep.subr.mxu0 %v12058_v0 }
0x301d   :  { %11115 = vmatpush3.msra.mxu0 %v13567_v33 }
0x301e   :  { %11116 = vmatprep.subr.mxu0 %v12058_v0 }
0x301f   :  { %11117 = vmatpush3.msra.mxu0 %v13578_v3 }
0x3020   :  { %11118 = vmatprep.subr.mxu0 %v12058_v0 }
0x3021   :  { %11119 = vmatpush3.msra.mxu0 %v13587_v19 }
0x3022   :  { %11134 = vmatprep.subr.mxu0 %v12058_v0 }
0x305f   :  { %v6291_v32 = vpop.f32.mrf.mxu1 }
0x3061   :  { %v11111_v37 = vpop.f32.mrf.mxu1 }
0x30d2   :  { %v11067_v40 = vpop.f32.mrf.mxu0 }
0x30d3   :  { %v13720_v5 = vadd.f32 %v11067_v40, %v9680_v38 }
0x30d4   :  { %v5963_v41 = vpop.f32.mrf.mxu0 }
0x30d5   :  { %v13725_v34 = vadd.f32 %v9680_v38, %v5963_v41 }
0x30d7   :  { %v6061_v27 = vadd.f32 %v6057_v16, %v13725_v34 }
0x30d9   :  { %v9695_v28 = vmul.f32 -1.442695, %v6061_v27 }
0x30da   :  { %v6215_v55 = vpop.f32.mrf.mxu0 }
0x30db   :  { %6220 = vrot.lane.b32.xlu0 %v6215_v55, %s12060_s22 }
0x30dc   :  { %v11100_v7 = vpop.f32.mrf.mxu0 }
0x30df   :  { %6139 = vrot.lane.b32.xlu0 %v6134_v50, %s12061_s4 }
0x30e3   :  { %6296 = vrot.lane.b32.xlu0 %v6291_v32, %s12062_s3 }
0x314d   :  { %v6221_v9 = vpop.permute.xlu0 %6220 }
0x314e   :  { %v6223_v10 = vadd.f32 %v6221_v9, %v13725_v34 }
0x3150   :  { %11793 = vtanh.f32 %v6223_v10 }
0x3151   :  { %11795 = vpow2.f32 %v9695_v28  ;;  %v6140_v51 = vpop.permute.xlu0 %6139 }
0x3152   :  { %v6142_v31 = vadd.f32 %v6140_v51, %v13725_v34 }
0x3154   :  { %v9696_v29 = vmul.f32 -1.442695, %v6142_v31 }
0x3155   :  { %v6297_v30 = vpop.permute.xlu0 %6296 }
0x3156   :  { %v6299_v36 = vadd.f32 %v6297_v30, %v13725_v34 }
0x3158   :  { %v9697_v48 = vmul.f32 -1.442695, %v6299_v36 }
0x315d   :  { %v11794_v23 = vpop.eup %11793 }
0x315e   :  { %6308 = vrot.lane.b32.xlu1 %v11794_v23, %s12060_s22  ;;  %v11796_v26 = vpop.eup %11795 }
0x315f   :  { %v6065_v62 = vadd.f32 1.0, %v11796_v26 }
0x3161   :  { %11797 = vrcp.f32 %v6065_v62 }
0x3162   :  { %11799 = vpow2.f32 %v9696_v29 }
0x316e   :  { %v11798_v47 = vpop.eup %11797 }
0x316f   :  { %v11800_v22 = vpop.eup %11799 }
0x3170   :  { %v6146_v45 = vadd.f32 1.0, %v11800_v22 }
0x3172   :  { %11801 = vrcp.f32 %v6146_v45 }
0x317f   :  { %v11802_v18 = vpop.eup %11801 }
0x3180   :  { %v6306_v35 = vmul.f32 0.0, %v11802_v18 }
0x31d0   :  { %v6309_v52 = vpop.permute.xlu1 %6308 }
0x31d1   :  { %v6311_v44 = vmul.f32 %v11798_v47, %v6309_v52 }
0x31d3   :  { %6313 = vrot.lane.b32.xlu1 %v6311_v44, %s12061_s4 }
0x3245   :  { %v6314_v58 = vpop.permute.xlu1 %6313 }
0x3246   :  { %v13732_v1 = vadd.f32 %v6314_v58, %v6306_v35 }
0x3248   :  { %11803 = vtanh.f32 %v13732_v1  ;;  %v6650_v29 = vrot.slane %v13732_v1, 6 }
0x3249   :  { %11805 = vpow2.f32 %v9697_v48 }
0x3255   :  { %v11804_v43 = vpop.eup %11803 }
0x3256   :  { %6319 = vrot.lane.b32.xlu1 %v11804_v43, %s12060_s22  ;;  %v11806_v54 = vpop.eup %11805 }
0x3257   :  { %v6303_v56 = vadd.f32 1.0, %v11806_v54 }
0x3259   :  { %11807 = vrcp.f32 %v6303_v56 }
0x3266   :  { %v11808_v57 = vpop.eup %11807 }
0x32c8   :  { %v6320_v59 = vpop.permute.xlu1 %6319 }
0x32c9   :  { %v6322_v60 = vmul.f32 %v11808_v57, %v6320_v59 }
0x32cb   :  { %6324 = vrot.lane.b32.xlu0 %v6322_v60, %s12061_s4 }
0x333d   :  { %v6325_v15 = vpop.permute.xlu0 %6324 }
0x333e   :  { %11121 = vmatmul.mubr.msk.f32.vlgmr.msra.gmra.mxu0 %vm87_vm1, %v6325_v15  ;;  %11132 = vmatmul.mubr.msk.f32.vlgmr.msra.gmra.mxu1 %vm87_vm1, %v6325_v15 }
0x333f   :  { %11135 = vmatpush3.msra.mxu0 %v13678_v20  ;;  %11146 = vmatpush3.msra.mxu1 %v13634_v25 }
0x3340   :  { %11136 = vmatprep.subr.mxu0 %v12058_v0  ;;  %11147 = vmatprep.subr.mxu1 %v12058_v0 }
0x3341   :  { %11137 = vmatpush3.msra.mxu0 %v13684_v12  ;;  %11148 = vmatpush3.msra.mxu1 %v13639_v39 }
0x3342   :  { %11138 = vmatprep.subr.mxu0 %v12058_v0  ;;  %11149 = vmatprep.subr.mxu1 %v12058_v0 }
0x3343   :  { %11139 = vmatpush3.msra.mxu0 %v13693_v13  ;;  %11150 = vmatpush3.msra.mxu1 %v13648_v61 }
0x3344   :  { %11140 = vmatprep.subr.mxu0 %v12058_v0  ;;  %11151 = vmatprep.subr.mxu1 %v12058_v0 }
0x3345   :  { %11141 = vmatpush3.msra.mxu0 %v13700_v14  ;;  %11142 = vmatprep.mubr.msk.f32.mxu0 %vm12059_vm0, %v12058_v0 }
0x3346   :  { %11152 = vmatpush3.msra.mxu1 %v13657_v8  ;;  %11153 = vmatprep.mubr.msk.f32.mxu1 %vm12059_vm0, %v12058_v0 }
0x3347   :  { %11143 = vmatmul.mubr.msk.f32.vlgmr.msra.gmra.mxu0 %vm87_vm1, %v6325_v15  ;;  %11154 = vmatmul.mubr.msk.f32.vlgmr.msra.gmra.mxu1 %vm87_vm1, %v6325_v15 }
0x3348   :  { %11156 = vmatprep.subr.mxu0 %v12058_v0  ;;  %11167 = vmatprep.subr.mxu1 %v12058_v0 }
0x3349   :  { %11157 = vmatpush3.msra.mxu0 %v13558_v6  ;;  %11168 = vmatpush3.msra.mxu1 %v13596_v63 }
0x334a   :  { %11158 = vmatprep.subr.mxu0 %v12058_v0  ;;  %11169 = vmatprep.subr.mxu1 %v12058_v0 }
0x334b   :  { %11159 = vmatpush3.msra.mxu0 %v13567_v33  ;;  %11170 = vmatpush3.msra.mxu1 %v13605_v53 }
0x334c   :  { %11160 = vmatprep.subr.mxu0 %v12058_v0  ;;  %11171 = vmatprep.subr.mxu1 %v12058_v0 }
0x334d   :  { %11161 = vmatpush3.msra.mxu0 %v13578_v3  ;;  %11172 = vmatpush3.msra.mxu1 %v13615_v49 }
0x334e   :  { %11162 = vmatprep.subr.mxu0 %v12058_v0  ;;  %11173 = vmatprep.subr.mxu1 %v12058_v0 }
0x334f   :  { %11163 = vmatpush3.msra.mxu0 %v13587_v19  ;;  %11174 = vmatpush3.msra.mxu1 %v13624_v24 }
0x3350   :  { %11164 = vmatprep.mubr.msk.f32.mxu0 %vm12059_vm0, %v12058_v0  ;;  %11175 = vmatprep.mubr.msk.f32.mxu1 %vm12059_vm0, %v12058_v0 }
0x3351   :  { %11178 = vmatprep.subr.mxu0 %v12058_v0  ;;  %11189 = vmatprep.subr.mxu1 %v12058_v0 }
0x33fe   :  { %v6394_v2 = vpop.f32.mrf.mxu0  ;;  %v6474_v11 = vpop.f32.mrf.mxu1 }
0x33ff   :  { %v6479_v32 = vrot.slane %v6474_v11, 6  ;;  %v6399_v55 = vrot.slane %v6394_v2, 6 }
0x3400   :  { %v11122_v42 = vpop.f32.mrf.mxu0  ;;  %v11133_v17 = vpop.f32.mrf.mxu1 }
0x3401   :  { %v6401_v7 = vadd.f32 %v6399_v55, %v13725_v34 }
0x3403   :  { %v9699_v9 = vmul.f32 -1.442695, %v6401_v7 }
0x3407   :  { %v6556_v21 = vpop.f32.mrf.mxu0  ;;  %v6633_v16 = vpop.f32.mrf.mxu1 }
0x3408   :  { %v6561_v46 = vrot.slane %v6556_v21, 6  ;;  %v6638_v37 = vrot.slane %v6633_v16, 6 }
0x3409   :  { %v11144_v50 = vpop.f32.mrf.mxu0  ;;  %v11155_v4 = vpop.f32.mrf.mxu1 }
0x340a   :  { %6562 = vrot.lane.b32.xlu1 %v6561_v46, %s12060_s22 }
0x340e   :  { %6480 = vrot.lane.b32.xlu1 %v6479_v32, %s12061_s4 }
0x3412   :  { %6639 = vrot.lane.b32.xlu1 %v6638_v37, %s12062_s3 }
0x347c   :  { %v6563_v38 = vpop.permute.xlu1 %6562 }
0x347d   :  { %v6565_v40 = vadd.f32 %v6563_v38, %v13725_v34 }
0x347f   :  { %11809 = vtanh.f32 %v6565_v40 }
0x3480   :  { %11811 = vpow2.f32 %v9699_v9  ;;  %v6481_v62 = vpop.permute.xlu1 %6480 }
0x3481   :  { %v6483_v47 = vadd.f32 %v6481_v62, %v13725_v34 }
0x3483   :  { %v9701_v52 = vmul.f32 -1.442695, %v6483_v47 }
0x3484   :  { %v6640_v58 = vpop.permute.xlu1 %6639 }
0x3485   :  { %v6642_v43 = vadd.f32 %v6640_v58, %v13725_v34 }
0x3487   :  { %v9704_v30 = vmul.f32 -1.442695, %v6642_v43 }
0x348c   :  { %v11810_v41 = vpop.eup %11809 }
0x348d   :  { %6654 = vrot.lane.b32.xlu0 %v11810_v41, %s12060_s22  ;;  %v11812_v10 = vpop.eup %11811 }
0x348e   :  { %v6405_v23 = vadd.f32 1.0, %v11812_v10 }
0x3490   :  { %11813 = vrcp.f32 %v6405_v23 }
0x3491   :  { %11815 = vpow2.f32 %v9701_v52 }
0x349d   :  { %v11814_v27 = vpop.eup %11813 }
0x349e   :  { %v11816_v44 = vpop.eup %11815 }
0x349f   :  { %v6487_v51 = vadd.f32 1.0, %v11816_v44 }
0x34a1   :  { %11817 = vrcp.f32 %v6487_v51 }
0x34ae   :  { %v11818_v31 = vpop.eup %11817 }
0x34af   :  { %v6652_v22 = vmul.f32 %v11818_v31, %v6650_v29 }
0x34ff   :  { %v6655_v28 = vpop.permute.xlu0 %6654 }
0x3500   :  { %v6657_v26 = vmul.f32 %v11814_v27, %v6655_v28 }
0x3502   :  { %6659 = vrot.lane.b32.xlu0 %v6657_v26, %s12061_s4 }
0x3574   :  { %v6660_v45 = vpop.permute.xlu0 %6659 }
0x3575   :  { %v13791_v18 = vadd.f32 %v6660_v45, %v6652_v22 }
0x3577   :  { %11819 = vtanh.f32 %v13791_v18  ;;  %v6997_v51 = vrot.slane %v13791_v18, 6 }
0x3578   :  { %11821 = vpow2.f32 %v9704_v30 }
0x3584   :  { %v11820_v35 = vpop.eup %11819 }
0x3585   :  { %6665 = vrot.lane.b32.xlu0 %v11820_v35, %s12060_s22  ;;  %v11822_v36 = vpop.eup %11821 }
0x3586   :  { %v6646_v48 = vadd.f32 1.0, %v11822_v36 }
0x3588   :  { %11823 = vrcp.f32 %v6646_v48 }
0x3595   :  { %v11824_v54 = vpop.eup %11823 }
0x35f7   :  { %v6666_v56 = vpop.permute.xlu0 %6665 }
0x35f8   :  { %v6668_v1 = vmul.f32 %v11824_v54, %v6666_v56 }
0x35fa   :  { %v6670_v57 = vrot.slane %v6668_v1, 2 }
0x35fc   :  { %6671 = vrot.lane.b32.xlu1 %v6670_v57, %s12061_s4 }
0x366e   :  { %v6672_v59 = vpop.permute.xlu1 %6671 }
0x366f   :  { %11165 = vmatmul.mubr.msk.f32.vlgmr.msra.gmra.mxu0 %vm87_vm1, %v6672_v59  ;;  %11176 = vmatmul.mubr.msk.f32.vlgmr.msra.gmra.mxu1 %vm87_vm1, %v6672_v59 }
0x3670   :  { %11179 = vmatpush3.msra.mxu0 %v13678_v20  ;;  %11190 = vmatpush3.msra.mxu1 %v13634_v25 }
0x3671   :  { %11180 = vmatprep.subr.mxu0 %v12058_v0  ;;  %11191 = vmatprep.subr.mxu1 %v12058_v0 }
0x3672   :  { %11181 = vmatpush3.msra.mxu0 %v13684_v12  ;;  %11192 = vmatpush3.msra.mxu1 %v13639_v39 }
0x3673   :  { %11182 = vmatprep.subr.mxu0 %v12058_v0  ;;  %11193 = vmatprep.subr.mxu1 %v12058_v0 }
0x3674   :  { %11183 = vmatpush3.msra.mxu0 %v13693_v13  ;;  %11194 = vmatpush3.msra.mxu1 %v13648_v61 }
0x3675   :  { %11184 = vmatprep.subr.mxu0 %v12058_v0  ;;  %11195 = vmatprep.subr.mxu1 %v12058_v0 }
0x3676   :  { %11185 = vmatpush3.msra.mxu0 %v13700_v14  ;;  %11186 = vmatprep.mubr.msk.f32.mxu0 %vm12059_vm0, %v12058_v0 }
0x3677   :  { %11196 = vmatpush3.msra.mxu1 %v13657_v8  ;;  %11197 = vmatprep.mubr.msk.f32.mxu1 %vm12059_vm0, %v12058_v0 }
0x3678   :  { %11187 = vmatmul.mubr.msk.f32.vlgmr.msra.gmra.mxu0 %vm87_vm1, %v6672_v59  ;;  %11198 = vmatmul.mubr.msk.f32.vlgmr.msra.gmra.mxu1 %vm87_vm1, %v6672_v59 }
0x3679   :  { %11200 = vmatprep.subr.mxu0 %v12058_v0  ;;  %11211 = vmatprep.subr.mxu1 %v12058_v0 }
0x367a   :  { %11201 = vmatpush3.msra.mxu0 %v13558_v6  ;;  %11212 = vmatpush3.msra.mxu1 %v13596_v63 }
0x367b   :  { %11202 = vmatprep.subr.mxu0 %v12058_v0  ;;  %11213 = vmatprep.subr.mxu1 %v12058_v0 }
0x367c   :  { %11203 = vmatpush3.msra.mxu0 %v13567_v33  ;;  %11214 = vmatpush3.msra.mxu1 %v13605_v53 }
0x367d   :  { %11204 = vmatprep.subr.mxu0 %v12058_v0  ;;  %11215 = vmatprep.subr.mxu1 %v12058_v0 }
0x367e   :  { %11205 = vmatpush3.msra.mxu0 %v13578_v3  ;;  %11216 = vmatpush3.msra.mxu1 %v13615_v49 }
0x367f   :  { %11206 = vmatprep.subr.mxu0 %v12058_v0  ;;  %11217 = vmatprep.subr.mxu1 %v12058_v0 }
0x3680   :  { %11207 = vmatpush3.msra.mxu0 %v13587_v19  ;;  %11218 = vmatpush3.msra.mxu1 %v13624_v24 }
0x3681   :  { %11208 = vmatprep.mubr.msk.f32.mxu0 %vm12059_vm0, %v12058_v0  ;;  %11219 = vmatprep.mubr.msk.f32.mxu1 %vm12059_vm0, %v12058_v0 }
0x3682   :  { %11222 = vmatprep.subr.mxu0 %v12058_v0  ;;  %11233 = vmatprep.subr.mxu1 %v12058_v0 }
0x372f   :  { %v6741_v60 = vpop.f32.mrf.mxu0  ;;  %v6821_v15 = vpop.f32.mrf.mxu1 }
0x3730   :  { %v6826_v50 = vrot.slane %v6821_v15, 4  ;;  %v6746_v40 = vrot.slane %v6741_v60, 4 }
0x3731   :  { %v11166_v2 = vpop.f32.mrf.mxu0  ;;  %v11177_v11 = vpop.f32.mrf.mxu1 }
0x3732   :  { %v6748_v41 = vadd.f32 %v6746_v40, %v13725_v34 }
0x3734   :  { %v9706_v55 = vmul.f32 -1.442695, %v6748_v41 }
0x3738   :  { %v6903_v42 = vpop.f32.mrf.mxu0  ;;  %v6980_v17 = vpop.f32.mrf.mxu1 }
0x3739   :  { %v6908_v21 = vrot.slane %v6903_v42, 4  ;;  %v6985_v4 = vrot.slane %v6980_v17, 4 }
0x373a   :  { %v11188_v16 = vpop.f32.mrf.mxu0  ;;  %v11199_v46 = vpop.f32.mrf.mxu1 }
0x373b   :  { %6909 = vrot.lane.b32.xlu0 %v6908_v21, %s12060_s22 }
0x373f   :  { %6827 = vrot.lane.b32.xlu0 %v6826_v50, %s12061_s4 }
0x3743   :  { %6986 = vrot.lane.b32.xlu0 %v6985_v4, %s12062_s3 }
0x37ad   :  { %v6910_v32 = vpop.permute.xlu0 %6909 }
0x37ae   :  { %v6912_v37 = vadd.f32 %v6910_v32, %v13725_v34 }
0x37b0   :  { %11825 = vtanh.f32 %v6912_v37 }
0x37b1   :  { %11827 = vpow2.f32 %v9706_v55  ;;  %v6828_v28 = vpop.permute.xlu0 %6827 }
0x37b2   :  { %v6830_v26 = vadd.f32 %v6828_v28, %v13725_v34 }
0x37b4   :  { %v9708_v62 = vmul.f32 -1.442695, %v6830_v26 }
0x37b5   :  { %v6987_v35 = vpop.permute.xlu0 %6986 }
0x37b6   :  { %v6989_v58 = vadd.f32 %v6987_v35, %v13725_v34 }
0x37b8   :  { %v9711_v43 = vmul.f32 -1.442695, %v6989_v58 }
0x37bd   :  { %v11826_v38 = vpop.eup %11825 }
0x37be   :  { %7001 = vrot.lane.b32.xlu1 %v11826_v38, %s12060_s22  ;;  %v11828_v7 = vpop.eup %11827 }
0x37bf   :  { %v6752_v9 = vadd.f32 1.0, %v11828_v7 }
0x37c1   :  { %11829 = vrcp.f32 %v6752_v9 }
0x37c2   :  { %11831 = vpow2.f32 %v9708_v62 }
0x37ce   :  { %v11830_v10 = vpop.eup %11829 }
0x37cf   :  { %v11832_v47 = vpop.eup %11831 }
0x37d0   :  { %v6834_v52 = vadd.f32 1.0, %v11832_v47 }
0x37d2   :  { %11833 = vrcp.f32 %v6834_v52 }
0x37df   :  { %v11834_v44 = vpop.eup %11833 }
0x37e0   :  { %v6999_v31 = vmul.f32 %v11834_v44, %v6997_v51 }
0x3830   :  { %v7002_v23 = vpop.permute.xlu1 %7001 }
0x3831   :  { %v7004_v27 = vmul.f32 %v11830_v10, %v7002_v23 }
0x3833   :  { %7006 = vrot.lane.b32.xlu1 %v7004_v27, %s12061_s4 }
0x38a5   :  { %v7007_v29 = vpop.permute.xlu1 %7006 }
0x38a6   :  { %v13850_v22 = vadd.f32 %v7007_v29, %v6999_v31 }
0x38a8   :  { %11835 = vtanh.f32 %v13850_v22  ;;  %v7344_v52 = vrot.slane %v13850_v22, 6 }
0x38a9   :  { %11837 = vpow2.f32 %v9711_v43 }
0x38b5   :  { %v11836_v45 = vpop.eup %11835 }
0x38b6   :  { %7012 = vrot.lane.b32.xlu1 %v11836_v45, %s12060_s22  ;;  %v11838_v30 = vpop.eup %11837 }
0x38b7   :  { %v6993_v36 = vadd.f32 1.0, %v11838_v30 }
0x38b9   :  { %11839 = vrcp.f32 %v6993_v36 }
0x38c6   :  { %v11840_v48 = vpop.eup %11839 }
0x3928   :  { %v7013_v54 = vpop.permute.xlu1 %7012 }
0x3929   :  { %v7015_v18 = vmul.f32 %v11840_v48, %v7013_v54 }
0x392b   :  { %v7017_v56 = vrot.slane %v7015_v18, 4 }
0x392d   :  { %7018 = vrot.lane.b32.xlu0 %v7017_v56, %s12061_s4 }
0x399f   :  { %v7019_v1 = vpop.permute.xlu0 %7018 }
0x39a0   :  { %11209 = vmatmul.mubr.msk.f32.vlgmr.msra.gmra.mxu0 %vm87_vm1, %v7019_v1  ;;  %11220 = vmatmul.mubr.msk.f32.vlgmr.msra.gmra.mxu1 %vm87_vm1, %v7019_v1 }
0x39a1   :  { %11223 = vmatpush3.msra.mxu0 %v13678_v20  ;;  %11234 = vmatpush3.msra.mxu1 %v13634_v25 }
0x39a2   :  { %11224 = vmatprep.subr.mxu0 %v12058_v0  ;;  %11235 = vmatprep.subr.mxu1 %v12058_v0 }
0x39a3   :  { %11225 = vmatpush3.msra.mxu0 %v13684_v12  ;;  %11236 = vmatpush3.msra.mxu1 %v13639_v39 }
0x39a4   :  { %11226 = vmatprep.subr.mxu0 %v12058_v0  ;;  %11237 = vmatprep.subr.mxu1 %v12058_v0 }
0x39a5   :  { %11227 = vmatpush3.msra.mxu0 %v13693_v13  ;;  %11238 = vmatpush3.msra.mxu1 %v13648_v61 }
0x39a6   :  { %11228 = vmatprep.subr.mxu0 %v12058_v0  ;;  %11239 = vmatprep.subr.mxu1 %v12058_v0 }
0x39a7   :  { %11229 = vmatpush3.msra.mxu0 %v13700_v14  ;;  %11230 = vmatprep.mubr.msk.f32.mxu0 %vm12059_vm0, %v12058_v0 }
0x39a8   :  { %11240 = vmatpush3.msra.mxu1 %v13657_v8  ;;  %11241 = vmatprep.mubr.msk.f32.mxu1 %vm12059_vm0, %v12058_v0 }
0x39a9   :  { %11231 = vmatmul.mubr.msk.f32.vlgmr.msra.gmra.mxu0 %vm87_vm1, %v7019_v1  ;;  %11242 = vmatmul.mubr.msk.f32.vlgmr.msra.gmra.mxu1 %vm87_vm1, %v7019_v1 }
0x39aa   :  { %11244 = vmatprep.subr.mxu0 %v12058_v0  ;;  %11255 = vmatprep.subr.mxu1 %v12058_v0 }
0x39ab   :  { %11245 = vmatpush3.msra.mxu0 %v13558_v6  ;;  %11256 = vmatpush3.msra.mxu1 %v13596_v63 }
0x39ac   :  { %11246 = vmatprep.subr.mxu0 %v12058_v0  ;;  %11257 = vmatprep.subr.mxu1 %v12058_v0 }
0x39ad   :  { %11247 = vmatpush3.msra.mxu0 %v13567_v33  ;;  %11258 = vmatpush3.msra.mxu1 %v13605_v53 }
0x39ae   :  { %11248 = vmatprep.subr.mxu0 %v12058_v0  ;;  %11259 = vmatprep.subr.mxu1 %v12058_v0 }
0x39af   :  { %11249 = vmatpush3.msra.mxu0 %v13578_v3  ;;  %11260 = vmatpush3.msra.mxu1 %v13615_v49 }
0x39b0   :  { %11250 = vmatprep.subr.mxu0 %v12058_v0  ;;  %11261 = vmatprep.subr.mxu1 %v12058_v0 }
0x39b1   :  { %11251 = vmatpush3.msra.mxu0 %v13587_v19  ;;  %11262 = vmatpush3.msra.mxu1 %v13624_v24 }
0x39b2   :  { %11252 = vmatprep.mubr.msk.f32.mxu0 %vm12059_vm0, %v12058_v0  ;;  %11263 = vmatprep.mubr.msk.f32.mxu1 %vm12059_vm0, %v12058_v0 }
0x39b3   :  { %11266 = vmatprep.subr.mxu0 %v12058_v0  ;;  %11277 = vmatprep.subr.mxu1 %v12058_v0 }
0x3a60   :  { %v7088_v57 = vpop.f32.mrf.mxu0  ;;  %v7168_v59 = vpop.f32.mrf.mxu1 }
0x3a61   :  { %v7173_v16 = vrot.slane %v7168_v59, 2  ;;  %v7093_v37 = vrot.slane %v7088_v57, 2 }
0x3a62   :  { %v11210_v60 = vpop.f32.mrf.mxu0  ;;  %v11221_v15 = vpop.f32.mrf.mxu1 }
0x3a63   :  { %v7095_v38 = vadd.f32 %v7093_v37, %v13725_v34 }
0x3a65   :  { %v9713_v40 = vmul.f32 -1.442695, %v7095_v38 }
0x3a69   :  { %v7250_v2 = vpop.f32.mrf.mxu0  ;;  %v7327_v11 = vpop.f32.mrf.mxu1 }
0x3a6a   :  { %v7255_v42 = vrot.slane %v7250_v2, 2  ;;  %v7332_v46 = vrot.slane %v7327_v11, 2 }
0x3a6b   :  { %v11232_v17 = vpop.f32.mrf.mxu0  ;;  %v11243_v21 = vpop.f32.mrf.mxu1 }
0x3a6c   :  { %7256 = vrot.lane.b32.xlu1 %v7255_v42, %s12060_s22 }
0x3a70   :  { %7174 = vrot.lane.b32.xlu1 %v7173_v16, %s12061_s4 }
0x3a74   :  { %7333 = vrot.lane.b32.xlu1 %v7332_v46, %s12062_s3 }
0x3ade   :  { %v7257_v50 = vpop.permute.xlu1 %7256 }
0x3adf   :  { %v7259_v4 = vadd.f32 %v7257_v50, %v13725_v34 }
0x3ae1   :  { %11841 = vtanh.f32 %v7259_v4 }
0x3ae2   :  { %11843 = vpow2.f32 %v9713_v40  ;;  %v7175_v23 = vpop.permute.xlu1 %7174 }
0x3ae3   :  { %v7177_v27 = vadd.f32 %v7175_v23, %v13725_v34 }
0x3ae5   :  { %v9715_v28 = vmul.f32 -1.442695, %v7177_v27 }
0x3ae6   :  { %v7334_v45 = vpop.permute.xlu1 %7333 }
0x3ae7   :  { %v7336_v35 = vadd.f32 %v7334_v45, %v13725_v34 }
0x3ae9   :  { %v9718_v58 = vmul.f32 -1.442695, %v7336_v35 }
0x3aee   :  { %v11842_v32 = vpop.eup %11841 }
0x3aef   :  { %7348 = vrot.lane.b32.xlu0 %v11842_v32, %s12060_s22  ;;  %v11844_v41 = vpop.eup %11843 }
0x3af0   :  { %v7099_v55 = vadd.f32 1.0, %v11844_v41 }
0x3af2   :  { %11845 = vrcp.f32 %v7099_v55 }
0x3af3   :  { %11847 = vpow2.f32 %v9715_v28  ;;  %v13984_v28 = vld [vmem:[%s14422_s8 + $0x70] sm:$0xff] }
0x3aff   :  { %v11846_v7 = vpop.eup %11845 }
0x3b00   :  { %v11848_v26 = vpop.eup %11847 }
0x3b01   :  { %v7181_v62 = vadd.f32 1.0, %v11848_v26  ;;  %v14036_v26 = vld [vmem:[%s14422_s8 + $0x30] sm:$0xff] }
0x3b03   :  { %11849 = vrcp.f32 %v7181_v62  ;;  %v14044_v62 = vld [vmem:[%s14422_s8 + $0x8] sm:$0xff] }
0x3b10   :  { %v11850_v47 = vpop.eup %11849 }
0x3b11   :  { %v7346_v44 = vmul.f32 %v11850_v47, %v7344_v52  ;;  %v14050_v47 = vld [vmem:[%s14422_s8 + $0x28] sm:$0xff]  ;;  %v14058_v52 = vld [vmem:[%s14422_s8] sm:$0xff] }
0x3b61   :  { %v7349_v9 = vpop.permute.xlu0 %7348 }
0x3b62   :  { %v7351_v10 = vmul.f32 %v11846_v7, %v7349_v9 }
0x3b64   :  { %7353 = vrot.lane.b32.xlu0 %v7351_v10, %s12061_s4 }
0x3bd6   :  { %v7354_v51 = vpop.permute.xlu0 %7353 }
0x3bd7   :  { %v13909_v31 = vadd.f32 %v7354_v51, %v7346_v44  ;;  %v14064_v44 = vld [vmem:[%s14422_s8 + $0x20] sm:$0xff] }
0x3bd9   :  { %11851 = vtanh.f32 %v13909_v31  ;;  %v7685_v46 = vrot.slane %v13909_v31, 6 }
0x3bda   :  { %11853 = vpow2.f32 %v9718_v58 }
0x3be6   :  { %v11852_v29 = vpop.eup %11851 }
0x3be7   :  { %7359 = vrot.lane.b32.xlu0 %v11852_v29, %s12060_s22  ;;  %v11854_v43 = vpop.eup %11853 }
0x3be8   :  { %v7340_v30 = vadd.f32 1.0, %v11854_v43 }
0x3bea   :  { %11855 = vrcp.f32 %v7340_v30 }
0x3bf7   :  { %v11856_v36 = vpop.eup %11855 }
0x3c59   :  { %v7360_v48 = vpop.permute.xlu0 %7359 }
0x3c5a   :  { %v7362_v22 = vmul.f32 %v11856_v36, %v7360_v48 }
0x3c5c   :  { %v7364_v54 = vrot.slane %v7362_v22, 6 }
0x3c5e   :  { %7365 = vrot.lane.b32.xlu1 %v7364_v54, %s12061_s4 }
0x3cd0   :  { %v7366_v18 = vpop.permute.xlu1 %7365 }
0x3cd1   :  { %11253 = vmatmul.mubr.msk.f32.vlgmr.msra.gmra.mxu0 %vm87_vm1, %v7366_v18  ;;  %11264 = vmatmul.mubr.msk.f32.vlgmr.msra.gmra.mxu1 %vm87_vm1, %v7366_v18 }
0x3cd2   :  { %11267 = vmatpush3.msra.mxu0 %v13678_v20  ;;  %11278 = vmatpush3.msra.mxu1 %v13634_v25 }
0x3cd3   :  { %11268 = vmatprep.subr.mxu0 %v12058_v0  ;;  %11279 = vmatprep.subr.mxu1 %v12058_v0 }
0x3cd4   :  { %11269 = vmatpush3.msra.mxu0 %v13684_v12  ;;  %11280 = vmatpush3.msra.mxu1 %v13639_v39 }
0x3cd5   :  { %11270 = vmatprep.subr.mxu0 %v12058_v0  ;;  %11281 = vmatprep.subr.mxu1 %v12058_v0 }
0x3cd6   :  { %11271 = vmatpush3.msra.mxu0 %v13693_v13  ;;  %11282 = vmatpush3.msra.mxu1 %v13648_v61 }
0x3cd7   :  { %11272 = vmatprep.subr.mxu0 %v12058_v0  ;;  %11283 = vmatprep.subr.mxu1 %v12058_v0 }
0x3cd8   :  { %11273 = vmatpush3.msra.mxu0 %v13700_v14  ;;  %11274 = vmatprep.mubr.msk.f32.mxu0 %vm12059_vm0, %v12058_v0 }
0x3cd9   :  { %11284 = vmatpush3.msra.mxu1 %v13657_v8  ;;  %11285 = vmatprep.mubr.msk.f32.mxu1 %vm12059_vm0, %v12058_v0 }
0x3cda   :  { %11275 = vmatmul.mubr.msk.f32.vlgmr.msra.gmra.mxu0 %vm87_vm1, %v7366_v18  ;;  %11286 = vmatmul.mubr.msk.f32.vlgmr.msra.gmra.mxu1 %vm87_vm1, %v7366_v18 }
0x3cdb   :  { %11288 = vmatprep.subr.mxu0 %v12058_v0  ;;  %11299 = vmatprep.subr.mxu1 %v12058_v0 }
0x3cdc   :  { %11289 = vmatpush3.msra.mxu0 %v13558_v6  ;;  %11300 = vmatpush3.msra.mxu1 %v13596_v63 }
0x3cdd   :  { %11290 = vmatprep.subr.mxu0 %v12058_v0  ;;  %11301 = vmatprep.subr.mxu1 %v12058_v0 }
0x3cde   :  { %11291 = vmatpush3.msra.mxu0 %v13567_v33  ;;  %11302 = vmatpush3.msra.mxu1 %v13605_v53 }
0x3cdf   :  { %11292 = vmatprep.subr.mxu0 %v12058_v0  ;;  %11303 = vmatprep.subr.mxu1 %v12058_v0 }
0x3ce0   :  { %11293 = vmatpush3.msra.mxu0 %v13578_v3  ;;  %11304 = vmatpush3.msra.mxu1 %v13615_v49 }
0x3ce1   :  { %11294 = vmatprep.subr.mxu0 %v12058_v0  ;;  %11305 = vmatprep.subr.mxu1 %v12058_v0 }
0x3ce2   :  { %11295 = vmatpush3.msra.mxu0 %v13587_v19  ;;  %11306 = vmatpush3.msra.mxu1 %v13624_v24 }
0x3ce3   :  { %11296 = vmatprep.mubr.msk.f32.mxu0 %vm12059_vm0, %v12058_v0  ;;  %11307 = vmatprep.mubr.msk.f32.mxu1 %vm12059_vm0, %v12058_v0 }
0x3ce4   :  { %11310 = vmatprep.subr.mxu0 %v12058_v0  ;;  %11321 = vmatprep.subr.mxu1 %v12058_v0 }
0x3d91   :  { %v7435_v6 = vpop.f32.mrf.mxu0  ;;  %v7512_v33 = vpop.f32.mrf.mxu1 }
0x3d92   :  { %v7439_v34 = vadd.f32 %v7435_v6, %v13720_v5 }
0x3d93   :  { %v11254_v3 = vpop.f32.mrf.mxu0  ;;  %v11265_v63 = vpop.f32.mrf.mxu1 }
0x3d94   :  { %v9720_v56 = vmul.f32 -1.442695, %v7439_v34 }
0x3d9a   :  { %v7593_v53 = vpop.f32.mrf.mxu0  ;;  %v7669_v49 = vpop.f32.mrf.mxu1 }
0x3d9b   :  { %7598 = vrot.lane.b32.xlu0 %v7593_v53, %s12060_s22 }
0x3d9c   :  { %v11276_v19 = vpop.f32.mrf.mxu0  ;;  %v11287_v24 = vpop.f32.mrf.mxu1 }
0x3d9f   :  { %7517 = vrot.lane.b32.xlu0 %v7512_v33, %s12061_s4 }
0x3da3   :  { %7674 = vrot.lane.b32.xlu0 %v7669_v49, %s12062_s3 }
0x3e0d   :  { %v7599_v39 = vpop.permute.xlu0 %7598 }
0x3e0e   :  { %v7601_v61 = vadd.f32 %v7599_v39, %v13720_v5 }
0x3e10   :  { %11857 = vtanh.f32 %v7601_v61 }
0x3e11   :  { %11859 = vpow2.f32 %v9720_v56  ;;  %v7518_v2 = vpop.permute.xlu0 %7517 }
0x3e12   :  { %v7520_v11 = vadd.f32 %v7518_v2, %v13720_v5 }
0x3e14   :  { %v9722_v42 = vmul.f32 -1.442695, %v7520_v11 }
0x3e15   :  { %v7675_v38 = vpop.permute.xlu0 %7674 }
0x3e16   :  { %v7677_v40 = vadd.f32 %v7675_v38, %v13720_v5 }
0x3e18   :  { %v9725_v41 = vmul.f32 -1.442695, %v7677_v40  ;;  %v14093_v40 = vld [vmem:[%s14422_s8 + $0x58] sm:$0xff] }
0x3e1d   :  { %v11858_v8 = vpop.eup %11857 }
0x3e1e   :  { %7689 = vrot.lane.b32.xlu1 %v11858_v8, %s12060_s22  ;;  %v11860_v1 = vpop.eup %11859 }
0x3e1f   :  { %v7443_v57 = vadd.f32 1.0, %v11860_v1 }
0x3e21   :  { %11861 = vrcp.f32 %v7443_v57 }
0x3e22   :  { %11863 = vpow2.f32 %v9722_v42 }
0x3e2e   :  { %v11862_v59 = vpop.eup %11861 }
0x3e2f   :  { %v11864_v17 = vpop.eup %11863 }
0x3e30   :  { %v7524_v21 = vadd.f32 1.0, %v11864_v17 }
0x3e32   :  { %11865 = vrcp.f32 %v7524_v21 }
0x3e3f   :  { %v11866_v16 = vpop.eup %11865 }
0x3e40   :  { %v7687_v50 = vmul.f32 %v11866_v16, %v7685_v46 }
0x3e90   :  { %v7690_v60 = vpop.permute.xlu1 %7689 }
0x3e91   :  { %v7692_v15 = vmul.f32 %v11862_v59, %v7690_v60 }
0x3e93   :  { %7694 = vrot.lane.b32.xlu1 %v7692_v15, %s12061_s4 }
0x3f05   :  { %v7695_v4 = vpop.permute.xlu1 %7694 }
0x3f06   :  { %v13968_v32 = vadd.f32 %v7695_v4, %v7687_v50 }
0x3f08   :  { %11867 = vtanh.f32 %v13968_v32  ;;  %v8031_v59 = vrot.slane %v13968_v32, 6 }
0x3f09   :  { %11869 = vpow2.f32 %v9725_v41  ;;  %v14099_v41 = vld [vmem:[%s14422_s8 + $0x78] sm:$0xff] }
0x3f15   :  { %v11868_v37 = vpop.eup %11867 }
0x3f16   :  { %7700 = vrot.lane.b32.xlu1 %v11868_v37, %s12060_s22  ;;  %v11870_v55 = vpop.eup %11869 }
0x3f17   :  { %v7681_v7 = vadd.f32 1.0, %v11870_v55  ;;  %v14107_v55 = vld [vmem:[%s14422_s8 + $0x50] sm:$0xff] }
0x3f19   :  { %11871 = vrcp.f32 %v7681_v7  ;;  %v14116_v7 = vld [vmem:[%s14422_s8 + $0x48] sm:$0xff] }
0x3f26   :  { %v11872_v9 = vpop.eup %11871 }
0x3f88   :  { %v7701_v10 = vpop.permute.xlu1 %7700 }
0x3f89   :  { %v7703_v23 = vmul.f32 %v11872_v9, %v7701_v10  ;;  %v14125_v9 = vld [vmem:[%s14422_s8 + $0x40] sm:$0xff] }
0x3f8b   :  { %7705 = vrot.lane.b32.xlu0 %v7703_v23, %s12061_s4 }
0x3ffd   :  { %v7706_v27 = vpop.permute.xlu0 %7705 }
0x3ffe   :  { %11297 = vmatmul.mubr.msk.f32.vlgmr.msra.gmra.mxu0 %vm87_vm1, %v7706_v27  ;;  %11308 = vmatmul.mubr.msk.f32.vlgmr.msra.gmra.mxu1 %vm87_vm1, %v7706_v27 }
0x3fff   :  { %11311 = vmatpush3.msra.mxu0 %v13678_v20  ;;  %11322 = vmatpush3.msra.mxu1 %v13634_v25  ;;  %v13993_v25 = vld [vmem:[%s14422_s8 + $0x68] sm:$0xff]  ;;  %v14004_v20 = vld [vmem:[%s14422_s8 + $0x60] sm:$0xff] }
0x4000   :  { %11312 = vmatprep.subr.mxu0 %v12058_v0  ;;  %11323 = vmatprep.subr.mxu1 %v12058_v0 }
0x4001   :  { %11313 = vmatpush3.msra.mxu0 %v13684_v12  ;;  %11324 = vmatpush3.msra.mxu1 %v13984_v28  ;;  %v14016_v12 = vld [vmem:[%s14422_s8 + $0x18] sm:$0xff] }
0x4002   :  { %11314 = vmatprep.subr.mxu0 %v12058_v0  ;;  %11325 = vmatprep.subr.mxu1 %v12058_v0 }
0x4003   :  { %11315 = vmatpush3.msra.mxu0 %v13693_v13  ;;  %11326 = vmatpush3.msra.mxu1 %v13993_v25  ;;  %v14022_v13 = vld [vmem:[%s14422_s8 + $0x38] sm:$0xff] }
0x4004   :  { %11316 = vmatprep.subr.mxu0 %v12058_v0  ;;  %11327 = vmatprep.subr.mxu1 %v12058_v0 }
0x4005   :  { %11317 = vmatpush3.msra.mxu0 %v13700_v14  ;;  %11318 = vmatprep.mubr.msk.f32.mxu0 %vm12059_vm0, %v12058_v0  ;;  %v14030_v14 = vld [vmem:[%s14422_s8 + $0x10] sm:$0xff] }
0x4006   :  { %11328 = vmatpush3.msra.mxu1 %v14004_v20  ;;  %11329 = vmatprep.mubr.msk.f32.mxu1 %vm12059_vm0, %v12058_v0 }
0x4007   :  { %11319 = vmatmul.mubr.msk.f32.vlgmr.msra.gmra.mxu0 %vm87_vm1, %v7706_v27  ;;  %11330 = vmatmul.mubr.msk.f32.vlgmr.msra.gmra.mxu1 %vm87_vm1, %v7706_v27 }
0x4008   :  { %11332 = vmatprep.subr.mxu0 %v12058_v0  ;;  %11343 = vmatprep.subr.mxu1 %v12058_v0 }
0x4009   :  { %11333 = vmatpush3.msra.mxu0 %v14016_v12  ;;  %11344 = vmatpush3.msra.mxu1 %v14022_v13 }
0x400a   :  { %11334 = vmatprep.subr.mxu0 %v12058_v0  ;;  %11345 = vmatprep.subr.mxu1 %v12058_v0 }
0x400b   :  { %11335 = vmatpush3.msra.mxu0 %v14030_v14  ;;  %11346 = vmatpush3.msra.mxu1 %v14036_v26 }
0x400c   :  { %11336 = vmatprep.subr.mxu0 %v12058_v0  ;;  %11347 = vmatprep.subr.mxu1 %v12058_v0 }
0x400d   :  { %11337 = vmatpush3.msra.mxu0 %v14044_v62  ;;  %11348 = vmatpush3.msra.mxu1 %v14050_v47 }
0x400e   :  { %11338 = vmatprep.subr.mxu0 %v12058_v0  ;;  %11349 = vmatprep.subr.mxu1 %v12058_v0 }
0x400f   :  { %11339 = vmatpush3.msra.mxu0 %v14058_v52  ;;  %11350 = vmatpush3.msra.mxu1 %v14064_v44 }
0x4010   :  { %11340 = vmatprep.mubr.msk.f32.mxu0 %vm12059_vm0, %v12058_v0  ;;  %11351 = vmatprep.mubr.msk.f32.mxu1 %vm12059_vm0, %v12058_v0 }
0x4011   :  { %11354 = vmatprep.subr.mxu0 %v12058_v0  ;;  %11365 = vmatprep.subr.mxu1 %v12058_v0 }
0x40be   :  { %v7775_v51 = vpop.f32.mrf.mxu0  ;;  %v7855_v31 = vpop.f32.mrf.mxu1 }
0x40bf   :  { %v7860_v48 = vrot.slane %v7855_v31, 6  ;;  %v7780_v33 = vrot.slane %v7775_v51, 6 }
0x40c0   :  { %v11298_v29 = vpop.f32.mrf.mxu0  ;;  %v11309_v45 = vpop.f32.mrf.mxu1 }
0x40c1   :  { %v7782_v3 = vadd.f32 %v7780_v33, %v13720_v5 }
0x40c3   :  { %v9727_v63 = vmul.f32 -1.442695, %v7782_v3 }
0x40c7   :  { %v7937_v35 = vpop.f32.mrf.mxu0  ;;  %v8014_v58 = vpop.f32.mrf.mxu1 }
0x40c8   :  { %v7942_v43 = vrot.slane %v7937_v35, 6  ;;  %v8019_v22 = vrot.slane %v8014_v58, 6 }
0x40c9   :  { %v11320_v30 = vpop.f32.mrf.mxu0  ;;  %v11331_v36 = vpop.f32.mrf.mxu1 }
0x40ca   :  { %7943 = vrot.lane.b32.xlu1 %v7942_v43, %s12060_s22 }
0x40ce   :  { %7861 = vrot.lane.b32.xlu1 %v7860_v48, %s12061_s4 }
0x40d2   :  { %8020 = vrot.lane.b32.xlu1 %v8019_v22, %s12062_s3 }
0x413c   :  { %v7944_v54 = vpop.permute.xlu1 %7943 }
0x413d   :  { %v7946_v18 = vadd.f32 %v7944_v54, %v13720_v5 }
0x413f   :  { %11873 = vtanh.f32 %v7946_v18 }
0x4140   :  { %11875 = vpow2.f32 %v9727_v63  ;;  %v7862_v61 = vpop.permute.xlu1 %7861 }
0x4141   :  { %v7864_v8 = vadd.f32 %v7862_v61, %v13720_v5 }
0x4143   :  { %v9729_v34 = vmul.f32 -1.442695, %v7864_v8 }
0x4144   :  { %v8021_v42 = vpop.permute.xlu1 %8020 }
0x4145   :  { %v8023_v17 = vadd.f32 %v8021_v42, %v13720_v5  ;;  %v11987_v42 = vld [vmem:[#allocation2] sm:$0xff] }
0x4147   :  { %v9732_v21 = vmul.f32 -1.442695, %v8023_v17  ;;  %v8835_v17 = vld [vmem:[%s14425_s11 + $0x10] sm:$0xff] }
0x414c   :  { %v11874_v6 = vpop.eup %11873 }
0x414d   :  { %8035 = vrot.lane.b32.xlu0 %v11874_v6, %s12060_s22  ;;  %v11876_v53 = vpop.eup %11875 }
0x414e   :  { %v7786_v49 = vadd.f32 1.0, %v11876_v53 }
0x4150   :  { %11877 = vrcp.f32 %v7786_v49 }
0x4151   :  { %11879 = vpow2.f32 %v9729_v34 }
0x415d   :  { %v11878_v19 = vpop.eup %11877 }
0x415e   :  { %v11880_v56 = vpop.eup %11879 }
0x415f   :  { %v7868_v1 = vadd.f32 1.0, %v11880_v56 }
0x4161   :  { %11881 = vrcp.f32 %v7868_v1 }
0x416e   :  { %v11882_v57 = vpop.eup %11881 }
0x416f   :  { %v8033_v60 = vmul.f32 %v11882_v57, %v8031_v59 }
0x41bf   :  { %v8036_v24 = vpop.permute.xlu0 %8035 }
0x41c0   :  { %v8038_v39 = vmul.f32 %v11878_v19, %v8036_v24 }
0x41c2   :  { %8040 = vrot.lane.b32.xlu0 %v8038_v39, %s12061_s4 }
0x4234   :  { %v8041_v15 = vpop.permute.xlu0 %8040 }
0x4235   :  { %v14082_v2 = vadd.f32 %v8041_v15, %v8033_v60 }
0x4237   :  { %11883 = vtanh.f32 %v14082_v2  ;;  %v8378_v53 = vrot.slane %v14082_v2, 6 }
0x4238   :  { %11885 = vpow2.f32 %v9732_v21  ;;  %v8748_v21 = vld [vmem:[%s14424_s10 + $0x20] sm:$0xff] }
0x4244   :  { %v11884_v11 = vpop.eup %11883 }
0x4245   :  { %8046 = vrot.lane.b32.xlu0 %v11884_v11, %s12060_s22  ;;  %v11886_v16 = vpop.eup %11885  ;;  %v8836_v11 = vld [vmem:[%s14425_s11 + $0x18] sm:$0xff] }
0x4246   :  { %v8027_v46 = vadd.f32 1.0, %v11886_v16  ;;  %v8834_v16 = vld [vmem:[%s14425_s11 + $0x8] sm:$0xff] }
0x4248   :  { %11887 = vrcp.f32 %v8027_v46  ;;  %v8747_v46 = vld [vmem:[%s14424_s10 + $0x18] sm:$0xff] }
0x4255   :  { %v11888_v50 = vpop.eup %11887 }
0x42b7   :  { %v8047_v4 = vpop.permute.xlu0 %8046 }
0x42b8   :  { %v8049_v32 = vmul.f32 %v11888_v50, %v8047_v4  ;;  %v8833_v50 = vld [vmem:[%s14425_s11] sm:$0xff]  ;;  %v8746_v4 = vld [vmem:[%s14424_s10 + $0x10] sm:$0xff] }
0x42ba   :  { %v8051_v37 = vrot.slane %v8049_v32, 2  ;;  %v8745_v32 = vld [vmem:[%s14424_s10 + $0x8] sm:$0xff] }
0x42bc   :  { %8052 = vrot.lane.b32.xlu1 %v8051_v37, %s12061_s4  ;;  %v9753_v37 = vld [vmem:[%s14425_s11 + $0x38] sm:$0xff] }
0x432e   :  { %v8053_v38 = vpop.permute.xlu1 %8052 }
0x432f   :  { %11341 = vmatmul.mubr.msk.f32.vlgmr.msra.gmra.mxu0 %vm87_vm1, %v8053_v38  ;;  %11352 = vmatmul.mubr.msk.f32.vlgmr.msra.gmra.mxu1 %vm87_vm1, %v8053_v38 }
0x4330   :  { %11355 = vmatpush3.msra.mxu0 %v14093_v40  ;;  %11366 = vmatpush3.msra.mxu1 %v14099_v41 }
0x4331   :  { %11356 = vmatprep.subr.mxu0 %v12058_v0  ;;  %11367 = vmatprep.subr.mxu1 %v12058_v0 }
0x4332   :  { %11357 = vmatpush3.msra.mxu0 %v14107_v55  ;;  %11368 = vmatpush3.msra.mxu1 %v13984_v28 }
0x4333   :  { %11358 = vmatprep.subr.mxu0 %v12058_v0  ;;  %11369 = vmatprep.subr.mxu1 %v12058_v0 }
0x4334   :  { %11359 = vmatpush3.msra.mxu0 %v14116_v7  ;;  %11370 = vmatpush3.msra.mxu1 %v13993_v25 }
0x4335   :  { %11360 = vmatprep.subr.mxu0 %v12058_v0  ;;  %11371 = vmatprep.subr.mxu1 %v12058_v0 }
0x4336   :  { %11361 = vmatpush3.msra.mxu0 %v14125_v9  ;;  %11362 = vmatprep.mubr.msk.f32.mxu0 %vm12059_vm0, %v12058_v0 }
0x4337   :  { %11372 = vmatpush3.msra.mxu1 %v14004_v20  ;;  %11373 = vmatprep.mubr.msk.f32.mxu1 %vm12059_vm0, %v12058_v0 }
0x4338   :  { %11363 = vmatmul.mubr.msk.f32.vlgmr.msra.gmra.mxu0 %vm87_vm1, %v8053_v38  ;;  %11374 = vmatmul.mubr.msk.f32.vlgmr.msra.gmra.mxu1 %vm87_vm1, %v8053_v38  ;;  %v8744_v38 = vld [vmem:[%s14424_s10] sm:$0xff] }
0x4339   :  { %11376 = vmatprep.subr.mxu0 %v12058_v0  ;;  %11387 = vmatprep.subr.mxu1 %v12058_v0 }
0x433a   :  { %11377 = vmatpush3.msra.mxu0 %v14016_v12  ;;  %11388 = vmatpush3.msra.mxu1 %v14022_v13 }
0x433b   :  { %11378 = vmatprep.subr.mxu0 %v12058_v0  ;;  %11389 = vmatprep.subr.mxu1 %v12058_v0 }
0x433c   :  { %11379 = vmatpush3.msra.mxu0 %v14030_v14  ;;  %11390 = vmatpush3.msra.mxu1 %v14036_v26 }
0x433d   :  { %11380 = vmatprep.subr.mxu0 %v12058_v0  ;;  %11391 = vmatprep.subr.mxu1 %v12058_v0 }
0x433e   :  { %11381 = vmatpush3.msra.mxu0 %v14044_v62  ;;  %11392 = vmatpush3.msra.mxu1 %v14050_v47 }
0x433f   :  { %11382 = vmatprep.subr.mxu0 %v12058_v0  ;;  %11393 = vmatprep.subr.mxu1 %v12058_v0 }
0x4340   :  { %11383 = vmatpush3.msra.mxu0 %v14058_v52  ;;  %11394 = vmatpush3.msra.mxu1 %v14064_v44 }
0x4341   :  { %11384 = vmatprep.mubr.msk.f32.mxu0 %vm12059_vm0, %v12058_v0  ;;  %11395 = vmatprep.mubr.msk.f32.mxu1 %vm12059_vm0, %v12058_v0 }
0x4342   :  { %11398 = vmatprep.subr.mxu0 %v12058_v0  ;;  %11409 = vmatprep.subr.mxu1 %v12058_v0 }
0x43ef   :  { %v8122_v10 = vpop.f32.mrf.mxu0  ;;  %v8202_v23 = vpop.f32.mrf.mxu1 }
0x43f0   :  { %v8207_v52 = vrot.slane %v8202_v23, 4  ;;  %v8127_v45 = vrot.slane %v8122_v10, 4  ;;  %v9750_v10 = vld [vmem:[%s14425_s11 + $0x20] sm:$0xff]  ;;  %v9755_v23 = vld [vmem:[%s14425_s11 + $0x48] sm:$0xff] }
0x43f1   :  { %v11342_v27 = vpop.f32.mrf.mxu0  ;;  %v11353_v12 = vpop.f32.mrf.mxu1 }
0x43f2   :  { %v8129_v35 = vadd.f32 %v8127_v45, %v13720_v5  ;;  %v9754_v27 = vld [vmem:[%s14425_s11 + $0x40] sm:$0xff]  ;;  %v9761_v12 = vld [vmem:[%s14425_s11 + $0x78] sm:$0xff] }
0x43f4   :  { %v9734_v58 = vmul.f32 -1.442695, %v8129_v35 }
0x43f8   :  { %v8284_v13 = vpop.f32.mrf.mxu0  ;;  %v8361_v14 = vpop.f32.mrf.mxu1 }
0x43f9   :  { %v8289_v26 = vrot.slane %v8284_v13, 4  ;;  %v8366_v44 = vrot.slane %v8361_v14, 4  ;;  %v9760_v13 = vld [vmem:[%s14425_s11 + $0x70] sm:$0xff]  ;;  %v9759_v14 = vld [vmem:[%s14425_s11 + $0x68] sm:$0xff] }
0x43fa   :  { %v11364_v62 = vpop.f32.mrf.mxu0  ;;  %v11375_v47 = vpop.f32.mrf.mxu1 }
0x43fb   :  { %8290 = vrot.lane.b32.xlu0 %v8289_v26, %s12060_s22  ;;  %v9758_v26 = vld [vmem:[%s14425_s11 + $0x60] sm:$0xff] }
0x43ff   :  { %8208 = vrot.lane.b32.xlu0 %v8207_v52, %s12061_s4 }
0x4403   :  { %8367 = vrot.lane.b32.xlu0 %v8366_v44, %s12062_s3 }
0x446d   :  { %v8291_v51 = vpop.permute.xlu0 %8290 }
0x446e   :  { %v8293_v31 = vadd.f32 %v8291_v51, %v13720_v5 }
0x4470   :  { %11889 = vtanh.f32 %v8293_v31 }
0x4471   :  { %11891 = vpow2.f32 %v9734_v58  ;;  %v8209_v54 = vpop.permute.xlu0 %8208 }
0x4472   :  { %v8211_v18 = vadd.f32 %v8209_v54, %v13720_v5 }
0x4474   :  { %v9736_v6 = vmul.f32 -1.442695, %v8211_v18 }
0x4475   :  { %v8368_v61 = vpop.permute.xlu0 %8367 }
0x4476   :  { %v8370_v8 = vadd.f32 %v8368_v61, %v13720_v5 }
0x4478   :  { %v9739_v34 = vmul.f32 -1.442695, %v8370_v8 }
0x447d   :  { %v11890_v29 = vpop.eup %11889 }
0x447e   :  { %8382 = vrot.lane.b32.xlu1 %v11890_v29, %s12060_s22  ;;  %v11892_v43 = vpop.eup %11891 }
0x447f   :  { %v8133_v30 = vadd.f32 1.0, %v11892_v43 }
0x4481   :  { %11893 = vrcp.f32 %v8133_v30 }
0x4482   :  { %11895 = vpow2.f32 %v9736_v6 }
0x448e   :  { %v11894_v36 = vpop.eup %11893 }
0x448f   :  { %v11896_v33 = vpop.eup %11895 }
0x4490   :  { %v8215_v3 = vadd.f32 1.0, %v11896_v33 }
0x4492   :  { %11897 = vrcp.f32 %v8215_v3 }
0x449f   :  { %v11898_v63 = vpop.eup %11897 }
0x44a0   :  { %v8380_v49 = vmul.f32 %v11898_v63, %v8378_v53 }
0x44f0   :  { %v8383_v48 = vpop.permute.xlu1 %8382 }
0x44f1   :  { %v8385_v22 = vmul.f32 %v11894_v36, %v8383_v48 }
0x44f3   :  { %8387 = vrot.lane.b32.xlu1 %v8385_v22, %s12061_s4 }
0x4565   :  { %v8388_v19 = vpop.permute.xlu1 %8387 }
0x4566   :  { %v14166_v24 = vadd.f32 %v8388_v19, %v8380_v49  ;;  %v9747_v49 = vld [vmem:[%s14426_s12] ss:$0 sm:$0xff] }
0x4568   :  { %11899 = vtanh.f32 %v14166_v24 }
0x4569   :  { %11901 = vpow2.f32 %v9739_v34 }
0x4575   :  { %v11900_v39 = vpop.eup %11899 }
0x4576   :  { %8393 = vrot.lane.b32.xlu1 %v11900_v39, %s12060_s22  ;;  %v11902_v56 = vpop.eup %11901 }
0x4577   :  { %v8374_v1 = vadd.f32 1.0, %v11902_v56 }
0x4579   :  { %11903 = vrcp.f32 %v8374_v1 }
0x4586   :  { %v11904_v57 = vpop.eup %11903 }
0x45e8   :  { %v8394_v59 = vpop.permute.xlu1 %8393 }
0x45e9   :  { %v8396_v60 = vmul.f32 %v11904_v57, %v8394_v59 }
0x45eb   :  { %v8398_v15 = vrot.slane %v8396_v60, 4 }
0x45ed   :  { %8399 = vrot.lane.b32.xlu0 %v8398_v15, %s12061_s4 }
0x465f   :  { %v8400_v2 = vpop.permute.xlu0 %8399 }
0x4660   :  { %11385 = vmatmul.mubr.msk.f32.vlgmr.msra.gmra.mxu0 %vm87_vm1, %v8400_v2  ;;  %11396 = vmatmul.mubr.msk.f32.vlgmr.msra.gmra.mxu1 %vm87_vm1, %v8400_v2 }
0x4661   :  { %11399 = vmatpush3.msra.mxu0 %v14093_v40  ;;  %11410 = vmatpush3.msra.mxu1 %v14099_v41  ;;  %v9752_v40 = vld [vmem:[%s14425_s11 + $0x30] sm:$0xff]  ;;  %v9757_v41 = vld [vmem:[%s14425_s11 + $0x58] sm:$0xff] }
0x4662   :  { %11400 = vmatprep.subr.mxu0 %v12058_v0  ;;  %11411 = vmatprep.subr.mxu1 %v12058_v0 }
0x4663   :  { %11401 = vmatpush3.msra.mxu0 %v14107_v55  ;;  %11412 = vmatpush3.msra.mxu1 %v13984_v28  ;;  %v8751_v28 = vld [vmem:[%s14424_s10 + $0x38] sm:$0xff]  ;;  %v9751_v55 = vld [vmem:[%s14425_s11 + $0x28] sm:$0xff] }
0x4664   :  { %11402 = vmatprep.subr.mxu0 %v12058_v0  ;;  %11413 = vmatprep.subr.mxu1 %v12058_v0 }
0x4665   :  { %11403 = vmatpush3.msra.mxu0 %v14116_v7  ;;  %11414 = vmatpush3.msra.mxu1 %v13993_v25  ;;  %v8750_v25 = vld [vmem:[%s14424_s10 + $0x30] sm:$0xff]  ;;  %v11988_v7 = vld [vmem:[#allocation2 + $0x8] sm:$0xff] }
0x4666   :  { %11404 = vmatprep.subr.mxu0 %v12058_v0  ;;  %11415 = vmatprep.subr.mxu1 %v12058_v0 }
0x4667   :  { %11405 = vmatpush3.msra.mxu0 %v14125_v9  ;;  %11406 = vmatprep.mubr.msk.f32.mxu0 %vm12059_vm0, %v12058_v0  ;;  %v9756_v9 = vld [vmem:[%s14425_s11 + $0x50] sm:$0xff] }
0x4668   :  { %11416 = vmatpush3.msra.mxu1 %v14004_v20  ;;  %11417 = vmatprep.mubr.msk.f32.mxu1 %vm12059_vm0, %v12058_v0  ;;  %v8749_v20 = vld [vmem:[%s14424_s10 + $0x28] sm:$0xff] }
0x4669   :  { %11407 = vmatmul.mubr.msk.f32.vlgmr.msra.gmra.mxu0 %vm87_vm1, %v8400_v2  ;;  %11418 = vmatmul.mubr.msk.f32.vlgmr.msra.gmra.mxu1 %vm87_vm1, %v8400_v2 }
0x466a   :  { %11420 = vmatprep.subr.mxu0 %v8751_v28  ;;  %11436 = vmatprep.mubr.msk.f32.mxu0 %vm5890_vm10, %v11987_v42 }
0x466b   :  { %11421 = vmatpush3.msra.mxu0 %v8751_v28  ;;  %11439 = vmatprep.subr.mxu1 %v12058_v0 }
0x466c   :  { %11422 = vmatprep.subr.mxu0 %v8750_v25  ;;  %11440 = vmatpush3.msra.mxu1 %v8836_v11 }
0x466d   :  { %11423 = vmatpush3.msra.mxu0 %v8750_v25  ;;  %11441 = vmatprep.subr.mxu1 %v12058_v0 }
0x466e   :  { %11424 = vmatprep.subr.mxu0 %v8749_v20  ;;  %11442 = vmatpush3.msra.mxu1 %v8835_v17 }
0x466f   :  { %11425 = vmatpush3.msra.mxu0 %v8749_v20  ;;  %11443 = vmatprep.subr.mxu1 %v12058_v0 }
0x4670   :  { %11426 = vmatprep.subr.mxu0 %v8748_v21  ;;  %11444 = vmatpush3.msra.mxu1 %v8834_v16 }
0x4671   :  { %11427 = vmatpush3.msra.mxu0 %v8748_v21  ;;  %11445 = vmatprep.subr.mxu1 %v12058_v0 }
0x4672   :  { %11428 = vmatprep.subr.mxu0 %v8747_v46  ;;  %11446 = vmatpush3.msra.mxu1 %v8833_v50 }
0x4673   :  { %11429 = vmatpush3.msra.mxu0 %v8747_v46  ;;  %11447 = vmatprep.mubr.msk.f32.mxu1 %vm12059_vm0, %v12058_v0 }
0x4674   :  { %11430 = vmatprep.subr.mxu0 %v8746_v4  ;;  %11448 = vmatmul.mubr.f32.vlgmr.msra.gmra.mxu1 %v12058_v0 }
0x4675   :  { %11431 = vmatpush3.msra.mxu0 %v8746_v4  ;;  %11450 = vmatprep.subr.mxu1 %v12058_v0 }
0x4676   :  { %11432 = vmatprep.subr.mxu0 %v8745_v32  ;;  %11451 = vmatpush3.msra.mxu1 %v9753_v37 }
0x4677   :  { %11433 = vmatpush3.msra.mxu0 %v8745_v32  ;;  %11452 = vmatprep.subr.mxu1 %v12058_v0 }
0x4678   :  { %11434 = vmatprep.subr.mxu0 %v8744_v38  ;;  %11453 = vmatpush3.msra.mxu1 %v9752_v40 }
0x4679   :  { %11435 = vmatpush3.msra.mxu0 %v8744_v38  ;;  %11454 = vmatprep.subr.mxu1 %v12058_v0 }
0x467a   :  { %11437 = vmatmul.mubr.msk.f32.vlgmr.msra.gmra.mxu0 %vm5890_vm10, %v11988_v7  ;;  %11461 = vmatprep.subr.mxu0 %v12058_v0 }
0x467b   :  { %11462 = vmatpush3.msra.mxu0 %v9757_v41  ;;  %11469 = vmatprep.mubr.msk.f32.mxu0 %vm12059_vm0, %v12058_v0 }
0x467c   :  { %11463 = vmatprep.subr.mxu0 %v12058_v0  ;;  %11455 = vmatpush3.msra.mxu1 %v9751_v55 }
0x467d   :  { %11464 = vmatpush3.msra.mxu0 %v9756_v9  ;;  %11456 = vmatprep.subr.mxu1 %v12058_v0 }
0x467e   :  { %11465 = vmatprep.subr.mxu0 %v12058_v0  ;;  %11457 = vmatpush3.msra.mxu1 %v9750_v10 }
0x467f   :  { %11466 = vmatpush3.msra.mxu0 %v9755_v23  ;;  %11458 = vmatprep.mubr.msk.f32.mxu1 %vm12059_vm0, %v12058_v0 }
0x4680   :  { %11467 = vmatprep.subr.mxu0 %v12058_v0  ;;  %11459 = vmatmul.mubr.f32.vlgmr.msra.gmra.mxu1 %v12058_v0 }
0x4681   :  { %11468 = vmatpush3.msra.mxu0 %v9754_v27  ;;  %11472 = vmatprep.subr.mxu1 %v12058_v0 }
0x4682   :  { %11470 = vmatmul.mubr.f32.vlgmr.msra.gmra.mxu0 %v12058_v0  ;;  %11480 = vmatprep.mubr.msk.f32.mxu1 %vm12059_vm0, %v12058_v0 }
0x4683   :  { %11483 = vmatprep.subr.mxu0 %v12058_v0  ;;  %11491 = vmatprep.mubr.msk.f32.mxu0 %vm12059_vm0, %v12058_v0 }
0x4684   :  { %11473 = vmatpush3.msra.mxu1 %v9761_v12  ;;  %v8725_v12 = vrot.slane %v14166_v24, 6  ;;  %v9192_v24 = vld [vmem:[%s14427_s13 + $0x10] sm:$0xff] }
0x4685   :  { %11474 = vmatprep.subr.mxu1 %v12058_v0 }
0x4686   :  { %11475 = vmatpush3.msra.mxu1 %v9760_v13 }
0x4687   :  { %11476 = vmatprep.subr.mxu1 %v12058_v0 }
0x4688   :  { %11477 = vmatpush3.msra.mxu1 %v9759_v14 }
0x4689   :  { %11478 = vmatprep.subr.mxu1 %v12058_v0 }
0x468a   :  { %11479 = vmatpush3.msra.mxu1 %v9758_v26 }
0x468b   :  { %11481 = vmatmul.mubr.f32.vlgmr.msra.gmra.mxu1 %v12058_v0  ;;  %11494 = vmatprep.subr.mxu1 %v12058_v0 }
0x468c   :  { %11502 = vmatprep.mubr.msk.f32.mxu1 %vm12059_vm0, %v12058_v0 }
0x4720   :  { %v8469_v62 = vpop.f32.mrf.mxu0  ;;  %v8549_v47 = vpop.f32.mrf.mxu1 }
0x4721   :  { %v8554_v53 = vrot.slane %v8549_v47, 2  ;;  %v8474_v57 = vrot.slane %v8469_v62, 2 }
0x4722   :  { %v11386_v52 = vpop.f32.mrf.mxu0  ;;  %v11397_v44 = vpop.f32.mrf.mxu1 }
0x4723   :  { %v8476_v59 = vadd.f32 %v8474_v57, %v13720_v5 }
0x4725   :  { %v9741_v60 = vmul.f32 -1.442695, %v8476_v59 }
0x4729   :  { %v8631_v51 = vpop.f32.mrf.mxu0  ;;  %v8708_v31 = vpop.f32.mrf.mxu1 }
0x472a   :  { %v8636_v29 = vrot.slane %v8631_v51, 2  ;;  %v8713_v16 = vrot.slane %v8708_v31, 2 }
0x472b   :  { %v11408_v45 = vpop.f32.mrf.mxu0  ;;  %v11419_v35 = vpop.f32.mrf.mxu1 }
0x472c   :  { %8637 = vrot.lane.b32.xlu1 %v8636_v29, %s12060_s22  ;;  %v9193_v45 = vld [vmem:[%s14427_s13 + $0x18] sm:$0xff]  ;;  %v9191_v35 = vld [vmem:[%s14427_s13 + $0x8] sm:$0xff] }
0x472d   :  { %11495 = vmatpush3.msra.mxu1 %v9193_v45 }
0x472e   :  { %11496 = vmatprep.subr.mxu1 %v12058_v0 }
0x472f   :  { %11497 = vmatpush3.msra.mxu1 %v9192_v24 }
0x4730   :  { %11498 = vmatprep.subr.mxu1 %v12058_v0 }
0x4731   :  { %11499 = vmatpush3.msra.mxu1 %v9191_v35 }
0x4732   :  { %11500 = vmatprep.subr.mxu1 %v12058_v0 }
0x4734   :  { %v8918_v58 = vpop.f32.mrf.mxu1 }
0x4735   :  { %v8923_v2 = vrot.slane %v8918_v58, 2  ;;  %v9190_v58 = vld [vmem:[%s14427_s13] sm:$0xff] }
0x4736   :  { %v11449_v43 = vpop.f32.mrf.mxu1  ;;  %11501 = vmatpush3.msra.mxu1 %v9190_v58 }
0x4737   :  { %11516 = vmatprep.subr.mxu1 %v12058_v0 }
0x473a   :  { %v11438_v30 = vpop.f32.mrf.mxu0 }
0x473b   :  { %v14310_v19 = vadd.f32 %v11438_v30, %v9747_v49 }
0x473c   :  { %v8825_v36 = vpop.f32.mrf.mxu0 }
0x473d   :  { %v8925_v25 = vadd.f32 %v8923_v2, %v14310_v19  ;;  %v9362_v2 = vld [vmem:[%s14429_s15 + $0x10] sm:$0xff] }
0x473f   :  { %v9762_v11 = vmul.f32 -1.442695, %v8925_v25  ;;  %v9360_v25 = vld [vmem:[%s14429_s15] sm:$0xff] }
0x4740   :  { %v8998_v18 = vpop.f32.mrf.mxu1 }
0x4741   :  { %v9003_v1 = vrot.slane %v8998_v18, 2 }
0x4742   :  { %v9080_v48 = vpop.f32.mrf.mxu0  ;;  %v11460_v6 = vpop.f32.mrf.mxu1 }
0x4743   :  { %v9085_v22 = vrot.slane %v9080_v48, 2 }
0x4744   :  { %v11471_v54 = vpop.f32.mrf.mxu0 }
0x4745   :  { %9086 = vrot.lane.b32.xlu0 %v9085_v22, %s12060_s22 }
0x474b   :  { %v9157_v8 = vpop.f32.mrf.mxu1 }
0x474c   :  { %v9162_v37 = vrot.slane %v9157_v8, 2 }
0x474d   :  { %v11482_v34 = vpop.f32.mrf.mxu1 }
0x479e   :  { %v8638_v33 = vpop.permute.xlu1 %8637 }
0x479f   :  { %v8640_v3 = vadd.f32 %v8638_v33, %v13720_v5 }
0x47a1   :  { %11905 = vtanh.f32 %v8640_v3 }
0x47ae   :  { %v11906_v63 = vpop.eup %11905 }
0x47af   :  { %8729 = vrot.lane.b32.xlu1 %v11906_v63, %s12060_s22 }
0x47b3   :  { %8555 = vrot.lane.b32.xlu1 %v8554_v53, %s12061_s4  ;;  %v9197_v53 = vld [vmem:[%s14427_s13 + $0x38] sm:$0xff] }
0x47b4   :  { %11484 = vmatpush3.msra.mxu0 %v9197_v53 }
0x47b5   :  { %11485 = vmatprep.subr.mxu0 %v12058_v0 }
0x47b7   :  { %v9087_v39 = vpop.permute.xlu0 %9086 }
0x47b8   :  { %v9089_v61 = vadd.f32 %v9087_v39, %v14310_v19 }
0x47ba   :  { %11907 = vtanh.f32 %v9089_v61  ;;  %v9194_v61 = vld [vmem:[%s14427_s13 + $0x20] sm:$0xff] }
0x47bb   :  { %11909 = vpow2.f32 %v9741_v60  ;;  %v9363_v60 = vld [vmem:[%s14429_s15 + $0x18] sm:$0xff] }
0x47c7   :  { %v11908_v56 = vpop.eup %11907 }
0x47c8   :  { %9175 = vrot.lane.b32.xlu0 %v11908_v56, %s12060_s22  ;;  %v11910_v15 = vpop.eup %11909 }
0x47c9   :  { %v8480_v28 = vadd.f32 1.0, %v11910_v15 }
0x47cb   :  { %11911 = vrcp.f32 %v8480_v28  ;;  %v9361_v28 = vld [vmem:[%s14429_s15 + $0x8] sm:$0xff] }
0x47cc   :  { %9004 = vrot.lane.b32.xlu0 %v9003_v1, %s12061_s4  ;;  %11913 = vpow2.f32 %v9762_v11  ;;  %v9367_v11 = vld [vmem:[%s14429_s15 + $0x38] sm:$0xff] }
0x47d8   :  { %v11912_v42 = vpop.eup %11911 }
0x47d9   :  { %v11914_v21 = vpop.eup %11913 }
0x47da   :  { %v8929_v46 = vadd.f32 1.0, %v11914_v21  ;;  %v9364_v21 = vld [vmem:[%s14429_s15 + $0x20] sm:$0xff] }
0x47dc   :  { %11915 = vrcp.f32 %v8929_v46 }
0x47e9   :  { %v11916_v50 = vpop.eup %11915 }
0x4821   :  { %v8730_v20 = vpop.permute.xlu1 %8729 }
0x4822   :  { %v8732_v17 = vmul.f32 %v11912_v42, %v8730_v20  ;;  %v9366_v20 = vld [vmem:[%s14429_s15 + $0x30] sm:$0xff] }
0x4824   :  { %8734 = vrot.lane.b32.xlu1 %v8732_v17, %s12061_s4  ;;  %v9365_v17 = vld [vmem:[%s14429_s15 + $0x28] sm:$0xff]  ;;  %s12009_s15 = scalar_lea.vmem %s9524_s27, 32 }
0x4825   :  { %v8556_v38 = vpop.permute.xlu1 %8555  ;;  %p12010_p5 = scmp.ne.s32.totalorder %s9524_s27, %s12009_s15  ;;  %p12015_p7 = scmp.lt.s32.totalorder %s12009_s15, %s12009_s15 }
0x4826   :  { %v8558_v40 = vadd.f32 %v8556_v38, %v13720_v5 }
0x4827   :  { %p12016_p8 = por %p12015_p7, %p12014_p6 }
0x4828   :  { %8714 = vrot.lane.b32.xlu1 %v8713_v16, %s12062_s3  ;;  %v9743_v41 = vmul.f32 -1.442695, %v8558_v40 }
0x4829   :  { %p12017_p9 = pnand %p12016_p8, %p12010_p5 }
0x482a   :  { %11917 = vpow2.f32 %v9743_v41 }
0x4837   :  { %v11918_v55 = vpop.eup %11917 }
0x4838   :  { %v8562_v9 = vadd.f32 1.0, %v11918_v55 }
0x483a   :  { %v9176_v4 = vpop.permute.xlu0 %9175  ;;  %11919 = vrcp.f32 %v8562_v9 }
0x483b   :  { %v9178_v32 = vmul.f32 %v11916_v50, %v9176_v4 }
0x483d   :  { %9180 = vrot.lane.b32.xlu0 %v9178_v32, %s12061_s4 }
0x483e   :  { %v9005_v7 = vpop.permute.xlu0 %9004 }
0x483f   :  { %v9007_v10 = vadd.f32 %v9005_v7, %v14310_v19 }
0x4841   :  { %9163 = vrot.lane.b32.xlu0 %v9162_v37, %s12062_s3  ;;  %v9763_v23 = vmul.f32 -1.442695, %v9007_v10  ;;  %v9767_v37 = vld [vmem:[%s14428_s14] ss:$0 sm:$0xff] }
0x4843   :  { %11921 = vpow2.f32 %v9763_v23 }
0x4847   :  { %v11920_v27 = vpop.eup %11919 }
0x4848   :  { %v8727_v13 = vmul.f32 %v11920_v27, %v8725_v12 }
0x4850   :  { %v11922_v26 = vpop.eup %11921 }
0x4851   :  { %v9011_v47 = vadd.f32 1.0, %v11922_v26 }
0x4896   :  { %v8735_v14 = vpop.permute.xlu1 %8734 }
0x4897   :  { %v8737_v62 = vadd.f32 %v8735_v14, %v8727_v13 }
0x4899   :  { %11923 = vtanh.f32 %v8737_v62 }
0x489a   :  { %11925 = vrcp.f32 %v9011_v47  ;;  %v8715_v30 = vpop.permute.xlu1 %8714 }
0x489b   :  { %v8717_v36 = vadd.f32 %v8715_v30, %v13720_v5  ;;  %v9196_v5 = vld [vmem:[%s14427_s13 + $0x30] sm:$0xff] }
0x489c   :  { %11486 = vmatpush3.msra.mxu0 %v9196_v5 }
0x489d   :  { %v9746_v48 = vmul.f32 -1.442695, %v8717_v36  ;;  %11487 = vmatprep.subr.mxu0 %v12058_v0 }
0x48a6   :  { %v11924_v52 = vpop.eup %11923 }
0x48a7   :  { %8740 = vrot.lane.b32.xlu1 %v11924_v52, %s12060_s22  ;;  %v11926_v44 = vpop.eup %11925 }
0x48a8   :  { %v9173_v51 = vmul.f32 0.0, %v11926_v44 }
0x48af   :  { %v9181_v31 = vpop.permute.xlu0 %9180 }
0x48b0   :  { %v9183_v29 = vadd.f32 %v9181_v31, %v9173_v51 }
0x48b2   :  { %11927 = vtanh.f32 %v9183_v29 }
0x48b3   :  { %11929 = vpow2.f32 %v9746_v48  ;;  %v9164_v54 = vpop.permute.xlu0 %9163 }
0x48b4   :  { %v9166_v6 = vadd.f32 %v9164_v54, %v14310_v19  ;;  %v9195_v19 = vld [vmem:[%s14427_s13 + $0x28] sm:$0xff] }
0x48b5   :  { %11488 = vmatpush3.msra.mxu0 %v9195_v19 }
0x48b6   :  { %v9764_v33 = vmul.f32 -1.442695, %v9166_v6  ;;  %11489 = vmatprep.subr.mxu0 %v12058_v0 }
0x48b7   :  { %11490 = vmatpush3.msra.mxu0 %v9194_v61 }
0x48b8   :  { %11505 = vmatprep.subr.mxu0 %v12058_v0 }
0x48bf   :  { %v11928_v43 = vpop.eup %11927 }
0x48c0   :  { %9186 = vrot.lane.b32.xlu0 %v11928_v43, %s12060_s22  ;;  %v11930_v22 = vpop.eup %11929 }
0x48c1   :  { %v8721_v18 = vadd.f32 1.0, %v11930_v22 }
0x48c3   :  { %11931 = vrcp.f32 %v8721_v18 }
0x48c4   :  { %11933 = vpow2.f32 %v9764_v33 }
0x48d0   :  { %v11932_v3 = vpop.eup %11931 }
0x48d1   :  { %v11934_v8 = vpop.eup %11933 }
0x48d2   :  { %v9170_v34 = vadd.f32 1.0, %v11934_v8 }
0x48d4   :  { %11935 = vrcp.f32 %v9170_v34 }
0x48e1   :  { %v11936_v56 = vpop.eup %11935 }
0x4919   :  { %v8741_v63 = vpop.permute.xlu1 %8740 }
0x491a   :  { %v8743_v49 = vmul.f32 %v11932_v3, %v8741_v63 }
0x491c   :  { %v9275_v39 = vrot.slane %v8743_v49, 6 }
0x491e   :  { %9276 = vrot.lane.b32.xlu0 %v9275_v39, %s12061_s4 }
0x4932   :  { %v9187_v1 = vpop.permute.xlu0 %9186 }
0x4933   :  { %v9189_v57 = vmul.f32 %v11936_v56, %v9187_v1 }
0x4935   :  { %v9199_v59 = vrot.slane %v9189_v57, 6 }
0x4937   :  { %9200 = vrot.lane.b32.xlu1 %v9199_v59, %s12061_s4 }
0x4990   :  { %v9277_v15 = vpop.permute.xlu0 %9276 }
0x4991   :  { %11503 = vmatmul.mubr.msk.f32.vlgmr.msra.gmra.mxu1 %vm87_vm1, %v9277_v15 }
0x4992   :  { %11517 = vmatpush3.msra.mxu1 %v9363_v60  ;;  %11524 = vmatprep.mubr.msk.f32.mxu1 %vm12059_vm0, %v12058_v0 }
0x4993   :  { %11518 = vmatprep.subr.mxu1 %v12058_v0 }
0x4994   :  { %11519 = vmatpush3.msra.mxu1 %v9362_v2 }
0x4995   :  { %11520 = vmatprep.subr.mxu1 %v12058_v0 }
0x4996   :  { %11521 = vmatpush3.msra.mxu1 %v9361_v28 }
0x4997   :  { %11522 = vmatprep.subr.mxu1 %v12058_v0 }
0x4998   :  { %11523 = vmatpush3.msra.mxu1 %v9360_v25 }
0x4999   :  { %11525 = vmatmul.mubr.msk.f32.vlgmr.msra.gmra.mxu1 %vm87_vm1, %v9277_v15 }
0x49a9   :  { %v9201_v42 = vpop.permute.xlu1 %9200 }
0x49aa   :  { %11492 = vmatmul.mubr.msk.f32.vlgmr.msra.gmra.mxu0 %vm87_vm1, %v9201_v42 }
0x49ab   :  { %11506 = vmatpush3.msra.mxu0 %v9367_v11  ;;  %11513 = vmatprep.mubr.msk.f32.mxu0 %vm12059_vm0, %v12058_v0 }
0x49ac   :  { %11507 = vmatprep.subr.mxu0 %v12058_v0 }
0x49ad   :  { %11508 = vmatpush3.msra.mxu0 %v9366_v20 }
0x49ae   :  { %11509 = vmatprep.subr.mxu0 %v12058_v0 }
0x49af   :  { %11510 = vmatpush3.msra.mxu0 %v9365_v17 }
0x49b0   :  { %11511 = vmatprep.subr.mxu0 %v12058_v0 }
0x49b1   :  { %11512 = vmatpush3.msra.mxu0 %v9364_v21 }
0x49b2   :  { %11514 = vmatmul.mubr.msk.f32.vlgmr.msra.gmra.mxu0 %vm87_vm1, %v9201_v42 }
0x4a51   :  { %v9346_v16 = vpop.f32.mrf.mxu1 }
0x4a53   :  { %v11504_v46 = vpop.f32.mrf.mxu1 }
0x4a59   :  { %v9504_v50 = vpop.f32.mrf.mxu1 }
0x4a5b   :  { %v11526_v4 = vpop.f32.mrf.mxu1 }
0x4a6a   :  { %v9270_v32 = vpop.f32.mrf.mxu0 }
0x4a6b   :  { %v9347_v38 = vadd.f32 %v9346_v16, %v9270_v32 }
0x4a6c   :  { %v11493_v40 = vpop.f32.mrf.mxu0 }
0x4a6d   :  { %v9357_v41 = vadd.f32 %v9767_v37, %v9347_v38 }
0x4a6f   :  { %9359 = vst.msk [vmem:[#allocation6] sm:$0x3] %vm9358_vm11, %v9357_v41 }
0x4a70   :  { %12020 = shalt.err (!%p12017_p9)
}
0x4a71   :  { %9526 = dma.vmem_to_hbm [thread:$0]  %s9524_s27, 32, %s14431_s17, [#allocation5]   ;;  %v9770_v55 = vld [vmem:[%s14430_s16] ss:$0 sm:$0xff] }
0x4a72   :  { %v9434_v0 = vpop.f32.mrf.mxu0  ;;  %s12064_s8 = smov [#allocation7]  }
0x4a73   :  { %s9533_s29 = sshll.u32 %s12064_s8, 4  ;;  %v9505_v7 = vadd.f32 %v9504_v50, %v9434_v0  ;;  %s9534_s29 = int_to_ptr.vmem [resolvable:$true] %s9533_s29 }
0x4a74   :  { %v11515_v9 = vpop.f32.mrf.mxu0  ;;  %s12029_s30 = scalar_lea.vmem %s9534_s29, 32  ;;  %p12034_p11 = scmp.lt.s32.totalorder %s9534_s29, %s9534_s29 }
0x4a75   :  { %v9515_v10 = vadd.f32 %v9770_v55, %v9505_v7  ;;  %p12030_p10 = scmp.ne.s32.totalorder %s9534_s29, %s12029_s30  ;;  %p12035_p12 = scmp.lt.s32.totalorder %s12029_s30, %s12029_s30 }
0x4a77   :  { %9516 = vst.msk [vmem:[#allocation7] sm:$0x3] %vm9358_vm11, %v9515_v10  ;;  %p12036_p13 = por %p12035_p12, %p12034_p11 }
0x4a79   :  { %p12037_p0 = pnand %p12036_p13, %p12030_p10 }
0x4a7b   :  { %12040 = shalt.err (!%p12037_p0)
}
0x4a7c   :  { %9536 = dma.vmem_to_hbm [thread:$0]  %s9534_s29, 32, %s14432_s18, [#allocation8]  }
0x4a7d   :  { %12051 = dma.done.wait [#allocation5], 32  }
0x4a7e   :  { %12052 = vsyncadd [#allocation5], 4294967264 }
0x4a7f   :  { %12053 = dma.done.wait [#allocation8], 32  }
0x4a80   :  { %12054 = vsyncadd [#allocation8], 4294967264 }
0x4a81   :  { %9543 = vsyncpa [#allocation4], 1 }
0x4a82   :  { %9544 = vsyncpa [#allocation5], 1 }
0x4a83   :  { %9545 = vsyncpa [#allocation8], 1 }

</bundles_post_ra>
